<compile_context>
chip_gen: v5e
topology: v5e:2x2
jax: 0.10.0
libtpu: 0.0.40
codegen_flags: <defaults>
</compile_context>

<pallas_src>
import functools

import jax
import jax.numpy as jnp
from jax.experimental import pallas as pl
from jax.experimental.pallas import tpu as pltpu

BN_EPS = 1e-5


# ----------------------------------------------------------------------------
# Pallas kernel 1: single-K-step GEMM + bias (+ ReLU), no accumulator scratch.
# Used for the (group-packed, lane-dense) conv GEMMs and for fc2.
# ----------------------------------------------------------------------------
def _gemm_bias_act_kernel(a_ref, b_ref, bias_ref, o_ref, *, relu):
    y = jnp.dot(a_ref[...], b_ref[...], preferred_element_type=jnp.float32)
    y = y + bias_ref[...]
    if relu:
        y = jnp.maximum(y, 0.0)
    o_ref[...] = y.astype(o_ref.dtype)


def matmul_bias_act(a, b, bias, *, relu, out_dtype=jnp.bfloat16, m_blocks=1):
    """a: [M, K] bf16, b: [K, N] bf16, bias: [1, N] f32 -> [M, N] out_dtype.

    Whole K in one grid step (K <= 576 here). M is split into `m_blocks`
    parallel row blocks so both v7x TensorCores get work where it matters.
    """
    M, K = a.shape
    K2, N = b.shape
    assert K == K2 and bias.shape == (1, N) and M % m_blocks == 0
    tm = M // m_blocks
    return pl.pallas_call(
        functools.partial(_gemm_bias_act_kernel, relu=relu),
        out_shape=jax.ShapeDtypeStruct((M, N), out_dtype),
        grid_spec=pltpu.PrefetchScalarGridSpec(
            num_scalar_prefetch=0,
            grid=(m_blocks,),
            in_specs=[
                pl.BlockSpec((tm, K), lambda i: (i, 0)),
                pl.BlockSpec((K, N), lambda i: (0, 0)),
                pl.BlockSpec((1, N), lambda i: (0, 0)),
            ],
            out_specs=pl.BlockSpec((tm, N), lambda i: (i, 0)),
        ),
        compiler_params=pltpu.CompilerParams(
            dimension_semantics=("parallel",)),
    )(a, b, bias)


# ----------------------------------------------------------------------------
# Pallas kernel 2: fc1 GEMM with resident f32 accumulator, pre-blocked weight.
# B is stored [NB, K, 128] so each 128-wide N block is a contiguous HBM slab.
# ----------------------------------------------------------------------------
def _fc1_kernel(a_ref, b_ref, bias_ref, o_ref, acc_ref):
    @pl.when(pl.program_id(2) == 0)
    def _():
        acc_ref[...] = jnp.zeros_like(acc_ref)

    acc_ref[...] += jnp.dot(a_ref[...], b_ref[0],
                            preferred_element_type=jnp.float32)

    @pl.when(pl.program_id(2) == pl.num_programs(2) - 1)
    def _():
        y = jnp.maximum(acc_ref[...] + bias_ref[...], 0.0)
        o_ref[...] = y.astype(o_ref.dtype)


def fc1_matmul_bias_relu(a, b_blocked, bias, *, k_steps=4,
                         out_dtype=jnp.bfloat16):
    """a: [M, K] bf16; b_blocked: [NB, K, 128] bf16; bias: [1, NB*128] f32.

    Returns ReLU(a @ W + bias) with W the [K, NB*128] logical weight. The j
    (N-block) axis is parallel so v7x's two TensorCores each stream half the
    ~25.7 MB weight contiguously; 4 K steps keep the B double-buffer at 6.4 MB.
    """
    M, K = a.shape
    NB, K2, TN = b_blocked.shape
    assert K == K2 and TN == 128 and K % k_steps == 0
    assert bias.shape == (1, NB * TN)
    tk = K // k_steps
    return pl.pallas_call(
        _fc1_kernel,
        out_shape=jax.ShapeDtypeStruct((M, NB * TN), out_dtype),
        grid_spec=pltpu.PrefetchScalarGridSpec(
            num_scalar_prefetch=0,
            grid=(1, NB, k_steps),
            in_specs=[
                pl.BlockSpec((M, tk), lambda i, j, k: (i, k)),
                pl.BlockSpec((1, tk, TN), lambda i, j, k: (j, k, 0)),
                pl.BlockSpec((1, TN), lambda i, j, k: (0, j)),
            ],
            out_specs=pl.BlockSpec((M, TN), lambda i, j, k: (i, j)),
            scratch_shapes=[pltpu.VMEM((M, TN), jnp.float32)],
        ),
        compiler_params=pltpu.CompilerParams(
            dimension_semantics=("parallel", "parallel", "arbitrary")),
    )(a, b_blocked, bias)


# ----------------------------------------------------------------------------
# Conv 3x3 / stride 2 / pad 1 as im2col + group-packed Pallas GEMM.
# `group` = 128 // Cout consecutive output rows are fused into one GEMM row
# (block-diagonal weight), so the GEMM's N dim is a dense 128 lanes.
# ----------------------------------------------------------------------------
def conv2d_bn_relu_pallas(x, w_gblk, bias_g, *, cout, group, m_blocks=1,
                          kh=3, kw=3, stride=2, pad=1):
    """x: [N, H, W, Cin] bf16 NHWC; w_gblk: [group*kh*kw*Cin, group*cout] bf16
    block-diagonal (BN scale folded); bias_g: [1, group*cout] f32."""
    N, H, W, C = x.shape
    Ho = (H + 2 * pad - kh) // stride + 1
    Wo = (W + 2 * pad - kw) // stride + 1
    assert group * cout == 128
    xp = jnp.pad(x, ((0, 0), (pad, pad), (pad, pad), (0, 0)))
    # TODO(synk): patch extraction stays as XLA glue (bf16, 1-2 MiB per layer);
    # Cin in {16, 32} has no clean lane-aligned in-kernel gather, and the fc1
    # weight stream dominates this network's HBM traffic anyway.
    taps = [xp[:, i:i + stride * Ho:stride, j:j + stride * Wo:stride, :]
            for i in range(kh) for j in range(kw)]
    m = N * Ho * Wo
    a = jnp.concatenate(taps, axis=-1).reshape(m // group, group * kh * kw * C)
    out = matmul_bias_act(a, w_gblk, bias_g, relu=True,
                          out_dtype=jnp.bfloat16, m_blocks=m_blocks)
    # (m//group, group*cout) row-major is bit-identical to (N, Ho, Wo, cout).
    return out.reshape(N, Ho, Wo, cout)


# ----------------------------------------------------------------------------
# Parameter init (deterministic, synthetic); eval-mode BN folded at init.
# ----------------------------------------------------------------------------
def _fold_bn_conv(keys, kh, kw, cin, cout):
    kw_, kg, kb, km, kv = (next(keys) for _ in range(5))
    fan_in = kh * kw * cin
    w = jax.random.normal(kw_, (kh, kw, cin, cout), jnp.float32) * (2.0 / fan_in) ** 0.5
    gamma = 1.0 + 0.1 * jax.random.normal(kg, (cout,), jnp.float32)
    beta = 0.1 * jax.random.normal(kb, (cout,), jnp.float32)
    rmean = 0.1 * jax.random.normal(km, (cout,), jnp.float32)
    rvar = 0.5 + jax.random.uniform(kv, (cout,), jnp.float32)
    scale = gamma / jnp.sqrt(rvar + BN_EPS)
    bias = beta - rmean * scale
    return w * scale[None, None, None, :], bias          # f32


def _init_conv1(keys):
    w, b = _fold_bn_conv(keys, 3, 3, 3, 16)
    return {"w": w.astype(jnp.bfloat16), "b": b}          # HWIO, (16,) f32


def _init_conv_grouped(keys, cin, cout):
    group = 128 // cout
    w, b = _fold_bn_conv(keys, 3, 3, cin, cout)
    w_mat = w.reshape(3 * 3 * cin, cout)                  # (kh,kw,cin)-ordered rows
    w_gblk = jnp.kron(jnp.eye(group, dtype=jnp.float32), w_mat).astype(jnp.bfloat16)
    bias_g = jnp.tile(b.reshape(1, cout), (1, group))     # f32, (1, 128)
    return {"w": w_gblk, "b": bias_g}


def _init_fc1(keys, din, dout):
    kw_, kb = next(keys), next(keys)
    bound = float(din) ** -0.5
    w = jax.random.uniform(kw_, (din, dout), jnp.float32, -bound, bound)
    b = jax.random.uniform(kb, (1, dout), jnp.float32, -bound, bound)
    nb = dout // 128
    # Pre-block: [nb, K, 128], one contiguous slab per 128-wide N block.
    w_blk = w.reshape(din, nb, 128).transpose(1, 0, 2).astype(jnp.bfloat16)
    return {"w": w_blk, "b": b}


def _init_fc2(keys, din, dout):
    kw_, kb = next(keys), next(keys)
    bound = float(din) ** -0.5
    w = jax.random.uniform(kw_, (din, dout), jnp.float32, -bound, bound)
    b = jax.random.uniform(kb, (1, dout), jnp.float32, -bound, bound)
    return {"w": w.astype(jnp.bfloat16), "b": b}


def init_params(key):
    keys = iter(jax.random.split(key, 32))
    return {
        "conv1": _init_conv1(keys),
        "conv2": _init_conv_grouped(keys, 16, 32),
        "conv3": _init_conv_grouped(keys, 32, 64),
        # fc1 weight is generated directly in NHWC-flatten order (synthetic
        # weights: semantics-preserving relabelling of PyTorch's (c,h,w) order).
        "fc1": _init_fc1(keys, 64 * 28 * 28, 256),
        "fc2": _init_fc2(keys, 256, 3),
    }


# ----------------------------------------------------------------------------
# Forward pass (inference semantics: eval-mode BN, dropout = identity)
# ----------------------------------------------------------------------------
def forward(params, x_nchw):
    # conv1 (Cin=3): XLA's native conv path (BN scale folded into the weight,
    # bias+ReLU fused by XLA). With 3 input channels the im2col gather is
    # hopelessly lane-starved in Pallas and the GEMM itself is ~22 MFLOP, so
    # this layer is glue-bound — per perf review, lax.conv is the cheap path.
    x = jax.lax.conv_general_dilated(
        x_nchw.astype(jnp.bfloat16), params["conv1"]["w"],
        window_strides=(2, 2), padding=((1, 1), (1, 1)),
        dimension_numbers=("NCHW", "HWIO", "NHWC"),
        preferred_element_type=jnp.float32)
    x = jnp.maximum(x + params["conv1"]["b"], 0.0).astype(jnp.bfloat16)  # [2,112,112,16]

    x = conv2d_bn_relu_pallas(x, params["conv2"]["w"], params["conv2"]["b"],
                              cout=32, group=4, m_blocks=2)              # [2,56,56,32]
    x = conv2d_bn_relu_pallas(x, params["conv3"]["w"], params["conv3"]["b"],
                              cout=64, group=2, m_blocks=1)              # [2,28,28,64]

    n = x.shape[0]
    feat = x.reshape(n, 28 * 28 * 64)                                    # [2, 50176]
    h = fc1_matmul_bias_relu(feat, params["fc1"]["w"], params["fc1"]["b"])  # [2, 256]
    # TODO(synk): nn.Dropout(0.5) is identity at inference; no kernel emitted.
    logits = matmul_bias_act(h, params["fc2"]["w"], params["fc2"]["b"],
                             relu=False, out_dtype=jnp.float32, m_blocks=1)  # [2, 3]
    return logits


if __name__ == "__main__":
    key = jax.random.PRNGKey(0)
    kp, kx = jax.random.split(key)
    params = init_params(kp)
    # fc1 expects 64*28*28 features => 224x224 input (3 stride-2 convs).
    x = jax.random.normal(kx, (2, 3, 224, 224), jnp.float32)             # NCHW, like PyTorch
    fwd = jax.jit(forward)
    out = jax.block_until_ready(fwd(params, x))
    assert out.shape == (2, 3) and out.dtype == jnp.float32
    print("KERNEL_OK")
</pallas_src>

<mosaic_0001>
module attributes {stable_mosaic.version = 11 : i64} {
  func.func @_gemm_bias_act_kernel(%arg0: i32, %arg1: memref<784x576xbf16, #tpu.memory_space<vmem>>, %arg2: memref<576x128xbf16, #tpu.memory_space<vmem>>, %arg3: memref<1x128xf32, #tpu.memory_space<vmem>>, %arg4: memref<784x128xbf16, #tpu.memory_space<vmem>>) attributes {dimension_semantics = [#tpu.dimension_semantics<parallel>], iteration_bounds = array<i64: 2>, scalar_prefetch = 0 : i64, scratch_operands = 0 : i64, tpu.core_type = #tpu.core_type<tc>, window_params = [{transform_indices = @transform_0, window_bounds = array<i64: 784, 576>}, {pipeline_mode = #tpu.pipeline_mode<synchronous>, transform_indices = @transform_1, window_bounds = array<i64: 576, 128>}, {pipeline_mode = #tpu.pipeline_mode<synchronous>, transform_indices = @transform_2, window_bounds = array<i64: 1, 128>}, {transform_indices = @transform_3, window_bounds = array<i64: 784, 128>}]} {
    %c0 = arith.constant 0 : index
    %c0_0 = arith.constant 0 : index
    %0 = vector.load %arg1[%c0, %c0_0] : memref<784x576xbf16, #tpu.memory_space<vmem>>, vector<784x576xbf16>
    %c0_1 = arith.constant 0 : index
    %c0_2 = arith.constant 0 : index
    %1 = vector.load %arg2[%c0_1, %c0_2] : memref<576x128xbf16, #tpu.memory_space<vmem>>, vector<576x128xbf16>
    %cst = arith.constant dense<0.000000e+00> : vector<784x128xf32>
    %2 = tpu.matmul %0, %1, %cst {dimension_numbers = #tpu.dot_dimension_numbers<[1], [0], [0], [1], [0, 0, 1, 1], [], []>} : vector<784x576xbf16>, vector<576x128xbf16>, vector<784x128xf32> -> vector<784x128xf32>
    %c0_3 = arith.constant 0 : index
    %c0_4 = arith.constant 0 : index
    %3 = vector.load %arg3[%c0_3, %c0_4] : memref<1x128xf32, #tpu.memory_space<vmem>>, vector<1x128xf32>
    %4 = vector.broadcast %3 : vector<1x128xf32> to vector<784x128xf32>
    %5 = arith.addf %2, %4 : vector<784x128xf32>
    %cst_5 = arith.constant 0.000000e+00 : f32
    %6 = vector.broadcast %cst_5 : f32 to vector<784x128xf32>
    %7 = arith.maximumf %5, %6 : vector<784x128xf32>
    %8 = arith.truncf %7 : vector<784x128xf32> to vector<784x128xbf16>
    %c0_6 = arith.constant 0 : index
    %c0_7 = arith.constant 0 : index
    %9 = vector.load %arg4[%c0_6, %c0_7] : memref<784x128xbf16, #tpu.memory_space<vmem>>, vector<784x128xbf16>
    tpu.vector_store %arg4[%c0_6, %c0_7], %8 {strides = array<i32>} : memref<784x128xbf16, #tpu.memory_space<vmem>>, vector<784x128xbf16>,
    return
  }
  func.func @transform_0(%arg0: i32) -> (i32, i32) {
    %c0_i32 = arith.constant 0 : i32
    %c0_i32_0 = arith.constant 0 : i32
    return %arg0, %c0_i32 : i32, i32
  }
  func.func @transform_1(%arg0: i32) -> (i32, i32) {
    %c0_i32 = arith.constant 0 : i32
    %c0_i32_0 = arith.constant 0 : i32
    %c0_i32_1 = arith.constant 0 : i32
    return %c0_i32, %c0_i32_0 : i32, i32
  }
  func.func @transform_2(%arg0: i32) -> (i32, i32) {
    %c0_i32 = arith.constant 0 : i32
    %c0_i32_0 = arith.constant 0 : i32
    %c0_i32_1 = arith.constant 0 : i32
    return %c0_i32, %c0_i32_0 : i32, i32
  }
  func.func @transform_3(%arg0: i32) -> (i32, i32) {
    %c0_i32 = arith.constant 0 : i32
    %c0_i32_0 = arith.constant 0 : i32
    return %arg0, %c0_i32 : i32, i32
  }
}

module attributes {stable_mosaic.version = 11 : i64} {
  func.func @_gemm_bias_act_kernel(%arg0: i32, %arg1: memref<784x576xbf16, #tpu.memory_space<vmem>>, %arg2: memref<576x128xbf16, #tpu.memory_space<vmem>>, %arg3: memref<1x128xf32, #tpu.memory_space<vmem>>, %arg4: memref<784x128xbf16, #tpu.memory_space<vmem>>) attributes {dimension_semantics = [#tpu.dimension_semantics<parallel>], iteration_bounds = array<i64: 1>, scalar_prefetch = 0 : i64, scratch_operands = 0 : i64, tpu.core_type = #tpu.core_type<tc>, window_params = [{transform_indices = @transform_0, window_bounds = array<i64: 784, 576>}, {pipeline_mode = #tpu.pipeline_mode<synchronous>, transform_indices = @transform_1, window_bounds = array<i64: 576, 128>}, {pipeline_mode = #tpu.pipeline_mode<synchronous>, transform_indices = @transform_2, window_bounds = array<i64: 1, 128>}, {transform_indices = @transform_3, window_bounds = array<i64: 784, 128>}]} {
    %c0 = arith.constant 0 : index
    %c0_0 = arith.constant 0 : index
    %0 = vector.load %arg1[%c0, %c0_0] : memref<784x576xbf16, #tpu.memory_space<vmem>>, vector<784x576xbf16>
    %c0_1 = arith.constant 0 : index
    %c0_2 = arith.constant 0 : index
    %1 = vector.load %arg2[%c0_1, %c0_2] : memref<576x128xbf16, #tpu.memory_space<vmem>>, vector<576x128xbf16>
    %cst = arith.constant dense<0.000000e+00> : vector<784x128xf32>
    %2 = tpu.matmul %0, %1, %cst {dimension_numbers = #tpu.dot_dimension_numbers<[1], [0], [0], [1], [0, 0, 1, 1], [], []>} : vector<784x576xbf16>, vector<576x128xbf16>, vector<784x128xf32> -> vector<784x128xf32>
    %c0_3 = arith.constant 0 : index
    %c0_4 = arith.constant 0 : index
    %3 = vector.load %arg3[%c0_3, %c0_4] : memref<1x128xf32, #tpu.memory_space<vmem>>, vector<1x128xf32>
    %4 = vector.broadcast %3 : vector<1x128xf32> to vector<784x128xf32>
    %5 = arith.addf %2, %4 : vector<784x128xf32>
    %cst_5 = arith.constant 0.000000e+00 : f32
    %6 = vector.broadcast %cst_5 : f32 to vector<784x128xf32>
    %7 = arith.maximumf %5, %6 : vector<784x128xf32>
    %8 = arith.truncf %7 : vector<784x128xf32> to vector<784x128xbf16>
    %c0_6 = arith.constant 0 : index
    %c0_7 = arith.constant 0 : index
    %9 = vector.load %arg4[%c0_6, %c0_7] : memref<784x128xbf16, #tpu.memory_space<vmem>>, vector<784x128xbf16>
    tpu.vector_store %arg4[%c0_6, %c0_7], %8 {strides = array<i32>} : memref<784x128xbf16, #tpu.memory_space<vmem>>, vector<784x128xbf16>,
    return
  }
  func.func @transform_0(%arg0: i32) -> (i32, i32) {
    %c0_i32 = arith.constant 0 : i32
    %c0_i32_0 = arith.constant 0 : i32
    return %arg0, %c0_i32 : i32, i32
  }
  func.func @transform_1(%arg0: i32) -> (i32, i32) {
    %c0_i32 = arith.constant 0 : i32
    %c0_i32_0 = arith.constant 0 : i32
    %c0_i32_1 = arith.constant 0 : i32
    return %c0_i32, %c0_i32_0 : i32, i32
  }
  func.func @transform_2(%arg0: i32) -> (i32, i32) {
    %c0_i32 = arith.constant 0 : i32
    %c0_i32_0 = arith.constant 0 : i32
    %c0_i32_1 = arith.constant 0 : i32
    return %c0_i32, %c0_i32_0 : i32, i32
  }
  func.func @transform_3(%arg0: i32) -> (i32, i32) {
    %c0_i32 = arith.constant 0 : i32
    %c0_i32_0 = arith.constant 0 : i32
    return %arg0, %c0_i32 : i32, i32
  }
}

module attributes {stable_mosaic.version = 11 : i64} {
  func.func @_gemm_bias_act_kernel(%arg0: i32, %arg1: memref<2x256xbf16, #tpu.memory_space<vmem>>, %arg2: memref<256x3xbf16, #tpu.memory_space<vmem>>, %arg3: memref<1x3xf32, #tpu.memory_space<vmem>>, %arg4: memref<2x3xf32, #tpu.memory_space<vmem>>) attributes {dimension_semantics = [#tpu.dimension_semantics<parallel>], iteration_bounds = array<i64: 1>, scalar_prefetch = 0 : i64, scratch_operands = 0 : i64, tpu.core_type = #tpu.core_type<tc>, window_params = [{transform_indices = @transform_0, window_bounds = array<i64: 2, 256>}, {pipeline_mode = #tpu.pipeline_mode<synchronous>, transform_indices = @transform_1, window_bounds = array<i64: 256, 3>}, {pipeline_mode = #tpu.pipeline_mode<synchronous>, transform_indices = @transform_2, window_bounds = array<i64: 1, 3>}, {transform_indices = @transform_3, window_bounds = array<i64: 2, 3>}]} {
    %c0 = arith.constant 0 : index
    %c0_0 = arith.constant 0 : index
    %0 = vector.load %arg1[%c0, %c0_0] : memref<2x256xbf16, #tpu.memory_space<vmem>>, vector<2x256xbf16>
    %c0_1 = arith.constant 0 : index
    %c0_2 = arith.constant 0 : index
    %1 = vector.load %arg2[%c0_1, %c0_2] : memref<256x3xbf16, #tpu.memory_space<vmem>>, vector<256x3xbf16>
    %cst = arith.constant dense<0.000000e+00> : vector<2x3xf32>
    %2 = tpu.matmul %0, %1, %cst {dimension_numbers = #tpu.dot_dimension_numbers<[1], [0], [0], [1], [0, 0, 1, 1], [], []>} : vector<2x256xbf16>, vector<256x3xbf16>, vector<2x3xf32> -> vector<2x3xf32>
    %c0_3 = arith.constant 0 : index
    %c0_4 = arith.constant 0 : index
    %3 = vector.load %arg3[%c0_3, %c0_4] : memref<1x3xf32, #tpu.memory_space<vmem>>, vector<1x3xf32>
    %4 = vector.broadcast %3 : vector<1x3xf32> to vector<2x3xf32>
    %5 = arith.addf %2, %4 : vector<2x3xf32>
    %c0_5 = arith.constant 0 : index
    %c0_6 = arith.constant 0 : index
    %6 = vector.load %arg4[%c0_5, %c0_6] : memref<2x3xf32, #tpu.memory_space<vmem>>, vector<2x3xf32>
    tpu.vector_store %arg4[%c0_5, %c0_6], %5 {strides = array<i32>} : memref<2x3xf32, #tpu.memory_space<vmem>>, vector<2x3xf32>,
    return
  }
  func.func @transform_0(%arg0: i32) -> (i32, i32) {
    %c0_i32 = arith.constant 0 : i32
    %c0_i32_0 = arith.constant 0 : i32
    return %arg0, %c0_i32 : i32, i32
  }
  func.func @transform_1(%arg0: i32) -> (i32, i32) {
    %c0_i32 = arith.constant 0 : i32
    %c0_i32_0 = arith.constant 0 : i32
    %c0_i32_1 = arith.constant 0 : i32
    return %c0_i32, %c0_i32_0 : i32, i32
  }
  func.func @transform_2(%arg0: i32) -> (i32, i32) {
    %c0_i32 = arith.constant 0 : i32
    %c0_i32_0 = arith.constant 0 : i32
    %c0_i32_1 = arith.constant 0 : i32
    return %c0_i32, %c0_i32_0 : i32, i32
  }
  func.func @transform_3(%arg0: i32) -> (i32, i32) {
    %c0_i32 = arith.constant 0 : i32
    %c0_i32_0 = arith.constant 0 : i32
    return %arg0, %c0_i32 : i32, i32
  }
}

module attributes {stable_mosaic.version = 11 : i64} {
  func.func @_fc1_kernel(%arg0: i32, %arg1: i32, %arg2: i32, %arg3: memref<2x12544xbf16, #tpu.memory_space<vmem>>, %arg4: memref<1x12544x128xbf16, #tpu.memory_space<vmem>>, %arg5: memref<1x128xf32, #tpu.memory_space<vmem>>, %arg6: memref<2x128xbf16, #tpu.memory_space<vmem>>, %arg7: memref<2x128xf32, #tpu.memory_space<vmem>>) attributes {dimension_semantics = [#tpu.dimension_semantics<parallel>, #tpu.dimension_semantics<parallel>, #tpu.dimension_semantics<arbitrary>], iteration_bounds = array<i64: 1, 2, 4>, scalar_prefetch = 0 : i64, scratch_operands = 1 : i64, tpu.core_type = #tpu.core_type<tc>, window_params = [{transform_indices = @transform_0, window_bounds = array<i64: 2, 12544>}, {transform_indices = @transform_1, window_bounds = array<i64: 1, 12544, 128>}, {transform_indices = @transform_2, window_bounds = array<i64: 1, 128>}, {transform_indices = @transform_3, window_bounds = array<i64: 2, 128>}]} {
    %c0_i32 = arith.constant 0 : i32
    %0 = arith.cmpi eq, %arg2, %c0_i32 : i32
    %1 = arith.extui %0 : i1 to i32
    %c0_i32_0 = arith.constant 0 : i32
    %2 = arith.cmpi ne, %1, %c0_i32_0 : i32
    scf.if %2 {
      %cst_10 = arith.constant 0.000000e+00 : f32
      %13 = vector.broadcast %cst_10 : f32 to vector<2x128xf32>
      %c0_11 = arith.constant 0 : index
      %c0_12 = arith.constant 0 : index
      %14 = vector.load %arg7[%c0_11, %c0_12] : memref<2x128xf32, #tpu.memory_space<vmem>>, vector<2x128xf32>
      tpu.vector_store %arg7[%c0_11, %c0_12], %13 {strides = array<i32>} : memref<2x128xf32, #tpu.memory_space<vmem>>, vector<2x128xf32>,
    } else {
    }
    %c0 = arith.constant 0 : index
    %c0_1 = arith.constant 0 : index
    %3 = vector.load %arg7[%c0, %c0_1] : memref<2x128xf32, #tpu.memory_space<vmem>>, vector<2x128xf32>
    %c0_2 = arith.constant 0 : index
    %c0_3 = arith.constant 0 : index
    %4 = vector.load %arg3[%c0_2, %c0_3] : memref<2x12544xbf16, #tpu.memory_space<vmem>>, vector<2x12544xbf16>
    %c0_4 = arith.constant 0 : index
    %c0_5 = arith.constant 0 : index
    %c0_6 = arith.constant 0 : index
    %5 = vector.load %arg4[%c0_4, %c0_5, %c0_6] : memref<1x12544x128xbf16, #tpu.memory_space<vmem>>, vector<1x12544x128xbf16>
    %6 = vector.shape_cast %5 : vector<1x12544x128xbf16> to vector<12544x128xbf16>
    %cst = arith.constant dense<0.000000e+00> : vector<2x128xf32>
    %7 = tpu.matmul %4, %6, %cst {dimension_numbers = #tpu.dot_dimension_numbers<[1], [0], [0], [1], [0, 0, 1, 1], [], []>} : vector<2x12544xbf16>, vector<12544x128xbf16>, vector<2x128xf32> -> vector<2x128xf32>
    %8 = arith.addf %3, %7 : vector<2x128xf32>
    %c0_7 = arith.constant 0 : index
    %c0_8 = arith.constant 0 : index
    %9 = vector.load %arg7[%c0_7, %c0_8] : memref<2x128xf32, #tpu.memory_space<vmem>>, vector<2x128xf32>
    tpu.vector_store %arg7[%c0_7, %c0_8], %8 {strides = array<i32>} : memref<2x128xf32, #tpu.memory_space<vmem>>, vector<2x128xf32>,
    %c3_i32 = arith.constant 3 : i32
    %10 = arith.cmpi eq, %arg2, %c3_i32 : i32
    %11 = arith.extui %10 : i1 to i32
    %c0_i32_9 = arith.constant 0 : i32
    %12 = arith.cmpi ne, %11, %c0_i32_9 : i32
    scf.if %12 {
      %c0_10 = arith.constant 0 : index
      %c0_11 = arith.constant 0 : index
      %13 = vector.load %arg7[%c0_10, %c0_11] : memref<2x128xf32, #tpu.memory_space<vmem>>, vector<2x128xf32>
      %c0_12 = arith.constant 0 : index
      %c0_13 = arith.constant 0 : index
      %14 = vector.load %arg5[%c0_12, %c0_13] : memref<1x128xf32, #tpu.memory_space<vmem>>, vector<1x128xf32>
      %15 = vector.broadcast %14 : vector<1x128xf32> to vector<2x128xf32>
      %16 = arith.addf %13, %15 : vector<2x128xf32>
      %cst_14 = arith.constant 0.000000e+00 : f32
      %17 = vector.broadcast %cst_14 : f32 to vector<2x128xf32>
      %18 = arith.maximumf %16, %17 : vector<2x128xf32>
      %19 = arith.truncf %18 : vector<2x128xf32> to vector<2x128xbf16>
      %c0_15 = arith.constant 0 : index
      %c0_16 = arith.constant 0 : index
      %20 = vector.load %arg6[%c0_15, %c0_16] : memref<2x128xbf16, #tpu.memory_space<vmem>>, vector<2x128xbf16>
      tpu.vector_store %arg6[%c0_15, %c0_16], %19 {strides = array<i32>} : memref<2x128xbf16, #tpu.memory_space<vmem>>, vector<2x128xbf16>,
    } else {
    }
    return
  }
  func.func @transform_0(%arg0: i32, %arg1: i32, %arg2: i32) -> (i32, i32) {
    %c0_i32 = arith.constant 0 : i32
    return %arg0, %arg2 : i32, i32
  }
  func.func @transform_1(%arg0: i32, %arg1: i32, %arg2: i32) -> (i32, i32, i32) {
    %c0_i32 = arith.constant 0 : i32
    %c0_i32_0 = arith.constant 0 : i32
    return %arg1, %arg2, %c0_i32 : i32, i32, i32
  }
  func.func @transform_2(%arg0: i32, %arg1: i32, %arg2: i32) -> (i32, i32) {
    %c0_i32 = arith.constant 0 : i32
    %c0_i32_0 = arith.constant 0 : i32
    return %c0_i32, %arg1 : i32, i32
  }
  func.func @transform_3(%arg0: i32, %arg1: i32, %arg2: i32) -> (i32, i32) {
    %c0_i32 = arith.constant 0 : i32
    return %arg0, %arg1 : i32, i32
  }
}

</mosaic_0001>

<bundles_post_ra>
// kernel: forward.4
= control target key start
LH: loop header
LB: loop body
LE: loop exit
PB: predicated region body
PF: predicated region fallthrough
CT: control target
= control target key end

     0   :  { %s5578_s12 = smov 0   ;;  %s6954_s0 = inlined_call_operand.vmem [shape: bf16[1568,576], index: 0, kind: input, shape index: {}]   ;;  %s6955_s1 = inlined_call_operand.vmem [shape: bf16[576,128], index: 1, kind: input, shape index: {}]   ;;  %s6956_s2 = inlined_call_operand.vmem [shape: f32[1,128], index: 2, kind: input, shape index: {}]   ;;  %s6957_s3 = inlined_call_operand.vmem [shape: bf16[1568,128], index: 3, kind: output, shape index: {}]  }
   0x1 LB: > { %s3757_s13 = sadd.s32 4294967295, %s5556_s12   ;;  %p3761_p0 = scmp.ge.s32.totalorder %s5556_s12, 1  ;;  %s5556_s12 = sphi %s5578_s12, %s13_s12  }
   0x2   : > { %p139_p1 = scmp.lt.s32.totalorder %s5556_s12, 3 }
   0x4   : > { %p140_p2 = pnand %p3761_p0, %p139_p1 }
   0x6   : > { %143 = sbr.rel (%p140_p2) target bundleno = 1170 (0x492), region = 32 }
   0xb   : > { %v5191_v0 = vld [vmem:[%s6955_s1 + $0x38] sm:$0xff]  ;;  %v5190_v1 = vld [vmem:[%s6955_s1 + $0x30] sm:$0xff]  ;;  %v5189_v2 = vld [vmem:[%s6955_s1 + $0x28] sm:$0xff]  ;;  %s164_s20 = smul.u32 98, %s3757_s13  ;;  %vm1989_vm0 = vcmask 523264  }
   0xc   : > { %5513 = vmatpush.bf16.msra.mxu1 %v5191_v0  ;;  %5514 = vmatpush.bf16.msra.mxu2 %v5191_v0  ;;  %v5188_v3 = vld [vmem:[%s6955_s1 + $0x20] sm:$0xff]  ;;  %v5187_v4 = vld [vmem:[%s6955_s1 + $0x18] sm:$0xff]  ;;  %v5186_v5 = vld [vmem:[%s6955_s1 + $0x10] sm:$0xff] }
   0xd   : > { %2137 = vmatpush.bf16.msra.mxu0 %v5191_v0  ;;  %5515 = vmatpush.bf16.msra.mxu3 %v5191_v0  ;;  %p165_p3 = scmp.lt.s32.totalorder %s164_s20, 195  ;;  %v5185_v6 = vld [vmem:[%s6955_s1 + $0x8] sm:$0xff]  ;;  %v5184_v7 = vld [vmem:[%s6955_s1] sm:$0xff]  ;;  %v5207_v12 = vld [vmem:[%s6955_s1 + $0xb8] sm:$0xff] }
   0xe   : > { %v5199_v15 = vld [vmem:[%s6955_s1 + $0x78] sm:$0xff]  ;;  %v5206_v20 = vld [vmem:[%s6955_s1 + $0xb0] sm:$0xff]  ;;  %v5205_v35 = vld [vmem:[%s6955_s1 + $0xa8] sm:$0xff] }
   0xf   : > { %s7087_s20 = smov (!%p165_p3, %s164_s20), 195  ;;  %v5219_v16 = vld [vmem:[%s6955_s1 + $0x118] sm:$0xff]  ;;  %v5198_v21 = vld [vmem:[%s6955_s1 + $0x70] sm:$0xff]  ;;  %v5197_v36 = vld [vmem:[%s6955_s1 + $0x68] sm:$0xff] }
  0x10   : > { %5516 = vmatpush.bf16.msra.mxu1 %v5190_v1  ;;  %5517 = vmatpush.bf16.msra.mxu2 %v5190_v1  ;;  %s5537_s27 = smul.u32 20, %s7087_s20  ;;  %v5215_v34 = vld [vmem:[%s6955_s1 + $0xf8] sm:$0xff]  ;;  %v5218_v39 = vld [vmem:[%s6955_s1 + $0x110] sm:$0xff]  ;;  %v5204_v54 = vld [vmem:[%s6955_s1 + $0xa0] sm:$0xff]  ;;  %s3763_s19 = sshll.u32 %s7087_s20, 2 }
  0x11   : > { %2138 = vmatpush.bf16.msra.mxu0 %v5190_v1  ;;  %5518 = vmatpush.bf16.msra.mxu3 %v5190_v1  ;;  %v5214_v50 = vld [vmem:[%s6955_s1 + $0xf0] sm:$0xff]  ;;  %v5196_v0 = vld [vmem:[%s6955_s1 + $0x60] sm:$0xff]  ;;  %s6121_s23 = scalar_lea.vmem %s6957_s3, %s3763_s19 }
  0x12   : > { %s5613_s5 = scalar_lea.vmem %s6954_s0, %s5537_s27 }
  0x13   : > { %v4026_v8 = vld [vmem:[%s5613_s5 + $0x208] sm:$0xf]  ;;  %v5006_v9 = vld [vmem:[%s5613_s5 + $0x218] sm:$0xf0]  ;;  %v4286_v10 = vld [vmem:[%s5613_s5 + $0x410] sm:$0xf] }
  0x14   : > { %5519 = vmatpush.bf16.msra.mxu1 %v5189_v2  ;;  %5520 = vmatpush.bf16.msra.mxu2 %v5189_v2  ;;  %v5071_v11 = vld [vmem:[%s5613_s5 + $0x420] sm:$0xf0]  ;;  %v3766_v13 = vld [vmem:[%s5613_s5] sm:$0xf]  ;;  %v4941_v14 = vld [vmem:[%s5613_s5 + $0x10] sm:$0xf0]  ;;  %v4027_v17 = vor.u32 %v5006_v9, %v4026_v8 }
  0x15   : > { %2139 = vmatpush.bf16.msra.mxu0 %v5189_v2  ;;  %5521 = vmatpush.bf16.msra.mxu3 %v5189_v2  ;;  %v4287_v18 = vor.u32 %v5071_v11, %v4286_v10  ;;  %v3767_v19 = vor.u32 %v4941_v14, %v3766_v13  ;;  %v4546_v22 = vld [vmem:[%s5613_s5 + $0x618] sm:$0xf]  ;;  %v5136_v23 = vld [vmem:[%s5613_s5 + $0x628] sm:$0xf0]  ;;  %v4046_v25 = vld [vmem:[%s5613_s5 + $0x230] sm:$0xf] }
  0x16   : > { %v4547_v24 = vor.u32 %v5136_v23, %v4546_v22  ;;  %v5011_v26 = vld [vmem:[%s5613_s5 + $0x240] sm:$0xf0]  ;;  %v4306_v27 = vld [vmem:[%s5613_s5 + $0x438] sm:$0xf]  ;;  %v5076_v28 = vld [vmem:[%s5613_s5 + $0x448] sm:$0xf0] }
  0x17   : > { %v3786_v29 = vld [vmem:[%s5613_s5 + $0x28] sm:$0xf]  ;;  %v4946_v30 = vld [vmem:[%s5613_s5 + $0x38] sm:$0xf0]  ;;  %v4047_v31 = vor.u32 %v5011_v26, %v4046_v25  ;;  %v4307_v32 = vor.u32 %v5076_v28, %v4306_v27  ;;  %v4566_v37 = vld [vmem:[%s5613_s5 + $0x640] sm:$0xf] }
  0x18   : > { %5522 = vmatpush.bf16.msra.mxu1 %v5188_v3  ;;  %5523 = vmatpush.bf16.msra.mxu2 %v5188_v3  ;;  %v3787_v33 = vor.u32 %v4946_v30, %v3786_v29  ;;  %v5141_v38 = vld [vmem:[%s5613_s5 + $0x650] sm:$0xf0]  ;;  %v4066_v41 = vld [vmem:[%s5613_s5 + $0x258] sm:$0xf]  ;;  %v5016_v42 = vld [vmem:[%s5613_s5 + $0x268] sm:$0xf0] }
  0x19   : > { %2140 = vmatpush.bf16.msra.mxu0 %v5188_v3  ;;  %5524 = vmatpush.bf16.msra.mxu3 %v5188_v3  ;;  %v4567_v40 = vor.u32 %v5141_v38, %v4566_v37  ;;  %v4326_v43 = vld [vmem:[%s5613_s5 + $0x460] sm:$0xf]  ;;  %v5081_v44 = vld [vmem:[%s5613_s5 + $0x470] sm:$0xf0]  ;;  %v3806_v45 = vld [vmem:[%s5613_s5 + $0x50] sm:$0xf]  ;;  %v4067_v47 = vor.u32 %v5016_v42, %v4066_v41 }
  0x1a   : > { %v4951_v46 = vld [vmem:[%s5613_s5 + $0x60] sm:$0xf0]  ;;  %v4327_v48 = vor.u32 %v5081_v44, %v4326_v43  ;;  %v4586_v51 = vld [vmem:[%s5613_s5 + $0x668] sm:$0xf]  ;;  %v5146_v52 = vld [vmem:[%s5613_s5 + $0x678] sm:$0xf0] }
  0x1b   : > { %v3807_v49 = vor.u32 %v4951_v46, %v3806_v45  ;;  %v4587_v53 = vor.u32 %v5146_v52, %v4586_v51  ;;  %v4086_v55 = vld [vmem:[%s5613_s5 + $0x280] sm:$0xf]  ;;  %v5021_v56 = vld [vmem:[%s5613_s5 + $0x290] sm:$0xf0]  ;;  %v4346_v57 = vld [vmem:[%s5613_s5 + $0x488] sm:$0xf] }
  0x1c   : > { %5525 = vmatpush.bf16.msra.mxu1 %v5187_v4  ;;  %5526 = vmatpush.bf16.msra.mxu2 %v5187_v4  ;;  %v5086_v58 = vld [vmem:[%s5613_s5 + $0x498] sm:$0xf0]  ;;  %v3826_v59 = vld [vmem:[%s5613_s5 + $0x78] sm:$0xf]  ;;  %v4956_v60 = vld [vmem:[%s5613_s5 + $0x88] sm:$0xf0]  ;;  %v4087_v61 = vor.u32 %v5021_v56, %v4086_v55 }
  0x1d   : > { %2141 = vmatpush.bf16.msra.mxu0 %v5187_v4  ;;  %5527 = vmatpush.bf16.msra.mxu3 %v5187_v4  ;;  %v4347_v62 = vor.u32 %v5086_v58, %v4346_v57  ;;  %v3827_v63 = vor.u32 %v4956_v60, %v3826_v59  ;;  %v4606_v1 = vld [vmem:[%s5613_s5 + $0x690] sm:$0xf]  ;;  %v5151_v2 = vld [vmem:[%s5613_s5 + $0x6a0] sm:$0xf0]  ;;  %v5213_v4 = vld [vmem:[%s6955_s1 + $0xe8] sm:$0xff] }
  0x1e   : > { %v4607_v3 = vor.u32 %v5151_v2, %v4606_v1  ;;  %v5091_v8 = vld [vmem:[%s5613_s5 + $0x4c0] sm:$0xf0]  ;;  %v3846_v9 = vld [vmem:[%s5613_s5 + $0xa0] sm:$0xf]  ;;  %v4961_v10 = vld [vmem:[%s5613_s5 + $0xb0] sm:$0xf0] }
  0x1f   : > { %v3847_v13 = vor.u32 %v4961_v10, %v3846_v9  ;;  %v5203_v14 = vld [vmem:[%s6955_s1 + $0x98] sm:$0xff]  ;;  %v5096_v23 = vld [vmem:[%s5613_s5 + $0x4e8] sm:$0xf0]  ;;  %v4646_v30 = vld [vmem:[%s5613_s5 + $0x6e0] sm:$0xf] }
  0x20   : > { %5528 = vmatpush.bf16.msra.mxu1 %v5186_v5  ;;  %5529 = vmatpush.bf16.msra.mxu2 %v5186_v5  ;;  %v4386_v22 = vld [vmem:[%s5613_s5 + $0x4d8] sm:$0xf]  ;;  %v4966_v25 = vld [vmem:[%s5613_s5 + $0xd8] sm:$0xf0]  ;;  %v5217_v29 = vld [vmem:[%s6955_s1 + $0x108] sm:$0xff] }
  0x21   : > { %2142 = vmatpush.bf16.msra.mxu0 %v5186_v5  ;;  %5530 = vmatpush.bf16.msra.mxu3 %v5186_v5  ;;  %v4106_v5 = vld [vmem:[%s5613_s5 + $0x2a8] sm:$0xf]  ;;  %v4387_v27 = vor.u32 %v5096_v23, %v4386_v22  ;;  %v3886_v37 = vld [vmem:[%s5613_s5 + $0xf0] sm:$0xf]  ;;  %v4971_v38 = vld [vmem:[%s5613_s5 + $0x100] sm:$0xf0] }
  0x22   : > { %v3887_v41 = vor.u32 %v4971_v38, %v3886_v37  ;;  %v5202_v42 = vld [vmem:[%s6955_s1 + $0x90] sm:$0xff]  ;;  %v5211_v43 = vld [vmem:[%s6955_s1 + $0xd8] sm:$0xff]  ;;  %v4666_v45 = vld [vmem:[%s5613_s5 + $0x708] sm:$0xf] }
  0x23   : > { %v5194_v44 = vld [vmem:[%s6955_s1 + $0x50] sm:$0xff]  ;;  %v5166_v46 = vld [vmem:[%s5613_s5 + $0x718] sm:$0xf0]  ;;  %v3906_v52 = vld [vmem:[%s5613_s5 + $0x118] sm:$0xf] }
  0x24   : > { %5531 = vmatpush.bf16.msra.mxu1 %v5185_v6  ;;  %5532 = vmatpush.bf16.msra.mxu2 %v5185_v6  ;;  %v5106_v51 = vld [vmem:[%s5613_s5 + $0x538] sm:$0xf0]  ;;  %v5210_v57 = vld [vmem:[%s6955_s1 + $0xd0] sm:$0xff]  ;;  %v5171_v59 = vld [vmem:[%s5613_s5 + $0x740] sm:$0xf0] }
  0x25   : > { %2143 = vmatpush.bf16.msra.mxu0 %v5185_v6  ;;  %5533 = vmatpush.bf16.msra.mxu3 %v5185_v6  ;;  %v5026_v6 = vld [vmem:[%s5613_s5 + $0x2b8] sm:$0xf0]  ;;  %v4686_v58 = vld [vmem:[%s5613_s5 + $0x730] sm:$0xf]  ;;  %v4186_v60 = vld [vmem:[%s5613_s5 + $0x348] sm:$0xf] }
  0x26   : > { %v4107_v11 = vor.u32 %v5026_v6, %v4106_v5  ;;  %v3926_v1 = vld [vmem:[%s5613_s5 + $0x140] sm:$0xf]  ;;  %v4981_v2 = vld [vmem:[%s5613_s5 + $0x150] sm:$0xf0]  ;;  %v5201_v5 = vld [vmem:[%s6955_s1 + $0x88] sm:$0xff] }
  0x27   : > { %v5193_v9 = vld [vmem:[%s6955_s1 + $0x48] sm:$0xff]  ;;  %v4986_v23 = vld [vmem:[%s5613_s5 + $0x178] sm:$0xf0]  ;;  %v5181_v37 = vld [vmem:[%s5613_s5 + $0x790] sm:$0xf0] }
  0x28   : > { %5534 = vmatpush.bf16.msra.mxu1 %v5184_v7  ;;  %5535 = vmatpush.bf16.msra.mxu2 %v5184_v7  ;;  %v3946_v22 = vld [vmem:[%s5613_s5 + $0x168] sm:$0xf]  ;;  %v5192_v38 = vld [vmem:[%s6955_s1 + $0x40] sm:$0xff] }
  0x29   : > { %2144 = vmatpush.bf16.msra.mxu0 %v5184_v7  ;;  %5536 = vmatpush.bf16.msra.mxu3 %v5184_v7  ;;  %v4366_v7 = vld [vmem:[%s5613_s5 + $0x4b0] sm:$0xf] }
  0x2b   : > { %2210 = vmatmul.bf16.vlgmr.msra.gmra.mxu1 %v4027_v17  ;;  %2275 = vmatmul.bf16.vlgmr.msra.gmra.mxu2 %v4287_v18  ;;  %v5195_v18 = vld [vmem:[%s6955_s1 + $0x58] sm:$0xff] }
  0x2c   : > { %2645 = vmatpush.bf16.msrb.mxu2 %v5207_v12  ;;  %2391 = vmatpush.bf16.msrb.mxu1 %v5199_v15  ;;  %v4367_v12 = vor.u32 %v5091_v8, %v4366_v7  ;;  %v4626_v15 = vld [vmem:[%s5613_s5 + $0x6b8] sm:$0xf]  ;;  %v3927_v7 = vor.u32 %v4981_v2, %v3926_v1  ;;  %v4996_v2 = vld [vmem:[%s5613_s5 + $0x1c8] sm:$0xf0] }
  0x2d   : > { %3157 = vmatpush.bf16.msrb.mxu0 %v5219_v16  ;;  %2340 = vmatmul.bf16.vlgmr.msra.gmra.mxu3 %v4547_v24  ;;  %v5156_v16 = vld [vmem:[%s5613_s5 + $0x6c8] sm:$0xf0]  ;;  %v3866_v24 = vld [vmem:[%s5613_s5 + $0xc8] sm:$0xf]  ;;  %v3986_v1 = vld [vmem:[%s5613_s5 + $0x1b8] sm:$0xf] }
  0x2e   : > { %2145 = vmatmul.bf16.vlgmr.msra.gmra.mxu0 %v3767_v19  ;;  %2899 = vmatpush.bf16.msrb.mxu3 %v5215_v34  ;;  %v4627_v17 = vor.u32 %v5156_v16, %v4626_v15  ;;  %v5212_v19 = vld [vmem:[%s6955_s1 + $0xe0] sm:$0xff]  ;;  %v3867_v28 = vor.u32 %v4966_v25, %v3866_v24  ;;  %v5036_v34 = vld [vmem:[%s5613_s5 + $0x308] sm:$0xf0] }
  0x2f   : > { %v5176_v15 = vld [vmem:[%s5613_s5 + $0x768] sm:$0xf0] }
  0x30   : > { %2646 = vmatpush.bf16.msrb.mxu2 %v5206_v20  ;;  %2392 = vmatpush.bf16.msrb.mxu1 %v5198_v21  ;;  %v4126_v20 = vld [vmem:[%s5613_s5 + $0x2d0] sm:$0xf]  ;;  %v5031_v21 = vld [vmem:[%s5613_s5 + $0x2e0] sm:$0xf0]  ;;  %v5209_v16 = vld [vmem:[%s6955_s1 + $0xc8] sm:$0xff] }
  0x31   : > { %3158 = vmatpush.bf16.msrb.mxu0 %v5218_v39  ;;  %v4127_v26 = vor.u32 %v5031_v21, %v4126_v20  ;;  %v4466_v20 = vld [vmem:[%s5613_s5 + $0x578] sm:$0xf]  ;;  %v5116_v21 = vld [vmem:[%s5613_s5 + $0x588] sm:$0xf0] }
  0x32   : > { %2900 = vmatpush.bf16.msrb.mxu3 %v5214_v50  ;;  %v4426_v50 = vld [vmem:[%s5613_s5 + $0x528] sm:$0xf] }
  0x33   : > { %v4427_v55 = vor.u32 %v5106_v51, %v4426_v50 }
  0x34   : > { %2647 = vmatpush.bf16.msrb.mxu2 %v5205_v35  ;;  %2393 = vmatpush.bf16.msrb.mxu1 %v5197_v36  ;;  %v4406_v35 = vld [vmem:[%s5613_s5 + $0x500] sm:$0xf]  ;;  %v5101_v36 = vld [vmem:[%s5613_s5 + $0x510] sm:$0xf0] }
  0x35   : > { %3159 = vmatpush.bf16.msrb.mxu0 %v5217_v29 }
  0x36   : > { %2901 = vmatpush.bf16.msrb.mxu3 %v5213_v4 }
  0x38   : > { %2648 = vmatpush.bf16.msrb.mxu2 %v5204_v54  ;;  %2394 = vmatpush.bf16.msrb.mxu1 %v5196_v0  ;;  %v5111_v0 = vld [vmem:[%s5613_s5 + $0x560] sm:$0xf0] }
  0x3a   : > { %2902 = vmatpush.bf16.msrb.mxu3 %v5212_v19  ;;  %v5051_v19 = vld [vmem:[%s5613_s5 + $0x380] sm:$0xf0] }
  0x3b   : > { %2215 = vmatmul.bf16.gmra.mxu1 %v4047_v31  ;;  %2280 = vmatmul.bf16.gmra.mxu2 %v4307_v32  ;;  %v5161_v31 = vld [vmem:[%s5613_s5 + $0x6f0] sm:$0xf0] }
  0x3c   : > { %2649 = vmatpush.bf16.msrb.mxu2 %v5203_v14  ;;  %2395 = vmatpush.bf16.msrb.mxu1 %v5195_v18  ;;  %v4647_v32 = vor.u32 %v5161_v31, %v4646_v30  ;;  %v4706_v14 = vld [vmem:[%s5613_s5 + $0x758] sm:$0xf] }
  0x3d   : > { %2345 = vmatmul.bf16.gmra.mxu3 %v4567_v40  ;;  %v4407_v40 = vor.u32 %v5101_v36, %v4406_v35  ;;  %v4707_v18 = vor.u32 %v5176_v15, %v4706_v14  ;;  %v5200_v35 = vld [vmem:[%s6955_s1 + $0x80] sm:$0xff] }
  0x3e   : > { %2150 = vmatmul.bf16.gmra.mxu0 %v3787_v33  ;;  %v4146_v33 = vld [vmem:[%s5613_s5 + $0x2f8] sm:$0xf]  ;;  %2903 = vmatpush.bf16.msrb.mxu3 %v5211_v43  ;;  %v4726_v36 = vld [vmem:[%s5613_s5 + $0x780] sm:$0xf]  ;;  %v5121_v43 = vld [vmem:[%s5613_s5 + $0x5b0] sm:$0xf0] }
  0x3f   : > { %v4147_v39 = vor.u32 %v5036_v34, %v4146_v33 }
  0x40   : > { %2650 = vmatpush.bf16.msrb.mxu2 %v5202_v42  ;;  %2396 = vmatpush.bf16.msrb.mxu1 %v5194_v44  ;;  %v4486_v42 = vld [vmem:[%s5613_s5 + $0x5a0] sm:$0xf]  ;;  %v3966_v44 = vld [vmem:[%s5613_s5 + $0x190] sm:$0xf] }
  0x42   : > { %2904 = vmatpush.bf16.msrb.mxu3 %v5210_v57 }
  0x44   : > { %2651 = vmatpush.bf16.msrb.mxu2 %v5201_v5  ;;  %2397 = vmatpush.bf16.msrb.mxu1 %v5193_v9  ;;  %v3987_v9 = vor.u32 %v4996_v2, %v3986_v1 }
  0x46   : > { %2905 = vmatpush.bf16.msrb.mxu3 %v5209_v16 }
  0x48   : > { %2652 = vmatpush.bf16.msrb.mxu2 %v5200_v35  ;;  %2398 = vmatpush.bf16.msrb.mxu1 %v5192_v38  ;;  %v5001_v35 = vld [vmem:[%s5613_s5 + $0x1f0] sm:$0xf0] }
  0x4b   : > { %2220 = vmatmul.bf16.gmra.mxu1 %v4067_v47  ;;  %2285 = vmatmul.bf16.gmra.mxu2 %v4327_v48  ;;  %v4166_v47 = vld [vmem:[%s5613_s5 + $0x320] sm:$0xf]  ;;  %v4667_v48 = vor.u32 %v5166_v46, %v4666_v45  ;;  %v4991_v45 = vld [vmem:[%s5613_s5 + $0x1a0] sm:$0xf0] }
  0x4c   : > { %v3967_v50 = vor.u32 %v4991_v45, %v3966_v44 }
  0x4d   : > { %2350 = vmatmul.bf16.gmra.mxu3 %v4587_v53  ;;  %v4976_v53 = vld [vmem:[%s5613_s5 + $0x128] sm:$0xf0] }
  0x4e   : > { %2155 = vmatmul.bf16.gmra.mxu0 %v3807_v49  ;;  %v5041_v49 = vld [vmem:[%s5613_s5 + $0x330] sm:$0xf0]  ;;  %v3907_v56 = vor.u32 %v4976_v53, %v3906_v52  ;;  %v5208_v53 = vld [vmem:[%s6955_s1 + $0xc0] sm:$0xff] }
  0x4f   : > { %v4167_v54 = vor.u32 %v5041_v49, %v4166_v47  ;;  %2906 = vmatpush.bf16.msrb.mxu3 %v5208_v53  ;;  %v4939_v53 = vld [vmem:[%s5613_s5 + $0x4] sm:$0xf] }
  0x5b   : > { %2225 = vmatmul.bf16.gmra.mxu1 %v4087_v61  ;;  %2290 = vmatmul.bf16.gmra.mxu2 %v4347_v62  ;;  %v4687_v61 = vor.u32 %v5171_v59, %v4686_v58  ;;  %v5046_v62 = vld [vmem:[%s5613_s5 + $0x358] sm:$0xf0]  ;;  %v4940_v58 = vld [vmem:[%s5613_s5 + $0xc] sm:$0xf]  ;;  %v3776_v59 = vld [vmem:[%s5613_s5 + $0x1c] sm:$0xf0] }
  0x5d   : > { %2355 = vmatmul.bf16.gmra.mxu3 %v4607_v3  ;;  %v4187_v3 = vor.u32 %v5046_v62, %v4186_v60  ;;  %v4246_v60 = vld [vmem:[%s5613_s5 + $0x3c0] sm:$0xf]  ;;  %v5061_v62 = vld [vmem:[%s5613_s5 + $0x3d0] sm:$0xf0] }
  0x5e   : > { %2160 = vmatmul.bf16.gmra.mxu0 %v3827_v63  ;;  %v4446_v63 = vld [vmem:[%s5613_s5 + $0x550] sm:$0xf] }
  0x5f   : > { %v4447_v4 = vor.u32 %v5111_v0, %v4446_v63  ;;  %v4506_v63 = vld [vmem:[%s5613_s5 + $0x5c8] sm:$0xf]  ;;  %v5126_v0 = vld [vmem:[%s5613_s5 + $0x5d8] sm:$0xf0] }
  0x60   : > { %v4507_v5 = vor.u32 %v5126_v0, %v4506_v63  ;;  %v4943_v63 = vld [vmem:[%s5613_s5 + $0x20] sm:$0xf0] }
  0x6b   : > { %2230 = vmatmul.bf16.gmra.mxu1 %v4107_v11  ;;  %2295 = vmatmul.bf16.gmra.mxu2 %v4367_v12 }
  0x6d   : > { %2360 = vmatmul.bf16.gmra.mxu3 %v4627_v17  ;;  %v4206_v17 = vld [vmem:[%s5613_s5 + $0x370] sm:$0xf] }
  0x6e   : > { %2165 = vmatmul.bf16.gmra.mxu0 %v3847_v13  ;;  %v5216_v13 = vld [vmem:[%s6955_s1 + $0x100] sm:$0xff]  ;;  %v4207_v25 = vor.u32 %v5051_v19, %v4206_v17  ;;  %v4945_v19 = vld [vmem:[%s5613_s5 + $0x34] sm:$0xf] }
  0x6f   : > { %3160 = vmatpush.bf16.msrb.mxu0 %v5216_v13 }
  0x7b   : > { %2235 = vmatmul.bf16.gmra.mxu1 %v4127_v26  ;;  %2300 = vmatmul.bf16.gmra.mxu2 %v4387_v27  ;;  %v4467_v26 = vor.u32 %v5116_v21, %v4466_v20  ;;  %v3796_v20 = vld [vmem:[%s5613_s5 + $0x44] sm:$0xf0] }
  0x7c   : > { %v4266_v21 = vld [vmem:[%s5613_s5 + $0x3e8] sm:$0xf] }
  0x7d   : > { %2365 = vmatmul.bf16.gmra.mxu3 %v4647_v32 }
  0x7e   : > { %2170 = vmatmul.bf16.gmra.mxu0 %v3867_v28  ;;  %v3947_v28 = vor.u32 %v4986_v23, %v3946_v22  ;;  %v3799_v22 = vor.u32 %v4945_v19, %v3796_v20  ;;  %v5066_v23 = vld [vmem:[%s5613_s5 + $0x3f8] sm:$0xf0] }
  0x8b   : > { %2240 = vmatmul.bf16.gmra.mxu1 %v4147_v39  ;;  %2305 = vmatmul.bf16.gmra.mxu2 %v4407_v40  ;;  %v4226_v39 = vld [vmem:[%s5613_s5 + $0x398] sm:$0xf]  ;;  %v4727_v40 = vor.u32 %v5181_v37, %v4726_v36  ;;  %v4267_v37 = vor.u32 %v5066_v23, %v4266_v21 }
  0x8d   : > { %2370 = vmatmul.bf16.gmra.mxu3 %v4667_v48  ;;  %v4487_v48 = vor.u32 %v5121_v43, %v4486_v42 }
  0x8e   : > { %2175 = vmatmul.bf16.gmra.mxu0 %v3887_v41  ;;  %v5056_v41 = vld [vmem:[%s5613_s5 + $0x3a8] sm:$0xf0] }
  0x8f   : > { %v4227_v47 = vor.u32 %v5056_v41, %v4226_v39 }
  0x9b   : > { %2245 = vmatmul.bf16.gmra.mxu1 %v4167_v54  ;;  %2310 = vmatmul.bf16.gmra.mxu2 %v4427_v55 }
  0x9d   : > { %2375 = vmatmul.bf16.gmra.mxu3 %v4687_v61  ;;  %v3779_v61 = vor.u32 %v4940_v58, %v3776_v59  ;;  %v3768_v59 = vld [vmem:[%s5613_s5 + $0x14] sm:$0xf0] }
  0x9e   : > { %2180 = vmatmul.bf16.gmra.mxu0 %v3907_v56  ;;  %v3771_v1 = vor.u32 %v4939_v53, %v3768_v59 }
  0xa8   : > { %v5754_v6 = vpop.f32.mrf.mxu1 }
  0xab   : > { %v5756_v8 = vpop.f32.mrf.mxu0  ;;  %2250 = vmatmul.bf16.gmra.mxu1 %v4187_v3  ;;  %2315 = vmatmul.bf16.gmra.mxu2 %v4447_v4  ;;  %v4247_v4 = vor.u32 %v5061_v62, %v4246_v60  ;;  %v3774_v60 = vld [vmem:[%s5613_s5 + $0x8] sm:$0xf]  ;;  %v3782_v62 = vld [vmem:[%s5613_s5 + $0x10] sm:$0xf] }
  0xad   : > { %2380 = vmatmul.bf16.gmra.mxu3 %v4707_v18 }
  0xae   : > { %2185 = vmatmul.bf16.gmra.mxu0 %v3927_v7  ;;  %v5761_v10 = vpop.f32.mrf.mxu2 }
  0xaf   : > { %6958 = vst [vmem:[#allocation2_spill] sm:$0xff] %v5761_v10 }
  0xb0   : > { %v5763_v11 = vpop.f32.mrf.mxu1  ;;  %v5785_v29 = vpop.f32.mrf.mxu3 }
  0xb1   : > { %6960 = vst [vmem:[#allocation4_spill] sm:$0xff] %v5785_v29  ;;  %v4962_v29 = vld [vmem:[%s5613_s5 + $0xb8] sm:$0xf0] }
  0xb3   : > { %v5765_v12 = vpop.f32.mrf.mxu0 }
  0xb6   : > { %v5781_v24 = vpop.f32.mrf.mxu2 }
  0xb7   : > { %6959 = vst [vmem:[#allocation3_spill] sm:$0xff] %v5781_v24 }
  0xb8   : > { %v5783_v27 = vpop.f32.mrf.mxu1  ;;  %v5793_v33 = vpop.f32.mrf.mxu3 }
  0xb9   : > { %6962 = vst [vmem:[#allocation6_spill] sm:$0xff] %v5793_v33  ;;  %v3854_v33 = vld [vmem:[%s5613_s5 + $0xa8] sm:$0xf] }
  0xbb   : > { %v5787_v30 = vpop.f32.mrf.mxu0  ;;  %2255 = vmatmul.bf16.gmra.mxu1 %v4207_v25  ;;  %2320 = vmatmul.bf16.gmra.mxu2 %v4467_v26  ;;  %v4526_v25 = vld [vmem:[%s5613_s5 + $0x5f0] sm:$0xf]  ;;  %v5131_v26 = vld [vmem:[%s5613_s5 + $0x600] sm:$0xf0] }
  0xbc   : > { %v4527_v38 = vor.u32 %v5131_v26, %v4526_v25  ;;  %v4955_v25 = vld [vmem:[%s5613_s5 + $0x84] sm:$0xf]  ;;  %v3836_v26 = vld [vmem:[%s5613_s5 + $0x94] sm:$0xf0] }
  0xbd   : > { %2385 = vmatmul.bf16.gmra.mxu3 %v4727_v40 }
  0xbe   : > { %2190 = vmatmul.bf16.gmra.mxu0 %v3947_v28  ;;  %v5789_v31 = vpop.f32.mrf.mxu2  ;;  %v4006_v28 = vld [vmem:[%s5613_s5 + $0x1e0] sm:$0xf] }
  0xbf   : > { %6961 = vst [vmem:[#allocation5_spill] sm:$0xff] %v5789_v31  ;;  %v4007_v40 = vor.u32 %v5001_v35, %v4006_v28  ;;  %v4944_v28 = vld [vmem:[%s5613_s5 + $0x2c] sm:$0xf]  ;;  %v3839_v35 = vor.u32 %v4955_v25, %v3836_v26  ;;  %v3922_v31 = vld [vmem:[%s5613_s5 + $0x128] sm:$0xf] }
  0xc0   : > { %v5791_v32 = vpop.f32.mrf.mxu1  ;;  %v5815_v51 = vpop.f32.mrf.mxu3  ;;  %v4960_v26 = vld [vmem:[%s5613_s5 + $0xac] sm:$0xf] }
  0xc1   : > { %6964 = vst [vmem:[#allocation8_spill] sm:$0xff] %v5815_v51  ;;  %v3848_v51 = vld [vmem:[%s5613_s5 + $0xb4] sm:$0xf0] }
  0xc3   : > { %v5795_v34 = vpop.f32.mrf.mxu0 }
  0xc6   : > { %v5811_v46 = vpop.f32.mrf.mxu2 }
  0xc7   : > { %6963 = vst [vmem:[#allocation7_spill] sm:$0xff] %v5811_v46  ;;  %v4977_v46 = vld [vmem:[%s5613_s5 + $0x130] sm:$0xf0] }
  0xc8   : > { %v5813_v49 = vpop.f32.mrf.mxu1  ;;  %v5826_v56 = vpop.f32.mrf.mxu3 }
  0xc9   : > { %6966 = vst [vmem:[#allocation10_spill] sm:$0xff] %v5826_v56 }
  0xcb   : > { %v5817_v52 = vpop.f32.mrf.mxu0  ;;  %2260 = vmatmul.bf16.gmra.mxu1 %v4227_v47  ;;  %2325 = vmatmul.bf16.gmra.mxu2 %v4487_v48  ;;  %v4950_v48 = vld [vmem:[%s5613_s5 + $0x5c] sm:$0xf] }
  0xcd   : > { %2907 = vmatmul.bf16.vlgmr.msrb.gmra.mxu3 %v3779_v61  ;;  %v4942_v61 = vld [vmem:[%s5613_s5 + $0x18] sm:$0xf0] }
  0xce   : > { %2195 = vmatmul.bf16.gmra.mxu0 %v3967_v50  ;;  %v5822_v54 = vpop.f32.mrf.mxu2  ;;  %v3816_v50 = vld [vmem:[%s5613_s5 + $0x6c] sm:$0xf0]  ;;  %v3775_v2 = vor.u32 %v4942_v61, %v3774_v60 }
  0xcf   : > { %6965 = vst [vmem:[#allocation9_spill] sm:$0xff] %v5822_v54  ;;  %v3819_v58 = vor.u32 %v4950_v48, %v3816_v50  ;;  %v3802_v48 = vld [vmem:[%s5613_s5 + $0x38] sm:$0xf]  ;;  %v4948_v50 = vld [vmem:[%s5613_s5 + $0x48] sm:$0xf0] }
  0xd0   : > { %v5824_v55 = vpop.f32.mrf.mxu1  ;;  %v5842_v13 = vpop.f32.mrf.mxu3  ;;  %v3803_v61 = vor.u32 %v4948_v50, %v3802_v48  ;;  %v4952_v48 = vld [vmem:[%s5613_s5 + $0x68] sm:$0xf0]  ;;  %v3822_v50 = vld [vmem:[%s5613_s5 + $0x60] sm:$0xf] }
  0xd1   : > { %6968 = vst [vmem:[#allocation12_spill] sm:$0xff] %v5842_v13  ;;  %v3914_v54 = vld [vmem:[%s5613_s5 + $0x120] sm:$0xf] }
  0xd3   : > { %v5828_v57 = vpop.f32.mrf.mxu0 }
  0xd6   : > { %v5838_v3 = vpop.f32.mrf.mxu2 }
  0xd7   : > { %6967 = vst [vmem:[#allocation11_spill] sm:$0xff] %v5838_v3  ;;  %v3908_v3 = vld [vmem:[%s5613_s5 + $0x12c] sm:$0xf0] }
  0xd8   : > { %v5840_v7 = vpop.f32.mrf.mxu1  ;;  %v5850_v17 = vpop.f32.mrf.mxu3 }
  0xd9   : > { %6970 = vst [vmem:[#allocation14_spill] sm:$0xff] %v5850_v17  ;;  %v3842_v17 = vld [vmem:[%s5613_s5 + $0x88] sm:$0xf] }
  0xdb   : > { %v5844_v14 = vpop.f32.mrf.mxu0  ;;  %2265 = vmatmul.bf16.gmra.mxu1 %v4247_v4  ;;  %2330 = vmatmul.bf16.gmra.mxu2 %v4507_v5  ;;  %v3783_v5 = vor.u32 %v4943_v63, %v3782_v62 }
  0xdd   : > { %2912 = vmatmul.bf16.gmra.mxu3 %v3799_v22 }
  0xde   : > { %2200 = vmatmul.bf16.gmra.mxu0 %v3987_v9  ;;  %v5846_v15 = vpop.f32.mrf.mxu2 }
  0xdf   : > { %6969 = vst [vmem:[#allocation13_spill] sm:$0xff] %v5846_v15 }
  0xe0   : > { %v5848_v16 = vpop.f32.mrf.mxu1  ;;  %v5866_v41 = vpop.f32.mrf.mxu3 }
  0xe1   : > { %6973 = vst [vmem:[#allocation17_spill] sm:$0xff] %v5866_v41  ;;  %v4957_v41 = vld [vmem:[%s5613_s5 + $0x90] sm:$0xf0] }
  0xe3   : > { %v5852_v18 = vpop.f32.mrf.mxu0 }
  0xe6   : > { %v5862_v36 = vpop.f32.mrf.mxu2 }
  0xe7   : > { %6971 = vst [vmem:[#allocation15_spill] sm:$0xff] %v5862_v36  ;;  %v3902_v36 = vld [vmem:[%s5613_s5 + $0x100] sm:$0xf] }
  0xe8   : > { %v5864_v39 = vpop.f32.mrf.mxu1  ;;  %v5874_v45 = vpop.f32.mrf.mxu3 }
  0xe9   : > { %6972 = vst [vmem:[#allocation16_spill] sm:$0xff] %v5864_v39 }
  0xea   : > { %6976 = vst [vmem:[#allocation20_spill] sm:$0xff] %v5874_v45  ;;  %v3834_v45 = vld [vmem:[%s5613_s5 + $0x80] sm:$0xf] }
  0xeb   : > { %v5868_v42 = vpop.f32.mrf.mxu0  ;;  %2270 = vmatmul.bf16.gmra.mxu1 %v4267_v37  ;;  %2335 = vmatmul.bf16.gmra.mxu2 %v4527_v38  ;;  %v3788_v37 = vld [vmem:[%s5613_s5 + $0x3c] sm:$0xf0]  ;;  %v3794_v38 = vld [vmem:[%s5613_s5 + $0x30] sm:$0xf]  ;;  %v3835_v13 = vor.u32 %v4957_v41, %v3834_v45 }
  0xed   : > { %2917 = vmatmul.bf16.gmra.mxu3 %v3819_v58  ;;  %v3791_v58 = vor.u32 %v4944_v28, %v3788_v37  ;;  %v3856_v28 = vld [vmem:[%s5613_s5 + $0xbc] sm:$0xf0] }
  0xee   : > { %2205 = vmatmul.bf16.gmra.mxu0 %v4007_v40  ;;  %v5870_v43 = vpop.f32.mrf.mxu2  ;;  %v4947_v40 = vld [vmem:[%s5613_s5 + $0x40] sm:$0xf0]  ;;  %v3859_v37 = vor.u32 %v4960_v26, %v3856_v28 }
  0xef   : > { %6974 = vst [vmem:[#allocation18_spill] sm:$0xff] %v5870_v43  ;;  %v3795_v59 = vor.u32 %v4947_v40, %v3794_v38  ;;  %v3808_v38 = vld [vmem:[%s5613_s5 + $0x64] sm:$0xf0]  ;;  %v3814_v40 = vld [vmem:[%s5613_s5 + $0x58] sm:$0xf] }
  0xf0   : > { %v5872_v44 = vpop.f32.mrf.mxu1  ;;  %v5890_v9 = vpop.f32.mrf.mxu3  ;;  %v4972_v43 = vld [vmem:[%s5613_s5 + $0x108] sm:$0xf0] }
  0xf1   : > { %6975 = vst [vmem:[#allocation19_spill] sm:$0xff] %v5872_v44 }
  0xf2   : > { %6979 = vst [vmem:[#allocation23_spill] sm:$0xff] %v5890_v9  ;;  %v3828_v9 = vld [vmem:[%s5613_s5 + $0x8c] sm:$0xf0] }
  0xf3   : > { %v5876_v47 = vpop.f32.mrf.mxu0 }
  0xf6   : > { %v5886_v0 = vpop.f32.mrf.mxu2 }
  0xf7   : > { %6977 = vst [vmem:[#allocation21_spill] sm:$0xff] %v5886_v0  ;;  %v3894_v0 = vld [vmem:[%s5613_s5 + $0xf8] sm:$0xf] }
  0xf8   : > { %v5888_v4 = vpop.f32.mrf.mxu1  ;;  %v5899_v22 = vpop.f32.mrf.mxu3 }
  0xf9   : > { %6978 = vst [vmem:[#allocation22_spill] sm:$0xff] %v5888_v4 }
  0xfa   : > { %6982 = vst [vmem:[#allocation26_spill] sm:$0xff] %v5899_v22 }
  0xfb   : > { %v5892_v19 = vpop.f32.mrf.mxu0  ;;  %2399 = vmatmul.bf16.vlgmr.msrb.gmra.mxu1 %v3771_v1  ;;  %2653 = vmatmul.bf16.vlgmr.msrb.gmra.mxu2 %v3775_v2 }
  0xfd   : > { %2922 = vmatmul.bf16.gmra.mxu3 %v3839_v35  ;;  %v4949_v35 = vld [vmem:[%s5613_s5 + $0x54] sm:$0xf] }
  0xfe   : > { %4888 = vmatmul.msk.bf16.vlgmr.msrb.gmra.mxu0 %vm1989_vm0, %v3783_v5  ;;  %v5895_v20 = vpop.f32.mrf.mxu2 }
  0xff   : > { %6980 = vst [vmem:[#allocation24_spill] sm:$0xff] %v5895_v20 }
 0x100   : > { %v5897_v21 = vpop.f32.mrf.mxu1  ;;  %v5915_v62 = vpop.f32.mrf.mxu3 }
 0x101   : > { %6981 = vst [vmem:[#allocation25_spill] sm:$0xff] %v5897_v21 }
 0x102   : > { %6985 = vst [vmem:[#allocation29_spill] sm:$0xff] %v5915_v62  ;;  %v3815_v62 = vor.u32 %v4952_v48, %v3814_v40  ;;  %v4965_v48 = vld [vmem:[%s5613_s5 + $0xd4] sm:$0xf] }
 0x103   : > { %v5901_v23 = vpop.f32.mrf.mxu0 }
 0x106   : > { %v5911_v53 = vpop.f32.mrf.mxu2 }
 0x107   : > { %6983 = vst [vmem:[#allocation27_spill] sm:$0xff] %v5911_v53  ;;  %v3882_v53 = vld [vmem:[%s5613_s5 + $0xd8] sm:$0xf] }
 0x108   : > { %v5913_v60 = vpop.f32.mrf.mxu1  ;;  %v5924_v5 = vpop.f32.mrf.mxu3 }
 0x109   : > { %6984 = vst [vmem:[#allocation28_spill] sm:$0xff] %v5913_v60 }
 0x10a   : > { %6988 = vst [vmem:[#allocation32_spill] sm:$0xff] %v5924_v5 }
 0x10b   : > { %v5917_v63 = vpop.f32.mrf.mxu0  ;;  %2404 = vmatmul.bf16.gmra.mxu1 %v3791_v58  ;;  %2658 = vmatmul.bf16.gmra.mxu2 %v3795_v59  ;;  %v4953_v58 = vld [vmem:[%s5613_s5 + $0x70] sm:$0xf0] }
 0x10c   : > { %v3823_v22 = vor.u32 %v4953_v58, %v3822_v50  ;;  %v3876_v50 = vld [vmem:[%s5613_s5 + $0xe4] sm:$0xf0]  ;;  %v4954_v58 = vld [vmem:[%s5613_s5 + $0x7c] sm:$0xf] }
 0x10d   : > { %2927 = vmatmul.bf16.gmra.mxu3 %v3859_v37 }
 0x10e   : > { %4889 = vmatmul.msk.bf16.gmra.mxu0 %vm1989_vm0, %v3803_v61  ;;  %v5920_v1 = vpop.f32.mrf.mxu2  ;;  %v3811_v61 = vor.u32 %v4949_v35, %v3808_v38 }
 0x10f   : > { %6986 = vst [vmem:[#allocation30_spill] sm:$0xff] %v5920_v1  ;;  %v4967_v1 = vld [vmem:[%s5613_s5 + $0xe0] sm:$0xf0] }
 0x110   : > { %v5922_v2 = vpop.f32.mrf.mxu1  ;;  %v5940_v26 = vpop.f32.mrf.mxu3 }
 0x111   : > { %6987 = vst [vmem:[#allocation31_spill] sm:$0xff] %v5922_v2 }
 0x112   : > { %6991 = vst [vmem:[#allocation35_spill] sm:$0xff] %v5940_v26  ;;  %v3879_v26 = vor.u32 %v4965_v48, %v3876_v50 }
 0x113   : > { %v5926_v25 = vpop.f32.mrf.mxu0 }
 0x116   : > { %v5936_v59 = vpop.f32.mrf.mxu2 }
 0x117   : > { %6989 = vst [vmem:[#allocation33_spill] sm:$0xff] %v5936_v59  ;;  %v3874_v59 = vld [vmem:[%s5613_s5 + $0xd0] sm:$0xf] }
 0x118   : > { %v5938_v5 = vpop.f32.mrf.mxu1  ;;  %v5949_v38 = vpop.f32.mrf.mxu3 }
 0x119   : > { %6990 = vst [vmem:[#allocation34_spill] sm:$0xff] %v5938_v5  ;;  %v4988_v5 = vld [vmem:[%s5613_s5 + $0x188] sm:$0xf0] }
 0x11a   : > { %6994 = vst [vmem:[#allocation38_spill] sm:$0xff] %v5949_v38 }
 0x11b   : > { %v5942_v28 = vpop.f32.mrf.mxu0  ;;  %2409 = vmatmul.bf16.gmra.mxu1 %v3811_v61  ;;  %2663 = vmatmul.bf16.gmra.mxu2 %v3815_v62  ;;  %v4958_v61 = vld [vmem:[%s5613_s5 + $0x98] sm:$0xf0]  ;;  %v3831_v62 = vor.u32 %v4954_v58, %v3828_v9  ;;  %v3896_v58 = vld [vmem:[%s5613_s5 + $0x10c] sm:$0xf0] }
 0x11c   : > { %v3843_v56 = vor.u32 %v4958_v61, %v3842_v17  ;;  %v4970_v17 = vld [vmem:[%s5613_s5 + $0xfc] sm:$0xf]  ;;  %v4959_v61 = vld [vmem:[%s5613_s5 + $0xa4] sm:$0xf] }
 0x11d   : > { %2932 = vmatmul.bf16.gmra.mxu3 %v3879_v26 }
 0x11e   : > { %4890 = vmatmul.msk.bf16.gmra.mxu0 %vm1989_vm0, %v3823_v22  ;;  %v5945_v37 = vpop.f32.mrf.mxu2 }
 0x11f   : > { %6992 = vst [vmem:[#allocation36_spill] sm:$0xff] %v5945_v37 }
 0x120   : > { %v5947_v35 = vpop.f32.mrf.mxu1  ;;  %v5965_v48 = vpop.f32.mrf.mxu3 }
 0x121   : > { %6993 = vst [vmem:[#allocation37_spill] sm:$0xff] %v5947_v35  ;;  %v4987_v35 = vld [vmem:[%s5613_s5 + $0x180] sm:$0xf0] }
 0x122   : > { %6997 = vst [vmem:[#allocation41_spill] sm:$0xff] %v5965_v48  ;;  %v3899_v48 = vor.u32 %v4970_v17, %v3896_v58 }
 0x123   : > { %v5951_v40 = vpop.f32.mrf.mxu0 }
 0x126   : > { %v5961_v22 = vpop.f32.mrf.mxu2 }
 0x127   : > { %6995 = vst [vmem:[#allocation39_spill] sm:$0xff] %v5961_v22  ;;  %v3862_v22 = vld [vmem:[%s5613_s5 + $0xb0] sm:$0xf] }
 0x128   : > { %v5963_v38 = vpop.f32.mrf.mxu1  ;;  %v5974_v41 = vpop.f32.mrf.mxu3 }
 0x129   : > { %6996 = vst [vmem:[#allocation40_spill] sm:$0xff] %v5963_v38  ;;  %v3954_v38 = vld [vmem:[%s5613_s5 + $0x170] sm:$0xf] }
 0x12a   : > { %7000 = vst [vmem:[#allocation44_spill] sm:$0xff] %v5974_v41  ;;  %v3955_v60 = vor.u32 %v4987_v35, %v3954_v38 }
 0x12b   : > { %v5967_v50 = vpop.f32.mrf.mxu0  ;;  %2414 = vmatmul.bf16.gmra.mxu1 %v3831_v62  ;;  %2668 = vmatmul.bf16.gmra.mxu2 %v3835_v13  ;;  %v4963_v62 = vld [vmem:[%s5613_s5 + $0xc0] sm:$0xf0]  ;;  %v3851_v13 = vor.u32 %v4959_v61, %v3848_v51  ;;  %v3916_v61 = vld [vmem:[%s5613_s5 + $0x134] sm:$0xf0] }
 0x12c   : > { %v3863_v37 = vor.u32 %v4963_v62, %v3862_v22  ;;  %v4975_v22 = vld [vmem:[%s5613_s5 + $0x124] sm:$0xf]  ;;  %v4964_v62 = vld [vmem:[%s5613_s5 + $0xcc] sm:$0xf] }
 0x12d   : > { %2937 = vmatmul.bf16.gmra.mxu3 %v3899_v48 }
 0x12e   : > { %4891 = vmatmul.msk.bf16.gmra.mxu0 %vm1989_vm0, %v3843_v56  ;;  %v5970_v26 = vpop.f32.mrf.mxu2 }
 0x12f   : > { %6998 = vst [vmem:[#allocation42_spill] sm:$0xff] %v5970_v26  ;;  %v3855_v26 = vor.u32 %v4962_v29, %v3854_v33 }
 0x130   : > { %v5972_v9 = vpop.f32.mrf.mxu1  ;;  %v5990_v17 = vpop.f32.mrf.mxu3 }
 0x131   : > { %6999 = vst [vmem:[#allocation43_spill] sm:$0xff] %v5972_v9 }
 0x132   : > { %7003 = vst [vmem:[#allocation47_spill] sm:$0xff] %v5990_v17  ;;  %v3919_v17 = vor.u32 %v4975_v22, %v3916_v61 }
 0x133   : > { %v5976_v45 = vpop.f32.mrf.mxu0 }
 0x136   : > { %v5986_v56 = vpop.f32.mrf.mxu2 }
 0x137   : > { %7001 = vst [vmem:[#allocation45_spill] sm:$0xff] %v5986_v56  ;;  %v3868_v56 = vld [vmem:[%s5613_s5 + $0xdc] sm:$0xf0] }
 0x138   : > { %v5988_v41 = vpop.f32.mrf.mxu1  ;;  %v5999_v29 = vpop.f32.mrf.mxu3 }
 0x139   : > { %7002 = vst [vmem:[#allocation46_spill] sm:$0xff] %v5988_v41 }
 0x13a   : > { %7006 = vst [vmem:[#allocation50_spill] sm:$0xff] %v5999_v29 }
 0x13b   : > { %v5992_v58 = vpop.f32.mrf.mxu0  ;;  %2419 = vmatmul.bf16.gmra.mxu1 %v3851_v13  ;;  %2673 = vmatmul.bf16.gmra.mxu2 %v3855_v26  ;;  %v4968_v13 = vld [vmem:[%s5613_s5 + $0xe8] sm:$0xf0]  ;;  %v3871_v26 = vor.u32 %v4964_v62, %v3868_v56  ;;  %v3936_v62 = vld [vmem:[%s5613_s5 + $0x15c] sm:$0xf0] }
 0x13c   : > { %v3883_v20 = vor.u32 %v4968_v13, %v3882_v53  ;;  %v4980_v53 = vld [vmem:[%s5613_s5 + $0x14c] sm:$0xf]  ;;  %v4969_v13 = vld [vmem:[%s5613_s5 + $0xf4] sm:$0xf] }
 0x13d   : > { %2942 = vmatmul.bf16.gmra.mxu3 %v3919_v17 }
 0x13e   : > { %4892 = vmatmul.msk.bf16.gmra.mxu0 %vm1989_vm0, %v3863_v37  ;;  %v5995_v48 = vpop.f32.mrf.mxu2 }
 0x13f   : > { %7004 = vst [vmem:[#allocation48_spill] sm:$0xff] %v5995_v48  ;;  %v3875_v48 = vor.u32 %v4967_v1, %v3874_v59 }
 0x140   : > { %v5997_v51 = vpop.f32.mrf.mxu1  ;;  %v6015_v22 = vpop.f32.mrf.mxu3 }
 0x141   : > { %7005 = vst [vmem:[#allocation49_spill] sm:$0xff] %v5997_v51 }
 0x142   : > { %7009 = vst [vmem:[#allocation53_spill] sm:$0xff] %v6015_v22  ;;  %v3939_v22 = vor.u32 %v4980_v53, %v3936_v62 }
 0x143   : > { %v6001_v33 = vpop.f32.mrf.mxu0 }
 0x146   : > { %v6011_v37 = vpop.f32.mrf.mxu2 }
 0x147   : > { %7007 = vst [vmem:[#allocation51_spill] sm:$0xff] %v6011_v37  ;;  %v3888_v37 = vld [vmem:[%s5613_s5 + $0x104] sm:$0xf0] }
 0x148   : > { %v6013_v29 = vpop.f32.mrf.mxu1  ;;  %v6024_v1 = vpop.f32.mrf.mxu3 }
 0x149   : > { %7008 = vst [vmem:[#allocation52_spill] sm:$0xff] %v6013_v29 }
 0x14a   : > { %7012 = vst [vmem:[#allocation56_spill] sm:$0xff] %v6024_v1 }
 0x14b   : > { %v6017_v61 = vpop.f32.mrf.mxu0  ;;  %2424 = vmatmul.bf16.gmra.mxu1 %v3871_v26  ;;  %2678 = vmatmul.bf16.gmra.mxu2 %v3875_v48  ;;  %v4973_v26 = vld [vmem:[%s5613_s5 + $0x110] sm:$0xf0]  ;;  %v3891_v48 = vor.u32 %v4969_v13, %v3888_v37  ;;  %v3956_v13 = vld [vmem:[%s5613_s5 + $0x184] sm:$0xf0] }
 0x14c   : > { %v3903_v15 = vor.u32 %v4973_v26, %v3902_v36  ;;  %v4985_v36 = vld [vmem:[%s5613_s5 + $0x174] sm:$0xf]  ;;  %v4974_v26 = vld [vmem:[%s5613_s5 + $0x11c] sm:$0xf] }
 0x14d   : > { %2947 = vmatmul.bf16.gmra.mxu3 %v3939_v22 }
 0x14e   : > { %4893 = vmatmul.msk.bf16.gmra.mxu0 %vm1989_vm0, %v3883_v20  ;;  %v6020_v17 = vpop.f32.mrf.mxu2 }
 0x14f   : > { %7010 = vst [vmem:[#allocation54_spill] sm:$0xff] %v6020_v17  ;;  %v3895_v17 = vor.u32 %v4972_v43, %v3894_v0 }
 0x150   : > { %v6022_v56 = vpop.f32.mrf.mxu1  ;;  %v6040_v53 = vpop.f32.mrf.mxu3 }
 0x151   : > { %7011 = vst [vmem:[#allocation55_spill] sm:$0xff] %v6022_v56  ;;  %v3942_v56 = vld [vmem:[%s5613_s5 + $0x150] sm:$0xf] }
 0x153   : > { %v6026_v59 = vpop.f32.mrf.mxu0 }
 0x156   : > { %v6036_v20 = vpop.f32.mrf.mxu2 }
 0x157   : > { %7013 = vst [vmem:[#allocation57_spill] sm:$0xff] %v6036_v20  ;;  %v3959_v20 = vor.u32 %v4985_v36, %v3956_v13 }
 0x158   : > { %v6038_v1 = vpop.f32.mrf.mxu1  ;;  %v6049_v43 = vpop.f32.mrf.mxu3 }
 0x159   : > { %7014 = vst [vmem:[#allocation58_spill] sm:$0xff] %v6038_v1  ;;  %v4982_v1 = vld [vmem:[%s5613_s5 + $0x158] sm:$0xf0] }
 0x15b   : > { %v6042_v62 = vpop.f32.mrf.mxu0  ;;  %2429 = vmatmul.bf16.gmra.mxu1 %v3891_v48  ;;  %2683 = vmatmul.bf16.gmra.mxu2 %v3895_v17  ;;  %v4978_v48 = vld [vmem:[%s5613_s5 + $0x138] sm:$0xf0]  ;;  %v3911_v17 = vor.u32 %v4974_v26, %v3908_v3  ;;  %v3976_v26 = vld [vmem:[%s5613_s5 + $0x1ac] sm:$0xf0] }
 0x15c   : > { %v3923_v10 = vor.u32 %v4978_v48, %v3922_v31  ;;  %v4990_v31 = vld [vmem:[%s5613_s5 + $0x19c] sm:$0xf]  ;;  %v4979_v48 = vld [vmem:[%s5613_s5 + $0x144] sm:$0xf] }
 0x15d   : > { %2952 = vmatmul.bf16.gmra.mxu3 %v3959_v20 }
 0x15e   : > { %4894 = vmatmul.msk.bf16.gmra.mxu0 %vm1989_vm0, %v3903_v15  ;;  %v6045_v22 = vpop.f32.mrf.mxu2 }
 0x15f   : > { %7015 = vst [vmem:[#allocation59_spill] sm:$0xff] %v6045_v22  ;;  %v3915_v22 = vor.u32 %v4977_v46, %v3914_v54 }
 0x160   : > { %v6047_v37 = vpop.f32.mrf.mxu1  ;;  %v6065_v36 = vpop.f32.mrf.mxu3 }
 0x161   : > { %7016 = vst [vmem:[#allocation60_spill] sm:$0xff] %v6047_v37  ;;  %v3934_v37 = vld [vmem:[%s5613_s5 + $0x148] sm:$0xf] }
 0x163   : > { %v6051_v0 = vpop.f32.mrf.mxu0 }
 0x166   : > { %v6061_v15 = vpop.f32.mrf.mxu2 }
 0x167   : > { %7017 = vst [vmem:[#allocation61_spill] sm:$0xff] %v6061_v15  ;;  %v3979_v15 = vor.u32 %v4990_v31, %v3976_v26  ;;  %v6093_v31 = vld [vmem:[%s6956_s2] ss:$0 sm:$0xff] }
 0x168   : > { %v6063_v24 = vpop.f32.mrf.mxu1  ;;  %v6074_v46 = vpop.f32.mrf.mxu3 }
 0x169   : > { %7018 = vst [vmem:[#allocation62_spill] sm:$0xff] %v6063_v24  ;;  %v3928_v24 = vld [vmem:[%s5613_s5 + $0x154] sm:$0xf0] }
 0x16b   : > { %v6067_v13 = vpop.f32.mrf.mxu0  ;;  %2434 = vmatmul.bf16.gmra.mxu1 %v3911_v17  ;;  %2688 = vmatmul.bf16.gmra.mxu2 %v3915_v22  ;;  %v4983_v17 = vld [vmem:[%s5613_s5 + $0x160] sm:$0xf0] }
 0x16c   : > { %v3943_v29 = vor.u32 %v4983_v17, %v3942_v56  ;;  %v4995_v17 = vld [vmem:[%s5613_s5 + $0x1c4] sm:$0xf] }
 0x16d   : > { %2957 = vmatmul.bf16.gmra.mxu3 %v3979_v15 }
 0x16e   : > { %4895 = vmatmul.msk.bf16.gmra.mxu0 %vm1989_vm0, %v3923_v10  ;;  %v6070_v20 = vpop.f32.mrf.mxu2  ;;  %v3931_v10 = vor.u32 %v4979_v48, %v3928_v24  ;;  %v2147_v24 = vadd.f32 %v6093_v31, %v5756_v8 }
 0x16f   : > { %7019 = vst [vmem:[#allocation63_spill] sm:$0xff] %v6070_v20  ;;  %v3935_v20 = vor.u32 %v4982_v1, %v3934_v37 }
 0x170   : > { %v6072_v3 = vpop.f32.mrf.mxu1  ;;  %v6088_v51 = vpop.f32.mrf.mxu3 }
 0x171   : > { %7020 = vst [vmem:[#allocation64_spill] sm:$0xff] %v6072_v3 }
 0x173   : > { %v6076_v54 = vpop.f32.mrf.mxu0 }
 0x176   : > { %v6086_v22 = vpop.f32.mrf.mxu2 }
 0x177   : > { %7021 = vst [vmem:[#allocation65_spill] sm:$0xff] %v6086_v22  ;;  %v3996_v22 = vld [vmem:[%s5613_s5 + $0x1d4] sm:$0xf0] }
 0x178   : > { %v2400_v3 = vpop.f32.mrf.mxu1  ;;  %v6098_v15 = vpop.f32.mrf.mxu3  ;;  %v3999_v9 = vor.u32 %v4995_v17, %v3996_v22 }
 0x179   : > { %v2401_v1 = vadd.f32 %v2400_v3, %v2147_v24  ;;  %v3962_v24 = vld [vmem:[%s5613_s5 + $0x178] sm:$0xf] }
 0x17a   : > { %v3963_v4 = vor.u32 %v4988_v5, %v3962_v24  ;;  %v4993_v24 = vld [vmem:[%s5613_s5 + $0x1b0] sm:$0xf0] }
 0x17b   : > { %v3162_v41 = vpop.f32.mrf.mxu0  ;;  %2439 = vmatmul.bf16.gmra.mxu1 %v3931_v10  ;;  %2693 = vmatmul.bf16.gmra.mxu2 %v3935_v20  ;;  %v2149_v20 = vadd.f32 %v6093_v31, %v5765_v12  ;;  %v4984_v10 = vld [vmem:[%s5613_s5 + $0x16c] sm:$0xf] }
 0x17d   : > { %2962 = vmatmul.bf16.gmra.mxu3 %v3999_v9 }
 0x17e   : > { %4896 = vmatmul.msk.bf16.gmra.mxu0 %vm1989_vm0, %v3943_v29  ;;  %v2654_v56 = vpop.f32.mrf.mxu2  ;;  %v3948_v29 = vld [vmem:[%s5613_s5 + $0x17c] sm:$0xf0] }
 0x17f   : > { %v2655_v26 = vadd.f32 %v2654_v56, %v2401_v1  ;;  %v3951_v1 = vor.u32 %v4984_v10, %v3948_v29  ;;  %v3974_v10 = vld [vmem:[%s5613_s5 + $0x198] sm:$0xf]  ;;  %v4992_v29 = vld [vmem:[%s5613_s5 + $0x1a8] sm:$0xf0] }
 0x180   : > { %v2402_v37 = vpop.f32.mrf.mxu1  ;;  %v6111_v44 = vpop.f32.mrf.mxu3 }
 0x181   : > { %v2909_v8 = vadd.f32 %v6040_v53, %v2655_v26  ;;  %v2403_v3 = vadd.f32 %v2402_v37, %v2149_v20  ;;  %v2154_v37 = vadd.f32 %v6093_v31, %v5795_v34  ;;  %v4989_v26 = vld [vmem:[%s5613_s5 + $0x194] sm:$0xf]  ;;  %v3968_v20 = vld [vmem:[%s5613_s5 + $0x1a4] sm:$0xf0] }
 0x183   : > { %v3164_v48 = vpop.f32.mrf.mxu0  ;;  %v3163_v12 = vadd.f32 %v3162_v41, %v2909_v8 }
 0x185   : > { %v3407_v35 = vmax.f32 %v3163_v12, 0.0  ;;  %v3971_v12 = vor.u32 %v4989_v26, %v3968_v20  ;;  %v4036_v20 = vld [vmem:[%s5613_s5 + $0x224] sm:$0xf0] }
 0x186   : > { %v2656_v2 = vpop.f32.mrf.mxu2 }
 0x187   : > { %v2657_v56 = vadd.f32 %v2656_v2, %v2403_v3  ;;  %v2152_v2 = vadd.f32 %v6093_v31, %v5787_v30  ;;  %v3982_v3 = vld [vmem:[%s5613_s5 + $0x1a0] sm:$0xf] }
 0x188   : > { %v2405_v21 = vpop.f32.mrf.mxu1  ;;  %v6123_v41 = vpop.f32.mrf.mxu3 }
 0x189   : > { %v2911_v22 = vadd.f32 %v6049_v43, %v2657_v56  ;;  %v4016_v43 = vld [vmem:[%s5613_s5 + $0x1fc] sm:$0xf0] }
 0x18b   : > { %v3167_v17 = vpop.f32.mrf.mxu0  ;;  %v3165_v39 = vadd.f32 %v3164_v48, %v2911_v22  ;;  %2444 = vmatmul.bf16.gmra.mxu1 %v3951_v1  ;;  %2698 = vmatmul.bf16.gmra.mxu2 %v3955_v60  ;;  %v2406_v60 = vadd.f32 %v2405_v21, %v2152_v2  ;;  %v3975_v22 = vor.u32 %v4992_v29, %v3974_v10  ;;  %v4994_v10 = vld [vmem:[%s5613_s5 + $0x1bc] sm:$0xf] }
 0x18d   : > { %v3408_v5 = vmax.f32 %v3165_v39, 0.0  ;;  %v5000_v39 = vld [vmem:[%s5613_s5 + $0x1ec] sm:$0xf] }
 0x18e   : > { %4897 = vmatmul.msk.bf16.gmra.mxu0 %vm1989_vm0, %v3963_v4  ;;  %v2659_v38 = vpop.f32.mrf.mxu2  ;;  %v4019_v48 = vor.u32 %v5000_v39, %v4016_v43 }
 0x18f   : > { %v5223_v9 = vpack.c.bf16 %v3408_v5, %v3407_v35  ;;  %v2660_v30 = vadd.f32 %v2659_v38, %v2406_v60  ;;  %v3983_v35 = vor.u32 %v4993_v24, %v3982_v3  ;;  %v4997_v3 = vld [vmem:[%s5613_s5 + $0x1d0] sm:$0xf0] }
 0x190   : > { %v2407_v4 = vpop.f32.mrf.mxu1  ;;  %2967 = vmatmul.bf16.gmra.mxu3 %v4019_v48  ;;  %v6137_v5 = vpop.f32.mrf.mxu3  ;;  %v5005_v48 = vld [vmem:[%s5613_s5 + $0x214] sm:$0xf] }
 0x191   : > { %5224 = vst [vmem:[%s6121_s23] sm:$0xff] %v5223_v9   ;;  %v2914_v21 = vadd.f32 %v6065_v36, %v2660_v30  ;;  %v2408_v8 = vadd.f32 %v2407_v4, %v2154_v37  ;;  %v2157_v36 = vadd.f32 %v6093_v31, %v5817_v52  ;;  %v2159_v52 = vadd.f32 %v6093_v31, %v5828_v57 }
 0x192   : > { %v4039_v29 = vor.u32 %v5005_v48, %v4036_v20 }
 0x193   : > { %v3169_v53 = vpop.f32.mrf.mxu0  ;;  %v3168_v34 = vadd.f32 %v3167_v17, %v2914_v21  ;;  %v3988_v21 = vld [vmem:[%s5613_s5 + $0x1cc] sm:$0xf0] }
 0x195   : > { %v3409_v4 = vmax.f32 %v3168_v34, 0.0 }
 0x196   : > { %v2661_v56 = vpop.f32.mrf.mxu2 }
 0x197   : > { %v2662_v1 = vadd.f32 %v2661_v56, %v2408_v8  ;;  %v3994_v8 = vld [vmem:[%s5613_s5 + $0x1c0] sm:$0xf] }
 0x198   : > { %v2410_v2 = vpop.f32.mrf.mxu1  ;;  %v3995_v34 = vor.u32 %v4997_v3, %v3994_v8  ;;  %v4008_v8 = vld [vmem:[%s5613_s5 + $0x1f4] sm:$0xf0]  ;;  %v4014_v3 = vld [vmem:[%s5613_s5 + $0x1e8] sm:$0xf] }
 0x199   : > { %v2916_v38 = vadd.f32 %v6074_v46, %v2662_v1  ;;  %v2411_v46 = vadd.f32 %v2410_v2, %v2157_v36  ;;  %v4002_v1 = vld [vmem:[%s5613_s5 + $0x1c8] sm:$0xf] }
 0x19b   : > { %v3172_v9 = vpop.f32.mrf.mxu0  ;;  %v3170_v60 = vadd.f32 %v3169_v53, %v2916_v38  ;;  %2449 = vmatmul.bf16.gmra.mxu1 %v3971_v12  ;;  %2703 = vmatmul.bf16.gmra.mxu2 %v3975_v22  ;;  %v6143_v53 = vpop.f32.mrf.mxu3  ;;  %v4998_v12 = vld [vmem:[%s5613_s5 + $0x1d8] sm:$0xf0] }
 0x19d   : > { %v3410_v30 = vmax.f32 %v3170_v60, 0.0  ;;  %v4003_v60 = vor.u32 %v4998_v12, %v4002_v1  ;;  %v4022_v12 = vld [vmem:[%s5613_s5 + $0x1f0] sm:$0xf] }
 0x19e   : > { %4898 = vmatmul.msk.bf16.gmra.mxu0 %vm1989_vm0, %v3983_v35  ;;  %v2664_v17 = vpop.f32.mrf.mxu2  ;;  %v3991_v35 = vor.u32 %v4994_v10, %v3988_v21  ;;  %v4056_v10 = vld [vmem:[%s5613_s5 + $0x24c] sm:$0xf0] }
 0x19f   : > { %v5228_v39 = vpack.c.bf16 %v3410_v30, %v3409_v4  ;;  %v2665_v37 = vadd.f32 %v2664_v17, %v2411_v46 }
 0x1a0   : > { %v2412_v43 = vpop.f32.mrf.mxu1  ;;  %2972 = vmatmul.bf16.gmra.mxu3 %v4039_v29  ;;  %v4999_v29 = vld [vmem:[%s5613_s5 + $0x1e4] sm:$0xf] }
 0x1a1   : > { %5465 = vst [vmem:[%s6121_s23 + $0x8] sm:$0xff] %v5228_v39   ;;  %v2919_v24 = vadd.f32 %v6088_v51, %v2665_v37  ;;  %v2413_v56 = vadd.f32 %v2412_v43, %v2159_v52  ;;  %v2162_v51 = vadd.f32 %v6093_v31, %v5844_v14  ;;  %v5010_v52 = vld [vmem:[%s5613_s5 + $0x23c] sm:$0xf]  ;;  %v2164_v14 = vadd.f32 %v6093_v31, %v5852_v18 }
 0x1a2   : > { %v4059_v21 = vor.u32 %v5010_v52, %v4056_v10  ;;  %v5015_v52 = vld [vmem:[%s5613_s5 + $0x264] sm:$0xf]  ;;  %v4076_v10 = vld [vmem:[%s5613_s5 + $0x274] sm:$0xf0] }
 0x1a3   : > { %v3174_v26 = vpop.f32.mrf.mxu0  ;;  %v6157_v36 = vpop.f32.mrf.mxu3  ;;  %v3173_v57 = vadd.f32 %v3172_v9, %v2919_v24  ;;  %v5002_v24 = vld [vmem:[%s5613_s5 + $0x1f8] sm:$0xf0] }
 0x1a5   : > { %v3411_v39 = vmax.f32 %v3173_v57, 0.0 }
 0x1a6   : > { %v2666_v22 = vpop.f32.mrf.mxu2 }
 0x1a7   : > { %v2667_v2 = vadd.f32 %v2666_v22, %v2413_v56  ;;  %v5003_v22 = vld [vmem:[%s5613_s5 + $0x200] sm:$0xf0] }
 0x1a8   : > { %v2415_v38 = vpop.f32.mrf.mxu1  ;;  %v4023_v57 = vor.u32 %v5003_v22, %v4022_v12  ;;  %v5008_v12 = vld [vmem:[%s5613_s5 + $0x228] sm:$0xf0] }
 0x1a9   : > { %v2921_v4 = vadd.f32 %v6098_v15, %v2667_v2  ;;  %v2416_v15 = vadd.f32 %v2415_v38, %v2162_v51  ;;  %v4015_v38 = vor.u32 %v5002_v24, %v4014_v3  ;;  %v5007_v3 = vld [vmem:[%s5613_s5 + $0x220] sm:$0xf0] }
 0x1ab   : > { %v3177_v30 = vpop.f32.mrf.mxu0  ;;  %v3175_v17 = vadd.f32 %v3174_v26, %v2921_v4  ;;  %2454 = vmatmul.bf16.gmra.mxu1 %v3991_v35  ;;  %2708 = vmatmul.bf16.gmra.mxu2 %v3995_v34  ;;  %v6163_v26 = vpop.f32.mrf.mxu3  ;;  %v4011_v34 = vor.u32 %v4999_v29, %v4008_v8  ;;  %v4079_v29 = vor.u32 %v5015_v52, %v4076_v10  ;;  %v4034_v8 = vld [vmem:[%s5613_s5 + $0x210] sm:$0xf]  ;;  %v5009_v52 = vld [vmem:[%s5613_s5 + $0x234] sm:$0xf] }
 0x1ad   : > { %v3412_v46 = vmax.f32 %v3175_v17, 0.0 }
 0x1ae   : > { %4899 = vmatmul.msk.bf16.gmra.mxu0 %vm1989_vm0, %v4003_v60  ;;  %v2669_v9 = vpop.f32.mrf.mxu2 }
 0x1af   : > { %v5233_v43 = vpack.c.bf16 %v3412_v46, %v3411_v39  ;;  %v2670_v48 = vadd.f32 %v2669_v9, %v2416_v15 }
 0x1b0   : > { %v2417_v37 = vpop.f32.mrf.mxu1  ;;  %2977 = vmatmul.bf16.gmra.mxu3 %v4059_v21  ;;  %v4028_v21 = vld [vmem:[%s5613_s5 + $0x21c] sm:$0xf0] }
 0x1b1   : > { %5466 = vst [vmem:[%s6121_s23 + $0x10] sm:$0xff] %v5233_v43   ;;  %v2924_v56 = vadd.f32 %v6111_v44, %v2670_v48  ;;  %v2418_v1 = vadd.f32 %v2417_v37, %v2164_v14  ;;  %v2167_v44 = vadd.f32 %v6093_v31, %v5868_v42  ;;  %v2169_v42 = vadd.f32 %v6093_v31, %v5876_v47  ;;  %v5004_v14 = vld [vmem:[%s5613_s5 + $0x20c] sm:$0xf] }
 0x1b3   : > { %v3179_v20 = vpop.f32.mrf.mxu0  ;;  %v6177_v4 = vpop.f32.mrf.mxu3  ;;  %v3178_v18 = vadd.f32 %v3177_v30, %v2924_v56 }
 0x1b5   : > { %v3413_v46 = vmax.f32 %v3178_v18, 0.0 }
 0x1b6   : > { %v2671_v2 = vpop.f32.mrf.mxu2 }
 0x1b7   : > { %v2672_v35 = vadd.f32 %v2671_v2, %v2418_v1  ;;  %v4042_v1 = vld [vmem:[%s5613_s5 + $0x218] sm:$0xf] }
 0x1b8   : > { %v2420_v60 = vpop.f32.mrf.mxu1 }
 0x1b9   : > { %v2926_v17 = vadd.f32 %v6123_v41, %v2672_v35  ;;  %v2421_v41 = vadd.f32 %v2420_v60, %v2167_v44  ;;  %v4031_v35 = vor.u32 %v5004_v14, %v4028_v21  ;;  %v4043_v60 = vor.u32 %v5008_v12, %v4042_v1  ;;  %v4054_v14 = vld [vmem:[%s5613_s5 + $0x238] sm:$0xf] }
 0x1bb   : > { %v3182_v51 = vpop.f32.mrf.mxu0  ;;  %v3180_v39 = vadd.f32 %v3179_v20, %v2926_v17  ;;  %2459 = vmatmul.bf16.gmra.mxu1 %v4011_v34  ;;  %2713 = vmatmul.bf16.gmra.mxu2 %v4015_v38  ;;  %v6183_v37 = vpop.f32.mrf.mxu3  ;;  %v4035_v34 = vor.u32 %v5007_v3, %v4034_v8  ;;  %v4062_v3 = vld [vmem:[%s5613_s5 + $0x240] sm:$0xf] }
 0x1bd   : > { %v3414_v9 = vmax.f32 %v3180_v39, 0.0 }
 0x1be   : > { %4900 = vmatmul.msk.bf16.gmra.mxu0 %vm1989_vm0, %v4023_v57  ;;  %v2674_v30 = vpop.f32.mrf.mxu2 }
 0x1bf   : > { %v5238_v43 = vpack.c.bf16 %v3414_v9, %v3413_v46  ;;  %v2675_v48 = vadd.f32 %v2674_v30, %v2421_v41 }
 0x1c0   : > { %v2422_v15 = vpop.f32.mrf.mxu1  ;;  %2982 = vmatmul.bf16.gmra.mxu3 %v4079_v29  ;;  %v5012_v29 = vld [vmem:[%s5613_s5 + $0x248] sm:$0xf0] }
 0x1c1   : > { %5467 = vst [vmem:[%s6121_s23 + $0x18] sm:$0xff] %v5238_v43   ;;  %v2929_v24 = vadd.f32 %v6137_v5, %v2675_v48  ;;  %v2423_v56 = vadd.f32 %v2422_v15, %v2169_v42  ;;  %v2172_v5 = vadd.f32 %v6093_v31, %v5892_v19  ;;  %v5020_v48 = vld [vmem:[%s5613_s5 + $0x28c] sm:$0xf]  ;;  %v2174_v19 = vadd.f32 %v6093_v31, %v5901_v23  ;;  %v4048_v42 = vld [vmem:[%s5613_s5 + $0x244] sm:$0xf0] }
 0x1c2   : > { %v4051_v12 = vor.u32 %v5009_v52, %v4048_v42  ;;  %v4082_v42 = vld [vmem:[%s5613_s5 + $0x268] sm:$0xf] }
 0x1c3   : > { %v3184_v20 = vpop.f32.mrf.mxu0  ;;  %v6197_v57 = vpop.f32.mrf.mxu3  ;;  %v3183_v47 = vadd.f32 %v3182_v51, %v2929_v24  ;;  %v5013_v24 = vld [vmem:[%s5613_s5 + $0x250] sm:$0xf0] }
 0x1c5   : > { %v3415_v44 = vmax.f32 %v3183_v47, 0.0 }
 0x1c6   : > { %v2676_v22 = vpop.f32.mrf.mxu2 }
 0x1c7   : > { %v2677_v2 = vadd.f32 %v2676_v22, %v2423_v56  ;;  %v4055_v22 = vor.u32 %v5012_v29, %v4054_v14  ;;  %v5018_v14 = vld [vmem:[%s5613_s5 + $0x278] sm:$0xf0] }
 0x1c8   : > { %v2425_v38 = vpop.f32.mrf.mxu1 }
 0x1c9   : > { %v2931_v18 = vadd.f32 %v6143_v53, %v2677_v2  ;;  %v2426_v53 = vadd.f32 %v2425_v38, %v2172_v5 }
 0x1cb   : > { %v3187_v17 = vpop.f32.mrf.mxu0  ;;  %v3185_v39 = vadd.f32 %v3184_v20, %v2931_v18  ;;  %2464 = vmatmul.bf16.gmra.mxu1 %v4031_v35  ;;  %2718 = vmatmul.bf16.gmra.mxu2 %v4035_v34  ;;  %v6203_v43 = vpop.f32.mrf.mxu3  ;;  %v4096_v20 = vld [vmem:[%s5613_s5 + $0x29c] sm:$0xf0]  ;;  %v4063_v35 = vor.u32 %v5013_v24, %v4062_v3 }
 0x1cc   : > { %v4099_v10 = vor.u32 %v5020_v48, %v4096_v20  ;;  %v4068_v48 = vld [vmem:[%s5613_s5 + $0x26c] sm:$0xf0]  ;;  %v4074_v20 = vld [vmem:[%s5613_s5 + $0x260] sm:$0xf] }
 0x1cd   : > { %v3416_v46 = vmax.f32 %v3185_v39, 0.0 }
 0x1ce   : > { %4901 = vmatmul.msk.bf16.gmra.mxu0 %vm1989_vm0, %v4043_v60  ;;  %v2679_v51 = vpop.f32.mrf.mxu2 }
 0x1cf   : > { %v5243_v9 = vpack.c.bf16 %v3416_v46, %v3415_v44  ;;  %v2680_v41 = vadd.f32 %v2679_v51, %v2426_v53  ;;  %v5025_v53 = vld [vmem:[%s5613_s5 + $0x2b4] sm:$0xf] }
 0x1d0   : > { %v2427_v30 = vpop.f32.mrf.mxu1  ;;  %2987 = vmatmul.bf16.gmra.mxu3 %v4099_v10 }
 0x1d1   : > { %5468 = vst [vmem:[%s6121_s23 + $0x20] sm:$0xff] %v5243_v9   ;;  %v2934_v21 = vadd.f32 %v6157_v36, %v2680_v41  ;;  %v2428_v8 = vadd.f32 %v2427_v30, %v2174_v19  ;;  %v2177_v36 = vadd.f32 %v6093_v31, %v5917_v63  ;;  %v4116_v30 = vld [vmem:[%s5613_s5 + $0x2c4] sm:$0xf0]  ;;  %v2179_v63 = vadd.f32 %v6093_v31, %v5926_v25  ;;  %v5014_v41 = vld [vmem:[%s5613_s5 + $0x25c] sm:$0xf] }
 0x1d2   : > { %v5017_v19 = vld [vmem:[%s5613_s5 + $0x270] sm:$0xf0] }
 0x1d3   : > { %v3189_v15 = vpop.f32.mrf.mxu0  ;;  %v6217_v34 = vpop.f32.mrf.mxu3  ;;  %v3188_v23 = vadd.f32 %v3187_v17, %v2934_v21  ;;  %v4075_v3 = vor.u32 %v5017_v19, %v4074_v20 }
 0x1d5   : > { %v3417_v18 = vmax.f32 %v3188_v23, 0.0 }
 0x1d6   : > { %v2681_v56 = vpop.f32.mrf.mxu2 }
 0x1d7   : > { %v2682_v1 = vadd.f32 %v2681_v56, %v2428_v8  ;;  %v4071_v8 = vor.u32 %v5014_v41, %v4068_v48  ;;  %v4083_v56 = vor.u32 %v5018_v14, %v4082_v42  ;;  %v4102_v41 = vld [vmem:[%s5613_s5 + $0x290] sm:$0xf] }
 0x1d8   : > { %v2430_v2 = vpop.f32.mrf.mxu1 }
 0x1d9   : > { %v2936_v38 = vadd.f32 %v6163_v26, %v2682_v1  ;;  %v2431_v26 = vadd.f32 %v2430_v2, %v2177_v36 }
 0x1db   : > { %v3192_v60 = vpop.f32.mrf.mxu0  ;;  %v3190_v47 = vadd.f32 %v3189_v15, %v2936_v38  ;;  %2469 = vmatmul.bf16.gmra.mxu1 %v4051_v12  ;;  %2723 = vmatmul.bf16.gmra.mxu2 %v4055_v22  ;;  %v6223_v46 = vpop.f32.mrf.mxu3  ;;  %v4119_v15 = vor.u32 %v5025_v53, %v4116_v30  ;;  %v5022_v53 = vld [vmem:[%s5613_s5 + $0x298] sm:$0xf0] }
 0x1dd   : > { %v3418_v39 = vmax.f32 %v3190_v47, 0.0 }
 0x1de   : > { %4902 = vmatmul.msk.bf16.gmra.mxu0 %vm1989_vm0, %v4063_v35  ;;  %v2684_v17 = vpop.f32.mrf.mxu2 }
 0x1df   : > { %v5248_v5 = vpack.c.bf16 %v3418_v39, %v3417_v18  ;;  %v2685_v51 = vadd.f32 %v2684_v17, %v2431_v26  ;;  %v5030_v17 = vld [vmem:[%s5613_s5 + $0x2dc] sm:$0xf]  ;;  %v5019_v26 = vld [vmem:[%s5613_s5 + $0x284] sm:$0xf] }
 0x1e0   : > { %v2432_v44 = vpop.f32.mrf.mxu1  ;;  %2992 = vmatmul.bf16.gmra.mxu3 %v4119_v15  ;;  %v5023_v15 = vld [vmem:[%s5613_s5 + $0x2a0] sm:$0xf0] }
 0x1e1   : > { %5469 = vst [vmem:[%s6121_s23 + $0x28] sm:$0xff] %v5248_v5   ;;  %v2939_v52 = vadd.f32 %v6177_v4, %v2685_v51  ;;  %v2433_v10 = vadd.f32 %v2432_v44, %v2179_v63  ;;  %v2182_v4 = vadd.f32 %v6093_v31, %v5942_v28  ;;  %v4136_v5 = vld [vmem:[%s5613_s5 + $0x2ec] sm:$0xf0]  ;;  %v2184_v28 = vadd.f32 %v6093_v31, %v5951_v40  ;;  %v4088_v51 = vld [vmem:[%s5613_s5 + $0x294] sm:$0xf0] }
 0x1e2   : > { %v4139_v44 = vor.u32 %v5030_v17, %v4136_v5  ;;  %v4091_v19 = vor.u32 %v5019_v26, %v4088_v51  ;;  %v4103_v42 = vor.u32 %v5023_v15, %v4102_v41  ;;  %v4122_v5 = vld [vmem:[%s5613_s5 + $0x2b8] sm:$0xf] }
 0x1e3   : > { %v3194_v9 = vpop.f32.mrf.mxu0  ;;  %v6237_v1 = vpop.f32.mrf.mxu3  ;;  %v3193_v25 = vadd.f32 %v3192_v60, %v2939_v52 }
 0x1e5   : > { %v3419_v35 = vmax.f32 %v3193_v25, 0.0 }
 0x1e6   : > { %v2686_v29 = vpop.f32.mrf.mxu2 }
 0x1e7   : > { %v2687_v21 = vadd.f32 %v2686_v29, %v2433_v10 }
 0x1e8   : > { %v2435_v24 = vpop.f32.mrf.mxu1 }
 0x1e9   : > { %v2941_v12 = vadd.f32 %v6183_v37, %v2687_v21  ;;  %v2436_v37 = vadd.f32 %v2435_v24, %v2182_v4 }
 0x1eb   : > { %v3197_v22 = vpop.f32.mrf.mxu0  ;;  %v3195_v2 = vadd.f32 %v3194_v9, %v2941_v12  ;;  %2474 = vmatmul.bf16.gmra.mxu1 %v4071_v8  ;;  %2728 = vmatmul.bf16.gmra.mxu2 %v4075_v3  ;;  %v6243_v36 = vpop.f32.mrf.mxu3  ;;  %v4094_v9 = vld [vmem:[%s5613_s5 + $0x288] sm:$0xf] }
 0x1ec   : > { %v4095_v52 = vor.u32 %v5022_v53, %v4094_v9 }
 0x1ed   : > { %v3420_v23 = vmax.f32 %v3195_v2, 0.0 }
 0x1ee   : > { %4903 = vmatmul.msk.bf16.gmra.mxu0 %vm1989_vm0, %v4083_v56  ;;  %v2689_v38 = vpop.f32.mrf.mxu2 }
 0x1ef   : > { %v5253_v60 = vpack.c.bf16 %v3420_v23, %v3419_v35  ;;  %v2690_v18 = vadd.f32 %v2689_v38, %v2436_v37  ;;  %v5035_v35 = vld [vmem:[%s5613_s5 + $0x304] sm:$0xf]  ;;  %v4156_v23 = vld [vmem:[%s5613_s5 + $0x314] sm:$0xf0]  ;;  %v5024_v38 = vld [vmem:[%s5613_s5 + $0x2ac] sm:$0xf] }
 0x1f0   : > { %v2437_v47 = vpop.f32.mrf.mxu1  ;;  %2997 = vmatmul.bf16.gmra.mxu3 %v4139_v44  ;;  %v4108_v37 = vld [vmem:[%s5613_s5 + $0x2bc] sm:$0xf0] }
 0x1f1   : > { %5470 = vst [vmem:[%s6121_s23 + $0x30] sm:$0xff] %v5253_v60   ;;  %v2944_v30 = vadd.f32 %v6197_v57, %v2690_v18  ;;  %v2438_v63 = vadd.f32 %v2437_v47, %v2184_v28  ;;  %v2187_v57 = vadd.f32 %v6093_v31, %v5967_v50  ;;  %v2189_v50 = vadd.f32 %v6093_v31, %v5976_v45  ;;  %v4114_v47 = vld [vmem:[%s5613_s5 + $0x2b0] sm:$0xf]  ;;  %v5027_v18 = vld [vmem:[%s5613_s5 + $0x2c0] sm:$0xf0] }
 0x1f2   : > { %v4159_v60 = vor.u32 %v5035_v35, %v4156_v23  ;;  %v5028_v28 = vld [vmem:[%s5613_s5 + $0x2c8] sm:$0xf0]  ;;  %v4111_v51 = vor.u32 %v5024_v38, %v4108_v37  ;;  %v4115_v9 = vor.u32 %v5027_v18, %v4114_v47  ;;  %v5033_v35 = vld [vmem:[%s5613_s5 + $0x2f0] sm:$0xf0] }
 0x1f3   : > { %v3199_v39 = vpop.f32.mrf.mxu0  ;;  %v6257_v14 = vpop.f32.mrf.mxu3  ;;  %v3198_v40 = vadd.f32 %v3197_v22, %v2944_v30  ;;  %v4123_v30 = vor.u32 %v5028_v28, %v4122_v5 }
 0x1f5   : > { %v3421_v3 = vmax.f32 %v3198_v40, 0.0 }
 0x1f6   : > { %v2691_v48 = vpop.f32.mrf.mxu2 }
 0x1f7   : > { %v2692_v20 = vadd.f32 %v2691_v48, %v2438_v63 }
 0x1f8   : > { %v2440_v10 = vpop.f32.mrf.mxu1 }
 0x1f9   : > { %v2946_v29 = vadd.f32 %v6203_v43, %v2692_v20  ;;  %v2441_v43 = vadd.f32 %v2440_v10, %v2187_v57  ;;  %v4176_v57 = vld [vmem:[%s5613_s5 + $0x33c] sm:$0xf0] }
 0x1fb   : > { %v3202_v21 = vpop.f32.mrf.mxu0  ;;  %v3200_v8 = vadd.f32 %v3199_v39, %v2946_v29  ;;  %2479 = vmatmul.bf16.gmra.mxu1 %v4091_v19  ;;  %2733 = vmatmul.bf16.gmra.mxu2 %v4095_v52  ;;  %v6263_v22 = vpop.f32.mrf.mxu3 }
 0x1fd   : > { %v3422_v24 = vmax.f32 %v3200_v8, 0.0  ;;  %v5040_v8 = vld [vmem:[%s5613_s5 + $0x32c] sm:$0xf] }
 0x1fe   : > { %4904 = vmatmul.msk.bf16.gmra.mxu0 %vm1989_vm0, %v4103_v42  ;;  %v2694_v56 = vpop.f32.mrf.mxu2 }
 0x1ff   : > { %v5258_v25 = vpack.c.bf16 %v3422_v24, %v3421_v3  ;;  %v2695_v2 = vadd.f32 %v2694_v56, %v2441_v43  ;;  %v5029_v3 = vld [vmem:[%s5613_s5 + $0x2d4] sm:$0xf]  ;;  %v4179_v24 = vor.u32 %v5040_v8, %v4176_v57  ;;  %v4128_v56 = vld [vmem:[%s5613_s5 + $0x2e4] sm:$0xf0]  ;;  %v5032_v43 = vld [vmem:[%s5613_s5 + $0x2e8] sm:$0xf0] }
 0x200   : > { %v2442_v12 = vpop.f32.mrf.mxu1  ;;  %3002 = vmatmul.bf16.gmra.mxu3 %v4159_v60  ;;  %v4131_v38 = vor.u32 %v5029_v3, %v4128_v56 }
 0x201   : > { %5471 = vst [vmem:[%s6121_s23 + $0x38] sm:$0xff] %v5258_v25   ;;  %v2949_v39 = vadd.f32 %v6217_v34, %v2695_v2  ;;  %v2443_v17 = vadd.f32 %v2442_v12, %v2189_v50  ;;  %v2192_v34 = vadd.f32 %v6093_v31, %v5992_v58  ;;  %v2194_v58 = vadd.f32 %v6093_v31, %v6001_v33  ;;  %v4134_v25 = vld [vmem:[%s5613_s5 + $0x2d8] sm:$0xf] }
 0x202   : > { %v4135_v60 = vor.u32 %v5032_v43, %v4134_v25 }
 0x203   : > { %v3204_v4 = vpop.f32.mrf.mxu0  ;;  %v6277_v63 = vpop.f32.mrf.mxu3  ;;  %v3203_v45 = vadd.f32 %v3202_v21, %v2949_v39 }
 0x205   : > { %v3423_v20 = vmax.f32 %v3203_v45, 0.0 }
 0x206   : > { %v2696_v26 = vpop.f32.mrf.mxu2 }
 0x207   : > { %v2697_v44 = vadd.f32 %v2696_v26, %v2443_v17 }
 0x208   : > { %v2445_v53 = vpop.f32.mrf.mxu1 }
 0x209   : > { %v2951_v41 = vadd.f32 %v6223_v46, %v2697_v44  ;;  %v2446_v46 = vadd.f32 %v2445_v53, %v2192_v34 }
 0x20b   : > { %v3207_v15 = vpop.f32.mrf.mxu0  ;;  %v3205_v48 = vadd.f32 %v3204_v4, %v2951_v41  ;;  %2484 = vmatmul.bf16.gmra.mxu1 %v4111_v51  ;;  %2738 = vmatmul.bf16.gmra.mxu2 %v4115_v9  ;;  %v6283_v40 = vpop.f32.mrf.mxu3  ;;  %v4142_v4 = vld [vmem:[%s5613_s5 + $0x2e0] sm:$0xf]  ;;  %v5045_v41 = vld [vmem:[%s5613_s5 + $0x354] sm:$0xf] }
 0x20c   : > { %v4143_v47 = vor.u32 %v5033_v35, %v4142_v4 }
 0x20d   : > { %v3424_v19 = vmax.f32 %v3205_v48, 0.0  ;;  %v5034_v48 = vld [vmem:[%s5613_s5 + $0x2fc] sm:$0xf] }
 0x20e   : > { %4905 = vmatmul.msk.bf16.gmra.mxu0 %vm1989_vm0, %v4123_v30  ;;  %v2699_v52 = vpop.f32.mrf.mxu2 }
 0x20f   : > { %v5263_v10 = vpack.c.bf16 %v3424_v19, %v3423_v20  ;;  %v2700_v29 = vadd.f32 %v2699_v52, %v2446_v46  ;;  %v4148_v20 = vld [vmem:[%s5613_s5 + $0x30c] sm:$0xf0]  ;;  %v4154_v19 = vld [vmem:[%s5613_s5 + $0x300] sm:$0xf]  ;;  %v5037_v52 = vld [vmem:[%s5613_s5 + $0x310] sm:$0xf0] }
 0x210   : > { %v2447_v42 = vpop.f32.mrf.mxu1  ;;  %3007 = vmatmul.bf16.gmra.mxu3 %v4179_v24  ;;  %v4151_v57 = vor.u32 %v5034_v48, %v4148_v20 }
 0x211   : > { %5472 = vst [vmem:[%s6121_s23 + $0x40] sm:$0xff] %v5263_v10   ;;  %v2954_v12 = vadd.f32 %v6237_v1, %v2700_v29  ;;  %v2448_v2 = vadd.f32 %v2447_v42, %v2194_v58  ;;  %v2197_v1 = vadd.f32 %v6093_v31, %v6017_v61  ;;  %v2199_v61 = vadd.f32 %v6093_v31, %v6026_v59  ;;  %v4162_v42 = vld [vmem:[%s5613_s5 + $0x308] sm:$0xf]  ;;  %v5038_v29 = vld [vmem:[%s5613_s5 + $0x318] sm:$0xf0] }
 0x212   : > { %v4155_v58 = vor.u32 %v5037_v52, %v4154_v19  ;;  %v4163_v24 = vor.u32 %v5038_v29, %v4162_v42 }
 0x213   : > { %v3209_v21 = vpop.f32.mrf.mxu0  ;;  %v6297_v18 = vpop.f32.mrf.mxu3  ;;  %v3208_v33 = vadd.f32 %v3207_v15, %v2954_v12  ;;  %v4196_v15 = vld [vmem:[%s5613_s5 + $0x364] sm:$0xf0] }
 0x214   : > { %v4199_v34 = vor.u32 %v5045_v41, %v4196_v15 }
 0x215   : > { %v3425_v28 = vmax.f32 %v3208_v33, 0.0  ;;  %v4216_v33 = vld [vmem:[%s5613_s5 + $0x38c] sm:$0xf0] }
 0x216   : > { %v2701_v23 = vpop.f32.mrf.mxu2 }
 0x217   : > { %v2702_v50 = vadd.f32 %v2701_v23, %v2448_v2 }
 0x218   : > { %v2450_v37 = vpop.f32.mrf.mxu1 }
 0x219   : > { %v2956_v39 = vadd.f32 %v6243_v36, %v2702_v50  ;;  %v2451_v36 = vadd.f32 %v2450_v37, %v2197_v1  ;;  %v4174_v1 = vld [vmem:[%s5613_s5 + $0x328] sm:$0xf] }
 0x21b   : > { %v3212_v17 = vpop.f32.mrf.mxu0  ;;  %v3210_v5 = vadd.f32 %v3209_v21, %v2956_v39  ;;  %2489 = vmatmul.bf16.gmra.mxu1 %v4131_v38  ;;  %2743 = vmatmul.bf16.gmra.mxu2 %v4135_v60  ;;  %v6303_v53 = vpop.f32.mrf.mxu3  ;;  %v5039_v39 = vld [vmem:[%s5613_s5 + $0x324] sm:$0xf] }
 0x21d   : > { %v3426_v26 = vmax.f32 %v3210_v5, 0.0  ;;  %v4168_v5 = vld [vmem:[%s5613_s5 + $0x334] sm:$0xf0] }
 0x21e   : > { %4906 = vmatmul.msk.bf16.gmra.mxu0 %vm1989_vm0, %v4143_v47  ;;  %v2704_v44 = vpop.f32.mrf.mxu2  ;;  %v5050_v47 = vld [vmem:[%s5613_s5 + $0x37c] sm:$0xf] }
 0x21f   : > { %v5268_v51 = vpack.c.bf16 %v3426_v26, %v3425_v28  ;;  %v2705_v30 = vadd.f32 %v2704_v44, %v2451_v36  ;;  %v5042_v28 = vld [vmem:[%s5613_s5 + $0x338] sm:$0xf0]  ;;  %v5043_v36 = vld [vmem:[%s5613_s5 + $0x340] sm:$0xf0] }
 0x220   : > { %v2452_v9 = vpop.f32.mrf.mxu1  ;;  %3012 = vmatmul.bf16.gmra.mxu3 %v4199_v34  ;;  %v4175_v41 = vor.u32 %v5042_v28, %v4174_v1 }
 0x221   : > { %5473 = vst [vmem:[%s6121_s23 + $0x48] sm:$0xff] %v5268_v51   ;;  %v2959_v10 = vadd.f32 %v6257_v14, %v2705_v30  ;;  %v2453_v46 = vadd.f32 %v2452_v9, %v2199_v61  ;;  %v2202_v14 = vadd.f32 %v6093_v31, %v6042_v62  ;;  %v2204_v62 = vadd.f32 %v6093_v31, %v6051_v0  ;;  %v4182_v51 = vld [vmem:[%s5613_s5 + $0x330] sm:$0xf] }
 0x222   : > { %v4183_v61 = vor.u32 %v5043_v36, %v4182_v51 }
 0x223   : > { %v3214_v45 = vpop.f32.mrf.mxu0  ;;  %v6317_v56 = vpop.f32.mrf.mxu3  ;;  %v3213_v59 = vadd.f32 %v3212_v17, %v2959_v10  ;;  %v4219_v17 = vor.u32 %v5050_v47, %v4216_v33 }
 0x225   : > { %v3427_v2 = vmax.f32 %v3213_v59, 0.0 }
 0x226   : > { %v2706_v21 = vpop.f32.mrf.mxu2 }
 0x227   : > { %v2707_v8 = vadd.f32 %v2706_v21, %v2453_v46 }
 0x228   : > { %v2455_v3 = vpop.f32.mrf.mxu1 }
 0x229   : > { %v2961_v25 = vadd.f32 %v6263_v22, %v2707_v8  ;;  %v2456_v22 = vadd.f32 %v2455_v3, %v2202_v14  ;;  %v4236_v3 = vld [vmem:[%s5613_s5 + $0x3b4] sm:$0xf0] }
 0x22b   : > { %v3217_v43 = vpop.f32.mrf.mxu0  ;;  %v3215_v12 = vadd.f32 %v3214_v45, %v2961_v25  ;;  %2494 = vmatmul.bf16.gmra.mxu1 %v4151_v57  ;;  %2748 = vmatmul.bf16.gmra.mxu2 %v4155_v58  ;;  %v6323_v38 = vpop.f32.mrf.mxu3  ;;  %v4171_v45 = vor.u32 %v5039_v39, %v4168_v5  ;;  %v5055_v58 = vld [vmem:[%s5613_s5 + $0x3a4] sm:$0xf]  ;;  %v4188_v25 = vld [vmem:[%s5613_s5 + $0x35c] sm:$0xf0] }
 0x22c   : > { %v4239_v59 = vor.u32 %v5055_v58, %v4236_v3 }
 0x22d   : > { %v3428_v4 = vmax.f32 %v3215_v12, 0.0  ;;  %v5047_v12 = vld [vmem:[%s5613_s5 + $0x360] sm:$0xf0] }
 0x22e   : > { %4907 = vmatmul.msk.bf16.gmra.mxu0 %vm1989_vm0, %v4163_v24  ;;  %v2709_v35 = vpop.f32.mrf.mxu2  ;;  %v5044_v24 = vld [vmem:[%s5613_s5 + $0x34c] sm:$0xf] }
 0x22f   : > { %v5273_v23 = vpack.c.bf16 %v3428_v4, %v3427_v2  ;;  %v2710_v60 = vadd.f32 %v2709_v35, %v2456_v22  ;;  %v4202_v4 = vld [vmem:[%s5613_s5 + $0x358] sm:$0xf]  ;;  %v5048_v35 = vld [vmem:[%s5613_s5 + $0x368] sm:$0xf0] }
 0x230   : > { %v2457_v50 = vpop.f32.mrf.mxu1  ;;  %3017 = vmatmul.bf16.gmra.mxu3 %v4219_v17  ;;  %v4203_v47 = vor.u32 %v5048_v35, %v4202_v4  ;;  %v5065_v35 = vld [vmem:[%s5613_s5 + $0x3f4] sm:$0xf] }
 0x231   : > { %5474 = vst [vmem:[%s6121_s23 + $0x50] sm:$0xff] %v5273_v23   ;;  %v2964_v26 = vadd.f32 %v6277_v63, %v2710_v60  ;;  %v2458_v44 = vadd.f32 %v2457_v50, %v2204_v62  ;;  %v2207_v63 = vadd.f32 %v6093_v31, %v6067_v13  ;;  %v2209_v13 = vadd.f32 %v6093_v31, %v6076_v54 }
 0x232   : > { %v4191_v50 = vor.u32 %v5044_v24, %v4188_v25 }
 0x233   : > { %v3219_v37 = vpop.f32.mrf.mxu0  ;;  %v6337_v48 = vpop.f32.mrf.mxu3  ;;  %v3218_v0 = vadd.f32 %v3217_v43, %v2964_v26  ;;  %v4194_v43 = vld [vmem:[%s5613_s5 + $0x350] sm:$0xf] }
 0x234   : > { %v4195_v60 = vor.u32 %v5047_v12, %v4194_v43 }
 0x235   : > { %v3429_v52 = vmax.f32 %v3218_v0, 0.0  ;;  %v4214_v0 = vld [vmem:[%s5613_s5 + $0x378] sm:$0xf] }
 0x236   : > { %v2711_v9 = vpop.f32.mrf.mxu2 }
 0x237   : > { %v2712_v30 = vadd.f32 %v2711_v9, %v2458_v44 }
 0x238   : > { %v2460_v15 = vpop.f32.mrf.mxu1 }
 0x239   : > { %v2966_v34 = vadd.f32 %v6283_v40, %v2712_v30  ;;  %v2461_v40 = vadd.f32 %v2460_v15, %v2207_v63  ;;  %v5060_v30 = vld [vmem:[%s5613_s5 + $0x3cc] sm:$0xf]  ;;  %v4222_v63 = vld [vmem:[%s5613_s5 + $0x380] sm:$0xf] }
 0x23b   : > { %v3222_v20 = vpop.f32.mrf.mxu0  ;;  %v3220_v19 = vadd.f32 %v3219_v37, %v2966_v34  ;;  %2499 = vmatmul.bf16.gmra.mxu1 %v4171_v45  ;;  %2753 = vmatmul.bf16.gmra.mxu2 %v4175_v41  ;;  %v6343_v21 = vpop.f32.mrf.mxu3  ;;  %v4256_v45 = vld [vmem:[%s5613_s5 + $0x3dc] sm:$0xf0]  ;;  %v5049_v41 = vld [vmem:[%s5613_s5 + $0x374] sm:$0xf]  ;;  %v5052_v34 = vld [vmem:[%s5613_s5 + $0x388] sm:$0xf0] }
 0x23c   : > { %v4259_v15 = vor.u32 %v5060_v30, %v4256_v45 }
 0x23d   : > { %v3430_v10 = vmax.f32 %v3220_v19, 0.0 }
 0x23e   : > { %4908 = vmatmul.msk.bf16.gmra.mxu0 %vm1989_vm0, %v4183_v61  ;;  %v2714_v46 = vpop.f32.mrf.mxu2  ;;  %v4208_v61 = vld [vmem:[%s5613_s5 + $0x384] sm:$0xf0] }
 0x23f   : > { %v5278_v42 = vpack.c.bf16 %v3430_v10, %v3429_v52  ;;  %v2715_v8 = vadd.f32 %v2714_v46, %v2461_v40  ;;  %v5053_v52 = vld [vmem:[%s5613_s5 + $0x390] sm:$0xf0]  ;;  %v4215_v40 = vor.u32 %v5052_v34, %v4214_v0 }
 0x240   : > { %v2462_v29 = vpop.f32.mrf.mxu1  ;;  %3022 = vmatmul.bf16.gmra.mxu3 %v4239_v59 }
 0x241   : > { %5475 = vst [vmem:[%s6121_s23 + $0x58] sm:$0xff] %v5278_v42   ;;  %v2969_v14 = vadd.f32 %v6297_v18, %v2715_v8  ;;  %v2463_v2 = vadd.f32 %v2462_v29, %v2209_v13  ;;  %v2212_v18 = vadd.f32 %v6093_v31, %v5754_v6  ;;  %v2214_v6 = vadd.f32 %v6093_v31, %v5763_v11 }
 0x242   : > { %v4211_v42 = vor.u32 %v5049_v41, %v4208_v61  ;;  %v4223_v8 = vor.u32 %v5053_v52, %v4222_v63  ;;  %v4296_v63 = vld [vmem:[%s5613_s5 + $0x42c] sm:$0xf0]  ;;  %v5059_v52 = vld [vmem:[%s5613_s5 + $0x3c4] sm:$0xf] }
 0x243   : > { %v3224_v57 = vpop.f32.mrf.mxu0  ;;  %v6357_v33 = vpop.f32.mrf.mxu3  ;;  %v3223_v54 = vadd.f32 %v3222_v20, %v2969_v14 }
 0x245   : > { %v3431_v5 = vmax.f32 %v3223_v54, 0.0 }
 0x246   : > { %v2716_v23 = vpop.f32.mrf.mxu2 }
 0x247   : > { %v2717_v22 = vadd.f32 %v2716_v23, %v2463_v2  ;;  %v4276_v23 = vld [vmem:[%s5613_s5 + $0x404] sm:$0xf0] }
 0x248   : > { %v2465_v37 = vpop.f32.mrf.mxu1 }
 0x249   : > { %v2971_v62 = vadd.f32 %v6303_v53, %v2717_v22  ;;  %v2466_v53 = vadd.f32 %v2465_v37, %v2212_v18  ;;  %v5054_v22 = vld [vmem:[%s5613_s5 + $0x39c] sm:$0xf]  ;;  %v4234_v37 = vld [vmem:[%s5613_s5 + $0x3a0] sm:$0xf] }
 0x24b   : > { %v3227_v39 = vpop.f32.mrf.mxu0  ;;  %v3225_v17 = vadd.f32 %v3224_v57, %v2971_v62  ;;  %2504 = vmatmul.bf16.gmra.mxu1 %v4191_v50  ;;  %2758 = vmatmul.bf16.gmra.mxu2 %v4195_v60  ;;  %v6363_v51 = vpop.f32.mrf.mxu3  ;;  %v4279_v50 = vor.u32 %v5065_v35, %v4276_v23  ;;  %v4228_v60 = vld [vmem:[%s5613_s5 + $0x3ac] sm:$0xf0] }
 0x24d   : > { %v3432_v1 = vmax.f32 %v3225_v17, 0.0  ;;  %v5058_v17 = vld [vmem:[%s5613_s5 + $0x3b8] sm:$0xf0] }
 0x24e   : > { %4909 = vmatmul.msk.bf16.gmra.mxu0 %vm1989_vm0, %v4203_v47  ;;  %v2719_v28 = vpop.f32.mrf.mxu2  ;;  %v5057_v47 = vld [vmem:[%s5613_s5 + $0x3b0] sm:$0xf0] }
 0x24f   : > { %v5283_v26 = vpack.c.bf16 %v3432_v1, %v3431_v5  ;;  %v2720_v36 = vadd.f32 %v2719_v28, %v2466_v53  ;;  %v4231_v1 = vor.u32 %v5054_v22, %v4228_v60  ;;  %v4235_v28 = vor.u32 %v5057_v47, %v4234_v37  ;;  %v5075_v47 = vld [vmem:[%s5613_s5 + $0x444] sm:$0xf] }
 0x250   : > { %v2467_v44 = vpop.f32.mrf.mxu1  ;;  %3027 = vmatmul.bf16.gmra.mxu3 %v4259_v15 }
 0x251   : > { %5476 = vst [vmem:[%s6121_s23 + $0x60] sm:$0xff] %v5283_v26   ;;  %v2974_v20 = vadd.f32 %v6317_v56, %v2720_v36  ;;  %v2468_v19 = vadd.f32 %v2467_v44, %v2214_v6  ;;  %v6384_v56 = vld [vmem:[%s6956_s2] ss:$0 sm:$0xff] }
 0x252   : > { %v2217_v13 = vadd.f32 %v6384_v56, %v5783_v27  ;;  %v2219_v27 = vadd.f32 %v6384_v56, %v5791_v32 }
 0x253   : > { %v3229_v9 = vpop.f32.mrf.mxu0  ;;  %v6377_v57 = vpop.f32.mrf.mxu3  ;;  %v3228_v11 = vadd.f32 %v3227_v39, %v2974_v20  ;;  %v4242_v39 = vld [vmem:[%s5613_s5 + $0x3a8] sm:$0xf] }
 0x254   : > { %v4243_v53 = vor.u32 %v5058_v17, %v4242_v39  ;;  %v4268_v17 = vld [vmem:[%s5613_s5 + $0x3fc] sm:$0xf0] }
 0x255   : > { %v3433_v24 = vmax.f32 %v3228_v11, 0.0  ;;  %v4262_v11 = vld [vmem:[%s5613_s5 + $0x3d0] sm:$0xf] }
 0x256   : > { %v2721_v10 = vpop.f32.mrf.mxu2 }
 0x257   : > { %v2722_v46 = vadd.f32 %v2721_v10, %v2468_v19  ;;  %v5070_v19 = vld [vmem:[%s5613_s5 + $0x41c] sm:$0xf] }
 0x258   : > { %v2470_v29 = vpop.f32.mrf.mxu1  ;;  %v4299_v10 = vor.u32 %v5070_v19, %v4296_v63 }
 0x259   : > { %v2976_v31 = vadd.f32 %v6323_v38, %v2722_v46  ;;  %v2471_v43 = vadd.f32 %v2470_v29, %v2217_v13  ;;  %v4248_v46 = vld [vmem:[%s5613_s5 + $0x3d4] sm:$0xf0] }
 0x25a   : > { %v4251_v13 = vor.u32 %v5059_v52, %v4248_v46 }
 0x25b   : > { %v3232_v58 = vpop.f32.mrf.mxu0  ;;  %v3230_v3 = vadd.f32 %v3229_v9, %v2976_v31  ;;  %2509 = vmatmul.bf16.gmra.mxu1 %v4211_v42  ;;  %2763 = vmatmul.bf16.gmra.mxu2 %v4215_v40  ;;  %v6388_v14 = vpop.f32.mrf.mxu3  ;;  %v4254_v42 = vld [vmem:[%s5613_s5 + $0x3c8] sm:$0xf]  ;;  %v5062_v40 = vld [vmem:[%s5613_s5 + $0x3d8] sm:$0xf0]  ;;  %v5063_v31 = vld [vmem:[%s5613_s5 + $0x3e0] sm:$0xf0] }
 0x25d   : > { %v3434_v38 = vmax.f32 %v3230_v3, 0.0 }
 0x25e   : > { %4910 = vmatmul.msk.bf16.gmra.mxu0 %vm1989_vm0, %v4223_v8  ;;  %v2724_v59 = vpop.f32.mrf.mxu2 }
 0x25f   : > { %v5288_v25 = vpack.c.bf16 %v3434_v38, %v3433_v24  ;;  %v2725_v2 = vadd.f32 %v2724_v59, %v2471_v43  ;;  %v4255_v24 = vor.u32 %v5062_v40, %v4254_v42  ;;  %v4263_v59 = vor.u32 %v5063_v31, %v4262_v11  ;;  %v5080_v42 = vld [vmem:[%s5613_s5 + $0x46c] sm:$0xf]  ;;  %v4336_v40 = vld [vmem:[%s5613_s5 + $0x47c] sm:$0xf0]  ;;  %v5069_v11 = vld [vmem:[%s5613_s5 + $0x414] sm:$0xf] }
 0x260   : > { %v2472_v12 = vpop.f32.mrf.mxu1  ;;  %3032 = vmatmul.bf16.gmra.mxu3 %v4279_v50  ;;  %v4339_v31 = vor.u32 %v5080_v42, %v4336_v40 }
 0x261   : > { %5477 = vst [vmem:[%s6121_s23 + $0x68] sm:$0xff] %v5288_v25   ;;  %v2979_v54 = vadd.f32 %v6337_v48, %v2725_v2  ;;  %v2473_v62 = vadd.f32 %v2472_v12, %v2219_v27  ;;  %v2222_v48 = vadd.f32 %v6384_v56, %v5813_v49  ;;  %v2224_v49 = vadd.f32 %v6384_v56, %v5824_v55 }
 0x263   : > { %v3234_v4 = vpop.f32.mrf.mxu0  ;;  %v6402_v44 = vpop.f32.mrf.mxu3  ;;  %v3233_v32 = vadd.f32 %v3232_v58, %v2979_v54  ;;  %v4316_v54 = vld [vmem:[%s5613_s5 + $0x454] sm:$0xf0] }
 0x264   : > { %v4319_v39 = vor.u32 %v5075_v47, %v4316_v54 }
 0x265   : > { %v3435_v45 = vmax.f32 %v3233_v32, 0.0 }
 0x266   : > { %v2726_v18 = vpop.f32.mrf.mxu2 }
 0x267   : > { %v2727_v5 = vadd.f32 %v2726_v18, %v2473_v62  ;;  %v5064_v62 = vld [vmem:[%s5613_s5 + $0x3ec] sm:$0xf]  ;;  %v4274_v18 = vld [vmem:[%s5613_s5 + $0x3f0] sm:$0xf] }
 0x268   : > { %v2475_v26 = vpop.f32.mrf.mxu1 }
 0x269   : > { %v2981_v36 = vadd.f32 %v6343_v21, %v2727_v5  ;;  %v2476_v21 = vadd.f32 %v2475_v26, %v2222_v48  ;;  %v5067_v5 = vld [vmem:[%s5613_s5 + $0x400] sm:$0xf0]  ;;  %v4282_v26 = vld [vmem:[%s5613_s5 + $0x3f8] sm:$0xf] }
 0x26b   : > { %v3237_v9 = vpop.f32.mrf.mxu0  ;;  %v3235_v30 = vadd.f32 %v3234_v4, %v2981_v36  ;;  %2514 = vmatmul.bf16.gmra.mxu1 %v4231_v1  ;;  %2768 = vmatmul.bf16.gmra.mxu2 %v4235_v28  ;;  %v6408_v0 = vpop.f32.mrf.mxu3 }
 0x26d   : > { %v3436_v6 = vmax.f32 %v3235_v30, 0.0  ;;  %v4275_v30 = vor.u32 %v5067_v5, %v4274_v18 }
 0x26e   : > { %4911 = vmatmul.msk.bf16.gmra.mxu0 %vm1989_vm0, %v4243_v53  ;;  %v2729_v41 = vpop.f32.mrf.mxu2  ;;  %v5068_v53 = vld [vmem:[%s5613_s5 + $0x408] sm:$0xf0] }
 0x26f   : > { %v5293_v15 = vpack.c.bf16 %v3436_v6, %v3435_v45  ;;  %v2730_v34 = vadd.f32 %v2729_v41, %v2476_v21  ;;  %v4283_v45 = vor.u32 %v5068_v53, %v4282_v26  ;;  %v7025_v26 = vld [vmem:[#allocation25_spill] sm:$0xff] }
 0x270   : > { %v2477_v61 = vpop.f32.mrf.mxu1  ;;  %3037 = vmatmul.bf16.gmra.mxu3 %v4299_v10  ;;  %v2239_v53 = vadd.f32 %v6384_v56, %v7025_v26 }
 0x271   : > { %5478 = vst [vmem:[%s6121_s23 + $0x70] sm:$0xff] %v5293_v15   ;;  %v2984_v29 = vadd.f32 %v6357_v33, %v2730_v34  ;;  %v2478_v8 = vadd.f32 %v2477_v61, %v2224_v49  ;;  %v2227_v33 = vadd.f32 %v6384_v56, %v5840_v7  ;;  %v2229_v7 = vadd.f32 %v6384_v56, %v5848_v16 }
 0x273   : > { %v3239_v20 = vpop.f32.mrf.mxu0  ;;  %v6422_v25 = vpop.f32.mrf.mxu3  ;;  %v3238_v55 = vadd.f32 %v3237_v9, %v2984_v29  ;;  %v4271_v9 = vor.u32 %v5064_v62, %v4268_v17  ;;  %v7023_v29 = vld [vmem:[#allocation19_spill] sm:$0xff] }
 0x275   : > { %v3437_v4 = vmax.f32 %v3238_v55, 0.0  ;;  %v5073_v55 = vld [vmem:[%s5613_s5 + $0x430] sm:$0xf0] }
 0x276   : > { %v2731_v58 = vpop.f32.mrf.mxu2 }
 0x277   : > { %v2732_v3 = vadd.f32 %v2731_v58, %v2478_v8  ;;  %v2234_v8 = vadd.f32 %v6384_v56, %v7023_v29  ;;  %v4288_v58 = vld [vmem:[%s5613_s5 + $0x424] sm:$0xf0] }
 0x278   : > { %v2480_v38 = vpop.f32.mrf.mxu1 }
 0x279   : > { %v2986_v43 = vadd.f32 %v6363_v51, %v2732_v3  ;;  %v2481_v51 = vadd.f32 %v2480_v38, %v2227_v33  ;;  %v4294_v3 = vld [vmem:[%s5613_s5 + $0x418] sm:$0xf] }
 0x27b   : > { %v3242_v12 = vpop.f32.mrf.mxu0  ;;  %v3240_v2 = vadd.f32 %v3239_v20, %v2986_v43  ;;  %2519 = vmatmul.bf16.gmra.mxu1 %v4251_v13  ;;  %2773 = vmatmul.bf16.gmra.mxu2 %v4255_v24  ;;  %v6428_v50 = vpop.f32.mrf.mxu3  ;;  %v5072_v13 = vld [vmem:[%s5613_s5 + $0x428] sm:$0xf0] }
 0x27c   : > { %v4295_v33 = vor.u32 %v5072_v13, %v4294_v3 }
 0x27d   : > { %v3438_v35 = vmax.f32 %v3240_v2, 0.0  ;;  %v4291_v2 = vor.u32 %v5069_v11, %v4288_v58 }
 0x27e   : > { %4912 = vmatmul.msk.bf16.gmra.mxu0 %vm1989_vm0, %v4263_v59  ;;  %v2734_v23 = vpop.f32.mrf.mxu2  ;;  %v4302_v59 = vld [vmem:[%s5613_s5 + $0x420] sm:$0xf] }
 0x27f   : > { %v5298_v27 = vpack.c.bf16 %v3438_v35, %v3437_v4  ;;  %v2735_v60 = vadd.f32 %v2734_v23, %v2481_v51  ;;  %v4303_v35 = vor.u32 %v5073_v55, %v4302_v59  ;;  %v7027_v59 = vld [vmem:[#allocation31_spill] sm:$0xff] }
 0x280   : > { %v2482_v22 = vpop.f32.mrf.mxu1  ;;  %3042 = vmatmul.bf16.gmra.mxu3 %v4319_v39  ;;  %v2244_v55 = vadd.f32 %v6384_v56, %v7027_v59 }
 0x281   : > { %5479 = vst [vmem:[%s6121_s23 + $0x78] sm:$0xff] %v5298_v27   ;;  %v2989_v1 = vadd.f32 %v6377_v57, %v2735_v60  ;;  %v2483_v28 = vadd.f32 %v2482_v22, %v2229_v7  ;;  %v7022_v57 = vld [vmem:[#allocation16_spill] sm:$0xff] }
 0x282   : > { %v2232_v61 = vadd.f32 %v6384_v56, %v7022_v57 }
 0x283   : > { %v3244_v37 = vpop.f32.mrf.mxu0  ;;  %v6442_v6 = vpop.f32.mrf.mxu3  ;;  %v3243_v16 = vadd.f32 %v3242_v12, %v2989_v1  ;;  %v5085_v1 = vld [vmem:[%s5613_s5 + $0x494] sm:$0xf] }
 0x285   : > { %v3439_v34 = vmax.f32 %v3243_v16, 0.0 }
 0x286   : > { %v2736_v32 = vpop.f32.mrf.mxu2 }
 0x287   : > { %v2737_v36 = vadd.f32 %v2736_v32, %v2483_v28  ;;  %v4356_v28 = vld [vmem:[%s5613_s5 + $0x4a4] sm:$0xf0]  ;;  %v5074_v32 = vld [vmem:[%s5613_s5 + $0x43c] sm:$0xf] }
 0x288   : > { %v2485_v48 = vpop.f32.mrf.mxu1 }
 0x289   : > { %v2991_v41 = vadd.f32 %v6388_v14, %v2737_v36  ;;  %v2486_v14 = vadd.f32 %v2485_v48, %v2232_v61  ;;  %v4359_v36 = vor.u32 %v5085_v1, %v4356_v28  ;;  %v5077_v48 = vld [vmem:[%s5613_s5 + $0x450] sm:$0xf0] }
 0x28b   : > { %v3247_v15 = vpop.f32.mrf.mxu0  ;;  %v3245_v21 = vadd.f32 %v3244_v37, %v2991_v41  ;;  %2524 = vmatmul.bf16.gmra.mxu1 %v4271_v9  ;;  %2778 = vmatmul.bf16.gmra.mxu2 %v4275_v30  ;;  %v6448_v52 = vpop.f32.mrf.mxu3  ;;  %v4308_v9 = vld [vmem:[%s5613_s5 + $0x44c] sm:$0xf0]  ;;  %v4314_v30 = vld [vmem:[%s5613_s5 + $0x440] sm:$0xf]  ;;  %v4322_v41 = vld [vmem:[%s5613_s5 + $0x448] sm:$0xf] }
 0x28c   : > { %v4311_v61 = vor.u32 %v5074_v32, %v4308_v9 }
 0x28d   : > { %v3440_v20 = vmax.f32 %v3245_v21, 0.0 }
 0x28e   : > { %4913 = vmatmul.msk.bf16.gmra.mxu0 %vm1989_vm0, %v4283_v45  ;;  %v2739_v19 = vpop.f32.mrf.mxu2 }
 0x28f   : > { %v5303_v63 = vpack.c.bf16 %v3440_v20, %v3439_v34  ;;  %v2740_v10 = vadd.f32 %v2739_v19, %v2486_v14  ;;  %v4315_v34 = vor.u32 %v5077_v48, %v4314_v30 }
 0x290   : > { %v2487_v49 = vpop.f32.mrf.mxu1  ;;  %3047 = vmatmul.bf16.gmra.mxu3 %v4339_v31 }
 0x291   : > { %5480 = vst [vmem:[%s6121_s23 + $0x80] sm:$0xff] %v5303_v63   ;;  %v2994_v24 = vadd.f32 %v6402_v44, %v2740_v10  ;;  %v2488_v38 = vadd.f32 %v2487_v49, %v2234_v8  ;;  %v7024_v44 = vld [vmem:[#allocation22_spill] sm:$0xff] }
 0x292   : > { %v2237_v37 = vadd.f32 %v6384_v56, %v7024_v44 }
 0x293   : > { %v3249_v46 = vpop.f32.mrf.mxu0  ;;  %v6462_v23 = vpop.f32.mrf.mxu3  ;;  %v3248_v27 = vadd.f32 %v3247_v15, %v2994_v24  ;;  %v5078_v15 = vld [vmem:[%s5613_s5 + $0x458] sm:$0xf0] }
 0x294   : > { %v4323_v19 = vor.u32 %v5078_v15, %v4322_v41  ;;  %v5090_v24 = vld [vmem:[%s5613_s5 + $0x4bc] sm:$0xf] }
 0x295   : > { %v3441_v47 = vmax.f32 %v3248_v27, 0.0  ;;  %v7029_v41 = vld [vmem:[#allocation37_spill] sm:$0xff] }
 0x296   : > { %v2741_v43 = vpop.f32.mrf.mxu2  ;;  %v2249_v15 = vadd.f32 %v6384_v56, %v7029_v41 }
 0x297   : > { %v2742_v12 = vadd.f32 %v2741_v43, %v2488_v38  ;;  %v4376_v38 = vld [vmem:[%s5613_s5 + $0x4cc] sm:$0xf0]  ;;  %v5079_v43 = vld [vmem:[%s5613_s5 + $0x464] sm:$0xf] }
 0x298   : > { %v2490_v4 = vpop.f32.mrf.mxu1 }
 0x299   : > { %v2996_v51 = vadd.f32 %v6408_v0, %v2742_v12  ;;  %v2491_v0 = vadd.f32 %v2490_v4, %v2237_v37  ;;  %v4379_v12 = vor.u32 %v5090_v24, %v4376_v38  ;;  %v5082_v4 = vld [vmem:[%s5613_s5 + $0x478] sm:$0xf0] }
 0x29b   : > { %v3252_v22 = vpop.f32.mrf.mxu0  ;;  %v3250_v60 = vadd.f32 %v3249_v46, %v2996_v51  ;;  %2529 = vmatmul.bf16.gmra.mxu1 %v4291_v2  ;;  %2783 = vmatmul.bf16.gmra.mxu2 %v4295_v33  ;;  %v6468_v17 = vpop.f32.mrf.mxu3  ;;  %v4328_v2 = vld [vmem:[%s5613_s5 + $0x474] sm:$0xf0]  ;;  %v4334_v33 = vld [vmem:[%s5613_s5 + $0x468] sm:$0xf]  ;;  %v4342_v51 = vld [vmem:[%s5613_s5 + $0x470] sm:$0xf] }
 0x29c   : > { %v4331_v37 = vor.u32 %v5079_v43, %v4328_v2 }
 0x29d   : > { %v3442_v54 = vmax.f32 %v3250_v60, 0.0 }
 0x29e   : > { %4914 = vmatmul.msk.bf16.gmra.mxu0 %vm1989_vm0, %v4303_v35  ;;  %v2744_v7 = vpop.f32.mrf.mxu2 }
 0x29f   : > { %v5308_v62 = vpack.c.bf16 %v3442_v54, %v3441_v47  ;;  %v2745_v18 = vadd.f32 %v2744_v7, %v2491_v0  ;;  %v4335_v47 = vor.u32 %v5082_v4, %v4334_v33 }
 0x2a0   : > { %v2492_v39 = vpop.f32.mrf.mxu1  ;;  %3052 = vmatmul.bf16.gmra.mxu3 %v4359_v36 }
 0x2a1   : > { %5481 = vst [vmem:[%s6121_s23 + $0x88] sm:$0xff] %v5308_v62   ;;  %v2999_v45 = vadd.f32 %v6422_v25, %v2745_v18  ;;  %v2493_v16 = vadd.f32 %v2492_v39, %v2239_v53  ;;  %v7026_v25 = vld [vmem:[#allocation28_spill] sm:$0xff] }
 0x2a2   : > { %v2242_v42 = vadd.f32 %v6384_v56, %v7026_v25 }
 0x2a3   : > { %v3254_v5 = vpop.f32.mrf.mxu0  ;;  %v6482_v63 = vpop.f32.mrf.mxu3  ;;  %v3253_v14 = vadd.f32 %v3252_v22, %v2999_v45  ;;  %v5083_v22 = vld [vmem:[%s5613_s5 + $0x480] sm:$0xf0] }
 0x2a4   : > { %v4343_v7 = vor.u32 %v5083_v22, %v4342_v51  ;;  %v5095_v45 = vld [vmem:[%s5613_s5 + $0x4e4] sm:$0xf]  ;;  %v7031_v51 = vld [vmem:[#allocation43_spill] sm:$0xff] }
 0x2a5   : > { %v3443_v40 = vmax.f32 %v3253_v14, 0.0  ;;  %v2254_v22 = vadd.f32 %v6384_v56, %v7031_v51 }
 0x2a6   : > { %v2746_v21 = vpop.f32.mrf.mxu2 }
 0x2a7   : > { %v2747_v57 = vadd.f32 %v2746_v21, %v2493_v16  ;;  %v4396_v16 = vld [vmem:[%s5613_s5 + $0x4f4] sm:$0xf0]  ;;  %v5084_v21 = vld [vmem:[%s5613_s5 + $0x48c] sm:$0xf] }
 0x2a8   : > { %v2495_v20 = vpop.f32.mrf.mxu1 }
 0x2a9   : > { %v3001_v49 = vadd.f32 %v6428_v50, %v2747_v57  ;;  %v2496_v50 = vadd.f32 %v2495_v20, %v2242_v42  ;;  %v4399_v57 = vor.u32 %v5095_v45, %v4396_v16  ;;  %v5087_v20 = vld [vmem:[%s5613_s5 + $0x4a0] sm:$0xf0] }
 0x2ab   : > { %v3257_v10 = vpop.f32.mrf.mxu0  ;;  %v3255_v46 = vadd.f32 %v3254_v5, %v3001_v49  ;;  %2534 = vmatmul.bf16.gmra.mxu1 %v4311_v61  ;;  %2788 = vmatmul.bf16.gmra.mxu2 %v4315_v34  ;;  %v6488_v58 = vpop.f32.mrf.mxu3  ;;  %v4348_v61 = vld [vmem:[%s5613_s5 + $0x49c] sm:$0xf0]  ;;  %v4354_v34 = vld [vmem:[%s5613_s5 + $0x490] sm:$0xf]  ;;  %v4362_v49 = vld [vmem:[%s5613_s5 + $0x498] sm:$0xf] }
 0x2ac   : > { %v4351_v42 = vor.u32 %v5084_v21, %v4348_v61 }
 0x2ad   : > { %v3444_v29 = vmax.f32 %v3255_v46, 0.0 }
 0x2ae   : > { %4915 = vmatmul.msk.bf16.gmra.mxu0 %vm1989_vm0, %v4323_v19  ;;  %v2749_v8 = vpop.f32.mrf.mxu2 }
 0x2af   : > { %v5313_v11 = vpack.c.bf16 %v3444_v29, %v3443_v40  ;;  %v2750_v3 = vadd.f32 %v2749_v8, %v2496_v50  ;;  %v4355_v40 = vor.u32 %v5087_v20, %v4354_v34 }
 0x2b0   : > { %v2497_v31 = vpop.f32.mrf.mxu1  ;;  %3057 = vmatmul.bf16.gmra.mxu3 %v4379_v12 }
 0x2b1   : > { %5482 = vst [vmem:[%s6121_s23 + $0x90] sm:$0xff] %v5313_v11   ;;  %v3004_v35 = vadd.f32 %v6442_v6, %v2750_v3  ;;  %v2498_v27 = vadd.f32 %v2497_v31, %v2244_v55  ;;  %v7028_v6 = vld [vmem:[#allocation34_spill] sm:$0xff] }
 0x2b2   : > { %v2247_v1 = vadd.f32 %v6384_v56, %v7028_v6 }
 0x2b3   : > { %v3259_v13 = vpop.f32.mrf.mxu0  ;;  %v6502_v62 = vpop.f32.mrf.mxu3  ;;  %v3258_v0 = vadd.f32 %v3257_v10, %v3004_v35  ;;  %v5088_v10 = vld [vmem:[%s5613_s5 + $0x4a8] sm:$0xf0] }
 0x2b4   : > { %v4363_v8 = vor.u32 %v5088_v10, %v4362_v49  ;;  %v5100_v35 = vld [vmem:[%s5613_s5 + $0x50c] sm:$0xf]  ;;  %v7033_v49 = vld [vmem:[#allocation49_spill] sm:$0xff] }
 0x2b5   : > { %v3445_v28 = vmax.f32 %v3258_v0, 0.0  ;;  %v2259_v10 = vadd.f32 %v6384_v56, %v7033_v49 }
 0x2b6   : > { %v2751_v60 = vpop.f32.mrf.mxu2 }
 0x2b7   : > { %v2752_v44 = vadd.f32 %v2751_v60, %v2498_v27  ;;  %v4416_v27 = vld [vmem:[%s5613_s5 + $0x51c] sm:$0xf0]  ;;  %v5089_v60 = vld [vmem:[%s5613_s5 + $0x4b4] sm:$0xf] }
 0x2b8   : > { %v2500_v54 = vpop.f32.mrf.mxu1 }
 0x2b9   : > { %v3006_v39 = vadd.f32 %v6448_v52, %v2752_v44  ;;  %v2501_v52 = vadd.f32 %v2500_v54, %v2247_v1  ;;  %v4419_v44 = vor.u32 %v5100_v35, %v4416_v27  ;;  %v5092_v54 = vld [vmem:[%s5613_s5 + $0x4c8] sm:$0xf0] }
 0x2bb   : > { %v3262_v18 = vpop.f32.mrf.mxu0  ;;  %v3260_v5 = vadd.f32 %v3259_v13, %v3006_v39  ;;  %2539 = vmatmul.bf16.gmra.mxu1 %v4331_v37  ;;  %2793 = vmatmul.bf16.gmra.mxu2 %v4335_v47  ;;  %v6508_v9 = vpop.f32.mrf.mxu3  ;;  %v4368_v37 = vld [vmem:[%s5613_s5 + $0x4c4] sm:$0xf0]  ;;  %v4374_v47 = vld [vmem:[%s5613_s5 + $0x4b8] sm:$0xf]  ;;  %v4382_v39 = vld [vmem:[%s5613_s5 + $0x4c0] sm:$0xf] }
 0x2bc   : > { %v4371_v1 = vor.u32 %v5089_v60, %v4368_v37 }
 0x2bd   : > { %v3446_v26 = vmax.f32 %v3260_v5, 0.0 }
 0x2be   : > { %4916 = vmatmul.msk.bf16.gmra.mxu0 %vm1989_vm0, %v4343_v7  ;;  %v2754_v53 = vpop.f32.mrf.mxu2 }
 0x2bf   : > { %v5318_v32 = vpack.c.bf16 %v3446_v26, %v3445_v28  ;;  %v2755_v30 = vadd.f32 %v2754_v53, %v2501_v52  ;;  %v4375_v28 = vor.u32 %v5092_v54, %v4374_v47 }
 0x2c0   : > { %v2502_v36 = vpop.f32.mrf.mxu1  ;;  %3062 = vmatmul.bf16.gmra.mxu3 %v4399_v57 }
 0x2c1   : > { %5483 = vst [vmem:[%s6121_s23 + $0x98] sm:$0xff] %v5318_v32   ;;  %v3009_v19 = vadd.f32 %v6462_v23, %v2755_v30  ;;  %v2503_v14 = vadd.f32 %v2502_v36, %v2249_v15  ;;  %v7030_v23 = vld [vmem:[#allocation40_spill] sm:$0xff] }
 0x2c2   : > { %v2252_v24 = vadd.f32 %v6384_v56, %v7030_v23 }
 0x2c3   : > { %v3264_v48 = vpop.f32.mrf.mxu0  ;;  %v6522_v11 = vpop.f32.mrf.mxu3  ;;  %v3263_v50 = vadd.f32 %v3262_v18, %v3009_v19  ;;  %v5093_v18 = vld [vmem:[%s5613_s5 + $0x4d0] sm:$0xf0] }
 0x2c4   : > { %v4383_v53 = vor.u32 %v5093_v18, %v4382_v39  ;;  %v5105_v19 = vld [vmem:[%s5613_s5 + $0x534] sm:$0xf]  ;;  %v7035_v39 = vld [vmem:[#allocation55_spill] sm:$0xff] }
 0x2c5   : > { %v3447_v38 = vmax.f32 %v3263_v50, 0.0  ;;  %v2264_v18 = vadd.f32 %v6384_v56, %v7035_v39 }
 0x2c6   : > { %v2756_v46 = vpop.f32.mrf.mxu2 }
 0x2c7   : > { %v2757_v25 = vadd.f32 %v2756_v46, %v2503_v14  ;;  %v4436_v14 = vld [vmem:[%s5613_s5 + $0x544] sm:$0xf0]  ;;  %v5094_v46 = vld [vmem:[%s5613_s5 + $0x4dc] sm:$0xf] }
 0x2c8   : > { %v2505_v29 = vpop.f32.mrf.mxu1 }
 0x2c9   : > { %v3011_v31 = vadd.f32 %v6468_v17, %v2757_v25  ;;  %v2506_v17 = vadd.f32 %v2505_v29, %v2252_v24  ;;  %v4439_v25 = vor.u32 %v5105_v19, %v4436_v14  ;;  %v5097_v29 = vld [vmem:[%s5613_s5 + $0x4f0] sm:$0xf0] }
 0x2cb   : > { %v3267_v3 = vpop.f32.mrf.mxu0  ;;  %v3265_v13 = vadd.f32 %v3264_v48, %v3011_v31  ;;  %2544 = vmatmul.bf16.gmra.mxu1 %v4351_v42  ;;  %2798 = vmatmul.bf16.gmra.mxu2 %v4355_v40  ;;  %v6528_v2 = vpop.f32.mrf.mxu3  ;;  %v4388_v42 = vld [vmem:[%s5613_s5 + $0x4ec] sm:$0xf0]  ;;  %v4394_v40 = vld [vmem:[%s5613_s5 + $0x4e0] sm:$0xf]  ;;  %v4402_v31 = vld [vmem:[%s5613_s5 + $0x4e8] sm:$0xf] }
 0x2cc   : > { %v4391_v24 = vor.u32 %v5094_v46, %v4388_v42 }
 0x2cd   : > { %v3448_v59 = vmax.f32 %v3265_v13, 0.0 }
 0x2ce   : > { %4917 = vmatmul.msk.bf16.gmra.mxu0 %vm1989_vm0, %v4363_v8  ;;  %v2759_v55 = vpop.f32.mrf.mxu2 }
 0x2cf   : > { %v5323_v43 = vpack.c.bf16 %v3448_v59, %v3447_v38  ;;  %v2760_v33 = vadd.f32 %v2759_v55, %v2506_v17  ;;  %v4395_v38 = vor.u32 %v5097_v29, %v4394_v40 }
 0x2d0   : > { %v2507_v12 = vpop.f32.mrf.mxu1  ;;  %3067 = vmatmul.bf16.gmra.mxu3 %v4419_v44 }
 0x2d1   : > { %5484 = vst [vmem:[%s6121_s23 + $0xa0] sm:$0xff] %v5323_v43   ;;  %v3014_v7 = vadd.f32 %v6482_v63, %v2760_v33  ;;  %v2508_v0 = vadd.f32 %v2507_v12, %v2254_v22  ;;  %v7032_v63 = vld [vmem:[#allocation46_spill] sm:$0xff] }
 0x2d2   : > { %v2257_v45 = vadd.f32 %v6384_v56, %v7032_v63 }
 0x2d3   : > { %v3269_v4 = vpop.f32.mrf.mxu0  ;;  %v6542_v32 = vpop.f32.mrf.mxu3  ;;  %v3268_v52 = vadd.f32 %v3267_v3, %v3014_v7  ;;  %v5098_v3 = vld [vmem:[%s5613_s5 + $0x4f8] sm:$0xf0] }
 0x2d4   : > { %v4403_v55 = vor.u32 %v5098_v3, %v4402_v31  ;;  %v5110_v7 = vld [vmem:[%s5613_s5 + $0x55c] sm:$0xf]  ;;  %v7037_v31 = vld [vmem:[#allocation60_spill] sm:$0xff] }
 0x2d5   : > { %v3449_v16 = vmax.f32 %v3268_v52, 0.0  ;;  %v2269_v3 = vadd.f32 %v6384_v56, %v7037_v31 }
 0x2d6   : > { %v2761_v5 = vpop.f32.mrf.mxu2 }
 0x2d7   : > { %v2762_v6 = vadd.f32 %v2761_v5, %v2508_v0  ;;  %v4456_v0 = vld [vmem:[%s5613_s5 + $0x56c] sm:$0xf0]  ;;  %v5099_v5 = vld [vmem:[%s5613_s5 + $0x504] sm:$0xf] }
 0x2d8   : > { %v2510_v26 = vpop.f32.mrf.mxu1 }
 0x2d9   : > { %v3016_v36 = vadd.f32 %v6488_v58, %v2762_v6  ;;  %v2511_v58 = vadd.f32 %v2510_v26, %v2257_v45  ;;  %v4459_v6 = vor.u32 %v5110_v7, %v4456_v0  ;;  %v5102_v26 = vld [vmem:[%s5613_s5 + $0x518] sm:$0xf0] }
 0x2db   : > { %v3272_v30 = vpop.f32.mrf.mxu0  ;;  %v3270_v48 = vadd.f32 %v3269_v4, %v3016_v36  ;;  %2549 = vmatmul.bf16.gmra.mxu1 %v4371_v1  ;;  %2803 = vmatmul.bf16.gmra.mxu2 %v4375_v28  ;;  %v6548_v61 = vpop.f32.mrf.mxu3  ;;  %v4408_v1 = vld [vmem:[%s5613_s5 + $0x514] sm:$0xf0]  ;;  %v4414_v28 = vld [vmem:[%s5613_s5 + $0x508] sm:$0xf]  ;;  %v4422_v36 = vld [vmem:[%s5613_s5 + $0x510] sm:$0xf] }
 0x2dc   : > { %v4411_v45 = vor.u32 %v5099_v5, %v4408_v1 }
 0x2dd   : > { %v3450_v41 = vmax.f32 %v3270_v48, 0.0 }
 0x2de   : > { %4918 = vmatmul.msk.bf16.gmra.mxu0 %vm1989_vm0, %v4383_v53  ;;  %v2764_v15 = vpop.f32.mrf.mxu2 }
 0x2df   : > { %v5328_v21 = vpack.c.bf16 %v3450_v41, %v3449_v16  ;;  %v2765_v34 = vadd.f32 %v2764_v15, %v2511_v58  ;;  %v4415_v16 = vor.u32 %v5102_v26, %v4414_v28 }
 0x2e0   : > { %v2512_v57 = vpop.f32.mrf.mxu1  ;;  %3072 = vmatmul.bf16.gmra.mxu3 %v4439_v25 }
 0x2e1   : > { %5485 = vst [vmem:[%s6121_s23 + $0xa8] sm:$0xff] %v5328_v21   ;;  %v3019_v8 = vadd.f32 %v6502_v62, %v2765_v34  ;;  %v2513_v50 = vadd.f32 %v2512_v57, %v2259_v10  ;;  %v7034_v62 = vld [vmem:[#allocation52_spill] sm:$0xff] }
 0x2e2   : > { %v2262_v35 = vadd.f32 %v6384_v56, %v7034_v62 }
 0x2e3   : > { %v3274_v20 = vpop.f32.mrf.mxu0  ;;  %v6562_v43 = vpop.f32.mrf.mxu3  ;;  %v3273_v17 = vadd.f32 %v3272_v30, %v3019_v8  ;;  %v5103_v30 = vld [vmem:[%s5613_s5 + $0x520] sm:$0xf0] }
 0x2e4   : > { %v4423_v15 = vor.u32 %v5103_v30, %v4422_v36  ;;  %v5115_v8 = vld [vmem:[%s5613_s5 + $0x584] sm:$0xf]  ;;  %v7039_v36 = vld [vmem:[#allocation64_spill] sm:$0xff] }
 0x2e5   : > { %v3451_v27 = vmax.f32 %v3273_v17, 0.0  ;;  %v2274_v30 = vadd.f32 %v6384_v56, %v7039_v36 }
 0x2e6   : > { %v2766_v13 = vpop.f32.mrf.mxu2 }
 0x2e7   : > { %v2767_v23 = vadd.f32 %v2766_v13, %v2513_v50  ;;  %v4476_v50 = vld [vmem:[%s5613_s5 + $0x594] sm:$0xf0]  ;;  %v5104_v13 = vld [vmem:[%s5613_s5 + $0x52c] sm:$0xf] }
 0x2e8   : > { %v2515_v59 = vpop.f32.mrf.mxu1 }
 0x2e9   : > { %v3021_v12 = vadd.f32 %v6508_v9, %v2767_v23  ;;  %v2516_v9 = vadd.f32 %v2515_v59, %v2262_v35  ;;  %v4479_v23 = vor.u32 %v5115_v8, %v4476_v50  ;;  %v5107_v59 = vld [vmem:[%s5613_s5 + $0x540] sm:$0xf0] }
 0x2eb   : > { %v3277_v33 = vpop.f32.mrf.mxu0  ;;  %v3275_v4 = vadd.f32 %v3274_v20, %v3021_v12  ;;  %2554 = vmatmul.bf16.gmra.mxu1 %v4391_v24  ;;  %2808 = vmatmul.bf16.gmra.mxu2 %v4395_v38  ;;  %v6568_v37 = vpop.f32.mrf.mxu3  ;;  %v4428_v24 = vld [vmem:[%s5613_s5 + $0x53c] sm:$0xf0]  ;;  %v4434_v38 = vld [vmem:[%s5613_s5 + $0x530] sm:$0xf]  ;;  %v4442_v12 = vld [vmem:[%s5613_s5 + $0x538] sm:$0xf] }
 0x2ec   : > { %v4431_v35 = vor.u32 %v5104_v13, %v4428_v24 }
 0x2ed   : > { %v3452_v51 = vmax.f32 %v3275_v4, 0.0 }
 0x2ee   : > { %4919 = vmatmul.msk.bf16.gmra.mxu0 %vm1989_vm0, %v4403_v55  ;;  %v2769_v22 = vpop.f32.mrf.mxu2 }
 0x2ef   : > { %v5333_v60 = vpack.c.bf16 %v3452_v51, %v3451_v27  ;;  %v2770_v47 = vadd.f32 %v2769_v22, %v2516_v9  ;;  %v4435_v27 = vor.u32 %v5107_v59, %v4434_v38 }
 0x2f0   : > { %v2517_v44 = vpop.f32.mrf.mxu1  ;;  %3077 = vmatmul.bf16.gmra.mxu3 %v4459_v6 }
 0x2f1   : > { %5486 = vst [vmem:[%s6121_s23 + $0xb0] sm:$0xff] %v5333_v60   ;;  %v3024_v53 = vadd.f32 %v6522_v11, %v2770_v47  ;;  %v2518_v52 = vadd.f32 %v2517_v44, %v2264_v18  ;;  %v7036_v11 = vld [vmem:[#allocation58_spill] sm:$0xff] }
 0x2f2   : > { %v2267_v19 = vadd.f32 %v6384_v56, %v7036_v11 }
 0x2f3   : > { %v3279_v54 = vpop.f32.mrf.mxu0  ;;  %v6582_v21 = vpop.f32.mrf.mxu3  ;;  %v3278_v58 = vadd.f32 %v3277_v33, %v3024_v53  ;;  %v5108_v33 = vld [vmem:[%s5613_s5 + $0x548] sm:$0xf0] }
 0x2f4   : > { %v4443_v22 = vor.u32 %v5108_v33, %v4442_v12  ;;  %v5120_v53 = vld [vmem:[%s5613_s5 + $0x5ac] sm:$0xf] }
 0x2f5   : > { %v3453_v14 = vmax.f32 %v3278_v58, 0.0  ;;  %v7041_v12 = vld [vmem:[#allocation3_spill] sm:$0xff] }
 0x2f6   : > { %v2771_v48 = vpop.f32.mrf.mxu2  ;;  %v2279_v33 = vadd.f32 %v6384_v56, %v7041_v12 }
 0x2f7   : > { %v2772_v63 = vadd.f32 %v2771_v48, %v2518_v52  ;;  %v4496_v52 = vld [vmem:[%s5613_s5 + $0x5bc] sm:$0xf0]  ;;  %v5109_v48 = vld [vmem:[%s5613_s5 + $0x554] sm:$0xf] }
 0x2f8   : > { %v2520_v41 = vpop.f32.mrf.mxu1 }
 0x2f9   : > { %v3026_v57 = vadd.f32 %v6528_v2, %v2772_v63  ;;  %v2521_v2 = vadd.f32 %v2520_v41, %v2267_v19  ;;  %v4499_v63 = vor.u32 %v5120_v53, %v4496_v52  ;;  %v5112_v41 = vld [vmem:[%s5613_s5 + $0x568] sm:$0xf0] }
 0x2fb   : > { %v3282_v34 = vpop.f32.mrf.mxu0  ;;  %v3280_v20 = vadd.f32 %v3279_v54, %v3026_v57  ;;  %2559 = vmatmul.bf16.gmra.mxu1 %v4411_v45  ;;  %2813 = vmatmul.bf16.gmra.mxu2 %v4415_v16  ;;  %v6588_v42 = vpop.f32.mrf.mxu3  ;;  %v4448_v45 = vld [vmem:[%s5613_s5 + $0x564] sm:$0xf0]  ;;  %v4454_v16 = vld [vmem:[%s5613_s5 + $0x558] sm:$0xf]  ;;  %v4462_v57 = vld [vmem:[%s5613_s5 + $0x560] sm:$0xf] }
 0x2fc   : > { %v4451_v19 = vor.u32 %v5109_v48, %v4448_v45 }
 0x2fd   : > { %v3454_v49 = vmax.f32 %v3280_v20, 0.0 }
 0x2fe   : > { %4920 = vmatmul.msk.bf16.gmra.mxu0 %vm1989_vm0, %v4423_v15  ;;  %v2774_v10 = vpop.f32.mrf.mxu2 }
 0x2ff   : > { %v5338_v46 = vpack.c.bf16 %v3454_v49, %v3453_v14  ;;  %v2775_v40 = vadd.f32 %v2774_v10, %v2521_v2  ;;  %v4455_v14 = vor.u32 %v5112_v41, %v4454_v16 }
 0x300   : > { %v2522_v25 = vpop.f32.mrf.mxu1  ;;  %3082 = vmatmul.bf16.gmra.mxu3 %v4479_v23 }
 0x301   : > { %5487 = vst [vmem:[%s6121_s23 + $0xb8] sm:$0xff] %v5338_v46   ;;  %v3029_v55 = vadd.f32 %v6542_v32, %v2775_v40  ;;  %v2523_v17 = vadd.f32 %v2522_v25, %v2269_v3  ;;  %v7038_v32 = vld [vmem:[#allocation62_spill] sm:$0xff] }
 0x302   : > { %v2272_v7 = vadd.f32 %v6384_v56, %v7038_v32 }
 0x303   : > { %v3284_v29 = vpop.f32.mrf.mxu0  ;;  %v6602_v60 = vpop.f32.mrf.mxu3  ;;  %v3283_v9 = vadd.f32 %v3282_v34, %v3029_v55  ;;  %v5113_v34 = vld [vmem:[%s5613_s5 + $0x570] sm:$0xf0] }
 0x304   : > { %v4463_v10 = vor.u32 %v5113_v34, %v4462_v57  ;;  %v5125_v55 = vld [vmem:[%s5613_s5 + $0x5d4] sm:$0xf]  ;;  %v7043_v57 = vld [vmem:[#allocation7_spill] sm:$0xff] }
 0x305   : > { %v3455_v0 = vmax.f32 %v3283_v9, 0.0  ;;  %v2284_v34 = vadd.f32 %v6384_v56, %v7043_v57 }
 0x306   : > { %v2776_v4 = vpop.f32.mrf.mxu2 }
 0x307   : > { %v2777_v62 = vadd.f32 %v2776_v4, %v2523_v17  ;;  %v4516_v17 = vld [vmem:[%s5613_s5 + $0x5e4] sm:$0xf0]  ;;  %v5114_v4 = vld [vmem:[%s5613_s5 + $0x57c] sm:$0xf] }
 0x308   : > { %v2525_v51 = vpop.f32.mrf.mxu1 }
 0x309   : > { %v3031_v44 = vadd.f32 %v6548_v61, %v2777_v62  ;;  %v2526_v61 = vadd.f32 %v2525_v51, %v2272_v7  ;;  %v4519_v62 = vor.u32 %v5125_v55, %v4516_v17  ;;  %v5117_v51 = vld [vmem:[%s5613_s5 + $0x590] sm:$0xf0] }
 0x30b   : > { %v3287_v47 = vpop.f32.mrf.mxu0  ;;  %v3285_v54 = vadd.f32 %v3284_v29, %v3031_v44  ;;  %2564 = vmatmul.bf16.gmra.mxu1 %v4431_v35  ;;  %2818 = vmatmul.bf16.gmra.mxu2 %v4435_v27  ;;  %v6608_v1 = vpop.f32.mrf.mxu3  ;;  %v4468_v35 = vld [vmem:[%s5613_s5 + $0x58c] sm:$0xf0]  ;;  %v4474_v27 = vld [vmem:[%s5613_s5 + $0x580] sm:$0xf]  ;;  %v4482_v44 = vld [vmem:[%s5613_s5 + $0x588] sm:$0xf] }
 0x30c   : > { %v4471_v7 = vor.u32 %v5114_v4, %v4468_v35 }
 0x30d   : > { %v3456_v39 = vmax.f32 %v3285_v54, 0.0 }
 0x30e   : > { %4921 = vmatmul.msk.bf16.gmra.mxu0 %vm1989_vm0, %v4443_v22  ;;  %v2779_v18 = vpop.f32.mrf.mxu2 }
 0x30f   : > { %v5343_v5 = vpack.c.bf16 %v3456_v39, %v3455_v0  ;;  %v2780_v28 = vadd.f32 %v2779_v18, %v2526_v61  ;;  %v4475_v0 = vor.u32 %v5117_v51, %v4474_v27 }
 0x310   : > { %v2527_v6 = vpop.f32.mrf.mxu1  ;;  %3087 = vmatmul.bf16.gmra.mxu3 %v4499_v63 }
 0x311   : > { %5488 = vst [vmem:[%s6121_s23 + $0xc0] sm:$0xff] %v5343_v5   ;;  %v3034_v15 = vadd.f32 %v6562_v43, %v2780_v28  ;;  %v2528_v58 = vadd.f32 %v2527_v6, %v2274_v30  ;;  %v7040_v43 = vld [vmem:[#allocation2_spill] sm:$0xff] }
 0x312   : > { %v2277_v8 = vadd.f32 %v6384_v56, %v7040_v43 }
 0x313   : > { %v3289_v26 = vpop.f32.mrf.mxu0  ;;  %v6622_v46 = vpop.f32.mrf.mxu3  ;;  %v3288_v2 = vadd.f32 %v3287_v47, %v3034_v15  ;;  %v5118_v47 = vld [vmem:[%s5613_s5 + $0x598] sm:$0xf0] }
 0x314   : > { %v4483_v18 = vor.u32 %v5118_v47, %v4482_v44  ;;  %v5130_v15 = vld [vmem:[%s5613_s5 + $0x5fc] sm:$0xf]  ;;  %v7045_v44 = vld [vmem:[#allocation11_spill] sm:$0xff] }
 0x315   : > { %v3457_v50 = vmax.f32 %v3288_v2, 0.0 }
 0x316   : > { %v2781_v20 = vpop.f32.mrf.mxu2 }
 0x317   : > { %v2782_v11 = vadd.f32 %v2781_v20, %v2528_v58  ;;  %v4536_v58 = vld [vmem:[%s5613_s5 + $0x60c] sm:$0xf0]  ;;  %v5119_v20 = vld [vmem:[%s5613_s5 + $0x5a4] sm:$0xf] }
 0x318   : > { %v2530_v49 = vpop.f32.mrf.mxu1 }
 0x319   : > { %v3036_v25 = vadd.f32 %v6568_v37, %v2782_v11  ;;  %v2531_v37 = vadd.f32 %v2530_v49, %v2277_v8  ;;  %v4539_v11 = vor.u32 %v5130_v15, %v4536_v58  ;;  %v5122_v49 = vld [vmem:[%s5613_s5 + $0x5b8] sm:$0xf0] }
 0x31b   : > { %v3292_v40 = vpop.f32.mrf.mxu0  ;;  %v3290_v29 = vadd.f32 %v3289_v26, %v3036_v25  ;;  %2569 = vmatmul.bf16.gmra.mxu1 %v4451_v19  ;;  %2823 = vmatmul.bf16.gmra.mxu2 %v4455_v14  ;;  %v6628_v24 = vpop.f32.mrf.mxu3  ;;  %v4488_v19 = vld [vmem:[%s5613_s5 + $0x5b4] sm:$0xf0]  ;;  %v4494_v14 = vld [vmem:[%s5613_s5 + $0x5a8] sm:$0xf]  ;;  %v4502_v25 = vld [vmem:[%s5613_s5 + $0x5b0] sm:$0xf] }
 0x31c   : > { %v4491_v8 = vor.u32 %v5119_v20, %v4488_v19 }
 0x31d   : > { %v3458_v31 = vmax.f32 %v3290_v29, 0.0 }
 0x31e   : > { %4922 = vmatmul.msk.bf16.gmra.mxu0 %vm1989_vm0, %v4463_v10  ;;  %v2784_v3 = vpop.f32.mrf.mxu2 }
 0x31f   : > { %v5348_v13 = vpack.c.bf16 %v3458_v31, %v3457_v50  ;;  %v2785_v38 = vadd.f32 %v2784_v3, %v2531_v37  ;;  %v4495_v50 = vor.u32 %v5122_v49, %v4494_v14 }
 0x320   : > { %v2532_v23 = vpop.f32.mrf.mxu1  ;;  %3092 = vmatmul.bf16.gmra.mxu3 %v4519_v62 }
 0x321   : > { %5489 = vst [vmem:[%s6121_s23 + $0xc8] sm:$0xff] %v5348_v13   ;;  %v3039_v22 = vadd.f32 %v6582_v21, %v2785_v38  ;;  %v2533_v9 = vadd.f32 %v2532_v23, %v2279_v33  ;;  %v7042_v21 = vld [vmem:[#allocation5_spill] sm:$0xff] }
 0x322   : > { %v2282_v53 = vadd.f32 %v6384_v56, %v7042_v21 }
 0x323   : > { %v3294_v59 = vpop.f32.mrf.mxu0  ;;  %v6642_v5 = vpop.f32.mrf.mxu3  ;;  %v3293_v61 = vadd.f32 %v3292_v40, %v3039_v22  ;;  %v5123_v40 = vld [vmem:[%s5613_s5 + $0x5c0] sm:$0xf0] }
 0x324   : > { %v4503_v3 = vor.u32 %v5123_v40, %v4502_v25  ;;  %v5135_v22 = vld [vmem:[%s5613_s5 + $0x624] sm:$0xf]  ;;  %v7047_v25 = vld [vmem:[#allocation15_spill] sm:$0xff] }
 0x325   : > { %v3459_v52 = vmax.f32 %v3293_v61, 0.0 }
 0x326   : > { %v2786_v54 = vpop.f32.mrf.mxu2 }
 0x327   : > { %v2787_v32 = vadd.f32 %v2786_v54, %v2533_v9  ;;  %v4556_v9 = vld [vmem:[%s5613_s5 + $0x634] sm:$0xf0]  ;;  %v5124_v54 = vld [vmem:[%s5613_s5 + $0x5cc] sm:$0xf] }
 0x328   : > { %v2535_v39 = vpop.f32.mrf.mxu1 }
 0x329   : > { %v3041_v6 = vadd.f32 %v6588_v42, %v2787_v32  ;;  %v2536_v42 = vadd.f32 %v2535_v39, %v2282_v53  ;;  %v4559_v32 = vor.u32 %v5135_v22, %v4556_v9  ;;  %v5127_v39 = vld [vmem:[%s5613_s5 + $0x5e0] sm:$0xf0] }
 0x32b   : > { %v3297_v28 = vpop.f32.mrf.mxu0  ;;  %v3295_v26 = vadd.f32 %v3294_v59, %v3041_v6  ;;  %2574 = vmatmul.bf16.gmra.mxu1 %v4471_v7  ;;  %2828 = vmatmul.bf16.gmra.mxu2 %v4475_v0  ;;  %v6648_v45 = vpop.f32.mrf.mxu3  ;;  %v7044_v59 = vld [vmem:[#allocation9_spill] sm:$0xff]  ;;  %v4508_v7 = vld [vmem:[%s5613_s5 + $0x5dc] sm:$0xf0]  ;;  %v4514_v0 = vld [vmem:[%s5613_s5 + $0x5d0] sm:$0xf] }
 0x32c   : > { %v4522_v6 = vld [vmem:[%s5613_s5 + $0x5d8] sm:$0xf]  ;;  %v4511_v53 = vor.u32 %v5124_v54, %v4508_v7 }
 0x32d   : > { %v3460_v36 = vmax.f32 %v3295_v26, 0.0 }
 0x32e   : > { %4923 = vmatmul.msk.bf16.gmra.mxu0 %vm1989_vm0, %v4483_v18  ;;  %v2789_v30 = vpop.f32.mrf.mxu2 }
 0x32f   : > { %v5353_v48 = vpack.c.bf16 %v3460_v36, %v3459_v52  ;;  %v2790_v16 = vadd.f32 %v2789_v30, %v2536_v42  ;;  %v4515_v52 = vor.u32 %v5127_v39, %v4514_v0 }
 0x330   : > { %v2537_v63 = vpop.f32.mrf.mxu1  ;;  %3097 = vmatmul.bf16.gmra.mxu3 %v4539_v11 }
 0x331   : > { %5490 = vst [vmem:[%s6121_s23 + $0xd0] sm:$0xff] %v5353_v48   ;;  %v3044_v10 = vadd.f32 %v6602_v60, %v2790_v16  ;;  %v2538_v2 = vadd.f32 %v2537_v63, %v2284_v34  ;;  %v6669_v60 = vld [vmem:[%s6956_s2] ss:$0 sm:$0xff] }
 0x332   : > { %v2287_v55 = vadd.f32 %v6669_v60, %v7044_v59  ;;  %v2289_v47 = vadd.f32 %v6669_v60, %v7045_v44  ;;  %v2294_v40 = vadd.f32 %v6669_v60, %v7047_v25 }
 0x333   : > { %v3299_v41 = vpop.f32.mrf.mxu0  ;;  %v6662_v13 = vpop.f32.mrf.mxu3  ;;  %v3298_v56 = vadd.f32 %v3297_v28, %v3044_v10  ;;  %v5128_v28 = vld [vmem:[%s5613_s5 + $0x5e8] sm:$0xf0] }
 0x334   : > { %v4523_v30 = vor.u32 %v5128_v28, %v4522_v6  ;;  %v5140_v10 = vld [vmem:[%s5613_s5 + $0x64c] sm:$0xf]  ;;  %v7049_v6 = vld [vmem:[#allocation21_spill] sm:$0xff] }
 0x335   : > { %v3461_v17 = vmax.f32 %v3298_v56, 0.0  ;;  %v2299_v28 = vadd.f32 %v6669_v60, %v7049_v6 }
 0x336   : > { %v2791_v29 = vpop.f32.mrf.mxu2 }
 0x337   : > { %v2792_v43 = vadd.f32 %v2791_v29, %v2538_v2  ;;  %v4576_v2 = vld [vmem:[%s5613_s5 + $0x65c] sm:$0xf0]  ;;  %v5129_v29 = vld [vmem:[%s5613_s5 + $0x5f4] sm:$0xf] }
 0x338   : > { %v2540_v31 = vpop.f32.mrf.mxu1 }
 0x339   : > { %v3046_v37 = vadd.f32 %v6608_v1, %v2792_v43  ;;  %v2541_v4 = vadd.f32 %v2540_v31, %v2287_v55  ;;  %v4579_v43 = vor.u32 %v5140_v10, %v4576_v2  ;;  %v5132_v31 = vld [vmem:[%s5613_s5 + $0x608] sm:$0xf0] }
 0x33b   : > { %v3302_v23 = vpop.f32.mrf.mxu0  ;;  %v3300_v38 = vadd.f32 %v3299_v41, %v3046_v37  ;;  %2579 = vmatmul.bf16.gmra.mxu1 %v4491_v8  ;;  %2833 = vmatmul.bf16.gmra.mxu2 %v4495_v50  ;;  %v6673_v35 = vpop.f32.mrf.mxu3  ;;  %v4528_v8 = vld [vmem:[%s5613_s5 + $0x604] sm:$0xf0]  ;;  %v4534_v50 = vld [vmem:[%s5613_s5 + $0x5f8] sm:$0xf]  ;;  %v4542_v37 = vld [vmem:[%s5613_s5 + $0x600] sm:$0xf] }
 0x33c   : > { %v4531_v55 = vor.u32 %v5129_v29, %v4528_v8 }
 0x33d   : > { %v3462_v1 = vmax.f32 %v3300_v38, 0.0 }
 0x33e   : > { %4924 = vmatmul.msk.bf16.gmra.mxu0 %vm1989_vm0, %v4503_v3  ;;  %v2794_v12 = vpop.f32.mrf.mxu2 }
 0x33f   : > { %v5358_v33 = vpack.c.bf16 %v3462_v1, %v3461_v17  ;;  %v2795_v27 = vadd.f32 %v2794_v12, %v2541_v4  ;;  %v4535_v17 = vor.u32 %v5132_v31, %v4534_v50 }
 0x340   : > { %v2542_v62 = vpop.f32.mrf.mxu1  ;;  %3102 = vmatmul.bf16.gmra.mxu3 %v4559_v32 }
 0x341   : > { %5491 = vst [vmem:[%s6121_s23 + $0xd8] sm:$0xff] %v5358_v33   ;;  %v3049_v18 = vadd.f32 %v6622_v46, %v2795_v27  ;;  %v2543_v61 = vadd.f32 %v2542_v62, %v2289_v47  ;;  %v7046_v46 = vld [vmem:[#allocation13_spill] sm:$0xff] }
 0x342   : > { %v2292_v15 = vadd.f32 %v6669_v60, %v7046_v46 }
 0x343   : > { %v3304_v51 = vpop.f32.mrf.mxu0  ;;  %v6687_v48 = vpop.f32.mrf.mxu3  ;;  %v3303_v42 = vadd.f32 %v3302_v23, %v3049_v18  ;;  %v5133_v23 = vld [vmem:[%s5613_s5 + $0x610] sm:$0xf0] }
 0x344   : > { %v4543_v12 = vor.u32 %v5133_v23, %v4542_v37  ;;  %v5145_v18 = vld [vmem:[%s5613_s5 + $0x674] sm:$0xf]  ;;  %v7051_v37 = vld [vmem:[#allocation27_spill] sm:$0xff] }
 0x345   : > { %v3463_v58 = vmax.f32 %v3303_v42, 0.0  ;;  %v2304_v23 = vadd.f32 %v6669_v60, %v7051_v37 }
 0x346   : > { %v2796_v26 = vpop.f32.mrf.mxu2 }
 0x347   : > { %v2797_v21 = vadd.f32 %v2796_v26, %v2543_v61  ;;  %v4596_v61 = vld [vmem:[%s5613_s5 + $0x684] sm:$0xf0]  ;;  %v5134_v26 = vld [vmem:[%s5613_s5 + $0x61c] sm:$0xf] }
 0x348   : > { %v2545_v36 = vpop.f32.mrf.mxu1 }
 0x349   : > { %v3051_v63 = vadd.f32 %v6628_v24, %v2797_v21  ;;  %v2546_v24 = vadd.f32 %v2545_v36, %v2292_v15  ;;  %v4599_v21 = vor.u32 %v5145_v18, %v4596_v61  ;;  %v5137_v36 = vld [vmem:[%s5613_s5 + $0x630] sm:$0xf0] }
 0x34b   : > { %v3307_v16 = vpop.f32.mrf.mxu0  ;;  %v3305_v41 = vadd.f32 %v3304_v51, %v3051_v63  ;;  %2584 = vmatmul.bf16.gmra.mxu1 %v4511_v53  ;;  %2838 = vmatmul.bf16.gmra.mxu2 %v4515_v52  ;;  %v6693_v19 = vpop.f32.mrf.mxu3  ;;  %v4548_v53 = vld [vmem:[%s5613_s5 + $0x62c] sm:$0xf0]  ;;  %v4554_v52 = vld [vmem:[%s5613_s5 + $0x620] sm:$0xf]  ;;  %v4562_v63 = vld [vmem:[%s5613_s5 + $0x628] sm:$0xf] }
 0x34c   : > { %v4551_v15 = vor.u32 %v5134_v26, %v4548_v53 }
 0x34d   : > { %v3464_v57 = vmax.f32 %v3305_v41, 0.0 }
 0x34e   : > { %4925 = vmatmul.msk.bf16.gmra.mxu0 %vm1989_vm0, %v4523_v30  ;;  %v2799_v34 = vpop.f32.mrf.mxu2 }
 0x34f   : > { %v5363_v20 = vpack.c.bf16 %v3464_v57, %v3463_v58  ;;  %v2800_v14 = vadd.f32 %v2799_v34, %v2546_v24  ;;  %v4555_v58 = vor.u32 %v5137_v36, %v4554_v52 }
 0x350   : > { %v2547_v11 = vpop.f32.mrf.mxu1  ;;  %3107 = vmatmul.bf16.gmra.mxu3 %v4579_v43 }
 0x351   : > { %5492 = vst [vmem:[%s6121_s23 + $0xe0] sm:$0xff] %v5363_v20   ;;  %v3054_v3 = vadd.f32 %v6642_v5, %v2800_v14  ;;  %v2548_v56 = vadd.f32 %v2547_v11, %v2294_v40  ;;  %v7048_v5 = vld [vmem:[#allocation18_spill] sm:$0xff] }
 0x352   : > { %v2297_v22 = vadd.f32 %v6669_v60, %v7048_v5 }
 0x353   : > { %v3309_v49 = vpop.f32.mrf.mxu0  ;;  %v6707_v33 = vpop.f32.mrf.mxu3  ;;  %v3308_v4 = vadd.f32 %v3307_v16, %v3054_v3  ;;  %v5138_v16 = vld [vmem:[%s5613_s5 + $0x638] sm:$0xf0] }
 0x354   : > { %v4563_v34 = vor.u32 %v5138_v16, %v4562_v63  ;;  %v5150_v3 = vld [vmem:[%s5613_s5 + $0x69c] sm:$0xf] }
 0x355   : > { %v3465_v9 = vmax.f32 %v3308_v4, 0.0  ;;  %v7053_v63 = vld [vmem:[#allocation33_spill] sm:$0xff] }
 0x356   : > { %v2801_v38 = vpop.f32.mrf.mxu2  ;;  %v2309_v16 = vadd.f32 %v6669_v60, %v7053_v63 }
 0x357   : > { %v2802_v59 = vadd.f32 %v2801_v38, %v2548_v56  ;;  %v4616_v56 = vld [vmem:[%s5613_s5 + $0x6ac] sm:$0xf0]  ;;  %v5139_v38 = vld [vmem:[%s5613_s5 + $0x644] sm:$0xf] }
 0x358   : > { %v2550_v1 = vpop.f32.mrf.mxu1 }
 0x359   : > { %v3056_v62 = vadd.f32 %v6648_v45, %v2802_v59  ;;  %v2551_v45 = vadd.f32 %v2550_v1, %v2297_v22  ;;  %v4619_v59 = vor.u32 %v5150_v3, %v4616_v56  ;;  %v5142_v1 = vld [vmem:[%s5613_s5 + $0x658] sm:$0xf0] }
 0x35b   : > { %v3312_v27 = vpop.f32.mrf.mxu0  ;;  %v3310_v51 = vadd.f32 %v3309_v49, %v3056_v62  ;;  %2589 = vmatmul.bf16.gmra.mxu1 %v4531_v55  ;;  %2843 = vmatmul.bf16.gmra.mxu2 %v4535_v17  ;;  %v6713_v7 = vpop.f32.mrf.mxu3  ;;  %v4568_v55 = vld [vmem:[%s5613_s5 + $0x654] sm:$0xf0]  ;;  %v4574_v17 = vld [vmem:[%s5613_s5 + $0x648] sm:$0xf]  ;;  %v4582_v62 = vld [vmem:[%s5613_s5 + $0x650] sm:$0xf] }
 0x35c   : > { %v4571_v22 = vor.u32 %v5139_v38, %v4568_v55 }
 0x35d   : > { %v3466_v44 = vmax.f32 %v3310_v51, 0.0 }
 0x35e   : > { %4926 = vmatmul.msk.bf16.gmra.mxu0 %vm1989_vm0, %v4543_v12  ;;  %v2804_v47 = vpop.f32.mrf.mxu2 }
 0x35f   : > { %v5368_v54 = vpack.c.bf16 %v3466_v44, %v3465_v9  ;;  %v2805_v0 = vadd.f32 %v2804_v47, %v2551_v45  ;;  %v4575_v9 = vor.u32 %v5142_v1, %v4574_v17 }
 0x360   : > { %v2552_v32 = vpop.f32.mrf.mxu1  ;;  %3112 = vmatmul.bf16.gmra.mxu3 %v4599_v21 }
 0x361   : > { %5493 = vst [vmem:[%s6121_s23 + $0xe8] sm:$0xff] %v5368_v54   ;;  %v3059_v30 = vadd.f32 %v6662_v13, %v2805_v0  ;;  %v2553_v42 = vadd.f32 %v2552_v32, %v2299_v28  ;;  %v7050_v13 = vld [vmem:[#allocation24_spill] sm:$0xff] }
 0x362   : > { %v2302_v10 = vadd.f32 %v6669_v60, %v7050_v13 }
 0x363   : > { %v3314_v39 = vpop.f32.mrf.mxu0  ;;  %v6727_v20 = vpop.f32.mrf.mxu3  ;;  %v3313_v24 = vadd.f32 %v3312_v27, %v3059_v30  ;;  %v5143_v27 = vld [vmem:[%s5613_s5 + $0x660] sm:$0xf0] }
 0x364   : > { %v4583_v47 = vor.u32 %v5143_v27, %v4582_v62  ;;  %v5155_v30 = vld [vmem:[%s5613_s5 + $0x6c4] sm:$0xf]  ;;  %v7055_v62 = vld [vmem:[#allocation39_spill] sm:$0xff] }
 0x365   : > { %v3467_v2 = vmax.f32 %v3313_v24, 0.0  ;;  %v2314_v27 = vadd.f32 %v6669_v60, %v7055_v62 }
 0x366   : > { %v2806_v41 = vpop.f32.mrf.mxu2 }
 0x367   : > { %v2807_v46 = vadd.f32 %v2806_v41, %v2553_v42  ;;  %v4636_v42 = vld [vmem:[%s5613_s5 + $0x6d4] sm:$0xf0]  ;;  %v5144_v41 = vld [vmem:[%s5613_s5 + $0x66c] sm:$0xf] }
 0x368   : > { %v2555_v57 = vpop.f32.mrf.mxu1 }
 0x369   : > { %v3061_v11 = vadd.f32 %v6673_v35, %v2807_v46  ;;  %v2556_v35 = vadd.f32 %v2555_v57, %v2302_v10  ;;  %v4639_v46 = vor.u32 %v5155_v30, %v4636_v42  ;;  %v5147_v57 = vld [vmem:[%s5613_s5 + $0x680] sm:$0xf0] }
 0x36b   : > { %v3317_v14 = vpop.f32.mrf.mxu0  ;;  %v3315_v49 = vadd.f32 %v3314_v39, %v3061_v11  ;;  %2594 = vmatmul.bf16.gmra.mxu1 %v4551_v15  ;;  %2848 = vmatmul.bf16.gmra.mxu2 %v4555_v58  ;;  %v6733_v8 = vpop.f32.mrf.mxu3  ;;  %v4588_v15 = vld [vmem:[%s5613_s5 + $0x67c] sm:$0xf0]  ;;  %v4594_v58 = vld [vmem:[%s5613_s5 + $0x670] sm:$0xf]  ;;  %v4602_v11 = vld [vmem:[%s5613_s5 + $0x678] sm:$0xf] }
 0x36c   : > { %v4591_v10 = vor.u32 %v5144_v41, %v4588_v15 }
 0x36d   : > { %v3468_v25 = vmax.f32 %v3315_v49, 0.0 }
 0x36e   : > { %4927 = vmatmul.msk.bf16.gmra.mxu0 %vm1989_vm0, %v4563_v34  ;;  %v2809_v40 = vpop.f32.mrf.mxu2 }
 0x36f   : > { %v5373_v29 = vpack.c.bf16 %v3468_v25, %v3467_v2  ;;  %v2810_v50 = vadd.f32 %v2809_v40, %v2556_v35  ;;  %v4595_v2 = vor.u32 %v5147_v57, %v4594_v58 }
 0x370   : > { %v2557_v43 = vpop.f32.mrf.mxu1  ;;  %3117 = vmatmul.bf16.gmra.mxu3 %v4619_v59 }
 0x371   : > { %5494 = vst [vmem:[%s6121_s23 + $0xf0] sm:$0xff] %v5373_v29   ;;  %v3064_v12 = vadd.f32 %v6687_v48, %v2810_v50  ;;  %v2558_v4 = vadd.f32 %v2557_v43, %v2304_v23  ;;  %v7052_v48 = vld [vmem:[#allocation30_spill] sm:$0xff] }
 0x372   : > { %v2307_v18 = vadd.f32 %v6669_v60, %v7052_v48 }
 0x373   : > { %v3319_v31 = vpop.f32.mrf.mxu0  ;;  %v6747_v54 = vpop.f32.mrf.mxu3  ;;  %v3318_v45 = vadd.f32 %v3317_v14, %v3064_v12  ;;  %v5148_v14 = vld [vmem:[%s5613_s5 + $0x688] sm:$0xf0] }
 0x374   : > { %v4603_v40 = vor.u32 %v5148_v14, %v4602_v11  ;;  %v5160_v12 = vld [vmem:[%s5613_s5 + $0x6ec] sm:$0xf]  ;;  %v7057_v11 = vld [vmem:[#allocation45_spill] sm:$0xff] }
 0x375   : > { %v3469_v61 = vmax.f32 %v3318_v45, 0.0  ;;  %v2319_v14 = vadd.f32 %v6669_v60, %v7057_v11 }
 0x376   : > { %v2811_v51 = vpop.f32.mrf.mxu2 }
 0x377   : > { %v2812_v5 = vadd.f32 %v2811_v51, %v2558_v4  ;;  %v4656_v4 = vld [vmem:[%s5613_s5 + $0x6fc] sm:$0xf0]  ;;  %v5149_v51 = vld [vmem:[%s5613_s5 + $0x694] sm:$0xf] }
 0x378   : > { %v2560_v44 = vpop.f32.mrf.mxu1 }
 0x379   : > { %v3066_v32 = vadd.f32 %v6693_v19, %v2812_v5  ;;  %v2561_v19 = vadd.f32 %v2560_v44, %v2307_v18  ;;  %v4659_v5 = vor.u32 %v5160_v12, %v4656_v4  ;;  %v5152_v44 = vld [vmem:[%s5613_s5 + $0x6a8] sm:$0xf0] }
 0x37b   : > { %v3322_v0 = vpop.f32.mrf.mxu0  ;;  %v3320_v39 = vadd.f32 %v3319_v31, %v3066_v32  ;;  %2599 = vmatmul.bf16.gmra.mxu1 %v4571_v22  ;;  %2853 = vmatmul.bf16.gmra.mxu2 %v4575_v9  ;;  %v6753_v53 = vpop.f32.mrf.mxu3  ;;  %v4608_v22 = vld [vmem:[%s5613_s5 + $0x6a4] sm:$0xf0]  ;;  %v4614_v9 = vld [vmem:[%s5613_s5 + $0x698] sm:$0xf]  ;;  %v4622_v32 = vld [vmem:[%s5613_s5 + $0x6a0] sm:$0xf] }
 0x37c   : > { %v4611_v18 = vor.u32 %v5149_v51, %v4608_v22 }
 0x37d   : > { %v3470_v6 = vmax.f32 %v3320_v39, 0.0 }
 0x37e   : > { %4928 = vmatmul.msk.bf16.gmra.mxu0 %vm1989_vm0, %v4583_v47  ;;  %v2814_v28 = vpop.f32.mrf.mxu2 }
 0x37f   : > { %v5378_v26 = vpack.c.bf16 %v3470_v6, %v3469_v61  ;;  %v2815_v52 = vadd.f32 %v2814_v28, %v2561_v19  ;;  %v4615_v61 = vor.u32 %v5152_v44, %v4614_v9 }
 0x380   : > { %v2562_v21 = vpop.f32.mrf.mxu1  ;;  %3122 = vmatmul.bf16.gmra.mxu3 %v4639_v46 }
 0x381   : > { %5495 = vst [vmem:[%s6121_s23 + $0xf8] sm:$0xff] %v5378_v26   ;;  %v3069_v34 = vadd.f32 %v6707_v33, %v2815_v52  ;;  %v2563_v24 = vadd.f32 %v2562_v21, %v2309_v16  ;;  %v7054_v33 = vld [vmem:[#allocation36_spill] sm:$0xff] }
 0x382   : > { %v2312_v3 = vadd.f32 %v6669_v60, %v7054_v33 }
 0x383   : > { %v3324_v36 = vpop.f32.mrf.mxu0  ;;  %v6767_v29 = vpop.f32.mrf.mxu3  ;;  %v3323_v35 = vadd.f32 %v3322_v0, %v3069_v34  ;;  %v5153_v0 = vld [vmem:[%s5613_s5 + $0x6b0] sm:$0xf0] }
 0x384   : > { %v4623_v28 = vor.u32 %v5153_v0, %v4622_v32  ;;  %v5165_v34 = vld [vmem:[%s5613_s5 + $0x714] sm:$0xf]  ;;  %v7059_v32 = vld [vmem:[#allocation51_spill] sm:$0xff] }
 0x385   : > { %v3471_v56 = vmax.f32 %v3323_v35, 0.0  ;;  %v2324_v0 = vadd.f32 %v6669_v60, %v7059_v32 }
 0x386   : > { %v2816_v49 = vpop.f32.mrf.mxu2 }
 0x387   : > { %v2817_v13 = vadd.f32 %v2816_v49, %v2563_v24  ;;  %v4676_v24 = vld [vmem:[%s5613_s5 + $0x724] sm:$0xf0]  ;;  %v5154_v49 = vld [vmem:[%s5613_s5 + $0x6bc] sm:$0xf] }
 0x388   : > { %v2565_v25 = vpop.f32.mrf.mxu1 }
 0x389   : > { %v3071_v43 = vadd.f32 %v6713_v7, %v2817_v13  ;;  %v2566_v7 = vadd.f32 %v2565_v25, %v2312_v3  ;;  %v4679_v13 = vor.u32 %v5165_v34, %v4676_v24  ;;  %v5157_v25 = vld [vmem:[%s5613_s5 + $0x6d0] sm:$0xf0] }
 0x38b   : > { %v3327_v50 = vpop.f32.mrf.mxu0  ;;  %v3325_v31 = vadd.f32 %v3324_v36, %v3071_v43  ;;  %2604 = vmatmul.bf16.gmra.mxu1 %v4591_v10  ;;  %2858 = vmatmul.bf16.gmra.mxu2 %v4595_v2  ;;  %v6773_v55 = vpop.f32.mrf.mxu3  ;;  %v4628_v10 = vld [vmem:[%s5613_s5 + $0x6cc] sm:$0xf0]  ;;  %v4634_v2 = vld [vmem:[%s5613_s5 + $0x6c0] sm:$0xf]  ;;  %v4642_v43 = vld [vmem:[%s5613_s5 + $0x6c8] sm:$0xf] }
 0x38c   : > { %v4631_v3 = vor.u32 %v5154_v49, %v4628_v10 }
 0x38d   : > { %v3472_v37 = vmax.f32 %v3325_v31, 0.0 }
 0x38e   : > { %4929 = vmatmul.msk.bf16.gmra.mxu0 %vm1989_vm0, %v4603_v40  ;;  %v2819_v23 = vpop.f32.mrf.mxu2 }
 0x38f   : > { %v5383_v38 = vpack.c.bf16 %v3472_v37, %v3471_v56  ;;  %v2820_v17 = vadd.f32 %v2819_v23, %v2566_v7  ;;  %v4635_v56 = vor.u32 %v5157_v25, %v4634_v2 }
 0x390   : > { %v2567_v59 = vpop.f32.mrf.mxu1  ;;  %3127 = vmatmul.bf16.gmra.mxu3 %v4659_v5 }
 0x391   : > { %5496 = vst [vmem:[%s6121_s23 + $0x100] sm:$0xff] %v5383_v38   ;;  %v3074_v47 = vadd.f32 %v6727_v20, %v2820_v17  ;;  %v2568_v45 = vadd.f32 %v2567_v59, %v2314_v27  ;;  %v7056_v20 = vld [vmem:[#allocation42_spill] sm:$0xff] }
 0x392   : > { %v2317_v30 = vadd.f32 %v6669_v60, %v7056_v20 }
 0x393   : > { %v3329_v1 = vpop.f32.mrf.mxu0  ;;  %v6787_v26 = vpop.f32.mrf.mxu3  ;;  %v3328_v19 = vadd.f32 %v3327_v50, %v3074_v47  ;;  %v5158_v50 = vld [vmem:[%s5613_s5 + $0x6d8] sm:$0xf0] }
 0x394   : > { %v4643_v23 = vor.u32 %v5158_v50, %v4642_v43  ;;  %v5170_v47 = vld [vmem:[%s5613_s5 + $0x73c] sm:$0xf] }
 0x395   : > { %v3473_v42 = vmax.f32 %v3328_v19, 0.0  ;;  %v7061_v43 = vld [vmem:[#allocation57_spill] sm:$0xff] }
 0x396   : > { %v2821_v39 = vpop.f32.mrf.mxu2  ;;  %v2329_v50 = vadd.f32 %v6669_v60, %v7061_v43 }
 0x397   : > { %v2822_v48 = vadd.f32 %v2821_v39, %v2568_v45  ;;  %v4696_v45 = vld [vmem:[%s5613_s5 + $0x74c] sm:$0xf0]  ;;  %v5159_v39 = vld [vmem:[%s5613_s5 + $0x6e4] sm:$0xf] }
 0x398   : > { %v2570_v6 = vpop.f32.mrf.mxu1 }
 0x399   : > { %v3076_v21 = vadd.f32 %v6733_v8, %v2822_v48  ;;  %v2571_v8 = vadd.f32 %v2570_v6, %v2317_v30  ;;  %v4699_v48 = vor.u32 %v5170_v47, %v4696_v45  ;;  %v5162_v6 = vld [vmem:[%s5613_s5 + $0x6f8] sm:$0xf0] }
 0x39b   : > { %v3332_v52 = vpop.f32.mrf.mxu0  ;;  %v3330_v36 = vadd.f32 %v3329_v1, %v3076_v21  ;;  %2609 = vmatmul.bf16.gmra.mxu1 %v4611_v18  ;;  %2863 = vmatmul.bf16.gmra.mxu2 %v4615_v61  ;;  %v6793_v15 = vpop.f32.mrf.mxu3  ;;  %v4648_v18 = vld [vmem:[%s5613_s5 + $0x6f4] sm:$0xf0]  ;;  %v4654_v61 = vld [vmem:[%s5613_s5 + $0x6e8] sm:$0xf]  ;;  %v4662_v21 = vld [vmem:[%s5613_s5 + $0x6f0] sm:$0xf] }
 0x39c   : > { %v4651_v30 = vor.u32 %v5159_v39, %v4648_v18 }
 0x39d   : > { %v3474_v63 = vmax.f32 %v3330_v36, 0.0 }
 0x39e   : > { %4930 = vmatmul.msk.bf16.gmra.mxu0 %vm1989_vm0, %v4623_v28  ;;  %v2824_v16 = vpop.f32.mrf.mxu2 }
 0x39f   : > { %v5388_v41 = vpack.c.bf16 %v3474_v63, %v3473_v42  ;;  %v2825_v58 = vadd.f32 %v2824_v16, %v2571_v8  ;;  %v4655_v42 = vor.u32 %v5162_v6, %v4654_v61  ;;  %v5180_v6 = vld [vmem:[%s5613_s5 + $0x78c] sm:$0xf] }
 0x3a0   : > { %v2572_v46 = vpop.f32.mrf.mxu1  ;;  %3132 = vmatmul.bf16.gmra.mxu3 %v4679_v13 }
 0x3a1   : > { %5497 = vst [vmem:[%s6121_s23 + $0x108] sm:$0xff] %v5388_v41   ;;  %v3079_v40 = vadd.f32 %v6747_v54, %v2825_v58  ;;  %v2573_v35 = vadd.f32 %v2572_v46, %v2319_v14  ;;  %v7058_v54 = vld [vmem:[#allocation48_spill] sm:$0xff] }
 0x3a2   : > { %v2322_v12 = vadd.f32 %v6669_v60, %v7058_v54 }
 0x3a3   : > { %v3334_v57 = vpop.f32.mrf.mxu0  ;;  %v6807_v38 = vpop.f32.mrf.mxu3  ;;  %v3333_v7 = vadd.f32 %v3332_v52, %v3079_v40  ;;  %v5163_v52 = vld [vmem:[%s5613_s5 + $0x700] sm:$0xf0] }
 0x3a4   : > { %v4663_v16 = vor.u32 %v5163_v52, %v4662_v21  ;;  %v5175_v40 = vld [vmem:[%s5613_s5 + $0x764] sm:$0xf]  ;;  %v5169_v52 = vld [vmem:[%s5613_s5 + $0x734] sm:$0xf] }
 0x3a5   : > { %v3475_v4 = vmax.f32 %v3333_v7, 0.0 }
 0x3a6   : > { %v2826_v31 = vpop.f32.mrf.mxu2 }
 0x3a7   : > { %v2827_v33 = vadd.f32 %v2826_v31, %v2573_v35  ;;  %v4716_v35 = vld [vmem:[%s5613_s5 + $0x774] sm:$0xf0]  ;;  %v5164_v31 = vld [vmem:[%s5613_s5 + $0x70c] sm:$0xf] }
 0x3a8   : > { %v2575_v37 = vpop.f32.mrf.mxu1 }
 0x3a9   : > { %v3081_v59 = vadd.f32 %v6753_v53, %v2827_v33  ;;  %v2576_v53 = vadd.f32 %v2575_v37, %v2322_v12  ;;  %v4719_v33 = vor.u32 %v5175_v40, %v4716_v35  ;;  %v5167_v37 = vld [vmem:[%s5613_s5 + $0x720] sm:$0xf0] }
 0x3ab   : > { %v3337_v17 = vpop.f32.mrf.mxu0  ;;  %v3335_v1 = vadd.f32 %v3334_v57, %v3081_v59  ;;  %2614 = vmatmul.bf16.gmra.mxu1 %v4631_v3  ;;  %2868 = vmatmul.bf16.gmra.mxu2 %v4635_v56  ;;  %v6813_v22 = vpop.f32.mrf.mxu3  ;;  %v4668_v3 = vld [vmem:[%s5613_s5 + $0x71c] sm:$0xf0]  ;;  %v4674_v56 = vld [vmem:[%s5613_s5 + $0x710] sm:$0xf]  ;;  %v4682_v59 = vld [vmem:[%s5613_s5 + $0x718] sm:$0xf] }
 0x3ac   : > { %v4671_v12 = vor.u32 %v5164_v31, %v4668_v3 }
 0x3ad   : > { %v3476_v62 = vmax.f32 %v3335_v1, 0.0 }
 0x3ae   : > { %4931 = vmatmul.msk.bf16.gmra.mxu0 %vm1989_vm0, %v4643_v23  ;;  %v2829_v27 = vpop.f32.mrf.mxu2 }
 0x3af   : > { %v5393_v51 = vpack.c.bf16 %v3476_v62, %v3475_v4  ;;  %v2830_v9 = vadd.f32 %v2829_v27, %v2576_v53  ;;  %v4675_v4 = vor.u32 %v5167_v37, %v4674_v56  ;;  %v7065_v37 = vld [vmem:[#allocation65_spill] sm:$0xff] }
 0x3b0   : > { %v2577_v5 = vpop.f32.mrf.mxu1  ;;  %3137 = vmatmul.bf16.gmra.mxu3 %v4699_v48 }
 0x3b1   : > { %5498 = vst [vmem:[%s6121_s23 + $0x110] sm:$0xff] %v5393_v51   ;;  %v3084_v28 = vadd.f32 %v6767_v29, %v2830_v9  ;;  %v2578_v19 = vadd.f32 %v2577_v5, %v2324_v0  ;;  %v7060_v29 = vld [vmem:[#allocation54_spill] sm:$0xff] }
 0x3b2   : > { %v2327_v34 = vadd.f32 %v6669_v60, %v7060_v29 }
 0x3b3   : > { %v3339_v44 = vpop.f32.mrf.mxu0  ;;  %v6827_v41 = vpop.f32.mrf.mxu3  ;;  %v3338_v8 = vadd.f32 %v3337_v17, %v3084_v28  ;;  %v5168_v17 = vld [vmem:[%s5613_s5 + $0x728] sm:$0xf0]  ;;  %v4736_v28 = vld [vmem:[%s5613_s5 + $0x79c] sm:$0xf0] }
 0x3b4   : > { %v4683_v27 = vor.u32 %v5168_v17, %v4682_v59  ;;  %v4708_v59 = vld [vmem:[%s5613_s5 + $0x76c] sm:$0xf0]  ;;  %v4714_v17 = vld [vmem:[%s5613_s5 + $0x760] sm:$0xf] }
 0x3b5   : > { %v3477_v24 = vmax.f32 %v3338_v8, 0.0 }
 0x3b6   : > { %v2831_v36 = vpop.f32.mrf.mxu2 }
 0x3b7   : > { %v2832_v20 = vadd.f32 %v2831_v36, %v2578_v19  ;;  %v7063_v19 = vld [vmem:[#allocation61_spill] sm:$0xff]  ;;  %v4739_v36 = vor.u32 %v5180_v6, %v4736_v28 }
 0x3b8   : > { %v2580_v63 = vpop.f32.mrf.mxu1  ;;  %v2334_v21 = vadd.f32 %v6669_v60, %v7063_v19 }
 0x3b9   : > { %v3086_v46 = vadd.f32 %v6773_v55, %v2832_v20  ;;  %v2581_v55 = vadd.f32 %v2580_v63, %v2327_v34  ;;  %v4688_v20 = vld [vmem:[%s5613_s5 + $0x744] sm:$0xf0] }
 0x3ba   : > { %v4691_v34 = vor.u32 %v5169_v52, %v4688_v20 }
 0x3bb   : > { %v3342_v58 = vpop.f32.mrf.mxu0  ;;  %v3340_v57 = vadd.f32 %v3339_v44, %v3086_v46  ;;  %2619 = vmatmul.bf16.gmra.mxu1 %v4651_v30  ;;  %2873 = vmatmul.bf16.gmra.mxu2 %v4655_v42  ;;  %v6833_v10 = vpop.f32.mrf.mxu3  ;;  %v7062_v44 = vld [vmem:[#allocation59_spill] sm:$0xff]  ;;  %v4694_v30 = vld [vmem:[%s5613_s5 + $0x738] sm:$0xf]  ;;  %v4702_v46 = vld [vmem:[%s5613_s5 + $0x740] sm:$0xf] }
 0x3bc   : > { %v2332_v47 = vadd.f32 %v6669_v60, %v7062_v44  ;;  %v5172_v42 = vld [vmem:[%s5613_s5 + $0x748] sm:$0xf0] }
 0x3bd   : > { %v3478_v11 = vmax.f32 %v3340_v57, 0.0 }
 0x3be   : > { %4932 = vmatmul.msk.bf16.gmra.mxu0 %vm1989_vm0, %v4663_v16  ;;  %v2834_v14 = vpop.f32.mrf.mxu2 }
 0x3bf   : > { %v5398_v49 = vpack.c.bf16 %v3478_v11, %v3477_v24  ;;  %v2835_v2 = vadd.f32 %v2834_v14, %v2581_v55  ;;  %v4695_v24 = vor.u32 %v5172_v42, %v4694_v30  ;;  %v5179_v30 = vld [vmem:[%s5613_s5 + $0x784] sm:$0xf]  ;;  %v4728_v42 = vld [vmem:[%s5613_s5 + $0x794] sm:$0xf0] }
 0x3c0   : > { %v2582_v13 = vpop.f32.mrf.mxu1  ;;  %3142 = vmatmul.bf16.gmra.mxu3 %v4719_v33 }
 0x3c1   : > { %5499 = vst [vmem:[%s6121_s23 + $0x118] sm:$0xff] %v5398_v49   ;;  %v3089_v23 = vadd.f32 %v6787_v26, %v2835_v2  ;;  %v2583_v7 = vadd.f32 %v2582_v13, %v2329_v50 }
 0x3c3   : > { %v3344_v25 = vpop.f32.mrf.mxu0  ;;  %v3343_v51 = vadd.f32 %v3342_v58, %v3089_v23  ;;  %v6848_v9 = vpop.f32.mrf.mxu3  ;;  %v5173_v58 = vld [vmem:[%s5613_s5 + $0x750] sm:$0xf0]  ;;  %v2339_v23 = vadd.f32 %v6669_v60, %v7065_v37 }
 0x3c4   : > { %v4703_v14 = vor.u32 %v5173_v58, %v4702_v46 }
 0x3c5   : > { %v3479_v45 = vmax.f32 %v3343_v51, 0.0 }
 0x3c6   : > { %v2836_v1 = vpop.f32.mrf.mxu2 }
 0x3c7   : > { %v2837_v54 = vadd.f32 %v2836_v1, %v2583_v7  ;;  %v5174_v7 = vld [vmem:[%s5613_s5 + $0x75c] sm:$0xf]  ;;  %v5177_v1 = vld [vmem:[%s5613_s5 + $0x770] sm:$0xf0] }
 0x3c8   : > { %v2585_v62 = vpop.f32.mrf.mxu1 }
 0x3c9   : > { %v3091_v53 = vadd.f32 %v6793_v15, %v2837_v54  ;;  %v2586_v39 = vadd.f32 %v2585_v62, %v2332_v47  ;;  %v5178_v62 = vld [vmem:[%s5613_s5 + $0x778] sm:$0xf0] }
 0x3cb   : > { %v3347_v5 = vpop.f32.mrf.mxu0  ;;  %v3345_v26 = vadd.f32 %v3344_v25, %v3091_v53  ;;  %2624 = vmatmul.bf16.gmra.mxu1 %v4671_v12  ;;  %2878 = vmatmul.bf16.gmra.mxu2 %v4675_v4  ;;  %v6862_v63 = vpop.f32.mrf.mxu3  ;;  %v4722_v4 = vld [vmem:[%s5613_s5 + $0x768] sm:$0xf]  ;;  %v4711_v53 = vor.u32 %v5174_v7, %v4708_v59 }
 0x3cc   : > { %v4723_v44 = vor.u32 %v5178_v62, %v4722_v4 }
 0x3cd   : > { %v3480_v32 = vmax.f32 %v3345_v26, 0.0 }
 0x3ce   : > { %4933 = vmatmul.msk.bf16.gmra.mxu0 %vm1989_vm0, %v4683_v27  ;;  %v2839_v15 = vpop.f32.mrf.mxu2 }
 0x3cf   : > { %v5403_v0 = vpack.c.bf16 %v3480_v32, %v3479_v45  ;;  %v2840_v18 = vadd.f32 %v2839_v15, %v2586_v39 }
 0x3d0   : > { %v2587_v48 = vpop.f32.mrf.mxu1  ;;  %3147 = vmatmul.bf16.gmra.mxu3 %v4739_v36  ;;  %v7067_v36 = vld [vmem:[#allocation6_spill] sm:$0xff] }
 0x3d1   : > { %5500 = vst [vmem:[%s6121_s23 + $0x120] sm:$0xff] %v5403_v0   ;;  %v3094_v16 = vadd.f32 %v6807_v38, %v2840_v18  ;;  %v2588_v8 = vadd.f32 %v2587_v48, %v2334_v21  ;;  %v7064_v38 = vld [vmem:[#allocation63_spill] sm:$0xff]  ;;  %v2344_v20 = vadd.f32 %v6669_v60, %v7067_v36 }
 0x3d2   : > { %v2337_v25 = vadd.f32 %v6669_v60, %v7064_v38 }
 0x3d3   : > { %v3349_v61 = vpop.f32.mrf.mxu0  ;;  %v3348_v49 = vadd.f32 %v3347_v5, %v3094_v16  ;;  %v6871_v50 = vpop.f32.mrf.mxu3  ;;  %v4715_v5 = vor.u32 %v5177_v1, %v4714_v17  ;;  %v4734_v16 = vld [vmem:[%s5613_s5 + $0x788] sm:$0xf] }
 0x3d5   : > { %v3481_v40 = vmax.f32 %v3348_v49, 0.0 }
 0x3d6   : > { %v2841_v57 = vpop.f32.mrf.mxu2 }
 0x3d7   : > { %v2842_v29 = vadd.f32 %v2841_v57, %v2588_v8  ;;  %v5182_v8 = vld [vmem:[%s5613_s5 + $0x798] sm:$0xf0]  ;;  %v4742_v57 = vld [vmem:[%s5613_s5 + $0x790] sm:$0xf] }
 0x3d8   : > { %v2590_v11 = vpop.f32.mrf.mxu1 }
 0x3d9   : > { %v3096_v55 = vadd.f32 %v6813_v22, %v2842_v29  ;;  %v2591_v31 = vadd.f32 %v2590_v11, %v2337_v25  ;;  %v5183_v29 = vld [vmem:[%s5613_s5 + $0x7a0] sm:$0xf0]  ;;  %v4731_v11 = vor.u32 %v5179_v30, %v4728_v42 }
 0x3db   : > { %v3352_v13 = vpop.f32.mrf.mxu0  ;;  %v3350_v2 = vadd.f32 %v3349_v61, %v3096_v55  ;;  %2629 = vmatmul.bf16.gmra.mxu1 %v4691_v34  ;;  %2883 = vmatmul.bf16.gmra.mxu2 %v4695_v24  ;;  %v3110_v47 = vpop.f32.mrf.mxu3  ;;  %v4743_v55 = vor.u32 %v5183_v29, %v4742_v57 }
 0x3dd   : > { %v3482_v35 = vmax.f32 %v3350_v2, 0.0 }
 0x3de   : > { %4934 = vmatmul.msk.bf16.gmra.mxu0 %vm1989_vm0, %v4703_v14  ;;  %v2844_v43 = vpop.f32.mrf.mxu2  ;;  %v4735_v14 = vor.u32 %v5182_v8, %v4734_v16  ;;  %v7072_v16 = vld [vmem:[#allocation17_spill] sm:$0xff] }
 0x3df   : > { %v5408_v22 = vpack.c.bf16 %v3482_v35, %v3481_v40  ;;  %v2845_v3 = vadd.f32 %v2844_v43, %v2591_v31  ;;  %v7068_v40 = vld [vmem:[#allocation8_spill] sm:$0xff]  ;;  %v2357_v8 = vadd.f32 %v6669_v60, %v7072_v16 }
 0x3e0   : > { %v2592_v33 = vpop.f32.mrf.mxu1  ;;  %v2347_v35 = vadd.f32 %v6669_v60, %v7068_v40 }
 0x3e1   : > { %5501 = vst [vmem:[%s6121_s23 + $0x128] sm:$0xff] %v5408_v22   ;;  %v3099_v54 = vadd.f32 %v6827_v41, %v2845_v3  ;;  %v2593_v12 = vadd.f32 %v2592_v33, %v2339_v23  ;;  %v7066_v41 = vld [vmem:[#allocation4_spill] sm:$0xff] }
 0x3e2   : > { %v2342_v39 = vadd.f32 %v6669_v60, %v7066_v41 }
 0x3e3   : > { %v3354_v56 = vpop.f32.mrf.mxu0  ;;  %v3353_v45 = vadd.f32 %v3352_v13, %v3099_v54  ;;  %v3113_v52 = vpop.f32.mrf.mxu3 }
 0x3e5   : > { %v3483_v48 = vmax.f32 %v3353_v45, 0.0 }
 0x3e6   : > { %v2846_v27 = vpop.f32.mrf.mxu2 }
 0x3e7   : > { %v2847_v51 = vadd.f32 %v2846_v27, %v2593_v12 }
 0x3e8   : > { %v2595_v26 = vpop.f32.mrf.mxu1 }
 0x3e9   : > { %v3101_v32 = vadd.f32 %v6833_v10, %v2847_v51  ;;  %v2596_v10 = vadd.f32 %v2595_v26, %v2342_v39 }
 0x3eb   : > { %v3357_v15 = vpop.f32.mrf.mxu0  ;;  %v3355_v0 = vadd.f32 %v3354_v56, %v3101_v32  ;;  %2634 = vmatmul.bf16.gmra.mxu1 %v4711_v53  ;;  %2888 = vmatmul.bf16.gmra.mxu2 %v4715_v5  ;;  %v7070_v5 = vld [vmem:[#allocation12_spill] sm:$0xff] }
 0x3ec   : > { %v2352_v26 = vadd.f32 %v6669_v60, %v7070_v5 }
 0x3ed   : > { %v3484_v18 = vmax.f32 %v3355_v0, 0.0 }
 0x3ee   : > { %4935 = vmatmul.msk.bf16.gmra.mxu0 %vm1989_vm0, %v4723_v44  ;;  %v2849_v61 = vpop.f32.mrf.mxu2 }
 0x3ef   : > { %v5413_v6 = vpack.c.bf16 %v3484_v18, %v3483_v48  ;;  %v2850_v19 = vadd.f32 %v2849_v61, %v2596_v10  ;;  %v7071_v18 = vld [vmem:[#allocation14_spill] sm:$0xff] }
 0x3f0   : > { %v2597_v28 = vpop.f32.mrf.mxu1  ;;  %v2354_v61 = vadd.f32 %v6669_v60, %v7071_v18 }
 0x3f1   : > { %5502 = vst [vmem:[%s6121_s23 + $0x130] sm:$0xff] %v5413_v6   ;;  %v3104_v46 = vadd.f32 %v6848_v9, %v2850_v19  ;;  %v2598_v58 = vadd.f32 %v2597_v28, %v2344_v20  ;;  %v3115_v9 = vpop.f32.mrf.mxu3 }
 0x3f3   : > { %v3359_v21 = vpop.f32.mrf.mxu0  ;;  %v3358_v13 = vadd.f32 %v3357_v15, %v3104_v46 }
 0x3f5   : > { %v3485_v43 = vmax.f32 %v3358_v13, 0.0 }
 0x3f6   : > { %v2851_v34 = vpop.f32.mrf.mxu2 }
 0x3f7   : > { %v2852_v24 = vadd.f32 %v2851_v34, %v2598_v58 }
 0x3f8   : > { %v2600_v49 = vpop.f32.mrf.mxu1 }
 0x3f9   : > { %v3106_v2 = vadd.f32 %v6862_v63, %v2852_v24  ;;  %v2601_v3 = vadd.f32 %v2600_v49, %v2347_v35  ;;  %v7069_v63 = vld [vmem:[#allocation10_spill] sm:$0xff]  ;;  %v3118_v54 = vpop.f32.mrf.mxu3 }
 0x3fa   : > { %v2349_v7 = vadd.f32 %v6669_v60, %v7069_v63 }
 0x3fb   : > { %v3362_v38 = vpop.f32.mrf.mxu0  ;;  %v3360_v25 = vadd.f32 %v3359_v21, %v3106_v2  ;;  %2639 = vmatmul.bf16.gmra.mxu1 %v4731_v11  ;;  %2893 = vmatmul.bf16.gmra.mxu2 %v4735_v14  ;;  %v7073_v14 = vld [vmem:[#allocation20_spill] sm:$0xff] }
 0x3fc   : > { %v2359_v49 = vadd.f32 %v6669_v60, %v7073_v14 }
 0x3fd   : > { %v3486_v22 = vmax.f32 %v3360_v25, 0.0 }
 0x3fe   : > { %4936 = vmatmul.msk.bf16.gmra.mxu0 %vm1989_vm0, %v4743_v55  ;;  %v2854_v31 = vpop.f32.mrf.mxu2 }
 0x3ff   : > { %v5418_v33 = vpack.c.bf16 %v3486_v22, %v3485_v43  ;;  %v2855_v37 = vadd.f32 %v2854_v31, %v2601_v3  ;;  %v7074_v31 = vld [vmem:[#allocation23_spill] sm:$0xff] }
 0x400   : > { %v2602_v56 = vpop.f32.mrf.mxu1 }
 0x401   : > { %5503 = vst [vmem:[%s6121_s23 + $0x138] sm:$0xff] %v5418_v33   ;;  %v3109_v59 = vadd.f32 %v6871_v50, %v2855_v37  ;;  %v2603_v17 = vadd.f32 %v2602_v56, %v2349_v7  ;;  %v3120_v50 = vpop.f32.mrf.mxu3  ;;  %v2362_v33 = vadd.f32 %v6669_v60, %v7074_v31 }
 0x403   : > { %v3364_v23 = vpop.f32.mrf.mxu0  ;;  %v3363_v62 = vadd.f32 %v3362_v38, %v3109_v59 }
 0x405   : > { %v3487_v44 = vmax.f32 %v3363_v62, 0.0 }
 0x406   : > { %v2856_v1 = vpop.f32.mrf.mxu2 }
 0x407   : > { %v2857_v12 = vadd.f32 %v2856_v1, %v2603_v17 }
 0x408   : > { %v2605_v4 = vpop.f32.mrf.mxu1 }
 0x409   : > { %v3111_v27 = vadd.f32 %v3110_v47, %v2857_v12  ;;  %v2606_v0 = vadd.f32 %v2605_v4, %v2352_v26  ;;  %v3123_v30 = vpop.f32.mrf.mxu3  ;;  %v7075_v12 = vld [vmem:[#allocation26_spill] sm:$0xff] }
 0x40b   : > { %v3367_v51 = vpop.f32.mrf.mxu0  ;;  %v3365_v53 = vadd.f32 %v3364_v23, %v3111_v27 }
 0x40d   : > { %v3488_v45 = vmax.f32 %v3365_v53, 0.0 }
 0x40e   : > { %v2859_v32 = vpop.f32.mrf.mxu2 }
 0x40f   : > { %v5423_v15 = vpack.c.bf16 %v3488_v45, %v3487_v44  ;;  %v2860_v39 = vadd.f32 %v2859_v32, %v2606_v0 }
 0x410   : > { %v2607_v41 = vpop.f32.mrf.mxu1 }
 0x411   : > { %5504 = vst [vmem:[%s6121_s23 + $0x140] sm:$0xff] %v5423_v15   ;;  %v3114_v6 = vadd.f32 %v3113_v52, %v2860_v39  ;;  %v2608_v47 = vadd.f32 %v2607_v41, %v2354_v61  ;;  %v3125_v55 = vpop.f32.mrf.mxu3  ;;  %v7076_v15 = vld [vmem:[#allocation29_spill] sm:$0xff] }
 0x413   : > { %v3369_v48 = vpop.f32.mrf.mxu0  ;;  %v3368_v21 = vadd.f32 %v3367_v51, %v3114_v6 }
 0x415   : > { %v3489_v46 = vmax.f32 %v3368_v21, 0.0 }
 0x416   : > { %v2861_v10 = vpop.f32.mrf.mxu2 }
 0x417   : > { %v2862_v28 = vadd.f32 %v2861_v10, %v2608_v47 }
 0x418   : > { %v2610_v19 = vpop.f32.mrf.mxu1 }
 0x419   : > { %v3116_v36 = vadd.f32 %v3115_v9, %v2862_v28  ;;  %v2611_v34 = vadd.f32 %v2610_v19, %v2357_v8  ;;  %v3128_v23 = vpop.f32.mrf.mxu3  ;;  %v7077_v28 = vld [vmem:[#allocation32_spill] sm:$0xff] }
 0x41b   : > { %v3372_v20 = vpop.f32.mrf.mxu0  ;;  %v3370_v42 = vadd.f32 %v3369_v48, %v3116_v36 }
 0x41d   : > { %v3490_v58 = vmax.f32 %v3370_v42, 0.0 }
 0x41e   : > { %v2864_v57 = vpop.f32.mrf.mxu2 }
 0x41f   : > { %v5428_v29 = vpack.c.bf16 %v3490_v58, %v3489_v46  ;;  %v2865_v52 = vadd.f32 %v2864_v57, %v2611_v34 }
 0x420   : > { %v2612_v24 = vpop.f32.mrf.mxu1 }
 0x421   : > { %5505 = vst [vmem:[%s6121_s23 + $0x148] sm:$0xff] %v5428_v29   ;;  %v3119_v13 = vadd.f32 %v3118_v54, %v2865_v52  ;;  %v2613_v2 = vadd.f32 %v2612_v24, %v2359_v49  ;;  %v6921_v54 = vld [vmem:[%s6956_s2] ss:$0 sm:$0xff]  ;;  %v3130_v5 = vpop.f32.mrf.mxu3  ;;  %v7078_v29 = vld [vmem:[#allocation35_spill] sm:$0xff] }
 0x422   : > { %v2364_v4 = vadd.f32 %v6921_v54, %v7075_v12  ;;  %v2367_v0 = vadd.f32 %v6921_v54, %v7076_v15  ;;  %v2369_v19 = vadd.f32 %v6921_v54, %v7077_v28  ;;  %v2372_v34 = vadd.f32 %v6921_v54, %v7078_v29 }
 0x423   : > { %v3374_v11 = vpop.f32.mrf.mxu0  ;;  %v3373_v40 = vadd.f32 %v3372_v20, %v3119_v13 }
 0x425   : > { %v3491_v3 = vmax.f32 %v3373_v40, 0.0 }
 0x426   : > { %v2866_v38 = vpop.f32.mrf.mxu2 }
 0x427   : > { %v2867_v25 = vadd.f32 %v2866_v38, %v2613_v2  ;;  %v7079_v38 = vld [vmem:[#allocation38_spill] sm:$0xff] }
 0x428   : > { %v2615_v9 = vpop.f32.mrf.mxu1 }
 0x429   : > { %v3121_v35 = vadd.f32 %v3120_v50, %v2867_v25  ;;  %v2616_v7 = vadd.f32 %v2615_v9, %v2362_v33  ;;  %v3133_v10 = vpop.f32.mrf.mxu3  ;;  %v2374_v25 = vadd.f32 %v6921_v54, %v7079_v38 }
 0x42b   : > { %v3377_v43 = vpop.f32.mrf.mxu0  ;;  %v3375_v22 = vadd.f32 %v3374_v11, %v3121_v35 }
 0x42d   : > { %v3492_v56 = vmax.f32 %v3375_v22, 0.0 }
 0x42e   : > { %v2869_v37 = vpop.f32.mrf.mxu2 }
 0x42f   : > { %v5433_v63 = vpack.c.bf16 %v3492_v56, %v3491_v3  ;;  %v2870_v17 = vadd.f32 %v2869_v37, %v2616_v7 }
 0x430   : > { %v2617_v59 = vpop.f32.mrf.mxu1 }
 0x431   : > { %5506 = vst [vmem:[%s6121_s23 + $0x150] sm:$0xff] %v5433_v63   ;;  %v3124_v62 = vadd.f32 %v3123_v30, %v2870_v17  ;;  %v2618_v60 = vadd.f32 %v2617_v59, %v2364_v4  ;;  %v3135_v57 = vpop.f32.mrf.mxu3 }
 0x433   : > { %v3379_v1 = vpop.f32.mrf.mxu0  ;;  %v3378_v26 = vadd.f32 %v3377_v43, %v3124_v62 }
 0x435   : > { %v3493_v41 = vmax.f32 %v3378_v26, 0.0 }
 0x436   : > { %v2871_v27 = vpop.f32.mrf.mxu2 }
 0x437   : > { %v2872_v51 = vadd.f32 %v2871_v27, %v2618_v60 }
 0x438   : > { %v2620_v53 = vpop.f32.mrf.mxu1 }
 0x439   : > { %v3126_v44 = vadd.f32 %v3125_v55, %v2872_v51  ;;  %v2621_v18 = vadd.f32 %v2620_v53, %v2367_v0  ;;  %v3138_v43 = vpop.f32.mrf.mxu3  ;;  %v7081_v51 = vld [vmem:[#allocation44_spill] sm:$0xff] }
 0x43a   : > { %v2379_v53 = vadd.f32 %v6921_v54, %v7081_v51 }
 0x43b   : > { %v3382_v45 = vpop.f32.mrf.mxu0  ;;  %v3380_v32 = vadd.f32 %v3379_v1, %v3126_v44 }
 0x43d   : > { %v3494_v50 = vmax.f32 %v3380_v32, 0.0 }
 0x43e   : > { %v2874_v39 = vpop.f32.mrf.mxu2 }
 0x43f   : > { %v5438_v48 = vpack.c.bf16 %v3494_v50, %v3493_v41  ;;  %v2875_v6 = vadd.f32 %v2874_v39, %v2621_v18 }
 0x440   : > { %v2622_v61 = vpop.f32.mrf.mxu1 }
 0x441   : > { %5507 = vst [vmem:[%s6121_s23 + $0x158] sm:$0xff] %v5438_v48   ;;  %v3129_v21 = vadd.f32 %v3128_v23, %v2875_v6  ;;  %v2623_v36 = vadd.f32 %v2622_v61, %v2369_v19  ;;  %v7080_v23 = vld [vmem:[#allocation41_spill] sm:$0xff]  ;;  %v3140_v62 = vpop.f32.mrf.mxu3  ;;  %v7082_v48 = vld [vmem:[#allocation47_spill] sm:$0xff] }
 0x442   : > { %v2377_v63 = vadd.f32 %v6921_v54, %v7080_v23  ;;  %v2382_v18 = vadd.f32 %v6921_v54, %v7082_v48 }
 0x443   : > { %v3384_v47 = vpop.f32.mrf.mxu0  ;;  %v3383_v16 = vadd.f32 %v3382_v45, %v3129_v21 }
 0x445   : > { %v3495_v24 = vmax.f32 %v3383_v16, 0.0 }
 0x446   : > { %v2876_v20 = vpop.f32.mrf.mxu2 }
 0x447   : > { %v2877_v30 = vadd.f32 %v2876_v20, %v2623_v36  ;;  %v7083_v36 = vld [vmem:[#allocation50_spill] sm:$0xff] }
 0x448   : > { %v2625_v42 = vpop.f32.mrf.mxu1  ;;  %v2384_v20 = vadd.f32 %v6921_v54, %v7083_v36 }
 0x449   : > { %v3131_v8 = vadd.f32 %v3130_v5, %v2877_v30  ;;  %v2626_v49 = vadd.f32 %v2625_v42, %v2372_v34  ;;  %v3143_v41 = vpop.f32.mrf.mxu3 }
 0x44b   : > { %v3387_v46 = vpop.f32.mrf.mxu0  ;;  %v3385_v58 = vadd.f32 %v3384_v47, %v3131_v8 }
 0x44d   : > { %v3496_v52 = vmax.f32 %v3385_v58, 0.0 }
 0x44e   : > { %v2879_v11 = vpop.f32.mrf.mxu2 }
 0x44f   : > { %v5443_v14 = vpack.c.bf16 %v3496_v52, %v3495_v24  ;;  %v2880_v13 = vadd.f32 %v2879_v11, %v2626_v49  ;;  %v7084_v52 = vld [vmem:[#allocation53_spill] sm:$0xff] }
 0x450   : > { %v2627_v55 = vpop.f32.mrf.mxu1  ;;  %v2387_v11 = vadd.f32 %v6921_v54, %v7084_v52 }
 0x451   : > { %5508 = vst [vmem:[%s6121_s23 + $0x160] sm:$0xff] %v5443_v14   ;;  %v3134_v9 = vadd.f32 %v3133_v10, %v2880_v13  ;;  %v2628_v40 = vadd.f32 %v2627_v55, %v2374_v25  ;;  %v3145_v30 = vpop.f32.mrf.mxu3 }
 0x453   : > { %v3389_v2 = vpop.f32.mrf.mxu0  ;;  %v3388_v33 = vadd.f32 %v3387_v46, %v3134_v9 }
 0x455   : > { %v3497_v7 = vmax.f32 %v3388_v33, 0.0 }
 0x456   : > { %v2881_v35 = vpop.f32.mrf.mxu2 }
 0x457   : > { %v2882_v22 = vadd.f32 %v2881_v35, %v2628_v40  ;;  %v7085_v35 = vld [vmem:[#allocation56_spill] sm:$0xff] }
 0x458   : > { %v2630_v31 = vpop.f32.mrf.mxu1 }
 0x459   : > { %v3136_v3 = vadd.f32 %v3135_v57, %v2882_v22  ;;  %v2631_v12 = vadd.f32 %v2630_v31, %v2377_v63  ;;  %v3148_v55 = vpop.f32.mrf.mxu3 }
 0x45b   : > { %v3392_v56 = vpop.f32.mrf.mxu0  ;;  %v3390_v37 = vadd.f32 %v3389_v2, %v3136_v3 }
 0x45d   : > { %v3498_v59 = vmax.f32 %v3390_v37, 0.0 }
 0x45e   : > { %v2884_v17 = vpop.f32.mrf.mxu2 }
 0x45f   : > { %v5448_v1 = vpack.c.bf16 %v3498_v59, %v3497_v7  ;;  %v2885_v60 = vadd.f32 %v2884_v17, %v2631_v12 }
 0x460   : > { %v2632_v4 = vpop.f32.mrf.mxu1 }
 0x461   : > { %5509 = vst [vmem:[%s6121_s23 + $0x168] sm:$0xff] %v5448_v1   ;;  %v3139_v5 = vadd.f32 %v3138_v43, %v2885_v60  ;;  %v2633_v26 = vadd.f32 %v2632_v4, %v2379_v53  ;;  %v2389_v43 = vadd.f32 %v6921_v54, %v7085_v35 }
 0x463   : > { %v3394_v27 = vpop.f32.mrf.mxu0  ;;  %v3393_v15 = vadd.f32 %v3392_v56, %v3139_v5  ;;  %v3150_v56 = vpop.f32.mrf.mxu3 }
 0x465   : > { %v3499_v61 = vmax.f32 %v3393_v15, 0.0 }
 0x466   : > { %v2886_v44 = vpop.f32.mrf.mxu2 }
 0x467   : > { %v2887_v45 = vadd.f32 %v2886_v44, %v2633_v26 }
 0x468   : > { %v2635_v32 = vpop.f32.mrf.mxu1 }
 0x469   : > { %v3141_v0 = vadd.f32 %v3140_v62, %v2887_v45  ;;  %v2636_v28 = vadd.f32 %v2635_v32, %v2382_v18 }
 0x46b   : > { %v3395_v50 = vadd.f32 %v3394_v27, %v3141_v0  ;;  %v3397_v39 = vpop.f32.mrf.mxu0 }
 0x46d   : > { %v3500_v6 = vmax.f32 %v3395_v50, 0.0 }
 0x46e   : > { %v2889_v47 = vpop.f32.mrf.mxu2 }
 0x46f   : > { %v5453_v10 = vpack.c.bf16 %v3500_v6, %v3499_v61  ;;  %v2890_v21 = vadd.f32 %v2889_v47, %v2636_v28 }
 0x470   : > { %v2637_v19 = vpop.f32.mrf.mxu1 }
 0x471   : > { %5510 = vst [vmem:[%s6121_s23 + $0x170] sm:$0xff] %v5453_v10   ;;  %v3144_v42 = vadd.f32 %v3143_v41, %v2890_v21  ;;  %v2638_v16 = vadd.f32 %v2637_v19, %v2384_v20 }
 0x473   : > { %v3399_v8 = vpop.f32.mrf.mxu0  ;;  %v3398_v29 = vadd.f32 %v3397_v39, %v3144_v42 }
 0x475   : > { %v3501_v14 = vmax.f32 %v3398_v29, 0.0 }
 0x476   : > { %v2891_v46 = vpop.f32.mrf.mxu2 }
 0x477   : > { %v2892_v58 = vadd.f32 %v2891_v46, %v2638_v16 }
 0x478   : > { %v2640_v57 = vpop.f32.mrf.mxu1 }
 0x479   : > { %v3146_v34 = vadd.f32 %v3145_v30, %v2892_v58  ;;  %v2641_v38 = vadd.f32 %v2640_v57, %v2387_v11 }
 0x47b   : > { %v3400_v24 = vadd.f32 %v3399_v8, %v3146_v34  ;;  %v3402_v25 = vpop.f32.mrf.mxu0 }
 0x47d   : > { %v3502_v49 = vmax.f32 %v3400_v24, 0.0 }
 0x47e   : > { %v2894_v13 = vpop.f32.mrf.mxu2 }
 0x47f   : > { %v5458_v2 = vpack.c.bf16 %v3502_v49, %v3501_v14  ;;  %v2895_v9 = vadd.f32 %v2894_v13, %v2641_v38 }
 0x480   : > { %v2642_v40 = vpop.f32.mrf.mxu1 }
 0x481   : > { %5511 = vst [vmem:[%s6121_s23 + $0x178] sm:$0xff] %v5458_v2   ;;  %v3149_v22 = vadd.f32 %v3148_v55, %v2895_v9  ;;  %v2643_v31 = vadd.f32 %v2642_v40, %v2389_v43 }
 0x483   : > { %v3403_v37 = vadd.f32 %v3402_v25, %v3149_v22  ;;  %v3404_v63 = vpop.f32.mrf.mxu0 }
 0x485   : > { %v3503_v59 = vmax.f32 %v3403_v37, 0.0 }
 0x486   : > { %v2896_v33 = vpop.f32.mrf.mxu2 }
 0x487   : > { %v2897_v3 = vadd.f32 %v2896_v33, %v2643_v31 }
 0x489   : > { %v3151_v23 = vadd.f32 %v3150_v56, %v2897_v3 }
 0x48b   : > { %v3405_v7 = vadd.f32 %v3404_v63, %v3151_v23 }
 0x48d   : > { %v3504_v17 = vmax.f32 %v3405_v7, 0.0 }
 0x48f   : > { %v5463_v1 = vpack.c.bf16 %v3504_v17, %v3503_v59 }
 0x491   : > { %5512 = vst [vmem:[%s6121_s23 + $0x180] sm:$0xff] %v5463_v1  }
 0x492 PF: > { %s13_s12 = sadd.s32 1, %s5556_s12  }
 0x493   : > { %p10_p4 = scmp.ge.s32.totalorder %s13_s12, 4  }
 0x495   :  { %12 = sbr.rel (!%p10_p4) target bundleno = 1 (0x1), region = 62 }

// kernel: forward.5
= control target key start
LH: loop header
LB: loop body
LE: loop exit
PB: predicated region body
PF: predicated region fallthrough
CT: control target
= control target key end

     0   :  { %vm1826_vm0 = vcmask 523264   ;;  %s7766_s1 = inlined_call_operand.vmem [shape: bf16[576,128], index: 1, kind: input, shape index: {}]   ;;  %s7767_s2 = inlined_call_operand.vmem [shape: f32[1,128], index: 2, kind: input, shape index: {}]   ;;  %s7768_s0 = inlined_call_operand.vmem [shape: bf16[784,576], index: 0, kind: input, shape index: {}]   ;;  %s7769_s3 = inlined_call_operand.vmem [shape: bf16[784,128], index: 3, kind: output, shape index: {}]  }
   0x1   :  { %v4967_v0 = vld [vmem:[%s7766_s1 + $0x38] sm:$0xff]  ;;  %v4966_v1 = vld [vmem:[%s7766_s1 + $0x30] sm:$0xff]  ;;  %v4965_v2 = vld [vmem:[%s7766_s1 + $0x28] sm:$0xff] }
   0x2   :  { %5289 = vmatpush.bf16.msra.mxu1 %v4967_v0  ;;  %5290 = vmatpush.bf16.msra.mxu2 %v4967_v0  ;;  %v4964_v3 = vld [vmem:[%s7766_s1 + $0x20] sm:$0xff]  ;;  %v4963_v4 = vld [vmem:[%s7766_s1 + $0x18] sm:$0xff]  ;;  %v4962_v5 = vld [vmem:[%s7766_s1 + $0x10] sm:$0xff] }
   0x3   :  { %1974 = vmatpush.bf16.msra.mxu0 %v4967_v0  ;;  %5291 = vmatpush.bf16.msra.mxu3 %v4967_v0  ;;  %v4961_v6 = vld [vmem:[%s7766_s1 + $0x8] sm:$0xff]  ;;  %v4960_v7 = vld [vmem:[%s7766_s1] sm:$0xff]  ;;  %v4782_v9 = vld [vmem:[%s7768_s0 + $0x218] sm:$0xf0] }
   0x4   :  { %v3804_v8 = vld [vmem:[%s7768_s0 + $0x208] sm:$0xf]  ;;  %v4064_v10 = vld [vmem:[%s7768_s0 + $0x410] sm:$0xf]  ;;  %v4847_v11 = vld [vmem:[%s7768_s0 + $0x420] sm:$0xf0] }
   0x5   :  { %v4983_v12 = vld [vmem:[%s7766_s1 + $0xb8] sm:$0xff]  ;;  %v3544_v13 = vld [vmem:[%s7768_s0] sm:$0xf]  ;;  %v4717_v14 = vld [vmem:[%s7768_s0 + $0x10] sm:$0xf0]  ;;  %v3805_v17 = vor.u32 %v4782_v9, %v3804_v8  ;;  %v4065_v18 = vor.u32 %v4847_v11, %v4064_v10 }
   0x6   :  { %5292 = vmatpush.bf16.msra.mxu1 %v4966_v1  ;;  %5293 = vmatpush.bf16.msra.mxu2 %v4966_v1  ;;  %v4975_v15 = vld [vmem:[%s7766_s1 + $0x78] sm:$0xff]  ;;  %v3545_v19 = vor.u32 %v4717_v14, %v3544_v13  ;;  %v4982_v20 = vld [vmem:[%s7766_s1 + $0xb0] sm:$0xff]  ;;  %v4912_v23 = vld [vmem:[%s7768_s0 + $0x628] sm:$0xf0] }
   0x7   :  { %1975 = vmatpush.bf16.msra.mxu0 %v4966_v1  ;;  %5294 = vmatpush.bf16.msra.mxu3 %v4966_v1  ;;  %v4995_v16 = vld [vmem:[%s7766_s1 + $0x118] sm:$0xff]  ;;  %v4974_v21 = vld [vmem:[%s7766_s1 + $0x70] sm:$0xff]  ;;  %v4787_v26 = vld [vmem:[%s7768_s0 + $0x240] sm:$0xf0] }
   0x8   :  { %v4324_v22 = vld [vmem:[%s7768_s0 + $0x618] sm:$0xf]  ;;  %v3824_v25 = vld [vmem:[%s7768_s0 + $0x230] sm:$0xf]  ;;  %v4852_v28 = vld [vmem:[%s7768_s0 + $0x448] sm:$0xf0] }
   0x9   :  { %v4325_v24 = vor.u32 %v4912_v23, %v4324_v22  ;;  %v4084_v27 = vld [vmem:[%s7768_s0 + $0x438] sm:$0xf]  ;;  %v3564_v29 = vld [vmem:[%s7768_s0 + $0x28] sm:$0xf]  ;;  %v4722_v30 = vld [vmem:[%s7768_s0 + $0x38] sm:$0xf0]  ;;  %v3825_v31 = vor.u32 %v4787_v26, %v3824_v25 }
   0xa   :  { %5295 = vmatpush.bf16.msra.mxu1 %v4965_v2  ;;  %5296 = vmatpush.bf16.msra.mxu2 %v4965_v2  ;;  %v4085_v32 = vor.u32 %v4852_v28, %v4084_v27  ;;  %v3565_v33 = vor.u32 %v4722_v30, %v3564_v29  ;;  %v4991_v34 = vld [vmem:[%s7766_s1 + $0xf8] sm:$0xff]  ;;  %v4981_v35 = vld [vmem:[%s7766_s1 + $0xa8] sm:$0xff]  ;;  %v4344_v37 = vld [vmem:[%s7768_s0 + $0x640] sm:$0xf] }
   0xb   :  { %1976 = vmatpush.bf16.msra.mxu0 %v4965_v2  ;;  %5297 = vmatpush.bf16.msra.mxu3 %v4965_v2  ;;  %v4973_v36 = vld [vmem:[%s7766_s1 + $0x68] sm:$0xff]  ;;  %v4917_v38 = vld [vmem:[%s7768_s0 + $0x650] sm:$0xf0]  ;;  %v3844_v41 = vld [vmem:[%s7768_s0 + $0x258] sm:$0xf] }
   0xc   :  { %v4994_v39 = vld [vmem:[%s7766_s1 + $0x110] sm:$0xff]  ;;  %v4345_v40 = vor.u32 %v4917_v38, %v4344_v37  ;;  %v4792_v42 = vld [vmem:[%s7768_s0 + $0x268] sm:$0xf0]  ;;  %v4104_v43 = vld [vmem:[%s7768_s0 + $0x460] sm:$0xf] }
   0xd   :  { %v4857_v44 = vld [vmem:[%s7768_s0 + $0x470] sm:$0xf0]  ;;  %v3584_v45 = vld [vmem:[%s7768_s0 + $0x50] sm:$0xf]  ;;  %v4727_v46 = vld [vmem:[%s7768_s0 + $0x60] sm:$0xf0]  ;;  %v3845_v47 = vor.u32 %v4792_v42, %v3844_v41 }
   0xe   :  { %5298 = vmatpush.bf16.msra.mxu1 %v4964_v3  ;;  %5299 = vmatpush.bf16.msra.mxu2 %v4964_v3  ;;  %v4105_v48 = vor.u32 %v4857_v44, %v4104_v43  ;;  %v3585_v49 = vor.u32 %v4727_v46, %v3584_v45  ;;  %v4990_v50 = vld [vmem:[%s7766_s1 + $0xf0] sm:$0xff]  ;;  %v4364_v51 = vld [vmem:[%s7768_s0 + $0x668] sm:$0xf]  ;;  %v4922_v52 = vld [vmem:[%s7768_s0 + $0x678] sm:$0xf0] }
   0xf   :  { %1977 = vmatpush.bf16.msra.mxu0 %v4964_v3  ;;  %5300 = vmatpush.bf16.msra.mxu3 %v4964_v3  ;;  %v4365_v53 = vor.u32 %v4922_v52, %v4364_v51  ;;  %v4980_v54 = vld [vmem:[%s7766_s1 + $0xa0] sm:$0xff]  ;;  %v4797_v56 = vld [vmem:[%s7768_s0 + $0x290] sm:$0xf0]  ;;  %v4124_v57 = vld [vmem:[%s7768_s0 + $0x488] sm:$0xf] }
  0x10   :  { %v3864_v55 = vld [vmem:[%s7768_s0 + $0x280] sm:$0xf]  ;;  %v4862_v58 = vld [vmem:[%s7768_s0 + $0x498] sm:$0xf0]  ;;  %v3604_v59 = vld [vmem:[%s7768_s0 + $0x78] sm:$0xf] }
  0x11   :  { %v4732_v60 = vld [vmem:[%s7768_s0 + $0x88] sm:$0xf0]  ;;  %v3865_v61 = vor.u32 %v4797_v56, %v3864_v55  ;;  %v4125_v62 = vor.u32 %v4862_v58, %v4124_v57  ;;  %v4972_v0 = vld [vmem:[%s7766_s1 + $0x60] sm:$0xff]  ;;  %v4384_v1 = vld [vmem:[%s7768_s0 + $0x690] sm:$0xf] }
  0x12   :  { %5301 = vmatpush.bf16.msra.mxu1 %v4963_v4  ;;  %5302 = vmatpush.bf16.msra.mxu2 %v4963_v4  ;;  %v3605_v63 = vor.u32 %v4732_v60, %v3604_v59  ;;  %v4927_v2 = vld [vmem:[%s7768_s0 + $0x6a0] sm:$0xf0]  ;;  %v3624_v9 = vld [vmem:[%s7768_s0 + $0xa0] sm:$0xf]  ;;  %v4737_v10 = vld [vmem:[%s7768_s0 + $0xb0] sm:$0xf0] }
  0x13   :  { %1978 = vmatpush.bf16.msra.mxu0 %v4963_v4  ;;  %5303 = vmatpush.bf16.msra.mxu3 %v4963_v4  ;;  %v4385_v3 = vor.u32 %v4927_v2, %v4384_v1  ;;  %v4989_v4 = vld [vmem:[%s7766_s1 + $0xe8] sm:$0xff]  ;;  %v4867_v8 = vld [vmem:[%s7768_s0 + $0x4c0] sm:$0xf0]  ;;  %v3625_v13 = vor.u32 %v4737_v10, %v3624_v9  ;;  %v4979_v14 = vld [vmem:[%s7766_s1 + $0x98] sm:$0xff] }
  0x14   :  { %v4164_v22 = vld [vmem:[%s7768_s0 + $0x4d8] sm:$0xf]  ;;  %v4872_v23 = vld [vmem:[%s7768_s0 + $0x4e8] sm:$0xf0]  ;;  %v4742_v25 = vld [vmem:[%s7768_s0 + $0xd8] sm:$0xf0] }
  0x15   :  { %v4165_v27 = vor.u32 %v4872_v23, %v4164_v22  ;;  %v4993_v29 = vld [vmem:[%s7766_s1 + $0x108] sm:$0xff]  ;;  %v4424_v30 = vld [vmem:[%s7768_s0 + $0x6e0] sm:$0xf]  ;;  %v3664_v37 = vld [vmem:[%s7768_s0 + $0xf0] sm:$0xf] }
  0x16   :  { %5304 = vmatpush.bf16.msra.mxu1 %v4962_v5  ;;  %5305 = vmatpush.bf16.msra.mxu2 %v4962_v5  ;;  %v4747_v38 = vld [vmem:[%s7768_s0 + $0x100] sm:$0xf0]  ;;  %v4978_v42 = vld [vmem:[%s7766_s1 + $0x90] sm:$0xff]  ;;  %v4987_v43 = vld [vmem:[%s7766_s1 + $0xd8] sm:$0xff] }
  0x17   :  { %1979 = vmatpush.bf16.msra.mxu0 %v4962_v5  ;;  %5306 = vmatpush.bf16.msra.mxu3 %v4962_v5  ;;  %v3884_v5 = vld [vmem:[%s7768_s0 + $0x2a8] sm:$0xf]  ;;  %v3665_v41 = vor.u32 %v4747_v38, %v3664_v37  ;;  %v4970_v44 = vld [vmem:[%s7766_s1 + $0x50] sm:$0xff]  ;;  %v4942_v46 = vld [vmem:[%s7768_s0 + $0x718] sm:$0xf0] }
  0x18   :  { %v4444_v45 = vld [vmem:[%s7768_s0 + $0x708] sm:$0xf]  ;;  %v4882_v51 = vld [vmem:[%s7768_s0 + $0x538] sm:$0xf0]  ;;  %v3684_v52 = vld [vmem:[%s7768_s0 + $0x118] sm:$0xf] }
  0x19   :  { %v4986_v57 = vld [vmem:[%s7766_s1 + $0xd0] sm:$0xff]  ;;  %v4947_v59 = vld [vmem:[%s7768_s0 + $0x740] sm:$0xf0]  ;;  %v3964_v60 = vld [vmem:[%s7768_s0 + $0x348] sm:$0xf] }
  0x1a   :  { %5307 = vmatpush.bf16.msra.mxu1 %v4961_v6  ;;  %5308 = vmatpush.bf16.msra.mxu2 %v4961_v6  ;;  %v4464_v58 = vld [vmem:[%s7768_s0 + $0x730] sm:$0xf]  ;;  %v3704_v1 = vld [vmem:[%s7768_s0 + $0x140] sm:$0xf]  ;;  %v4757_v2 = vld [vmem:[%s7768_s0 + $0x150] sm:$0xf0] }
  0x1b   :  { %1980 = vmatpush.bf16.msra.mxu0 %v4961_v6  ;;  %5309 = vmatpush.bf16.msra.mxu3 %v4961_v6  ;;  %v4802_v6 = vld [vmem:[%s7768_s0 + $0x2b8] sm:$0xf0]  ;;  %v4969_v9 = vld [vmem:[%s7766_s1 + $0x48] sm:$0xff]  ;;  %v4957_v37 = vld [vmem:[%s7768_s0 + $0x790] sm:$0xf0] }
  0x1c   :  { %v3885_v11 = vor.u32 %v4802_v6, %v3884_v5  ;;  %v4977_v5 = vld [vmem:[%s7766_s1 + $0x88] sm:$0xff]  ;;  %v4762_v23 = vld [vmem:[%s7768_s0 + $0x178] sm:$0xf0]  ;;  %v4968_v38 = vld [vmem:[%s7766_s1 + $0x40] sm:$0xff] }
  0x1d   :  { %v3724_v22 = vld [vmem:[%s7768_s0 + $0x168] sm:$0xf] }
  0x1e   :  { %5310 = vmatpush.bf16.msra.mxu1 %v4960_v7  ;;  %5311 = vmatpush.bf16.msra.mxu2 %v4960_v7 }
  0x1f   :  { %1981 = vmatpush.bf16.msra.mxu0 %v4960_v7  ;;  %5312 = vmatpush.bf16.msra.mxu3 %v4960_v7  ;;  %v4144_v7 = vld [vmem:[%s7768_s0 + $0x4b0] sm:$0xf] }
  0x21   :  { %2047 = vmatmul.bf16.vlgmr.msra.gmra.mxu1 %v3805_v17  ;;  %2112 = vmatmul.bf16.vlgmr.msra.gmra.mxu2 %v4065_v18  ;;  %v4971_v18 = vld [vmem:[%s7766_s1 + $0x58] sm:$0xff] }
  0x22   :  { %2482 = vmatpush.bf16.msrb.mxu2 %v4983_v12  ;;  %2228 = vmatpush.bf16.msrb.mxu1 %v4975_v15  ;;  %v4145_v12 = vor.u32 %v4867_v8, %v4144_v7  ;;  %v4404_v15 = vld [vmem:[%s7768_s0 + $0x6b8] sm:$0xf]  ;;  %v3705_v7 = vor.u32 %v4757_v2, %v3704_v1  ;;  %v4772_v2 = vld [vmem:[%s7768_s0 + $0x1c8] sm:$0xf0] }
  0x23   :  { %2994 = vmatpush.bf16.msrb.mxu0 %v4995_v16  ;;  %2177 = vmatmul.bf16.vlgmr.msra.gmra.mxu3 %v4325_v24  ;;  %v4932_v16 = vld [vmem:[%s7768_s0 + $0x6c8] sm:$0xf0]  ;;  %v3644_v24 = vld [vmem:[%s7768_s0 + $0xc8] sm:$0xf]  ;;  %v3764_v1 = vld [vmem:[%s7768_s0 + $0x1b8] sm:$0xf] }
  0x24   :  { %1982 = vmatmul.bf16.vlgmr.msra.gmra.mxu0 %v3545_v19  ;;  %2736 = vmatpush.bf16.msrb.mxu3 %v4991_v34  ;;  %v4405_v17 = vor.u32 %v4932_v16, %v4404_v15  ;;  %v4988_v19 = vld [vmem:[%s7766_s1 + $0xe0] sm:$0xff]  ;;  %v3645_v28 = vor.u32 %v4742_v25, %v3644_v24  ;;  %v4812_v34 = vld [vmem:[%s7768_s0 + $0x308] sm:$0xf0] }
  0x25   :  { %v4952_v15 = vld [vmem:[%s7768_s0 + $0x768] sm:$0xf0] }
  0x26   :  { %2483 = vmatpush.bf16.msrb.mxu2 %v4982_v20  ;;  %2229 = vmatpush.bf16.msrb.mxu1 %v4974_v21  ;;  %v3904_v20 = vld [vmem:[%s7768_s0 + $0x2d0] sm:$0xf]  ;;  %v4807_v21 = vld [vmem:[%s7768_s0 + $0x2e0] sm:$0xf0]  ;;  %v4985_v16 = vld [vmem:[%s7766_s1 + $0xc8] sm:$0xff] }
  0x27   :  { %2995 = vmatpush.bf16.msrb.mxu0 %v4994_v39  ;;  %v3905_v26 = vor.u32 %v4807_v21, %v3904_v20  ;;  %v4244_v20 = vld [vmem:[%s7768_s0 + $0x578] sm:$0xf]  ;;  %v4892_v21 = vld [vmem:[%s7768_s0 + $0x588] sm:$0xf0] }
  0x28   :  { %2737 = vmatpush.bf16.msrb.mxu3 %v4990_v50  ;;  %v4204_v50 = vld [vmem:[%s7768_s0 + $0x528] sm:$0xf] }
  0x29   :  { %v4205_v55 = vor.u32 %v4882_v51, %v4204_v50 }
  0x2a   :  { %2484 = vmatpush.bf16.msrb.mxu2 %v4981_v35  ;;  %2230 = vmatpush.bf16.msrb.mxu1 %v4973_v36  ;;  %v4184_v35 = vld [vmem:[%s7768_s0 + $0x500] sm:$0xf]  ;;  %v4877_v36 = vld [vmem:[%s7768_s0 + $0x510] sm:$0xf0] }
  0x2b   :  { %2996 = vmatpush.bf16.msrb.mxu0 %v4993_v29 }
  0x2c   :  { %2738 = vmatpush.bf16.msrb.mxu3 %v4989_v4 }
  0x2e   :  { %2485 = vmatpush.bf16.msrb.mxu2 %v4980_v54  ;;  %2231 = vmatpush.bf16.msrb.mxu1 %v4972_v0  ;;  %v4887_v0 = vld [vmem:[%s7768_s0 + $0x560] sm:$0xf0] }
  0x30   :  { %2739 = vmatpush.bf16.msrb.mxu3 %v4988_v19  ;;  %v4827_v19 = vld [vmem:[%s7768_s0 + $0x380] sm:$0xf0] }
  0x31   :  { %2052 = vmatmul.bf16.gmra.mxu1 %v3825_v31  ;;  %2117 = vmatmul.bf16.gmra.mxu2 %v4085_v32  ;;  %v4937_v31 = vld [vmem:[%s7768_s0 + $0x6f0] sm:$0xf0] }
  0x32   :  { %2486 = vmatpush.bf16.msrb.mxu2 %v4979_v14  ;;  %2232 = vmatpush.bf16.msrb.mxu1 %v4971_v18  ;;  %v4425_v32 = vor.u32 %v4937_v31, %v4424_v30  ;;  %v4484_v14 = vld [vmem:[%s7768_s0 + $0x758] sm:$0xf] }
  0x33   :  { %2182 = vmatmul.bf16.gmra.mxu3 %v4345_v40  ;;  %v4185_v40 = vor.u32 %v4877_v36, %v4184_v35  ;;  %v4485_v18 = vor.u32 %v4952_v15, %v4484_v14  ;;  %v4976_v35 = vld [vmem:[%s7766_s1 + $0x80] sm:$0xff] }
  0x34   :  { %1987 = vmatmul.bf16.gmra.mxu0 %v3565_v33  ;;  %v3924_v33 = vld [vmem:[%s7768_s0 + $0x2f8] sm:$0xf]  ;;  %2740 = vmatpush.bf16.msrb.mxu3 %v4987_v43  ;;  %v4504_v36 = vld [vmem:[%s7768_s0 + $0x780] sm:$0xf]  ;;  %v4897_v43 = vld [vmem:[%s7768_s0 + $0x5b0] sm:$0xf0] }
  0x35   :  { %v3925_v39 = vor.u32 %v4812_v34, %v3924_v33 }
  0x36   :  { %2487 = vmatpush.bf16.msrb.mxu2 %v4978_v42  ;;  %2233 = vmatpush.bf16.msrb.mxu1 %v4970_v44  ;;  %v4264_v42 = vld [vmem:[%s7768_s0 + $0x5a0] sm:$0xf]  ;;  %v3744_v44 = vld [vmem:[%s7768_s0 + $0x190] sm:$0xf] }
  0x38   :  { %2741 = vmatpush.bf16.msrb.mxu3 %v4986_v57 }
  0x3a   :  { %2488 = vmatpush.bf16.msrb.mxu2 %v4977_v5  ;;  %2234 = vmatpush.bf16.msrb.mxu1 %v4969_v9  ;;  %v3765_v9 = vor.u32 %v4772_v2, %v3764_v1 }
  0x3c   :  { %2742 = vmatpush.bf16.msrb.mxu3 %v4985_v16 }
  0x3e   :  { %2489 = vmatpush.bf16.msrb.mxu2 %v4976_v35  ;;  %2235 = vmatpush.bf16.msrb.mxu1 %v4968_v38  ;;  %v4777_v35 = vld [vmem:[%s7768_s0 + $0x1f0] sm:$0xf0] }
  0x41   :  { %2057 = vmatmul.bf16.gmra.mxu1 %v3845_v47  ;;  %2122 = vmatmul.bf16.gmra.mxu2 %v4105_v48  ;;  %v3944_v47 = vld [vmem:[%s7768_s0 + $0x320] sm:$0xf]  ;;  %v4445_v48 = vor.u32 %v4942_v46, %v4444_v45  ;;  %v4767_v45 = vld [vmem:[%s7768_s0 + $0x1a0] sm:$0xf0] }
  0x42   :  { %v3745_v50 = vor.u32 %v4767_v45, %v3744_v44 }
  0x43   :  { %2187 = vmatmul.bf16.gmra.mxu3 %v4365_v53  ;;  %v4752_v53 = vld [vmem:[%s7768_s0 + $0x128] sm:$0xf0] }
  0x44   :  { %1992 = vmatmul.bf16.gmra.mxu0 %v3585_v49  ;;  %v4817_v49 = vld [vmem:[%s7768_s0 + $0x330] sm:$0xf0]  ;;  %v3685_v56 = vor.u32 %v4752_v53, %v3684_v52  ;;  %v4984_v53 = vld [vmem:[%s7766_s1 + $0xc0] sm:$0xff] }
  0x45   :  { %v3945_v54 = vor.u32 %v4817_v49, %v3944_v47  ;;  %2743 = vmatpush.bf16.msrb.mxu3 %v4984_v53  ;;  %v4715_v53 = vld [vmem:[%s7768_s0 + $0x4] sm:$0xf] }
  0x51   :  { %2062 = vmatmul.bf16.gmra.mxu1 %v3865_v61  ;;  %2127 = vmatmul.bf16.gmra.mxu2 %v4125_v62  ;;  %v4465_v61 = vor.u32 %v4947_v59, %v4464_v58  ;;  %v4822_v62 = vld [vmem:[%s7768_s0 + $0x358] sm:$0xf0]  ;;  %v4716_v58 = vld [vmem:[%s7768_s0 + $0xc] sm:$0xf]  ;;  %v3554_v59 = vld [vmem:[%s7768_s0 + $0x1c] sm:$0xf0] }
  0x53   :  { %2192 = vmatmul.bf16.gmra.mxu3 %v4385_v3  ;;  %v3965_v3 = vor.u32 %v4822_v62, %v3964_v60  ;;  %v4024_v60 = vld [vmem:[%s7768_s0 + $0x3c0] sm:$0xf]  ;;  %v4837_v62 = vld [vmem:[%s7768_s0 + $0x3d0] sm:$0xf0] }
  0x54   :  { %1997 = vmatmul.bf16.gmra.mxu0 %v3605_v63  ;;  %v4224_v63 = vld [vmem:[%s7768_s0 + $0x550] sm:$0xf] }
  0x55   :  { %v4225_v4 = vor.u32 %v4887_v0, %v4224_v63  ;;  %v4284_v63 = vld [vmem:[%s7768_s0 + $0x5c8] sm:$0xf]  ;;  %v4902_v0 = vld [vmem:[%s7768_s0 + $0x5d8] sm:$0xf0] }
  0x56   :  { %v4285_v5 = vor.u32 %v4902_v0, %v4284_v63  ;;  %v4719_v63 = vld [vmem:[%s7768_s0 + $0x20] sm:$0xf0] }
  0x61   :  { %2067 = vmatmul.bf16.gmra.mxu1 %v3885_v11  ;;  %2132 = vmatmul.bf16.gmra.mxu2 %v4145_v12 }
  0x63   :  { %2197 = vmatmul.bf16.gmra.mxu3 %v4405_v17  ;;  %v3984_v17 = vld [vmem:[%s7768_s0 + $0x370] sm:$0xf] }
  0x64   :  { %2002 = vmatmul.bf16.gmra.mxu0 %v3625_v13  ;;  %v4992_v13 = vld [vmem:[%s7766_s1 + $0x100] sm:$0xff]  ;;  %v3985_v25 = vor.u32 %v4827_v19, %v3984_v17  ;;  %v4721_v19 = vld [vmem:[%s7768_s0 + $0x34] sm:$0xf] }
  0x65   :  { %2997 = vmatpush.bf16.msrb.mxu0 %v4992_v13 }
  0x71   :  { %2072 = vmatmul.bf16.gmra.mxu1 %v3905_v26  ;;  %2137 = vmatmul.bf16.gmra.mxu2 %v4165_v27  ;;  %v4245_v26 = vor.u32 %v4892_v21, %v4244_v20  ;;  %v3574_v20 = vld [vmem:[%s7768_s0 + $0x44] sm:$0xf0] }
  0x72   :  { %v4044_v21 = vld [vmem:[%s7768_s0 + $0x3e8] sm:$0xf] }
  0x73   :  { %2202 = vmatmul.bf16.gmra.mxu3 %v4425_v32 }
  0x74   :  { %2007 = vmatmul.bf16.gmra.mxu0 %v3645_v28  ;;  %v3725_v28 = vor.u32 %v4762_v23, %v3724_v22  ;;  %v3577_v22 = vor.u32 %v4721_v19, %v3574_v20  ;;  %v4842_v23 = vld [vmem:[%s7768_s0 + $0x3f8] sm:$0xf0] }
  0x81   :  { %2077 = vmatmul.bf16.gmra.mxu1 %v3925_v39  ;;  %2142 = vmatmul.bf16.gmra.mxu2 %v4185_v40  ;;  %v4004_v39 = vld [vmem:[%s7768_s0 + $0x398] sm:$0xf]  ;;  %v4505_v40 = vor.u32 %v4957_v37, %v4504_v36  ;;  %v4045_v37 = vor.u32 %v4842_v23, %v4044_v21 }
  0x83   :  { %2207 = vmatmul.bf16.gmra.mxu3 %v4445_v48  ;;  %v4265_v48 = vor.u32 %v4897_v43, %v4264_v42 }
  0x84   :  { %2012 = vmatmul.bf16.gmra.mxu0 %v3665_v41  ;;  %v4832_v41 = vld [vmem:[%s7768_s0 + $0x3a8] sm:$0xf0] }
  0x85   :  { %v4005_v47 = vor.u32 %v4832_v41, %v4004_v39 }
  0x91   :  { %2082 = vmatmul.bf16.gmra.mxu1 %v3945_v54  ;;  %2147 = vmatmul.bf16.gmra.mxu2 %v4205_v55 }
  0x93   :  { %2212 = vmatmul.bf16.gmra.mxu3 %v4465_v61  ;;  %v3557_v61 = vor.u32 %v4716_v58, %v3554_v59  ;;  %v3546_v59 = vld [vmem:[%s7768_s0 + $0x14] sm:$0xf0] }
  0x94   :  { %2017 = vmatmul.bf16.gmra.mxu0 %v3685_v56  ;;  %v3549_v1 = vor.u32 %v4715_v53, %v3546_v59 }
  0x9e   :  { %v5637_v6 = vpop.f32.mrf.mxu1 }
  0xa1   :  { %v5639_v8 = vpop.f32.mrf.mxu0  ;;  %2087 = vmatmul.bf16.gmra.mxu1 %v3965_v3  ;;  %2152 = vmatmul.bf16.gmra.mxu2 %v4225_v4  ;;  %v4025_v4 = vor.u32 %v4837_v62, %v4024_v60  ;;  %v3552_v60 = vld [vmem:[%s7768_s0 + $0x8] sm:$0xf]  ;;  %v3560_v62 = vld [vmem:[%s7768_s0 + $0x10] sm:$0xf] }
  0xa3   :  { %2217 = vmatmul.bf16.gmra.mxu3 %v4485_v18 }
  0xa4   :  { %2022 = vmatmul.bf16.gmra.mxu0 %v3705_v7  ;;  %v5644_v10 = vpop.f32.mrf.mxu2 }
  0xa5   :  { %7770 = vst [vmem:[#allocation2_spill] sm:$0xff] %v5644_v10 }
  0xa6   :  { %v5646_v11 = vpop.f32.mrf.mxu1  ;;  %v5684_v29 = vpop.f32.mrf.mxu3 }
  0xa7   :  { %7772 = vst [vmem:[#allocation4_spill] sm:$0xff] %v5684_v29 }
  0xa9   :  { %v5648_v12 = vpop.f32.mrf.mxu0 }
  0xac   :  { %v5680_v24 = vpop.f32.mrf.mxu2 }
  0xad   :  { %7771 = vst [vmem:[#allocation3_spill] sm:$0xff] %v5680_v24 }
  0xae   :  { %v5682_v27 = vpop.f32.mrf.mxu1  ;;  %v5692_v33 = vpop.f32.mrf.mxu3 }
  0xaf   :  { %7774 = vst [vmem:[#allocation6_spill] sm:$0xff] %v5692_v33 }
  0xb1   :  { %v5686_v30 = vpop.f32.mrf.mxu0  ;;  %2092 = vmatmul.bf16.gmra.mxu1 %v3985_v25  ;;  %2157 = vmatmul.bf16.gmra.mxu2 %v4245_v26  ;;  %v4304_v25 = vld [vmem:[%s7768_s0 + $0x5f0] sm:$0xf]  ;;  %v4907_v26 = vld [vmem:[%s7768_s0 + $0x600] sm:$0xf0] }
  0xb2   :  { %v4305_v38 = vor.u32 %v4907_v26, %v4304_v25  ;;  %v4731_v25 = vld [vmem:[%s7768_s0 + $0x84] sm:$0xf]  ;;  %v3614_v26 = vld [vmem:[%s7768_s0 + $0x94] sm:$0xf0] }
  0xb3   :  { %2222 = vmatmul.bf16.gmra.mxu3 %v4505_v40 }
  0xb4   :  { %2027 = vmatmul.bf16.gmra.mxu0 %v3725_v28  ;;  %v5688_v31 = vpop.f32.mrf.mxu2  ;;  %v3784_v28 = vld [vmem:[%s7768_s0 + $0x1e0] sm:$0xf] }
  0xb5   :  { %7773 = vst [vmem:[#allocation5_spill] sm:$0xff] %v5688_v31  ;;  %v3785_v40 = vor.u32 %v4777_v35, %v3784_v28  ;;  %v4720_v28 = vld [vmem:[%s7768_s0 + $0x2c] sm:$0xf]  ;;  %v3617_v35 = vor.u32 %v4731_v25, %v3614_v26 }
  0xb6   :  { %v5690_v32 = vpop.f32.mrf.mxu1  ;;  %v5730_v51 = vpop.f32.mrf.mxu3  ;;  %v4736_v26 = vld [vmem:[%s7768_s0 + $0xac] sm:$0xf] }
  0xb7   :  { %7776 = vst [vmem:[#allocation8_spill] sm:$0xff] %v5730_v51 }
  0xb9   :  { %v5694_v34 = vpop.f32.mrf.mxu0 }
  0xbc   :  { %v5726_v46 = vpop.f32.mrf.mxu2 }
  0xbd   :  { %7775 = vst [vmem:[#allocation7_spill] sm:$0xff] %v5726_v46 }
  0xbe   :  { %v5728_v49 = vpop.f32.mrf.mxu1  ;;  %v5741_v56 = vpop.f32.mrf.mxu3 }
  0xbf   :  { %7778 = vst [vmem:[#allocation10_spill] sm:$0xff] %v5741_v56 }
  0xc1   :  { %v5732_v52 = vpop.f32.mrf.mxu0  ;;  %2097 = vmatmul.bf16.gmra.mxu1 %v4005_v47  ;;  %2162 = vmatmul.bf16.gmra.mxu2 %v4265_v48  ;;  %v4726_v48 = vld [vmem:[%s7768_s0 + $0x5c] sm:$0xf] }
  0xc3   :  { %2744 = vmatmul.bf16.vlgmr.msrb.gmra.mxu3 %v3557_v61  ;;  %v4718_v61 = vld [vmem:[%s7768_s0 + $0x18] sm:$0xf0] }
  0xc4   :  { %2032 = vmatmul.bf16.gmra.mxu0 %v3745_v50  ;;  %v5737_v54 = vpop.f32.mrf.mxu2  ;;  %v3594_v50 = vld [vmem:[%s7768_s0 + $0x6c] sm:$0xf0]  ;;  %v3553_v2 = vor.u32 %v4718_v61, %v3552_v60 }
  0xc5   :  { %7777 = vst [vmem:[#allocation9_spill] sm:$0xff] %v5737_v54  ;;  %v3597_v58 = vor.u32 %v4726_v48, %v3594_v50  ;;  %v3580_v48 = vld [vmem:[%s7768_s0 + $0x38] sm:$0xf]  ;;  %v4724_v50 = vld [vmem:[%s7768_s0 + $0x48] sm:$0xf0] }
  0xc6   :  { %v5739_v55 = vpop.f32.mrf.mxu1  ;;  %v5773_v13 = vpop.f32.mrf.mxu3  ;;  %v3581_v61 = vor.u32 %v4724_v50, %v3580_v48  ;;  %v4728_v48 = vld [vmem:[%s7768_s0 + $0x68] sm:$0xf0]  ;;  %v3600_v50 = vld [vmem:[%s7768_s0 + $0x60] sm:$0xf] }
  0xc7   :  { %7780 = vst [vmem:[#allocation12_spill] sm:$0xff] %v5773_v13 }
  0xc9   :  { %v5743_v57 = vpop.f32.mrf.mxu0 }
  0xcc   :  { %v5769_v3 = vpop.f32.mrf.mxu2 }
  0xcd   :  { %7779 = vst [vmem:[#allocation11_spill] sm:$0xff] %v5769_v3 }
  0xce   :  { %v5771_v7 = vpop.f32.mrf.mxu1  ;;  %v5781_v17 = vpop.f32.mrf.mxu3 }
  0xcf   :  { %7782 = vst [vmem:[#allocation14_spill] sm:$0xff] %v5781_v17 }
  0xd1   :  { %v5775_v14 = vpop.f32.mrf.mxu0  ;;  %2102 = vmatmul.bf16.gmra.mxu1 %v4025_v4  ;;  %2167 = vmatmul.bf16.gmra.mxu2 %v4285_v5  ;;  %v3561_v5 = vor.u32 %v4719_v63, %v3560_v62 }
  0xd3   :  { %2749 = vmatmul.bf16.gmra.mxu3 %v3577_v22 }
  0xd4   :  { %2037 = vmatmul.bf16.gmra.mxu0 %v3765_v9  ;;  %v5777_v15 = vpop.f32.mrf.mxu2 }
  0xd5   :  { %7781 = vst [vmem:[#allocation13_spill] sm:$0xff] %v5777_v15 }
  0xd6   :  { %v5779_v16 = vpop.f32.mrf.mxu1  ;;  %v5813_v41 = vpop.f32.mrf.mxu3 }
  0xd7   :  { %7784 = vst [vmem:[#allocation16_spill] sm:$0xff] %v5813_v41 }
  0xd9   :  { %v5783_v18 = vpop.f32.mrf.mxu0 }
  0xdc   :  { %v5809_v36 = vpop.f32.mrf.mxu2 }
  0xdd   :  { %7783 = vst [vmem:[#allocation15_spill] sm:$0xff] %v5809_v36 }
  0xde   :  { %v5811_v39 = vpop.f32.mrf.mxu1  ;;  %v5821_v45 = vpop.f32.mrf.mxu3 }
  0xdf   :  { %7786 = vst [vmem:[#allocation18_spill] sm:$0xff] %v5821_v45 }
  0xe1   :  { %v5815_v42 = vpop.f32.mrf.mxu0  ;;  %2107 = vmatmul.bf16.gmra.mxu1 %v4045_v37  ;;  %2172 = vmatmul.bf16.gmra.mxu2 %v4305_v38  ;;  %v3566_v37 = vld [vmem:[%s7768_s0 + $0x3c] sm:$0xf0]  ;;  %v3572_v38 = vld [vmem:[%s7768_s0 + $0x30] sm:$0xf] }
  0xe3   :  { %2754 = vmatmul.bf16.gmra.mxu3 %v3597_v58  ;;  %v3569_v58 = vor.u32 %v4720_v28, %v3566_v37  ;;  %v3634_v28 = vld [vmem:[%s7768_s0 + $0xbc] sm:$0xf0] }
  0xe4   :  { %2042 = vmatmul.bf16.gmra.mxu0 %v3785_v40  ;;  %v5817_v43 = vpop.f32.mrf.mxu2  ;;  %v4723_v40 = vld [vmem:[%s7768_s0 + $0x40] sm:$0xf0]  ;;  %v3637_v37 = vor.u32 %v4736_v26, %v3634_v28 }
  0xe5   :  { %7785 = vst [vmem:[#allocation17_spill] sm:$0xff] %v5817_v43  ;;  %v3573_v59 = vor.u32 %v4723_v40, %v3572_v38  ;;  %v3586_v38 = vld [vmem:[%s7768_s0 + $0x64] sm:$0xf0]  ;;  %v3592_v40 = vld [vmem:[%s7768_s0 + $0x58] sm:$0xf] }
  0xe6   :  { %v5819_v44 = vpop.f32.mrf.mxu1  ;;  %v5853_v9 = vpop.f32.mrf.mxu3  ;;  %v3593_v26 = vor.u32 %v4728_v48, %v3592_v40  ;;  %v3606_v48 = vld [vmem:[%s7768_s0 + $0x8c] sm:$0xf0] }
  0xe7   :  { %7788 = vst [vmem:[#allocation20_spill] sm:$0xff] %v5853_v9 }
  0xe9   :  { %v5823_v47 = vpop.f32.mrf.mxu0 }
  0xec   :  { %v5849_v0 = vpop.f32.mrf.mxu2 }
  0xed   :  { %7787 = vst [vmem:[#allocation19_spill] sm:$0xff] %v5849_v0 }
  0xee   :  { %v5851_v4 = vpop.f32.mrf.mxu1  ;;  %v5862_v22 = vpop.f32.mrf.mxu3 }
  0xef   :  { %7791 = vst [vmem:[#allocation23_spill] sm:$0xff] %v5862_v22 }
  0xf1   :  { %v5855_v19 = vpop.f32.mrf.mxu0  ;;  %2236 = vmatmul.bf16.vlgmr.msrb.gmra.mxu1 %v3549_v1  ;;  %2490 = vmatmul.bf16.vlgmr.msrb.gmra.mxu2 %v3553_v2 }
  0xf3   :  { %2759 = vmatmul.bf16.gmra.mxu3 %v3617_v35  ;;  %v4725_v35 = vld [vmem:[%s7768_s0 + $0x54] sm:$0xf] }
  0xf4   :  { %4666 = vmatmul.msk.bf16.vlgmr.msrb.gmra.mxu0 %vm1826_vm0, %v3561_v5  ;;  %v5858_v20 = vpop.f32.mrf.mxu2 }
  0xf5   :  { %7789 = vst [vmem:[#allocation21_spill] sm:$0xff] %v5858_v20 }
  0xf6   :  { %v5860_v21 = vpop.f32.mrf.mxu1  ;;  %v5894_v62 = vpop.f32.mrf.mxu3 }
  0xf7   :  { %7790 = vst [vmem:[#allocation22_spill] sm:$0xff] %v5860_v21 }
  0xf8   :  { %7794 = vst [vmem:[#allocation26_spill] sm:$0xff] %v5894_v62 }
  0xf9   :  { %v5864_v23 = vpop.f32.mrf.mxu0 }
  0xfc   :  { %v5890_v53 = vpop.f32.mrf.mxu2 }
  0xfd   :  { %7792 = vst [vmem:[#allocation24_spill] sm:$0xff] %v5890_v53 }
  0xfe   :  { %v5892_v60 = vpop.f32.mrf.mxu1  ;;  %v5903_v5 = vpop.f32.mrf.mxu3 }
  0xff   :  { %7793 = vst [vmem:[#allocation25_spill] sm:$0xff] %v5892_v60 }
 0x100   :  { %7797 = vst [vmem:[#allocation29_spill] sm:$0xff] %v5903_v5 }
 0x101   :  { %v5896_v63 = vpop.f32.mrf.mxu0  ;;  %2241 = vmatmul.bf16.gmra.mxu1 %v3569_v58  ;;  %2495 = vmatmul.bf16.gmra.mxu2 %v3573_v59  ;;  %v4729_v58 = vld [vmem:[%s7768_s0 + $0x70] sm:$0xf0] }
 0x102   :  { %v3601_v5 = vor.u32 %v4729_v58, %v3600_v50  ;;  %v3612_v50 = vld [vmem:[%s7768_s0 + $0x80] sm:$0xf]  ;;  %v4733_v58 = vld [vmem:[%s7768_s0 + $0x90] sm:$0xf0] }
 0x103   :  { %2764 = vmatmul.bf16.gmra.mxu3 %v3637_v37 }
 0x104   :  { %4667 = vmatmul.msk.bf16.gmra.mxu0 %vm1826_vm0, %v3581_v61  ;;  %v5899_v1 = vpop.f32.mrf.mxu2  ;;  %v3589_v61 = vor.u32 %v4725_v35, %v3586_v38  ;;  %v4741_v35 = vld [vmem:[%s7768_s0 + $0xd4] sm:$0xf]  ;;  %v3654_v38 = vld [vmem:[%s7768_s0 + $0xe4] sm:$0xf0] }
 0x105   :  { %7795 = vst [vmem:[#allocation27_spill] sm:$0xff] %v5899_v1  ;;  %v3657_v40 = vor.u32 %v4741_v35, %v3654_v38 }
 0x106   :  { %v5901_v2 = vpop.f32.mrf.mxu1  ;;  %v5935_v62 = vpop.f32.mrf.mxu3 }
 0x107   :  { %7796 = vst [vmem:[#allocation28_spill] sm:$0xff] %v5901_v2 }
 0x108   :  { %7800 = vst [vmem:[#allocation32_spill] sm:$0xff] %v5935_v62 }
 0x109   :  { %v5905_v25 = vpop.f32.mrf.mxu0 }
 0x10c   :  { %v5931_v59 = vpop.f32.mrf.mxu2 }
 0x10d   :  { %7798 = vst [vmem:[#allocation30_spill] sm:$0xff] %v5931_v59 }
 0x10e   :  { %v5933_v28 = vpop.f32.mrf.mxu1  ;;  %v5944_v37 = vpop.f32.mrf.mxu3 }
 0x10f   :  { %7799 = vst [vmem:[#allocation31_spill] sm:$0xff] %v5933_v28 }
 0x110   :  { %7803 = vst [vmem:[#allocation35_spill] sm:$0xff] %v5944_v37  ;;  %v3613_v37 = vor.u32 %v4733_v58, %v3612_v50  ;;  %v3626_v50 = vld [vmem:[%s7768_s0 + $0xb4] sm:$0xf0]  ;;  %v3632_v58 = vld [vmem:[%s7768_s0 + $0xa8] sm:$0xf] }
 0x111   :  { %v5937_v22 = vpop.f32.mrf.mxu0  ;;  %2246 = vmatmul.bf16.gmra.mxu1 %v3589_v61  ;;  %2500 = vmatmul.bf16.gmra.mxu2 %v3593_v26  ;;  %v3620_v61 = vld [vmem:[%s7768_s0 + $0x88] sm:$0xf]  ;;  %v4734_v26 = vld [vmem:[%s7768_s0 + $0x98] sm:$0xf0] }
 0x112   :  { %v3621_v17 = vor.u32 %v4734_v26, %v3620_v61  ;;  %v4738_v61 = vld [vmem:[%s7768_s0 + $0xb8] sm:$0xf0]  ;;  %v3640_v26 = vld [vmem:[%s7768_s0 + $0xb0] sm:$0xf] }
 0x113   :  { %2769 = vmatmul.bf16.gmra.mxu3 %v3657_v40 }
 0x114   :  { %4668 = vmatmul.msk.bf16.gmra.mxu0 %vm1826_vm0, %v3601_v5  ;;  %v5940_v9 = vpop.f32.mrf.mxu2  ;;  %v4730_v5 = vld [vmem:[%s7768_s0 + $0x7c] sm:$0xf] }
 0x115   :  { %7801 = vst [vmem:[#allocation33_spill] sm:$0xff] %v5940_v9  ;;  %v3609_v38 = vor.u32 %v4730_v5, %v3606_v48  ;;  %v4746_v5 = vld [vmem:[%s7768_s0 + $0xfc] sm:$0xf]  ;;  %v3674_v48 = vld [vmem:[%s7768_s0 + $0x10c] sm:$0xf0] }
 0x116   :  { %v5942_v45 = vpop.f32.mrf.mxu1  ;;  %v5976_v13 = vpop.f32.mrf.mxu3 }
 0x117   :  { %7802 = vst [vmem:[#allocation34_spill] sm:$0xff] %v5942_v45 }
 0x118   :  { %7806 = vst [vmem:[#allocation38_spill] sm:$0xff] %v5976_v13 }
 0x119   :  { %v5946_v41 = vpop.f32.mrf.mxu0 }
 0x11c   :  { %v5972_v35 = vpop.f32.mrf.mxu2 }
 0x11d   :  { %7804 = vst [vmem:[#allocation36_spill] sm:$0xff] %v5972_v35 }
 0x11e   :  { %v5974_v62 = vpop.f32.mrf.mxu1  ;;  %v5985_v40 = vpop.f32.mrf.mxu3 }
 0x11f   :  { %7805 = vst [vmem:[#allocation37_spill] sm:$0xff] %v5974_v62 }
 0x120   :  { %7809 = vst [vmem:[#allocation41_spill] sm:$0xff] %v5985_v40  ;;  %v3633_v40 = vor.u32 %v4738_v61, %v3632_v58  ;;  %v3646_v58 = vld [vmem:[%s7768_s0 + $0xdc] sm:$0xf0]  ;;  %v3652_v61 = vld [vmem:[%s7768_s0 + $0xd0] sm:$0xf] }
 0x121   :  { %v5978_v56 = vpop.f32.mrf.mxu0  ;;  %2251 = vmatmul.bf16.gmra.mxu1 %v3609_v38  ;;  %2505 = vmatmul.bf16.gmra.mxu2 %v3613_v37  ;;  %v3677_v37 = vor.u32 %v4746_v5, %v3674_v48  ;;  %v4739_v38 = vld [vmem:[%s7768_s0 + $0xc0] sm:$0xf0] }
 0x123   :  { %2774 = vmatmul.bf16.gmra.mxu3 %v3677_v37 }
 0x124   :  { %4669 = vmatmul.msk.bf16.gmra.mxu0 %vm1826_vm0, %v3621_v17  ;;  %v5981_v51 = vpop.f32.mrf.mxu2  ;;  %v4735_v17 = vld [vmem:[%s7768_s0 + $0xa4] sm:$0xf] }
 0x125   :  { %7807 = vst [vmem:[#allocation39_spill] sm:$0xff] %v5981_v51  ;;  %v3629_v48 = vor.u32 %v4735_v17, %v3626_v50  ;;  %v3641_v51 = vor.u32 %v4739_v38, %v3640_v26  ;;  %v4751_v17 = vld [vmem:[%s7768_s0 + $0x124] sm:$0xf]  ;;  %v3694_v50 = vld [vmem:[%s7768_s0 + $0x134] sm:$0xf0] }
 0x126   :  { %v5983_v33 = vpop.f32.mrf.mxu1  ;;  %v6017_v35 = vpop.f32.mrf.mxu3  ;;  %v4743_v26 = vld [vmem:[%s7768_s0 + $0xe0] sm:$0xf0]  ;;  %v3660_v38 = vld [vmem:[%s7768_s0 + $0xd8] sm:$0xf] }
 0x127   :  { %7808 = vst [vmem:[#allocation40_spill] sm:$0xff] %v5983_v33 }
 0x128   :  { %7812 = vst [vmem:[#allocation44_spill] sm:$0xff] %v6017_v35 }
 0x129   :  { %v5987_v29 = vpop.f32.mrf.mxu0 }
 0x12c   :  { %v6013_v5 = vpop.f32.mrf.mxu2 }
 0x12d   :  { %7810 = vst [vmem:[#allocation42_spill] sm:$0xff] %v6013_v5 }
 0x12e   :  { %v6015_v13 = vpop.f32.mrf.mxu1  ;;  %v6026_v37 = vpop.f32.mrf.mxu3 }
 0x12f   :  { %7811 = vst [vmem:[#allocation43_spill] sm:$0xff] %v6015_v13  ;;  %v3740_v13 = vld [vmem:[%s7768_s0 + $0x178] sm:$0xf] }
 0x130   :  { %7815 = vst [vmem:[#allocation47_spill] sm:$0xff] %v6026_v37  ;;  %v3653_v37 = vor.u32 %v4743_v26, %v3652_v61  ;;  %v3666_v61 = vld [vmem:[%s7768_s0 + $0x104] sm:$0xf0]  ;;  %v3672_v26 = vld [vmem:[%s7768_s0 + $0xf8] sm:$0xf] }
 0x131   :  { %v6019_v9 = vpop.f32.mrf.mxu0  ;;  %2256 = vmatmul.bf16.gmra.mxu1 %v3629_v48  ;;  %2510 = vmatmul.bf16.gmra.mxu2 %v3633_v40  ;;  %v3697_v40 = vor.u32 %v4751_v17, %v3694_v50  ;;  %v4744_v48 = vld [vmem:[%s7768_s0 + $0xe8] sm:$0xf0] }
 0x133   :  { %2779 = vmatmul.bf16.gmra.mxu3 %v3697_v40 }
 0x134   :  { %4670 = vmatmul.msk.bf16.gmra.mxu0 %vm1826_vm0, %v3641_v51  ;;  %v6022_v59 = vpop.f32.mrf.mxu2  ;;  %v4740_v51 = vld [vmem:[%s7768_s0 + $0xcc] sm:$0xf] }
 0x135   :  { %7813 = vst [vmem:[#allocation45_spill] sm:$0xff] %v6022_v59  ;;  %v3649_v50 = vor.u32 %v4740_v51, %v3646_v58  ;;  %v3661_v59 = vor.u32 %v4744_v48, %v3660_v38  ;;  %v4756_v51 = vld [vmem:[%s7768_s0 + $0x14c] sm:$0xf]  ;;  %v3714_v58 = vld [vmem:[%s7768_s0 + $0x15c] sm:$0xf0] }
 0x136   :  { %v6024_v1 = vpop.f32.mrf.mxu1  ;;  %v6058_v53 = vpop.f32.mrf.mxu3  ;;  %v4748_v38 = vld [vmem:[%s7768_s0 + $0x108] sm:$0xf0]  ;;  %v3680_v48 = vld [vmem:[%s7768_s0 + $0x100] sm:$0xf] }
 0x137   :  { %7814 = vst [vmem:[#allocation46_spill] sm:$0xff] %v6024_v1  ;;  %v6184_v1 = vld [vmem:[%s7767_s2] ss:$0 sm:$0xff] }
 0x138   :  { %7818 = vst [vmem:[#allocation50_spill] sm:$0xff] %v6058_v53 }
 0x139   :  { %v6028_v5 = vpop.f32.mrf.mxu0 }
 0x13c   :  { %v6054_v17 = vpop.f32.mrf.mxu2 }
 0x13d   :  { %7816 = vst [vmem:[#allocation48_spill] sm:$0xff] %v6054_v17 }
 0x13e   :  { %v6056_v35 = vpop.f32.mrf.mxu1  ;;  %v6067_v40 = vpop.f32.mrf.mxu3 }
 0x13f   :  { %7817 = vst [vmem:[#allocation49_spill] sm:$0xff] %v6056_v35 }
 0x140   :  { %7821 = vst [vmem:[#allocation53_spill] sm:$0xff] %v6067_v40  ;;  %v3673_v40 = vor.u32 %v4748_v38, %v3672_v26  ;;  %v3686_v26 = vld [vmem:[%s7768_s0 + $0x12c] sm:$0xf0]  ;;  %v3692_v38 = vld [vmem:[%s7768_s0 + $0x120] sm:$0xf] }
 0x141   :  { %v6060_v20 = vpop.f32.mrf.mxu0  ;;  %2261 = vmatmul.bf16.gmra.mxu1 %v3649_v50  ;;  %2515 = vmatmul.bf16.gmra.mxu2 %v3653_v37  ;;  %v3717_v37 = vor.u32 %v4756_v51, %v3714_v58  ;;  %v4749_v50 = vld [vmem:[%s7768_s0 + $0x110] sm:$0xf0] }
 0x143   :  { %2784 = vmatmul.bf16.gmra.mxu3 %v3717_v37 }
 0x144   :  { %4671 = vmatmul.msk.bf16.gmra.mxu0 %vm1826_vm0, %v3661_v59  ;;  %v6063_v0 = vpop.f32.mrf.mxu2  ;;  %v4745_v59 = vld [vmem:[%s7768_s0 + $0xf4] sm:$0xf] }
 0x145   :  { %7819 = vst [vmem:[#allocation51_spill] sm:$0xff] %v6063_v0  ;;  %v3669_v58 = vor.u32 %v4745_v59, %v3666_v61  ;;  %v3681_v0 = vor.u32 %v4749_v50, %v3680_v48  ;;  %v4761_v59 = vld [vmem:[%s7768_s0 + $0x174] sm:$0xf]  ;;  %v3734_v61 = vld [vmem:[%s7768_s0 + $0x184] sm:$0xf0] }
 0x146   :  { %v6065_v43 = vpop.f32.mrf.mxu1  ;;  %v6099_v36 = vpop.f32.mrf.mxu3  ;;  %v4753_v48 = vld [vmem:[%s7768_s0 + $0x130] sm:$0xf0]  ;;  %v3700_v50 = vld [vmem:[%s7768_s0 + $0x128] sm:$0xf] }
 0x147   :  { %7820 = vst [vmem:[#allocation52_spill] sm:$0xff] %v6065_v43 }
 0x149   :  { %v6069_v17 = vpop.f32.mrf.mxu0 }
 0x14c   :  { %v6095_v51 = vpop.f32.mrf.mxu2 }
 0x14d   :  { %7822 = vst [vmem:[#allocation54_spill] sm:$0xff] %v6095_v51 }
 0x14e   :  { %v6097_v53 = vpop.f32.mrf.mxu1  ;;  %v6108_v37 = vpop.f32.mrf.mxu3 }
 0x14f   :  { %7823 = vst [vmem:[#allocation55_spill] sm:$0xff] %v6097_v53 }
 0x151   :  { %v6101_v15 = vpop.f32.mrf.mxu0  ;;  %2266 = vmatmul.bf16.gmra.mxu1 %v3669_v58  ;;  %2520 = vmatmul.bf16.gmra.mxu2 %v3673_v40  ;;  %v3737_v40 = vor.u32 %v4761_v59, %v3734_v61  ;;  %v4754_v58 = vld [vmem:[%s7768_s0 + $0x138] sm:$0xf0] }
 0x152   :  { %v3701_v31 = vor.u32 %v4754_v58, %v3700_v50  ;;  %v4758_v50 = vld [vmem:[%s7768_s0 + $0x158] sm:$0xf0]  ;;  %v3720_v58 = vld [vmem:[%s7768_s0 + $0x150] sm:$0xf] }
 0x153   :  { %2789 = vmatmul.bf16.gmra.mxu3 %v3737_v40 }
 0x154   :  { %4672 = vmatmul.msk.bf16.gmra.mxu0 %vm1826_vm0, %v3681_v0  ;;  %v6104_v3 = vpop.f32.mrf.mxu2  ;;  %v4750_v0 = vld [vmem:[%s7768_s0 + $0x11c] sm:$0xf] }
 0x155   :  { %7824 = vst [vmem:[#allocation56_spill] sm:$0xff] %v6104_v3  ;;  %v3689_v61 = vor.u32 %v4750_v0, %v3686_v26  ;;  %v3693_v3 = vor.u32 %v4753_v48, %v3692_v38  ;;  %v4766_v0 = vld [vmem:[%s7768_s0 + $0x19c] sm:$0xf]  ;;  %v3754_v26 = vld [vmem:[%s7768_s0 + $0x1ac] sm:$0xf0] }
 0x156   :  { %v6106_v54 = vpop.f32.mrf.mxu1  ;;  %v6140_v24 = vpop.f32.mrf.mxu3  ;;  %v3706_v38 = vld [vmem:[%s7768_s0 + $0x154] sm:$0xf0]  ;;  %v3712_v48 = vld [vmem:[%s7768_s0 + $0x148] sm:$0xf] }
 0x157   :  { %7825 = vst [vmem:[#allocation57_spill] sm:$0xff] %v6106_v54 }
 0x159   :  { %v6110_v51 = vpop.f32.mrf.mxu0 }
 0x15c   :  { %v6136_v59 = vpop.f32.mrf.mxu2 }
 0x15d   :  { %7826 = vst [vmem:[#allocation58_spill] sm:$0xff] %v6136_v59 }
 0x15e   :  { %v6138_v46 = vpop.f32.mrf.mxu1  ;;  %v6149_v40 = vpop.f32.mrf.mxu3 }
 0x15f   :  { %7827 = vst [vmem:[#allocation59_spill] sm:$0xff] %v6138_v46 }
 0x161   :  { %v6142_v10 = vpop.f32.mrf.mxu0  ;;  %2271 = vmatmul.bf16.gmra.mxu1 %v3689_v61  ;;  %2525 = vmatmul.bf16.gmra.mxu2 %v3693_v3  ;;  %v3757_v3 = vor.u32 %v4766_v0, %v3754_v26  ;;  %v4759_v61 = vld [vmem:[%s7768_s0 + $0x160] sm:$0xf0] }
 0x162   :  { %v3721_v46 = vor.u32 %v4759_v61, %v3720_v58  ;;  %v4771_v61 = vld [vmem:[%s7768_s0 + $0x1c4] sm:$0xf] }
 0x163   :  { %2794 = vmatmul.bf16.gmra.mxu3 %v3757_v3  ;;  %v1984_v3 = vadd.f32 %v6184_v1, %v5639_v8  ;;  %v4760_v8 = vld [vmem:[%s7768_s0 + $0x16c] sm:$0xf] }
 0x164   :  { %4673 = vmatmul.msk.bf16.gmra.mxu0 %vm1826_vm0, %v3701_v31  ;;  %v6145_v54 = vpop.f32.mrf.mxu2  ;;  %v4755_v31 = vld [vmem:[%s7768_s0 + $0x144] sm:$0xf] }
 0x165   :  { %7828 = vst [vmem:[#allocation60_spill] sm:$0xff] %v6145_v54  ;;  %v3709_v26 = vor.u32 %v4755_v31, %v3706_v38  ;;  %v3713_v54 = vor.u32 %v4758_v50, %v3712_v48 }
 0x166   :  { %v6147_v53 = vpop.f32.mrf.mxu1  ;;  %v6179_v43 = vpop.f32.mrf.mxu3 }
 0x167   :  { %7829 = vst [vmem:[#allocation61_spill] sm:$0xff] %v6147_v53 }
 0x169   :  { %v6151_v59 = vpop.f32.mrf.mxu0 }
 0x16c   :  { %v6177_v0 = vpop.f32.mrf.mxu2 }
 0x16d   :  { %7830 = vst [vmem:[#allocation62_spill] sm:$0xff] %v6177_v0 }
 0x16e   :  { %v2237_v53 = vpop.f32.mrf.mxu1  ;;  %v6189_v48 = vpop.f32.mrf.mxu3 }
 0x16f   :  { %v2238_v31 = vadd.f32 %v2237_v53, %v1984_v3  ;;  %v4763_v3 = vld [vmem:[%s7768_s0 + $0x180] sm:$0xf0] }
 0x171   :  { %v2999_v35 = vpop.f32.mrf.mxu0  ;;  %2276 = vmatmul.bf16.gmra.mxu1 %v3709_v26  ;;  %2530 = vmatmul.bf16.gmra.mxu2 %v3713_v54  ;;  %v3774_v54 = vld [vmem:[%s7768_s0 + $0x1d4] sm:$0xf0]  ;;  %v3732_v26 = vld [vmem:[%s7768_s0 + $0x170] sm:$0xf] }
 0x172   :  { %v3777_v53 = vor.u32 %v4771_v61, %v3774_v54  ;;  %v4764_v61 = vld [vmem:[%s7768_s0 + $0x188] sm:$0xf0]  ;;  %v3733_v45 = vor.u32 %v4763_v3, %v3732_v26 }
 0x173   :  { %v3741_v2 = vor.u32 %v4764_v61, %v3740_v13  ;;  %v3760_v61 = vld [vmem:[%s7768_s0 + $0x1a0] sm:$0xf] }
 0x174   :  { %4674 = vmatmul.msk.bf16.gmra.mxu0 %vm1826_vm0, %v3721_v46  ;;  %v2491_v0 = vpop.f32.mrf.mxu2  ;;  %v1986_v46 = vadd.f32 %v6184_v1, %v5648_v12  ;;  %2799 = vmatmul.bf16.gmra.mxu3 %v3777_v53 }
 0x175   :  { %v2492_v50 = vadd.f32 %v2491_v0, %v2238_v31  ;;  %v3726_v0 = vld [vmem:[%s7768_s0 + $0x17c] sm:$0xf0] }
 0x176   :  { %v2239_v38 = vpop.f32.mrf.mxu1  ;;  %v3729_v62 = vor.u32 %v4760_v8, %v3726_v0  ;;  %v6218_v60 = vpop.f32.mrf.mxu3 }
 0x177   :  { %v2746_v31 = vadd.f32 %v6099_v36, %v2492_v50  ;;  %v2240_v12 = vadd.f32 %v2239_v38, %v1986_v46  ;;  %v1989_v46 = vadd.f32 %v6184_v1, %v5686_v30  ;;  %v3794_v30 = vld [vmem:[%s7768_s0 + $0x1fc] sm:$0xf0] }
 0x179   :  { %v3001_v58 = vpop.f32.mrf.mxu0  ;;  %v3000_v21 = vadd.f32 %v2999_v35, %v2746_v31  ;;  %v3746_v35 = vld [vmem:[%s7768_s0 + $0x1a4] sm:$0xf0] }
 0x17b   :  { %v3244_v53 = vmax.f32 %v3000_v21, 0.0  ;;  %v1991_v21 = vadd.f32 %v6184_v1, %v5694_v34 }
 0x17c   :  { %v2493_v54 = vpop.f32.mrf.mxu2 }
 0x17d   :  { %v2494_v33 = vadd.f32 %v2493_v54, %v2240_v12  ;;  %v4769_v54 = vld [vmem:[%s7768_s0 + $0x1b0] sm:$0xf0] }
 0x17e   :  { %v2242_v28 = vpop.f32.mrf.mxu1  ;;  %v6224_v3 = vpop.f32.mrf.mxu3 }
 0x17f   :  { %v2748_v36 = vadd.f32 %v6108_v37, %v2494_v33  ;;  %v2243_v26 = vadd.f32 %v2242_v28, %v1989_v46  ;;  %v3752_v37 = vld [vmem:[%s7768_s0 + $0x198] sm:$0xf] }
 0x181   :  { %v3004_v38 = vpop.f32.mrf.mxu0  ;;  %v3002_v50 = vadd.f32 %v3001_v58, %v2748_v36  ;;  %2281 = vmatmul.bf16.gmra.mxu1 %v3729_v62  ;;  %2535 = vmatmul.bf16.gmra.mxu2 %v3733_v45  ;;  %v4776_v45 = vld [vmem:[%s7768_s0 + $0x1ec] sm:$0xf] }
 0x182   :  { %v3797_v28 = vor.u32 %v4776_v45, %v3794_v30  ;;  %v4768_v58 = vld [vmem:[%s7768_s0 + $0x1a8] sm:$0xf0]  ;;  %v1994_v45 = vadd.f32 %v6184_v1, %v5732_v52  ;;  %v3814_v52 = vld [vmem:[%s7768_s0 + $0x224] sm:$0xf0] }
 0x183   :  { %v3245_v12 = vmax.f32 %v3002_v50, 0.0 }
 0x184   :  { %4675 = vmatmul.msk.bf16.gmra.mxu0 %vm1826_vm0, %v3741_v2  ;;  %v2496_v8 = vpop.f32.mrf.mxu2  ;;  %v4765_v2 = vld [vmem:[%s7768_s0 + $0x194] sm:$0xf]  ;;  %2804 = vmatmul.bf16.gmra.mxu3 %v3797_v28 }
 0x185   :  { %v4999_v0 = vpack.c.bf16 %v3245_v12, %v3244_v53  ;;  %v2497_v33 = vadd.f32 %v2496_v8, %v2243_v26  ;;  %v3749_v46 = vor.u32 %v4765_v2, %v3746_v35  ;;  %v3753_v53 = vor.u32 %v4768_v58, %v3752_v37 }
 0x186   :  { %v2244_v13 = vpop.f32.mrf.mxu1  ;;  %v3761_v8 = vor.u32 %v4769_v54, %v3760_v61  ;;  %v3766_v54 = vld [vmem:[%s7768_s0 + $0x1cc] sm:$0xf0] }
 0x187   :  { %5000 = vst [vmem:[%s7769_s3] sm:$0xff] %v4999_v0   ;;  %v2751_v31 = vadd.f32 %v6140_v24, %v2497_v33  ;;  %v2245_v34 = vadd.f32 %v2244_v13, %v1991_v21  ;;  %v6256_v0 = vpop.f32.mrf.mxu3 }
 0x189   :  { %v3006_v62 = vpop.f32.mrf.mxu0  ;;  %v3005_v26 = vadd.f32 %v3004_v38, %v2751_v31  ;;  %v1996_v31 = vadd.f32 %v6184_v1, %v5743_v57 }
 0x18b   :  { %v3246_v30 = vmax.f32 %v3005_v26, 0.0 }
 0x18c   :  { %v2498_v36 = vpop.f32.mrf.mxu2 }
 0x18d   :  { %v2499_v50 = vadd.f32 %v2498_v36, %v2245_v34  ;;  %v4770_v34 = vld [vmem:[%s7768_s0 + $0x1bc] sm:$0xf]  ;;  %v3772_v36 = vld [vmem:[%s7768_s0 + $0x1c0] sm:$0xf] }
 0x18e   :  { %v2247_v12 = vpop.f32.mrf.mxu1 }
 0x18f   :  { %v2753_v24 = vadd.f32 %v6149_v40, %v2499_v50  ;;  %v2248_v35 = vadd.f32 %v2247_v12, %v1994_v45  ;;  %v6262_v58 = vpop.f32.mrf.mxu3  ;;  %v4773_v50 = vld [vmem:[%s7768_s0 + $0x1d0] sm:$0xf0]  ;;  %v4774_v12 = vld [vmem:[%s7768_s0 + $0x1d8] sm:$0xf0] }
 0x191   :  { %v3009_v13 = vpop.f32.mrf.mxu0  ;;  %v3007_v33 = vadd.f32 %v3006_v62, %v2753_v24  ;;  %2286 = vmatmul.bf16.gmra.mxu1 %v3749_v46  ;;  %2540 = vmatmul.bf16.gmra.mxu2 %v3753_v53  ;;  %v4781_v62 = vld [vmem:[%s7768_s0 + $0x214] sm:$0xf]  ;;  %v3780_v53 = vld [vmem:[%s7768_s0 + $0x1c8] sm:$0xf]  ;;  %v3769_v24 = vor.u32 %v4770_v34, %v3766_v54 }
 0x192   :  { %v3817_v61 = vor.u32 %v4781_v62, %v3814_v52 }
 0x193   :  { %v3247_v21 = vmax.f32 %v3007_v33, 0.0  ;;  %v3773_v33 = vor.u32 %v4773_v50, %v3772_v36  ;;  %v2001_v36 = vadd.f32 %v6184_v1, %v5783_v18  ;;  %v4775_v50 = vld [vmem:[%s7768_s0 + $0x1e4] sm:$0xf] }
 0x194   :  { %4676 = vmatmul.msk.bf16.gmra.mxu0 %vm1826_vm0, %v3761_v8  ;;  %v2501_v2 = vpop.f32.mrf.mxu2  ;;  %2809 = vmatmul.bf16.gmra.mxu3 %v3817_v61 }
 0x195   :  { %v5004_v28 = vpack.c.bf16 %v3247_v21, %v3246_v30  ;;  %v2502_v40 = vadd.f32 %v2501_v2, %v2248_v35  ;;  %v3781_v30 = vor.u32 %v4774_v12, %v3780_v53  ;;  %v3792_v53 = vld [vmem:[%s7768_s0 + $0x1e8] sm:$0xf]  ;;  %v4778_v12 = vld [vmem:[%s7768_s0 + $0x1f8] sm:$0xf0] }
 0x196   :  { %v2249_v37 = vpop.f32.mrf.mxu1 }
 0x197   :  { %5241 = vst [vmem:[%s7769_s3 + $0x8] sm:$0xff] %v5004_v28   ;;  %v2756_v46 = vadd.f32 %v6179_v43, %v2502_v40  ;;  %v2250_v57 = vadd.f32 %v2249_v37, %v1996_v31  ;;  %v6294_v21 = vpop.f32.mrf.mxu3  ;;  %v1999_v37 = vadd.f32 %v6184_v1, %v5775_v14  ;;  %v3834_v14 = vld [vmem:[%s7768_s0 + $0x24c] sm:$0xf0] }
 0x199   :  { %v3011_v38 = vpop.f32.mrf.mxu0  ;;  %v3010_v2 = vadd.f32 %v3009_v13, %v2756_v46 }
 0x19b   :  { %v3248_v40 = vmax.f32 %v3010_v2, 0.0  ;;  %v3793_v2 = vor.u32 %v4778_v12, %v3792_v53  ;;  %v3806_v12 = vld [vmem:[%s7768_s0 + $0x21c] sm:$0xf0] }
 0x19c   :  { %v2503_v8 = vpop.f32.mrf.mxu2 }
 0x19d   :  { %v2504_v26 = vadd.f32 %v2503_v8, %v2250_v57  ;;  %v3786_v57 = vld [vmem:[%s7768_s0 + $0x1f4] sm:$0xf0] }
 0x19e   :  { %v2252_v45 = vpop.f32.mrf.mxu1 }
 0x19f   :  { %v2758_v43 = vadd.f32 %v6189_v48, %v2504_v26  ;;  %v2253_v34 = vadd.f32 %v2252_v45, %v1999_v37  ;;  %v6300_v54 = vpop.f32.mrf.mxu3  ;;  %v3800_v26 = vld [vmem:[%s7768_s0 + $0x1f0] sm:$0xf] }
 0x1a1   :  { %v3014_v28 = vpop.f32.mrf.mxu0  ;;  %v3012_v35 = vadd.f32 %v3011_v38, %v2758_v43  ;;  %2291 = vmatmul.bf16.gmra.mxu1 %v3769_v24  ;;  %2545 = vmatmul.bf16.gmra.mxu2 %v3773_v33  ;;  %v4786_v38 = vld [vmem:[%s7768_s0 + $0x23c] sm:$0xf]  ;;  %v4779_v24 = vld [vmem:[%s7768_s0 + $0x200] sm:$0xf0] }
 0x1a2   :  { %v3837_v46 = vor.u32 %v4786_v38, %v3834_v14 }
 0x1a3   :  { %v3249_v62 = vmax.f32 %v3012_v35, 0.0  ;;  %v3801_v35 = vor.u32 %v4779_v24, %v3800_v26  ;;  %v3820_v24 = vld [vmem:[%s7768_s0 + $0x218] sm:$0xf] }
 0x1a4   :  { %4677 = vmatmul.msk.bf16.gmra.mxu0 %vm1826_vm0, %v3781_v30  ;;  %v2506_v52 = vpop.f32.mrf.mxu2  ;;  %2814 = vmatmul.bf16.gmra.mxu3 %v3837_v46  ;;  %v3789_v30 = vor.u32 %v4775_v50, %v3786_v57  ;;  %v2006_v46 = vadd.f32 %v6184_v1, %v5823_v47  ;;  %v4780_v57 = vld [vmem:[%s7768_s0 + $0x20c] sm:$0xf] }
 0x1a5   :  { %v5009_v31 = vpack.c.bf16 %v3249_v62, %v3248_v40  ;;  %v2507_v48 = vadd.f32 %v2506_v52, %v2253_v34 }
 0x1a6   :  { %v2254_v61 = vpop.f32.mrf.mxu1 }
 0x1a7   :  { %5242 = vst [vmem:[%s7769_s3 + $0x10] sm:$0xff] %v5009_v31   ;;  %v2761_v8 = vadd.f32 %v6218_v60, %v2507_v48  ;;  %v2255_v18 = vadd.f32 %v2254_v61, %v2001_v36  ;;  %v6332_v37 = vpop.f32.mrf.mxu3  ;;  %v2004_v31 = vadd.f32 %v6184_v1, %v5815_v42  ;;  %v3854_v42 = vld [vmem:[%s7768_s0 + $0x274] sm:$0xf0] }
 0x1a9   :  { %v3016_v13 = vpop.f32.mrf.mxu0  ;;  %v3015_v40 = vadd.f32 %v3014_v28, %v2761_v8  ;;  %v3812_v8 = vld [vmem:[%s7768_s0 + $0x210] sm:$0xf] }
 0x1ab   :  { %v3250_v34 = vmax.f32 %v3015_v40, 0.0 }
 0x1ac   :  { %v2508_v33 = vpop.f32.mrf.mxu2 }
 0x1ad   :  { %v2509_v45 = vadd.f32 %v2508_v33, %v2255_v18  ;;  %v4783_v18 = vld [vmem:[%s7768_s0 + $0x220] sm:$0xf0]  ;;  %v4784_v33 = vld [vmem:[%s7768_s0 + $0x228] sm:$0xf0] }
 0x1ae   :  { %v2257_v43 = vpop.f32.mrf.mxu1  ;;  %v3821_v40 = vor.u32 %v4784_v33, %v3820_v24  ;;  %v4789_v24 = vld [vmem:[%s7768_s0 + $0x250] sm:$0xf0] }
 0x1af   :  { %v2763_v60 = vadd.f32 %v6224_v3, %v2509_v45  ;;  %v2258_v14 = vadd.f32 %v2257_v43, %v2004_v31  ;;  %v6338_v50 = vpop.f32.mrf.mxu3  ;;  %v3813_v43 = vor.u32 %v4783_v18, %v3812_v8  ;;  %v3832_v8 = vld [vmem:[%s7768_s0 + $0x238] sm:$0xf]  ;;  %v4788_v18 = vld [vmem:[%s7768_s0 + $0x248] sm:$0xf0] }
 0x1b1   :  { %v3019_v62 = vpop.f32.mrf.mxu0  ;;  %v3017_v52 = vadd.f32 %v3016_v13, %v2763_v60  ;;  %2296 = vmatmul.bf16.gmra.mxu1 %v3789_v30  ;;  %2550 = vmatmul.bf16.gmra.mxu2 %v3793_v2  ;;  %v4791_v13 = vld [vmem:[%s7768_s0 + $0x264] sm:$0xf]  ;;  %v3809_v2 = vor.u32 %v4780_v57, %v3806_v12  ;;  %v4785_v57 = vld [vmem:[%s7768_s0 + $0x234] sm:$0xf]  ;;  %v3826_v12 = vld [vmem:[%s7768_s0 + $0x244] sm:$0xf0] }
 0x1b2   :  { %v3857_v53 = vor.u32 %v4791_v13, %v3854_v42 }
 0x1b3   :  { %v3251_v61 = vmax.f32 %v3017_v52, 0.0 }
 0x1b4   :  { %4678 = vmatmul.msk.bf16.gmra.mxu0 %vm1826_vm0, %v3801_v35  ;;  %v2511_v48 = vpop.f32.mrf.mxu2  ;;  %2819 = vmatmul.bf16.gmra.mxu3 %v3857_v53 }
 0x1b5   :  { %v5014_v38 = vpack.c.bf16 %v3251_v61, %v3250_v34  ;;  %v2512_v3 = vadd.f32 %v2511_v48, %v2258_v14  ;;  %v2009_v61 = vadd.f32 %v6184_v1, %v5855_v19  ;;  %v3874_v19 = vld [vmem:[%s7768_s0 + $0x29c] sm:$0xf0] }
 0x1b6   :  { %v2259_v36 = vpop.f32.mrf.mxu1 }
 0x1b7   :  { %5243 = vst [vmem:[%s7769_s3 + $0x18] sm:$0xff] %v5014_v38   ;;  %v2766_v26 = vadd.f32 %v6256_v0, %v2512_v3  ;;  %v2260_v47 = vadd.f32 %v2259_v36, %v2006_v46  ;;  %v6370_v60 = vpop.f32.mrf.mxu3  ;;  %v2011_v46 = vadd.f32 %v6184_v1, %v5864_v23 }
 0x1b9   :  { %v3021_v28 = vpop.f32.mrf.mxu0  ;;  %v3020_v52 = vadd.f32 %v3019_v62, %v2766_v26 }
 0x1bb   :  { %v3252_v48 = vmax.f32 %v3020_v52, 0.0 }
 0x1bc   :  { %v2513_v45 = vpop.f32.mrf.mxu2 }
 0x1bd   :  { %v2514_v30 = vadd.f32 %v2513_v45, %v2260_v47  ;;  %v3840_v47 = vld [vmem:[%s7768_s0 + $0x240] sm:$0xf] }
 0x1be   :  { %v2262_v35 = vpop.f32.mrf.mxu1 }
 0x1bf   :  { %v2768_v0 = vadd.f32 %v6262_v58, %v2514_v30  ;;  %v2263_v3 = vadd.f32 %v2262_v35, %v2009_v61  ;;  %v6376_v42 = vpop.f32.mrf.mxu3  ;;  %v3829_v30 = vor.u32 %v4785_v57, %v3826_v12  ;;  %v3841_v35 = vor.u32 %v4789_v24, %v3840_v47  ;;  %v3846_v57 = vld [vmem:[%s7768_s0 + $0x26c] sm:$0xf0]  ;;  %v4793_v12 = vld [vmem:[%s7768_s0 + $0x270] sm:$0xf0] }
 0x1c0   :  { %v2014_v61 = vadd.f32 %v6184_v1, %v5896_v63  ;;  %v3894_v63 = vld [vmem:[%s7768_s0 + $0x2c4] sm:$0xf0] }
 0x1c1   :  { %v3024_v31 = vpop.f32.mrf.mxu0  ;;  %v3022_v34 = vadd.f32 %v3021_v28, %v2768_v0  ;;  %2301 = vmatmul.bf16.gmra.mxu1 %v3809_v2  ;;  %2555 = vmatmul.bf16.gmra.mxu2 %v3813_v43  ;;  %v4796_v28 = vld [vmem:[%s7768_s0 + $0x28c] sm:$0xf]  ;;  %v3833_v2 = vor.u32 %v4788_v18, %v3832_v8  ;;  %v3860_v18 = vld [vmem:[%s7768_s0 + $0x268] sm:$0xf] }
 0x1c2   :  { %v3877_v53 = vor.u32 %v4796_v28, %v3874_v19  ;;  %v2016_v28 = vadd.f32 %v6184_v1, %v5905_v25  ;;  %v4790_v19 = vld [vmem:[%s7768_s0 + $0x25c] sm:$0xf] }
 0x1c3   :  { %v3253_v38 = vmax.f32 %v3022_v34, 0.0  ;;  %v3849_v24 = vor.u32 %v4790_v19, %v3846_v57  ;;  %v4798_v19 = vld [vmem:[%s7768_s0 + $0x298] sm:$0xf0]  ;;  %v3880_v57 = vld [vmem:[%s7768_s0 + $0x290] sm:$0xf] }
 0x1c4   :  { %4679 = vmatmul.msk.bf16.gmra.mxu0 %vm1826_vm0, %v3821_v40  ;;  %v2516_v14 = vpop.f32.mrf.mxu2  ;;  %2824 = vmatmul.bf16.gmra.mxu3 %v3877_v53  ;;  %v3852_v53 = vld [vmem:[%s7768_s0 + $0x260] sm:$0xf] }
 0x1c5   :  { %v5019_v36 = vpack.c.bf16 %v3253_v38, %v3252_v48  ;;  %v2517_v58 = vadd.f32 %v2516_v14, %v2263_v3 }
 0x1c6   :  { %v2264_v13 = vpop.f32.mrf.mxu1 }
 0x1c7   :  { %5244 = vst [vmem:[%s7769_s3 + $0x20] sm:$0xff] %v5019_v36   ;;  %v2771_v26 = vadd.f32 %v6294_v21, %v2517_v58  ;;  %v2265_v23 = vadd.f32 %v2264_v13, %v2011_v46  ;;  %v6408_v40 = vpop.f32.mrf.mxu3 }
 0x1c9   :  { %v3026_v62 = vpop.f32.mrf.mxu0  ;;  %v3025_v52 = vadd.f32 %v3024_v31, %v2771_v26  ;;  %v4794_v26 = vld [vmem:[%s7768_s0 + $0x278] sm:$0xf0] }
 0x1cb   :  { %v3254_v48 = vmax.f32 %v3025_v52, 0.0 }
 0x1cc   :  { %v2518_v33 = vpop.f32.mrf.mxu2 }
 0x1cd   :  { %v2519_v45 = vadd.f32 %v2518_v33, %v2265_v23  ;;  %v3853_v33 = vor.u32 %v4793_v12, %v3852_v53  ;;  %v4799_v53 = vld [vmem:[%s7768_s0 + $0x2a0] sm:$0xf0] }
 0x1ce   :  { %v2267_v43 = vpop.f32.mrf.mxu1 }
 0x1cf   :  { %v2773_v21 = vadd.f32 %v6300_v54, %v2519_v45  ;;  %v2268_v3 = vadd.f32 %v2267_v43, %v2014_v61  ;;  %v6414_v58 = vpop.f32.mrf.mxu3 }
 0x1d1   :  { %v3029_v0 = vpop.f32.mrf.mxu0  ;;  %v3027_v34 = vadd.f32 %v3026_v62, %v2773_v21  ;;  %2306 = vmatmul.bf16.gmra.mxu1 %v3829_v30  ;;  %2560 = vmatmul.bf16.gmra.mxu2 %v3833_v2  ;;  %v4801_v62 = vld [vmem:[%s7768_s0 + $0x2b4] sm:$0xf]  ;;  %v3861_v30 = vor.u32 %v4794_v26, %v3860_v18  ;;  %v2019_v21 = vadd.f32 %v6184_v1, %v5937_v22  ;;  %v3914_v22 = vld [vmem:[%s7768_s0 + $0x2ec] sm:$0xf0] }
 0x1d2   :  { %v3897_v46 = vor.u32 %v4801_v62, %v3894_v63  ;;  %v3866_v63 = vld [vmem:[%s7768_s0 + $0x294] sm:$0xf0] }
 0x1d3   :  { %v3255_v38 = vmax.f32 %v3027_v34, 0.0 }
 0x1d4   :  { %4680 = vmatmul.msk.bf16.gmra.mxu0 %vm1826_vm0, %v3841_v35  ;;  %v2521_v14 = vpop.f32.mrf.mxu2  ;;  %2829 = vmatmul.bf16.gmra.mxu3 %v3897_v46 }
 0x1d5   :  { %v5024_v36 = vpack.c.bf16 %v3255_v38, %v3254_v48  ;;  %v2522_v54 = vadd.f32 %v2521_v14, %v2268_v3 }
 0x1d6   :  { %v2269_v13 = vpop.f32.mrf.mxu1 }
 0x1d7   :  { %5245 = vst [vmem:[%s7769_s3 + $0x28] sm:$0xff] %v5024_v36   ;;  %v2776_v8 = vadd.f32 %v6332_v37, %v2522_v54  ;;  %v2270_v25 = vadd.f32 %v2269_v13, %v2016_v28  ;;  %v6446_v2 = vpop.f32.mrf.mxu3  ;;  %v4806_v13 = vld [vmem:[%s7768_s0 + $0x2dc] sm:$0xf]  ;;  %v2021_v54 = vadd.f32 %v6184_v1, %v5946_v41  ;;  %v3872_v28 = vld [vmem:[%s7768_s0 + $0x288] sm:$0xf] }
 0x1d8   :  { %v3917_v62 = vor.u32 %v4806_v13, %v3914_v22  ;;  %v3873_v18 = vor.u32 %v4798_v19, %v3872_v28  ;;  %v3892_v13 = vld [vmem:[%s7768_s0 + $0x2b0] sm:$0xf]  ;;  %v4803_v22 = vld [vmem:[%s7768_s0 + $0x2c0] sm:$0xf0] }
 0x1d9   :  { %v3031_v31 = vpop.f32.mrf.mxu0  ;;  %v3030_v43 = vadd.f32 %v3029_v0, %v2776_v8 }
 0x1db   :  { %v3256_v34 = vmax.f32 %v3030_v43, 0.0 }
 0x1dc   :  { %v2523_v23 = vpop.f32.mrf.mxu2 }
 0x1dd   :  { %v2524_v47 = vadd.f32 %v2523_v23, %v2270_v25  ;;  %v3881_v23 = vor.u32 %v4799_v53, %v3880_v57 }
 0x1de   :  { %v2272_v45 = vpop.f32.mrf.mxu1 }
 0x1df   :  { %v2778_v37 = vadd.f32 %v6338_v50, %v2524_v47  ;;  %v2273_v14 = vadd.f32 %v2272_v45, %v2019_v21  ;;  %v6452_v3 = vpop.f32.mrf.mxu3 }
 0x1e1   :  { %v3034_v35 = vpop.f32.mrf.mxu0  ;;  %v3032_v52 = vadd.f32 %v3031_v31, %v2778_v37  ;;  %2311 = vmatmul.bf16.gmra.mxu1 %v3849_v24  ;;  %2565 = vmatmul.bf16.gmra.mxu2 %v3853_v33  ;;  %v4795_v31 = vld [vmem:[%s7768_s0 + $0x284] sm:$0xf] }
 0x1e2   :  { %v3869_v25 = vor.u32 %v4795_v31, %v3866_v63  ;;  %v3900_v31 = vld [vmem:[%s7768_s0 + $0x2b8] sm:$0xf] }
 0x1e3   :  { %v3257_v61 = vmax.f32 %v3032_v52, 0.0 }
 0x1e4   :  { %4681 = vmatmul.msk.bf16.gmra.mxu0 %vm1826_vm0, %v3861_v30  ;;  %v2526_v48 = vpop.f32.mrf.mxu2  ;;  %2834 = vmatmul.bf16.gmra.mxu3 %v3917_v62  ;;  %v2024_v30 = vadd.f32 %v6184_v1, %v5978_v56  ;;  %v3934_v56 = vld [vmem:[%s7768_s0 + $0x314] sm:$0xf0]  ;;  %v4804_v62 = vld [vmem:[%s7768_s0 + $0x2c8] sm:$0xf0] }
 0x1e5   :  { %v5029_v38 = vpack.c.bf16 %v3257_v61, %v3256_v34  ;;  %v2527_v50 = vadd.f32 %v2526_v48, %v2273_v14  ;;  %v2026_v14 = vadd.f32 %v6184_v1, %v5987_v29  ;;  %v3901_v57 = vor.u32 %v4804_v62, %v3900_v31 }
 0x1e6   :  { %v2274_v36 = vpop.f32.mrf.mxu1 }
 0x1e7   :  { %5246 = vst [vmem:[%s7769_s3 + $0x30] sm:$0xff] %v5029_v38   ;;  %v2781_v46 = vadd.f32 %v6370_v60, %v2527_v50  ;;  %v2275_v41 = vadd.f32 %v2274_v36, %v2021_v54  ;;  %v6484_v47 = vpop.f32.mrf.mxu3  ;;  %v4811_v38 = vld [vmem:[%s7768_s0 + $0x304] sm:$0xf]  ;;  %v4800_v36 = vld [vmem:[%s7768_s0 + $0x2ac] sm:$0xf] }
 0x1e8   :  { %v3937_v50 = vor.u32 %v4811_v38, %v3934_v56  ;;  %v3920_v56 = vld [vmem:[%s7768_s0 + $0x2e0] sm:$0xf] }
 0x1e9   :  { %v3036_v0 = vpop.f32.mrf.mxu0  ;;  %v3035_v24 = vadd.f32 %v3034_v35, %v2781_v46  ;;  %v3893_v46 = vor.u32 %v4803_v22, %v3892_v13 }
 0x1eb   :  { %v3258_v43 = vmax.f32 %v3035_v24, 0.0 }
 0x1ec   :  { %v2528_v12 = vpop.f32.mrf.mxu2 }
 0x1ed   :  { %v2529_v8 = vadd.f32 %v2528_v12, %v2275_v41 }
 0x1ee   :  { %v2277_v26 = vpop.f32.mrf.mxu1 }
 0x1ef   :  { %v2783_v60 = vadd.f32 %v6376_v42, %v2529_v8  ;;  %v2278_v34 = vadd.f32 %v2277_v26, %v2024_v30  ;;  %v6490_v48 = vpop.f32.mrf.mxu3 }
 0x1f1   :  { %v3039_v33 = vpop.f32.mrf.mxu0  ;;  %v3037_v45 = vadd.f32 %v3036_v0, %v2783_v60  ;;  %2316 = vmatmul.bf16.gmra.mxu1 %v3869_v25  ;;  %2570 = vmatmul.bf16.gmra.mxu2 %v3873_v18  ;;  %v3886_v0 = vld [vmem:[%s7768_s0 + $0x2bc] sm:$0xf0]  ;;  %v2029_v18 = vadd.f32 %v6184_v1, %v6019_v9 }
 0x1f2   :  { %v3889_v19 = vor.u32 %v4800_v36, %v3886_v0  ;;  %v3954_v9 = vld [vmem:[%s7768_s0 + $0x33c] sm:$0xf0] }
 0x1f3   :  { %v3259_v37 = vmax.f32 %v3037_v45, 0.0 }
 0x1f4   :  { %4682 = vmatmul.msk.bf16.gmra.mxu0 %vm1826_vm0, %v3881_v23  ;;  %v2531_v52 = vpop.f32.mrf.mxu2  ;;  %2839 = vmatmul.bf16.gmra.mxu3 %v3937_v50 }
 0x1f5   :  { %v5034_v21 = vpack.c.bf16 %v3259_v37, %v3258_v43  ;;  %v2532_v42 = vadd.f32 %v2531_v52, %v2278_v34  ;;  %v4816_v37 = vld [vmem:[%s7768_s0 + $0x32c] sm:$0xf]  ;;  %v2031_v52 = vadd.f32 %v6184_v1, %v6028_v5 }
 0x1f6   :  { %v2279_v61 = vpop.f32.mrf.mxu1  ;;  %v3957_v34 = vor.u32 %v4816_v37, %v3954_v9  ;;  %v4814_v37 = vld [vmem:[%s7768_s0 + $0x318] sm:$0xf0] }
 0x1f7   :  { %5247 = vst [vmem:[%s7769_s3 + $0x38] sm:$0xff] %v5034_v21   ;;  %v2786_v54 = vadd.f32 %v6408_v40, %v2532_v42  ;;  %v2280_v29 = vadd.f32 %v2279_v61, %v2026_v14  ;;  %v6522_v53 = vpop.f32.mrf.mxu3  ;;  %v4805_v21 = vld [vmem:[%s7768_s0 + $0x2d4] sm:$0xf]  ;;  %v3906_v61 = vld [vmem:[%s7768_s0 + $0x2e4] sm:$0xf0] }
 0x1f8   :  { %v3912_v42 = vld [vmem:[%s7768_s0 + $0x2d8] sm:$0xf]  ;;  %v4809_v14 = vld [vmem:[%s7768_s0 + $0x2f0] sm:$0xf0]  ;;  %v3909_v0 = vor.u32 %v4805_v21, %v3906_v61 }
 0x1f9   :  { %v3041_v35 = vpop.f32.mrf.mxu0  ;;  %v3040_v12 = vadd.f32 %v3039_v33, %v2786_v54  ;;  %v3921_v54 = vor.u32 %v4809_v14, %v3920_v56  ;;  %v2039_v14 = vadd.f32 %v6184_v1, %v6101_v15  ;;  %v3994_v15 = vld [vmem:[%s7768_s0 + $0x38c] sm:$0xf0] }
 0x1fb   :  { %v3260_v26 = vmax.f32 %v3040_v12, 0.0 }
 0x1fc   :  { %v2533_v63 = vpop.f32.mrf.mxu2 }
 0x1fd   :  { %v2534_v28 = vadd.f32 %v2533_v63, %v2280_v29 }
 0x1fe   :  { %v2282_v41 = vpop.f32.mrf.mxu1 }
 0x1ff   :  { %v2788_v40 = vadd.f32 %v6414_v58, %v2534_v28  ;;  %v2283_v45 = vadd.f32 %v2282_v41, %v2029_v18  ;;  %v6528_v43 = vpop.f32.mrf.mxu3  ;;  %v2034_v28 = vadd.f32 %v6184_v1, %v6060_v20  ;;  %v4821_v18 = vld [vmem:[%s7768_s0 + $0x354] sm:$0xf]  ;;  %v3974_v20 = vld [vmem:[%s7768_s0 + $0x364] sm:$0xf0] }
 0x201   :  { %v3044_v8 = vpop.f32.mrf.mxu0  ;;  %v3042_v25 = vadd.f32 %v3041_v35, %v2788_v40  ;;  %2321 = vmatmul.bf16.gmra.mxu1 %v3889_v19  ;;  %2575 = vmatmul.bf16.gmra.mxu2 %v3893_v46  ;;  %v4808_v35 = vld [vmem:[%s7768_s0 + $0x2e8] sm:$0xf0] }
 0x202   :  { %v3913_v13 = vor.u32 %v4808_v35, %v3912_v42 }
 0x203   :  { %v3261_v23 = vmax.f32 %v3042_v25, 0.0 }
 0x204   :  { %4683 = vmatmul.msk.bf16.gmra.mxu0 %vm1826_vm0, %v3901_v57  ;;  %v2536_v24 = vpop.f32.mrf.mxu2  ;;  %2844 = vmatmul.bf16.gmra.mxu3 %v3957_v34 }
 0x205   :  { %v5039_v60 = vpack.c.bf16 %v3261_v23, %v3260_v26  ;;  %v2537_v58 = vadd.f32 %v2536_v24, %v2283_v45  ;;  %v2036_v26 = vadd.f32 %v6184_v1, %v6069_v17  ;;  %v4810_v23 = vld [vmem:[%s7768_s0 + $0x2fc] sm:$0xf]  ;;  %v3977_v24 = vor.u32 %v4821_v18, %v3974_v20  ;;  %v3932_v45 = vld [vmem:[%s7768_s0 + $0x300] sm:$0xf] }
 0x206   :  { %v2284_v30 = vpop.f32.mrf.mxu1 }
 0x207   :  { %5248 = vst [vmem:[%s7769_s3 + $0x40] sm:$0xff] %v5039_v60   ;;  %v2791_v38 = vadd.f32 %v6446_v2, %v2537_v58  ;;  %v2285_v5 = vadd.f32 %v2284_v30, %v2031_v52  ;;  %v6560_v29 = vpop.f32.mrf.mxu3  ;;  %v3926_v60 = vld [vmem:[%s7768_s0 + $0x30c] sm:$0xf0]  ;;  %v4813_v30 = vld [vmem:[%s7768_s0 + $0x310] sm:$0xf0] }
 0x208   :  { %v3929_v21 = vor.u32 %v4810_v23, %v3926_v60  ;;  %v3933_v34 = vor.u32 %v4813_v30, %v3932_v45 }
 0x209   :  { %v3046_v33 = vpop.f32.mrf.mxu0  ;;  %v3045_v31 = vadd.f32 %v3044_v8, %v2791_v38 }
 0x20b   :  { %v3262_v19 = vmax.f32 %v3045_v31, 0.0 }
 0x20c   :  { %v2538_v36 = vpop.f32.mrf.mxu2 }
 0x20d   :  { %v2539_v50 = vadd.f32 %v2538_v36, %v2285_v5 }
 0x20e   :  { %v2287_v22 = vpop.f32.mrf.mxu1 }
 0x20f   :  { %v2793_v2 = vadd.f32 %v6452_v3, %v2539_v50  ;;  %v2288_v12 = vadd.f32 %v2287_v22, %v2034_v28  ;;  %v6566_v25 = vpop.f32.mrf.mxu3  ;;  %v4815_v28 = vld [vmem:[%s7768_s0 + $0x324] sm:$0xf] }
 0x211   :  { %v3049_v62 = vpop.f32.mrf.mxu0  ;;  %v3047_v63 = vadd.f32 %v3046_v33, %v2793_v2  ;;  %2326 = vmatmul.bf16.gmra.mxu1 %v3909_v0  ;;  %2580 = vmatmul.bf16.gmra.mxu2 %v3913_v13  ;;  %v3940_v33 = vld [vmem:[%s7768_s0 + $0x308] sm:$0xf] }
 0x212   :  { %v3941_v42 = vor.u32 %v4814_v37, %v3940_v33 }
 0x213   :  { %v3263_v46 = vmax.f32 %v3047_v63, 0.0  ;;  %v2041_v63 = vadd.f32 %v6184_v1, %v6110_v51 }
 0x214   :  { %4684 = vmatmul.msk.bf16.gmra.mxu0 %vm1826_vm0, %v3921_v54  ;;  %v2541_v41 = vpop.f32.mrf.mxu2  ;;  %2849 = vmatmul.bf16.gmra.mxu3 %v3977_v24 }
 0x215   :  { %v5044_v57 = vpack.c.bf16 %v3263_v46, %v3262_v19  ;;  %v2542_v3 = vadd.f32 %v2541_v41, %v2288_v12  ;;  %v3946_v46 = vld [vmem:[%s7768_s0 + $0x334] sm:$0xf0]  ;;  %v3952_v41 = vld [vmem:[%s7768_s0 + $0x328] sm:$0xf] }
 0x216   :  { %v2289_v40 = vpop.f32.mrf.mxu1  ;;  %v3949_v20 = vor.u32 %v4815_v28, %v3946_v46 }
 0x217   :  { %5249 = vst [vmem:[%s7769_s3 + $0x48] sm:$0xff] %v5044_v57   ;;  %v2796_v58 = vadd.f32 %v6484_v47, %v2542_v3  ;;  %v2290_v17 = vadd.f32 %v2289_v40, %v2036_v26  ;;  %v6598_v35 = vpop.f32.mrf.mxu3  ;;  %v4818_v57 = vld [vmem:[%s7768_s0 + $0x338] sm:$0xf0]  ;;  %v3960_v40 = vld [vmem:[%s7768_s0 + $0x330] sm:$0xf] }
 0x218   :  { %v4819_v3 = vld [vmem:[%s7768_s0 + $0x340] sm:$0xf0]  ;;  %v3953_v26 = vor.u32 %v4818_v57, %v3952_v41  ;;  %v2049_v57 = vadd.f32 %v6184_v1, %v5637_v6  ;;  %v4034_v6 = vld [vmem:[%s7768_s0 + $0x3dc] sm:$0xf0] }
 0x219   :  { %v3051_v8 = vpop.f32.mrf.mxu0  ;;  %v3050_v38 = vadd.f32 %v3049_v62, %v2796_v58  ;;  %v4826_v62 = vld [vmem:[%s7768_s0 + $0x37c] sm:$0xf]  ;;  %v3961_v24 = vor.u32 %v4819_v3, %v3960_v40 }
 0x21a   :  { %v3997_v19 = vor.u32 %v4826_v62, %v3994_v15 }
 0x21b   :  { %v3264_v36 = vmax.f32 %v3050_v38, 0.0  ;;  %v4831_v38 = vld [vmem:[%s7768_s0 + $0x3a4] sm:$0xf] }
 0x21c   :  { %v2543_v9 = vpop.f32.mrf.mxu2 }
 0x21d   :  { %v2544_v52 = vadd.f32 %v2543_v9, %v2290_v17  ;;  %v2044_v17 = vadd.f32 %v6184_v1, %v6142_v10  ;;  %v4014_v10 = vld [vmem:[%s7768_s0 + $0x3b4] sm:$0xf0] }
 0x21e   :  { %v2292_v61 = vpop.f32.mrf.mxu1 }
 0x21f   :  { %v2798_v47 = vadd.f32 %v6490_v48, %v2544_v52  ;;  %v2293_v22 = vadd.f32 %v2292_v61, %v2039_v14  ;;  %v6604_v31 = vpop.f32.mrf.mxu3  ;;  %v3966_v14 = vld [vmem:[%s7768_s0 + $0x35c] sm:$0xf0] }
 0x221   :  { %v3054_v5 = vpop.f32.mrf.mxu0  ;;  %v3052_v56 = vadd.f32 %v3051_v8, %v2798_v47  ;;  %2331 = vmatmul.bf16.gmra.mxu1 %v3929_v21  ;;  %2585 = vmatmul.bf16.gmra.mxu2 %v3933_v34  ;;  %v2046_v47 = vadd.f32 %v6184_v1, %v6151_v59 }
 0x223   :  { %v3265_v50 = vmax.f32 %v3052_v56, 0.0  ;;  %v4017_v56 = vor.u32 %v4831_v38, %v4014_v10 }
 0x224   :  { %4685 = vmatmul.msk.bf16.gmra.mxu0 %vm1826_vm0, %v3941_v42  ;;  %v2546_v0 = vpop.f32.mrf.mxu2  ;;  %2854 = vmatmul.bf16.gmra.mxu3 %v3997_v19 }
 0x225   :  { %v5049_v13 = vpack.c.bf16 %v3265_v50, %v3264_v36  ;;  %v2547_v48 = vadd.f32 %v2546_v0, %v2293_v22  ;;  %v3972_v36 = vld [vmem:[%s7768_s0 + $0x350] sm:$0xf]  ;;  %v4823_v50 = vld [vmem:[%s7768_s0 + $0x360] sm:$0xf0]  ;;  %v4824_v22 = vld [vmem:[%s7768_s0 + $0x368] sm:$0xf0] }
 0x226   :  { %v2294_v54 = vpop.f32.mrf.mxu1  ;;  %v3973_v62 = vor.u32 %v4823_v50, %v3972_v36 }
 0x227   :  { %5250 = vst [vmem:[%s7769_s3 + $0x50] sm:$0xff] %v5049_v13   ;;  %v2801_v12 = vadd.f32 %v6522_v53, %v2547_v48  ;;  %v2295_v51 = vadd.f32 %v2294_v54, %v2041_v63  ;;  %v6636_v60 = vpop.f32.mrf.mxu3  ;;  %v3980_v13 = vld [vmem:[%s7768_s0 + $0x358] sm:$0xf] }
 0x228   :  { %v3981_v63 = vor.u32 %v4824_v22, %v3980_v13 }
 0x229   :  { %v3056_v2 = vpop.f32.mrf.mxu0  ;;  %v3055_v45 = vadd.f32 %v3054_v5, %v2801_v12  ;;  %v4820_v5 = vld [vmem:[%s7768_s0 + $0x34c] sm:$0xf] }
 0x22b   :  { %v3266_v33 = vmax.f32 %v3055_v45, 0.0  ;;  %v4825_v45 = vld [vmem:[%s7768_s0 + $0x374] sm:$0xf] }
 0x22c   :  { %v2548_v8 = vpop.f32.mrf.mxu2 }
 0x22d   :  { %v2549_v18 = vadd.f32 %v2548_v8, %v2295_v51 }
 0x22e   :  { %v2297_v23 = vpop.f32.mrf.mxu1 }
 0x22f   :  { %v2803_v53 = vadd.f32 %v6528_v43, %v2549_v18  ;;  %v2298_v21 = vadd.f32 %v2297_v23, %v2044_v17  ;;  %v6642_v61 = vpop.f32.mrf.mxu3  ;;  %v4836_v23 = vld [vmem:[%s7768_s0 + $0x3cc] sm:$0xf] }
 0x230   :  { %v4828_v17 = vld [vmem:[%s7768_s0 + $0x388] sm:$0xf0] }
 0x231   :  { %v3059_v30 = vpop.f32.mrf.mxu0  ;;  %v3057_v58 = vadd.f32 %v3056_v2, %v2803_v53  ;;  %2336 = vmatmul.bf16.gmra.mxu1 %v3949_v20  ;;  %2590 = vmatmul.bf16.gmra.mxu2 %v3953_v26  ;;  %v3969_v2 = vor.u32 %v4820_v5, %v3966_v14  ;;  %v4037_v53 = vor.u32 %v4836_v23, %v4034_v6 }
 0x233   :  { %v3267_v37 = vmax.f32 %v3057_v58, 0.0  ;;  %v3992_v58 = vld [vmem:[%s7768_s0 + $0x378] sm:$0xf] }
 0x234   :  { %4686 = vmatmul.msk.bf16.gmra.mxu0 %vm1826_vm0, %v3961_v24  ;;  %v2551_v9 = vpop.f32.mrf.mxu2  ;;  %2859 = vmatmul.bf16.gmra.mxu3 %v4017_v56  ;;  %v2051_v24 = vadd.f32 %v6184_v1, %v5646_v11  ;;  %v4000_v1 = vld [vmem:[%s7768_s0 + $0x380] sm:$0xf] }
 0x235   :  { %v5054_v52 = vpack.c.bf16 %v3267_v37, %v3266_v33  ;;  %v2552_v43 = vadd.f32 %v2551_v9, %v2298_v21  ;;  %v4829_v37 = vld [vmem:[%s7768_s0 + $0x390] sm:$0xf0]  ;;  %v6719_v56 = vld [vmem:[%s7767_s2] ss:$0 sm:$0xff] }
 0x236   :  { %v2299_v34 = vpop.f32.mrf.mxu1  ;;  %v2054_v14 = vadd.f32 %v6719_v56, %v5682_v27  ;;  %v4054_v27 = vld [vmem:[%s7768_s0 + $0x404] sm:$0xf0] }
 0x237   :  { %5251 = vst [vmem:[%s7769_s3 + $0x58] sm:$0xff] %v5054_v52   ;;  %v2806_v0 = vadd.f32 %v6560_v29, %v2552_v43  ;;  %v2300_v59 = vadd.f32 %v2299_v34, %v2046_v47  ;;  %v6674_v28 = vpop.f32.mrf.mxu3  ;;  %v3993_v34 = vor.u32 %v4828_v17, %v3992_v58 }
 0x239   :  { %v3061_v42 = vpop.f32.mrf.mxu0  ;;  %v3060_v19 = vadd.f32 %v3059_v30, %v2806_v0  ;;  %v3986_v30 = vld [vmem:[%s7768_s0 + $0x384] sm:$0xf0] }
 0x23a   :  { %v3989_v21 = vor.u32 %v4825_v45, %v3986_v30  ;;  %v2059_v45 = vadd.f32 %v6719_v56, %v5728_v49  ;;  %v4074_v49 = vld [vmem:[%s7768_s0 + $0x42c] sm:$0xf0] }
 0x23b   :  { %v3268_v12 = vmax.f32 %v3060_v19, 0.0  ;;  %v4006_v19 = vld [vmem:[%s7768_s0 + $0x3ac] sm:$0xf0] }
 0x23c   :  { %v2553_v54 = vpop.f32.mrf.mxu2 }
 0x23d   :  { %v2554_v48 = vadd.f32 %v2553_v54, %v2300_v59 }
 0x23e   :  { %v2302_v15 = vpop.f32.mrf.mxu1 }
 0x23f   :  { %v2808_v29 = vadd.f32 %v6566_v25, %v2554_v48  ;;  %v2303_v8 = vadd.f32 %v2302_v15, %v2049_v57  ;;  %v6680_v20 = vpop.f32.mrf.mxu3  ;;  %v4830_v15 = vld [vmem:[%s7768_s0 + $0x39c] sm:$0xf]  ;;  %v4020_v57 = vld [vmem:[%s7768_s0 + $0x3a8] sm:$0xf] }
 0x241   :  { %v3064_v46 = vpop.f32.mrf.mxu0  ;;  %v3062_v41 = vadd.f32 %v3061_v42, %v2808_v29  ;;  %2341 = vmatmul.bf16.gmra.mxu1 %v3969_v2  ;;  %2595 = vmatmul.bf16.gmra.mxu2 %v3973_v62  ;;  %v4001_v42 = vor.u32 %v4829_v37, %v4000_v1  ;;  %v4841_v2 = vld [vmem:[%s7768_s0 + $0x3f4] sm:$0xf]  ;;  %v2056_v62 = vadd.f32 %v6719_v56, %v5690_v32  ;;  %v4012_v29 = vld [vmem:[%s7768_s0 + $0x3a0] sm:$0xf] }
 0x243   :  { %v3269_v51 = vmax.f32 %v3062_v41, 0.0 }
 0x244   :  { %4687 = vmatmul.msk.bf16.gmra.mxu0 %vm1826_vm0, %v3981_v63  ;;  %v2556_v40 = vpop.f32.mrf.mxu2  ;;  %2864 = vmatmul.bf16.gmra.mxu3 %v4037_v53  ;;  %v4057_v63 = vor.u32 %v4841_v2, %v4054_v27  ;;  %v2064_v27 = vadd.f32 %v6719_v56, %v5771_v7  ;;  %v4094_v7 = vld [vmem:[%s7768_s0 + $0x454] sm:$0xf0] }
 0x245   :  { %v5059_v3 = vpack.c.bf16 %v3269_v51, %v3268_v12  ;;  %v2557_v25 = vadd.f32 %v2556_v40, %v2303_v8  ;;  %v4834_v12 = vld [vmem:[%s7768_s0 + $0x3b8] sm:$0xf0] }
 0x246   :  { %v2304_v18 = vpop.f32.mrf.mxu1 }
 0x247   :  { %5252 = vst [vmem:[%s7769_s3 + $0x60] sm:$0xff] %v5059_v3   ;;  %v2811_v33 = vadd.f32 %v6598_v35, %v2557_v25  ;;  %v2305_v11 = vadd.f32 %v2304_v18, %v2051_v24  ;;  %v6712_v38 = vpop.f32.mrf.mxu3  ;;  %v4009_v3 = vor.u32 %v4830_v15, %v4006_v19  ;;  %v4021_v25 = vor.u32 %v4834_v12, %v4020_v57  ;;  %v4851_v57 = vld [vmem:[%s7768_s0 + $0x444] sm:$0xf] }
 0x248   :  { %v2066_v12 = vadd.f32 %v6719_v56, %v5779_v16 }
 0x249   :  { %v3066_v26 = vpop.f32.mrf.mxu0  ;;  %v3065_v10 = vadd.f32 %v3064_v46, %v2811_v33  ;;  %v4833_v46 = vld [vmem:[%s7768_s0 + $0x3b0] sm:$0xf0] }
 0x24a   :  { %v4013_v8 = vor.u32 %v4833_v46, %v4012_v29 }
 0x24b   :  { %v3270_v36 = vmax.f32 %v3065_v10, 0.0  ;;  %v4838_v10 = vld [vmem:[%s7768_s0 + $0x3d8] sm:$0xf0] }
 0x24c   :  { %v2558_v9 = vpop.f32.mrf.mxu2 }
 0x24d   :  { %v2559_v52 = vadd.f32 %v2558_v9, %v2305_v11  ;;  %v4846_v9 = vld [vmem:[%s7768_s0 + $0x41c] sm:$0xf] }
 0x24e   :  { %v2307_v43 = vpop.f32.mrf.mxu1 }
 0x24f   :  { %v2813_v35 = vadd.f32 %v6604_v31, %v2559_v52  ;;  %v2308_v13 = vadd.f32 %v2307_v43, %v2054_v14  ;;  %v6723_v22 = vpop.f32.mrf.mxu3  ;;  %v2061_v52 = vadd.f32 %v6719_v56, %v5739_v55  ;;  %v4026_v43 = vld [vmem:[%s7768_s0 + $0x3d4] sm:$0xf0] }
 0x251   :  { %v3069_v47 = vpop.f32.mrf.mxu0  ;;  %v3067_v5 = vadd.f32 %v3066_v26, %v2813_v35  ;;  %2346 = vmatmul.bf16.gmra.mxu1 %v3989_v21  ;;  %2600 = vmatmul.bf16.gmra.mxu2 %v3993_v34  ;;  %v4835_v21 = vld [vmem:[%s7768_s0 + $0x3c4] sm:$0xf]  ;;  %v4077_v34 = vor.u32 %v4846_v9, %v4074_v49 }
 0x253   :  { %v3271_v50 = vmax.f32 %v3067_v5, 0.0  ;;  %v4839_v5 = vld [vmem:[%s7768_s0 + $0x3e0] sm:$0xf0] }
 0x254   :  { %4688 = vmatmul.msk.bf16.gmra.mxu0 %vm1826_vm0, %v4001_v42  ;;  %v2561_v0 = vpop.f32.mrf.mxu2  ;;  %2869 = vmatmul.bf16.gmra.mxu3 %v4057_v63  ;;  %v4032_v42 = vld [vmem:[%s7768_s0 + $0x3c8] sm:$0xf] }
 0x255   :  { %v5064_v59 = vpack.c.bf16 %v3271_v50, %v3270_v36  ;;  %v2562_v54 = vadd.f32 %v2561_v0, %v2308_v13  ;;  %v4029_v50 = vor.u32 %v4835_v21, %v4026_v43  ;;  %v4033_v0 = vor.u32 %v4838_v10, %v4032_v42 }
 0x256   :  { %v2309_v31 = vpop.f32.mrf.mxu1 }
 0x257   :  { %5253 = vst [vmem:[%s7769_s3 + $0x68] sm:$0xff] %v5064_v59   ;;  %v2816_v41 = vadd.f32 %v6636_v60, %v2562_v54  ;;  %v2310_v32 = vadd.f32 %v2309_v31, %v2056_v62  ;;  %v6755_v26 = vpop.f32.mrf.mxu3 }
 0x259   :  { %v3071_v48 = vpop.f32.mrf.mxu0  ;;  %v3070_v23 = vadd.f32 %v3069_v47, %v2816_v41  ;;  %v4040_v47 = vld [vmem:[%s7768_s0 + $0x3d0] sm:$0xf] }
 0x25a   :  { %v4041_v13 = vor.u32 %v4839_v5, %v4040_v47  ;;  %v4845_v47 = vld [vmem:[%s7768_s0 + $0x414] sm:$0xf] }
 0x25b   :  { %v3272_v53 = vmax.f32 %v3070_v23, 0.0  ;;  %v4060_v23 = vld [vmem:[%s7768_s0 + $0x3f8] sm:$0xf] }
 0x25c   :  { %v2563_v51 = vpop.f32.mrf.mxu2 }
 0x25d   :  { %v2564_v40 = vadd.f32 %v2563_v51, %v2310_v32  ;;  %v4840_v51 = vld [vmem:[%s7768_s0 + $0x3ec] sm:$0xf] }
 0x25e   :  { %v2312_v18 = vpop.f32.mrf.mxu1 }
 0x25f   :  { %v2818_v60 = vadd.f32 %v6642_v61, %v2564_v40  ;;  %v2313_v33 = vadd.f32 %v2312_v18, %v2059_v45  ;;  %v6761_v1 = vpop.f32.mrf.mxu3  ;;  %v4097_v40 = vor.u32 %v4851_v57, %v4094_v7  ;;  %v4843_v18 = vld [vmem:[%s7768_s0 + $0x400] sm:$0xf0] }
 0x261   :  { %v3074_v6 = vpop.f32.mrf.mxu0  ;;  %v3072_v24 = vadd.f32 %v3071_v48, %v2818_v60  ;;  %2351 = vmatmul.bf16.gmra.mxu1 %v4009_v3  ;;  %2605 = vmatmul.bf16.gmra.mxu2 %v4013_v8  ;;  %v4046_v3 = vld [vmem:[%s7768_s0 + $0x3fc] sm:$0xf0]  ;;  %v4052_v8 = vld [vmem:[%s7768_s0 + $0x3f0] sm:$0xf]  ;;  %v4844_v60 = vld [vmem:[%s7768_s0 + $0x408] sm:$0xf0] }
 0x262   :  { %v4049_v45 = vor.u32 %v4840_v51, %v4046_v3 }
 0x263   :  { %v3273_v30 = vmax.f32 %v3072_v24, 0.0 }
 0x264   :  { %4689 = vmatmul.msk.bf16.gmra.mxu0 %vm1826_vm0, %v4021_v25  ;;  %v2566_v58 = vpop.f32.mrf.mxu2  ;;  %2874 = vmatmul.bf16.gmra.mxu3 %v4077_v34 }
 0x265   :  { %v5069_v17 = vpack.c.bf16 %v3273_v30, %v3272_v53  ;;  %v2567_v61 = vadd.f32 %v2566_v58, %v2313_v33  ;;  %v4053_v53 = vor.u32 %v4843_v18, %v4052_v8  ;;  %v4061_v58 = vor.u32 %v4844_v60, %v4060_v23  ;;  %v4861_v8 = vld [vmem:[%s7768_s0 + $0x494] sm:$0xf]  ;;  %v7831_v18 = vld [vmem:[#allocation22_spill] sm:$0xff]  ;;  %v4086_v60 = vld [vmem:[%s7768_s0 + $0x44c] sm:$0xf0] }
 0x266   :  { %v2314_v11 = vpop.f32.mrf.mxu1 }
 0x267   :  { %5254 = vst [vmem:[%s7769_s3 + $0x70] sm:$0xff] %v5069_v17   ;;  %v2821_v35 = vadd.f32 %v6674_v28, %v2567_v61  ;;  %v2315_v55 = vadd.f32 %v2314_v11, %v2061_v52  ;;  %v6793_v31 = vpop.f32.mrf.mxu3 }
 0x269   :  { %v3076_v37 = vpop.f32.mrf.mxu0  ;;  %v3075_v54 = vadd.f32 %v3074_v6, %v2821_v35  ;;  %v4856_v35 = vld [vmem:[%s7768_s0 + $0x46c] sm:$0xf] }
 0x26b   :  { %v3274_v62 = vmax.f32 %v3075_v54, 0.0 }
 0x26c   :  { %v2568_v14 = vpop.f32.mrf.mxu2 }
 0x26d   :  { %v2569_v36 = vadd.f32 %v2568_v14, %v2315_v55  ;;  %v2071_v55 = vadd.f32 %v6719_v56, %v5819_v44  ;;  %v4066_v14 = vld [vmem:[%s7768_s0 + $0x424] sm:$0xf0] }
 0x26e   :  { %v2317_v59 = vpop.f32.mrf.mxu1 }
 0x26f   :  { %v2823_v28 = vadd.f32 %v6680_v20, %v2569_v36  ;;  %v2318_v29 = vadd.f32 %v2317_v59, %v2064_v27  ;;  %v6799_v41 = vpop.f32.mrf.mxu3  ;;  %v4072_v36 = vld [vmem:[%s7768_s0 + $0x418] sm:$0xf]  ;;  %v4080_v59 = vld [vmem:[%s7768_s0 + $0x420] sm:$0xf] }
 0x271   :  { %v3079_v48 = vpop.f32.mrf.mxu0  ;;  %v3077_v2 = vadd.f32 %v3076_v37, %v2823_v28  ;;  %2356 = vmatmul.bf16.gmra.mxu1 %v4029_v50  ;;  %2610 = vmatmul.bf16.gmra.mxu2 %v4033_v0  ;;  %v2069_v37 = vadd.f32 %v6719_v56, %v5811_v39  ;;  %v4114_v39 = vld [vmem:[%s7768_s0 + $0x47c] sm:$0xf0]  ;;  %v4848_v50 = vld [vmem:[%s7768_s0 + $0x428] sm:$0xf0] }
 0x272   :  { %v4117_v5 = vor.u32 %v4856_v35, %v4114_v39 }
 0x273   :  { %v3275_v15 = vmax.f32 %v3077_v2, 0.0  ;;  %v4073_v2 = vor.u32 %v4848_v50, %v4072_v36  ;;  %v4866_v50 = vld [vmem:[%s7768_s0 + $0x4bc] sm:$0xf] }
 0x274   :  { %4690 = vmatmul.msk.bf16.gmra.mxu0 %vm1826_vm0, %v4041_v13  ;;  %v2571_v63 = vpop.f32.mrf.mxu2  ;;  %2879 = vmatmul.bf16.gmra.mxu3 %v4097_v40  ;;  %v4849_v13 = vld [vmem:[%s7768_s0 + $0x430] sm:$0xf0] }
 0x275   :  { %v5074_v19 = vpack.c.bf16 %v3275_v15, %v3274_v62  ;;  %v2572_v20 = vadd.f32 %v2571_v63, %v2318_v29  ;;  %v4081_v62 = vor.u32 %v4849_v13, %v4080_v59  ;;  %v4855_v13 = vld [vmem:[%s7768_s0 + $0x464] sm:$0xf] }
 0x276   :  { %v2319_v46 = vpop.f32.mrf.mxu1 }
 0x277   :  { %5255 = vst [vmem:[%s7769_s3 + $0x78] sm:$0xff] %v5074_v19   ;;  %v2826_v25 = vadd.f32 %v6712_v38, %v2572_v20  ;;  %v2320_v16 = vadd.f32 %v2319_v46, %v2066_v12  ;;  %v6831_v17 = vpop.f32.mrf.mxu3  ;;  %v2074_v46 = vadd.f32 %v6719_v56, %v5851_v4  ;;  %v4134_v4 = vld [vmem:[%s7768_s0 + $0x4a4] sm:$0xf0] }
 0x278   :  { %v4137_v23 = vor.u32 %v4861_v8, %v4134_v4 }
 0x279   :  { %v3081_v32 = vpop.f32.mrf.mxu0  ;;  %v3080_v33 = vadd.f32 %v3079_v48, %v2826_v25  ;;  %v4069_v48 = vor.u32 %v4845_v47, %v4066_v14  ;;  %v2076_v25 = vadd.f32 %v6719_v56, %v7831_v18 }
 0x27b   :  { %v3276_v9 = vmax.f32 %v3080_v33, 0.0 }
 0x27c   :  { %v2573_v6 = vpop.f32.mrf.mxu2 }
 0x27d   :  { %v2574_v24 = vadd.f32 %v2573_v6, %v2320_v16  ;;  %v4850_v16 = vld [vmem:[%s7768_s0 + $0x43c] sm:$0xf]  ;;  %v4092_v6 = vld [vmem:[%s7768_s0 + $0x440] sm:$0xf] }
 0x27e   :  { %v2322_v30 = vpop.f32.mrf.mxu1 }
 0x27f   :  { %v2828_v38 = vadd.f32 %v6723_v22, %v2574_v24  ;;  %v2323_v34 = vadd.f32 %v2322_v30, %v2069_v37  ;;  %v6837_v42 = vpop.f32.mrf.mxu3  ;;  %v4853_v24 = vld [vmem:[%s7768_s0 + $0x450] sm:$0xf0]  ;;  %v4100_v30 = vld [vmem:[%s7768_s0 + $0x448] sm:$0xf] }
 0x281   :  { %v3084_v11 = vpop.f32.mrf.mxu0  ;;  %v3082_v61 = vadd.f32 %v3081_v32, %v2828_v38  ;;  %2361 = vmatmul.bf16.gmra.mxu1 %v4049_v45  ;;  %2615 = vmatmul.bf16.gmra.mxu2 %v4053_v53 }
 0x283   :  { %v3277_v49 = vmax.f32 %v3082_v61, 0.0  ;;  %v4093_v61 = vor.u32 %v4853_v24, %v4092_v6 }
 0x284   :  { %4691 = vmatmul.msk.bf16.gmra.mxu0 %vm1826_vm0, %v4061_v58  ;;  %v2576_v52 = vpop.f32.mrf.mxu2  ;;  %2884 = vmatmul.bf16.gmra.mxu3 %v4117_v5  ;;  %v4854_v58 = vld [vmem:[%s7768_s0 + $0x458] sm:$0xf0] }
 0x285   :  { %v5079_v21 = vpack.c.bf16 %v3277_v49, %v3276_v9  ;;  %v2577_v22 = vadd.f32 %v2576_v52, %v2323_v34  ;;  %v4101_v9 = vor.u32 %v4854_v58, %v4100_v30  ;;  %v7835_v30 = vld [vmem:[#allocation34_spill] sm:$0xff] }
 0x286   :  { %v2324_v43 = vpop.f32.mrf.mxu1  ;;  %v2086_v58 = vadd.f32 %v6719_v56, %v7835_v30 }
 0x287   :  { %5256 = vst [vmem:[%s7769_s3 + $0x80] sm:$0xff] %v5079_v21   ;;  %v2831_v0 = vadd.f32 %v6755_v26, %v2577_v22  ;;  %v2325_v44 = vadd.f32 %v2324_v43, %v2071_v55  ;;  %v6869_v15 = vpop.f32.mrf.mxu3  ;;  %v7832_v43 = vld [vmem:[#allocation25_spill] sm:$0xff] }
 0x288   :  { %v2079_v22 = vadd.f32 %v6719_v56, %v7832_v43 }
 0x289   :  { %v3086_v10 = vpop.f32.mrf.mxu0  ;;  %v3085_v63 = vadd.f32 %v3084_v11, %v2831_v0  ;;  %v4089_v11 = vor.u32 %v4850_v16, %v4086_v60  ;;  %v4154_v0 = vld [vmem:[%s7768_s0 + $0x4cc] sm:$0xf0] }
 0x28b   :  { %v3278_v20 = vmax.f32 %v3085_v63, 0.0  ;;  %v4120_v63 = vld [vmem:[%s7768_s0 + $0x470] sm:$0xf] }
 0x28c   :  { %v2578_v54 = vpop.f32.mrf.mxu2 }
 0x28d   :  { %v2579_v28 = vadd.f32 %v2578_v54, %v2325_v44  ;;  %v7833_v44 = vld [vmem:[#allocation28_spill] sm:$0xff]  ;;  %v4157_v54 = vor.u32 %v4866_v50, %v4154_v0 }
 0x28e   :  { %v2327_v27 = vpop.f32.mrf.mxu1  ;;  %v2081_v59 = vadd.f32 %v6719_v56, %v7833_v44 }
 0x28f   :  { %v2833_v26 = vadd.f32 %v6761_v1, %v2579_v28  ;;  %v2328_v12 = vadd.f32 %v2327_v27, %v2074_v46  ;;  %v6875_v40 = vpop.f32.mrf.mxu3  ;;  %v4106_v28 = vld [vmem:[%s7768_s0 + $0x474] sm:$0xf0] }
 0x290   :  { %v4109_v46 = vor.u32 %v4855_v13, %v4106_v28 }
 0x291   :  { %v3089_v19 = vpop.f32.mrf.mxu0  ;;  %v3087_v29 = vadd.f32 %v3086_v10, %v2833_v26  ;;  %2366 = vmatmul.bf16.gmra.mxu1 %v4069_v48  ;;  %2620 = vmatmul.bf16.gmra.mxu2 %v4073_v2  ;;  %v4112_v48 = vld [vmem:[%s7768_s0 + $0x468] sm:$0xf]  ;;  %v4858_v2 = vld [vmem:[%s7768_s0 + $0x478] sm:$0xf0]  ;;  %v4859_v26 = vld [vmem:[%s7768_s0 + $0x480] sm:$0xf0] }
 0x293   :  { %v3279_v32 = vmax.f32 %v3087_v29, 0.0 }
 0x294   :  { %4692 = vmatmul.msk.bf16.gmra.mxu0 %vm1826_vm0, %v4081_v62  ;;  %v2581_v57 = vpop.f32.mrf.mxu2  ;;  %2889 = vmatmul.bf16.gmra.mxu3 %v4137_v23 }
 0x295   :  { %v5084_v7 = vpack.c.bf16 %v3279_v32, %v3278_v20  ;;  %v2582_v1 = vadd.f32 %v2581_v57, %v2328_v12  ;;  %v4113_v20 = vor.u32 %v4858_v2, %v4112_v48  ;;  %v4121_v57 = vor.u32 %v4859_v26, %v4120_v63  ;;  %v7837_v63 = vld [vmem:[#allocation40_spill] sm:$0xff] }
 0x296   :  { %v2329_v51 = vpop.f32.mrf.mxu1  ;;  %v2091_v26 = vadd.f32 %v6719_v56, %v7837_v63 }
 0x297   :  { %5257 = vst [vmem:[%s7769_s3 + $0x88] sm:$0xff] %v5084_v7   ;;  %v2836_v45 = vadd.f32 %v6793_v31, %v2582_v1  ;;  %v2330_v53 = vadd.f32 %v2329_v51, %v2076_v25  ;;  %v6907_v49 = vpop.f32.mrf.mxu3 }
 0x299   :  { %v3091_v3 = vpop.f32.mrf.mxu0  ;;  %v3090_v52 = vadd.f32 %v3089_v19, %v2836_v45  ;;  %v4871_v45 = vld [vmem:[%s7768_s0 + $0x4e4] sm:$0xf] }
 0x29b   :  { %v3280_v10 = vmax.f32 %v3090_v52, 0.0 }
 0x29c   :  { %v2583_v33 = vpop.f32.mrf.mxu2 }
 0x29d   :  { %v2584_v38 = vadd.f32 %v2583_v33, %v2330_v53  ;;  %v4174_v53 = vld [vmem:[%s7768_s0 + $0x4f4] sm:$0xf0]  ;;  %v4860_v33 = vld [vmem:[%s7768_s0 + $0x48c] sm:$0xf] }
 0x29e   :  { %v2332_v37 = vpop.f32.mrf.mxu1 }
 0x29f   :  { %v2838_v31 = vadd.f32 %v6799_v41, %v2584_v38  ;;  %v2333_v47 = vadd.f32 %v2332_v37, %v2079_v22  ;;  %v6913_v14 = vpop.f32.mrf.mxu3  ;;  %v4177_v38 = vor.u32 %v4871_v45, %v4174_v53  ;;  %v4863_v37 = vld [vmem:[%s7768_s0 + $0x4a0] sm:$0xf0] }
 0x2a1   :  { %v3094_v21 = vpop.f32.mrf.mxu0  ;;  %v3092_v34 = vadd.f32 %v3091_v3, %v2838_v31  ;;  %2371 = vmatmul.bf16.gmra.mxu1 %v4089_v11  ;;  %2625 = vmatmul.bf16.gmra.mxu2 %v4093_v61  ;;  %v7834_v3 = vld [vmem:[#allocation31_spill] sm:$0xff]  ;;  %v4126_v11 = vld [vmem:[%s7768_s0 + $0x49c] sm:$0xf0]  ;;  %v4132_v61 = vld [vmem:[%s7768_s0 + $0x490] sm:$0xf] }
 0x2a2   :  { %v2084_v8 = vadd.f32 %v6719_v56, %v7834_v3  ;;  %v4140_v31 = vld [vmem:[%s7768_s0 + $0x498] sm:$0xf]  ;;  %v4129_v22 = vor.u32 %v4860_v33, %v4126_v11 }
 0x2a3   :  { %v3281_v35 = vmax.f32 %v3092_v34, 0.0 }
 0x2a4   :  { %4693 = vmatmul.msk.bf16.gmra.mxu0 %vm1826_vm0, %v4101_v9  ;;  %v2586_v39 = vpop.f32.mrf.mxu2  ;;  %2894 = vmatmul.bf16.gmra.mxu3 %v4157_v54 }
 0x2a5   :  { %v5089_v55 = vpack.c.bf16 %v3281_v35, %v3280_v10  ;;  %v2587_v41 = vadd.f32 %v2586_v39, %v2333_v47  ;;  %v4133_v10 = vor.u32 %v4863_v37, %v4132_v61 }
 0x2a6   :  { %v2334_v5 = vpop.f32.mrf.mxu1 }
 0x2a7   :  { %5258 = vst [vmem:[%s7769_s3 + $0x90] sm:$0xff] %v5089_v55   ;;  %v2841_v27 = vadd.f32 %v6831_v17, %v2587_v41  ;;  %v2335_v62 = vadd.f32 %v2334_v5, %v2081_v59  ;;  %v6945_v7 = vpop.f32.mrf.mxu3 }
 0x2a9   :  { %v3096_v36 = vpop.f32.mrf.mxu0  ;;  %v3095_v12 = vadd.f32 %v3094_v21, %v2841_v27  ;;  %v4864_v21 = vld [vmem:[%s7768_s0 + $0x4a8] sm:$0xf0] }
 0x2aa   :  { %v4141_v39 = vor.u32 %v4864_v21, %v4140_v31  ;;  %v4876_v27 = vld [vmem:[%s7768_s0 + $0x50c] sm:$0xf]  ;;  %v7839_v31 = vld [vmem:[#allocation46_spill] sm:$0xff] }
 0x2ab   :  { %v3282_v4 = vmax.f32 %v3095_v12, 0.0  ;;  %v2096_v21 = vadd.f32 %v6719_v56, %v7839_v31 }
 0x2ac   :  { %v2588_v19 = vpop.f32.mrf.mxu2 }
 0x2ad   :  { %v2589_v29 = vadd.f32 %v2588_v19, %v2335_v62  ;;  %v4194_v62 = vld [vmem:[%s7768_s0 + $0x51c] sm:$0xf0]  ;;  %v4865_v19 = vld [vmem:[%s7768_s0 + $0x4b4] sm:$0xf] }
 0x2ae   :  { %v2337_v32 = vpop.f32.mrf.mxu1 }
 0x2af   :  { %v2843_v17 = vadd.f32 %v6837_v42, %v2589_v29  ;;  %v2338_v23 = vadd.f32 %v2337_v32, %v2084_v8  ;;  %v6951_v6 = vpop.f32.mrf.mxu3  ;;  %v4197_v29 = vor.u32 %v4876_v27, %v4194_v62  ;;  %v4868_v32 = vld [vmem:[%s7768_s0 + $0x4c8] sm:$0xf0] }
 0x2b1   :  { %v3099_v51 = vpop.f32.mrf.mxu0  ;;  %v3097_v1 = vadd.f32 %v3096_v36, %v2843_v17  ;;  %2376 = vmatmul.bf16.gmra.mxu1 %v4109_v46  ;;  %2630 = vmatmul.bf16.gmra.mxu2 %v4113_v20  ;;  %v7836_v36 = vld [vmem:[#allocation37_spill] sm:$0xff]  ;;  %v4146_v46 = vld [vmem:[%s7768_s0 + $0x4c4] sm:$0xf0]  ;;  %v4160_v17 = vld [vmem:[%s7768_s0 + $0x4c0] sm:$0xf] }
 0x2b2   :  { %v2089_v50 = vadd.f32 %v6719_v56, %v7836_v36  ;;  %v4152_v20 = vld [vmem:[%s7768_s0 + $0x4b8] sm:$0xf]  ;;  %v4149_v8 = vor.u32 %v4865_v19, %v4146_v46 }
 0x2b3   :  { %v3283_v18 = vmax.f32 %v3097_v1, 0.0 }
 0x2b4   :  { %4694 = vmatmul.msk.bf16.gmra.mxu0 %vm1826_vm0, %v4121_v57  ;;  %v2591_v25 = vpop.f32.mrf.mxu2  ;;  %2899 = vmatmul.bf16.gmra.mxu3 %v4177_v38 }
 0x2b5   :  { %v5094_v16 = vpack.c.bf16 %v3283_v18, %v3282_v4  ;;  %v2592_v42 = vadd.f32 %v2591_v25, %v2338_v23  ;;  %v4153_v4 = vor.u32 %v4868_v32, %v4152_v20 }
 0x2b6   :  { %v2339_v60 = vpop.f32.mrf.mxu1 }
 0x2b7   :  { %5259 = vst [vmem:[%s7769_s3 + $0x98] sm:$0xff] %v5094_v16   ;;  %v2846_v9 = vadd.f32 %v6869_v15, %v2592_v42  ;;  %v2340_v52 = vadd.f32 %v2339_v60, %v2086_v58  ;;  %v6983_v55 = vpop.f32.mrf.mxu3 }
 0x2b9   :  { %v3101_v24 = vpop.f32.mrf.mxu0  ;;  %v3100_v47 = vadd.f32 %v3099_v51, %v2846_v9  ;;  %v4869_v51 = vld [vmem:[%s7768_s0 + $0x4d0] sm:$0xf0] }
 0x2ba   :  { %v4161_v25 = vor.u32 %v4869_v51, %v4160_v17  ;;  %v4881_v9 = vld [vmem:[%s7768_s0 + $0x534] sm:$0xf] }
 0x2bb   :  { %v3284_v0 = vmax.f32 %v3100_v47, 0.0  ;;  %v7841_v17 = vld [vmem:[#allocation52_spill] sm:$0xff] }
 0x2bc   :  { %v2593_v34 = vpop.f32.mrf.mxu2  ;;  %v2101_v51 = vadd.f32 %v6719_v56, %v7841_v17 }
 0x2bd   :  { %v2594_v43 = vadd.f32 %v2593_v34, %v2340_v52  ;;  %v4214_v52 = vld [vmem:[%s7768_s0 + $0x544] sm:$0xf0]  ;;  %v4870_v34 = vld [vmem:[%s7768_s0 + $0x4dc] sm:$0xf] }
 0x2be   :  { %v2342_v35 = vpop.f32.mrf.mxu1 }
 0x2bf   :  { %v2848_v15 = vadd.f32 %v6875_v40, %v2594_v43  ;;  %v2343_v54 = vadd.f32 %v2342_v35, %v2089_v50  ;;  %v6989_v48 = vpop.f32.mrf.mxu3  ;;  %v4217_v43 = vor.u32 %v4881_v9, %v4214_v52  ;;  %v4873_v35 = vld [vmem:[%s7768_s0 + $0x4f0] sm:$0xf0] }
 0x2c1   :  { %v3104_v5 = vpop.f32.mrf.mxu0  ;;  %v3102_v41 = vadd.f32 %v3101_v24, %v2848_v15  ;;  %2381 = vmatmul.bf16.gmra.mxu1 %v4129_v22  ;;  %2635 = vmatmul.bf16.gmra.mxu2 %v4133_v10  ;;  %v7838_v24 = vld [vmem:[#allocation43_spill] sm:$0xff]  ;;  %v4166_v22 = vld [vmem:[%s7768_s0 + $0x4ec] sm:$0xf0]  ;;  %v4172_v10 = vld [vmem:[%s7768_s0 + $0x4e0] sm:$0xf] }
 0x2c2   :  { %v2094_v45 = vadd.f32 %v6719_v56, %v7838_v24  ;;  %v4180_v15 = vld [vmem:[%s7768_s0 + $0x4e8] sm:$0xf]  ;;  %v4169_v50 = vor.u32 %v4870_v34, %v4166_v22 }
 0x2c3   :  { %v3285_v44 = vmax.f32 %v3102_v41, 0.0 }
 0x2c4   :  { %4695 = vmatmul.msk.bf16.gmra.mxu0 %vm1826_vm0, %v4141_v39  ;;  %v2596_v59 = vpop.f32.mrf.mxu2  ;;  %2904 = vmatmul.bf16.gmra.mxu3 %v4197_v29 }
 0x2c5   :  { %v5099_v13 = vpack.c.bf16 %v3285_v44, %v3284_v0  ;;  %v2597_v40 = vadd.f32 %v2596_v59, %v2343_v54  ;;  %v4173_v0 = vor.u32 %v4873_v35, %v4172_v10 }
 0x2c6   :  { %v2344_v28 = vpop.f32.mrf.mxu1 }
 0x2c7   :  { %5260 = vst [vmem:[%s7769_s3 + $0xa0] sm:$0xff] %v5099_v13   ;;  %v2851_v57 = vadd.f32 %v6907_v49, %v2597_v40  ;;  %v2345_v12 = vadd.f32 %v2344_v28, %v2091_v26  ;;  %v7021_v16 = vpop.f32.mrf.mxu3 }
 0x2c9   :  { %v3106_v2 = vpop.f32.mrf.mxu0  ;;  %v3105_v23 = vadd.f32 %v3104_v5, %v2851_v57  ;;  %v4874_v5 = vld [vmem:[%s7768_s0 + $0x4f8] sm:$0xf0] }
 0x2ca   :  { %v4181_v59 = vor.u32 %v4874_v5, %v4180_v15  ;;  %v4886_v57 = vld [vmem:[%s7768_s0 + $0x55c] sm:$0xf] }
 0x2cb   :  { %v3286_v53 = vmax.f32 %v3105_v23, 0.0  ;;  %v7843_v15 = vld [vmem:[#allocation57_spill] sm:$0xff] }
 0x2cc   :  { %v2598_v1 = vpop.f32.mrf.mxu2  ;;  %v2106_v5 = vadd.f32 %v6719_v56, %v7843_v15 }
 0x2cd   :  { %v2599_v3 = vadd.f32 %v2598_v1, %v2345_v12  ;;  %v4234_v12 = vld [vmem:[%s7768_s0 + $0x56c] sm:$0xf0]  ;;  %v4875_v1 = vld [vmem:[%s7768_s0 + $0x504] sm:$0xf] }
 0x2ce   :  { %v2347_v18 = vpop.f32.mrf.mxu1 }
 0x2cf   :  { %v2853_v49 = vadd.f32 %v6913_v14, %v2599_v3  ;;  %v2348_v38 = vadd.f32 %v2347_v18, %v2094_v45  ;;  %v7027_v61 = vpop.f32.mrf.mxu3  ;;  %v4237_v3 = vor.u32 %v4886_v57, %v4234_v12  ;;  %v4878_v18 = vld [vmem:[%s7768_s0 + $0x518] sm:$0xf0] }
 0x2d1   :  { %v3109_v60 = vpop.f32.mrf.mxu0  ;;  %v3107_v42 = vadd.f32 %v3106_v2, %v2853_v49  ;;  %2386 = vmatmul.bf16.gmra.mxu1 %v4149_v8  ;;  %2640 = vmatmul.bf16.gmra.mxu2 %v4153_v4  ;;  %v7840_v2 = vld [vmem:[#allocation49_spill] sm:$0xff]  ;;  %v4192_v4 = vld [vmem:[%s7768_s0 + $0x508] sm:$0xf]  ;;  %v4200_v49 = vld [vmem:[%s7768_s0 + $0x510] sm:$0xf] }
 0x2d2   :  { %v2099_v27 = vadd.f32 %v6719_v56, %v7840_v2  ;;  %v4186_v8 = vld [vmem:[%s7768_s0 + $0x514] sm:$0xf0] }
 0x2d3   :  { %v3287_v30 = vmax.f32 %v3107_v42, 0.0  ;;  %v4189_v45 = vor.u32 %v4875_v1, %v4186_v8 }
 0x2d4   :  { %4696 = vmatmul.msk.bf16.gmra.mxu0 %vm1826_vm0, %v4161_v25  ;;  %v2601_v58 = vpop.f32.mrf.mxu2  ;;  %2909 = vmatmul.bf16.gmra.mxu3 %v4217_v43 }
 0x2d5   :  { %v5104_v33 = vpack.c.bf16 %v3287_v30, %v3286_v53  ;;  %v2602_v14 = vadd.f32 %v2601_v58, %v2348_v38  ;;  %v4193_v53 = vor.u32 %v4878_v18, %v4192_v4 }
 0x2d6   :  { %v2349_v11 = vpop.f32.mrf.mxu1 }
 0x2d7   :  { %5261 = vst [vmem:[%s7769_s3 + $0xa8] sm:$0xff] %v5104_v33   ;;  %v2856_v39 = vadd.f32 %v6945_v7, %v2602_v14  ;;  %v2350_v47 = vadd.f32 %v2349_v11, %v2096_v21  ;;  %v7059_v13 = vpop.f32.mrf.mxu3 }
 0x2d9   :  { %v3111_v37 = vpop.f32.mrf.mxu0  ;;  %v3110_v54 = vadd.f32 %v3109_v60, %v2856_v39  ;;  %v4879_v60 = vld [vmem:[%s7768_s0 + $0x520] sm:$0xf0] }
 0x2da   :  { %v4201_v58 = vor.u32 %v4879_v60, %v4200_v49  ;;  %v4891_v39 = vld [vmem:[%s7768_s0 + $0x584] sm:$0xf]  ;;  %v7845_v49 = vld [vmem:[#allocation61_spill] sm:$0xff] }
 0x2db   :  { %v3288_v62 = vmax.f32 %v3110_v54, 0.0  ;;  %v2111_v60 = vadd.f32 %v6719_v56, %v7845_v49 }
 0x2dc   :  { %v2603_v41 = vpop.f32.mrf.mxu2 }
 0x2dd   :  { %v2604_v36 = vadd.f32 %v2603_v41, %v2350_v47  ;;  %v4254_v47 = vld [vmem:[%s7768_s0 + $0x594] sm:$0xf0]  ;;  %v4880_v41 = vld [vmem:[%s7768_s0 + $0x52c] sm:$0xf] }
 0x2de   :  { %v2352_v44 = vpop.f32.mrf.mxu1 }
 0x2df   :  { %v2858_v7 = vadd.f32 %v6951_v6, %v2604_v36  ;;  %v2353_v29 = vadd.f32 %v2352_v44, %v2099_v27  ;;  %v7065_v20 = vpop.f32.mrf.mxu3  ;;  %v4257_v36 = vor.u32 %v4891_v39, %v4254_v47  ;;  %v4883_v44 = vld [vmem:[%s7768_s0 + $0x540] sm:$0xf0] }
 0x2e1   :  { %v3114_v28 = vpop.f32.mrf.mxu0  ;;  %v3112_v40 = vadd.f32 %v3111_v37, %v2858_v7  ;;  %2391 = vmatmul.bf16.gmra.mxu1 %v4169_v50  ;;  %2645 = vmatmul.bf16.gmra.mxu2 %v4173_v0  ;;  %v7842_v37 = vld [vmem:[#allocation55_spill] sm:$0xff]  ;;  %v4206_v50 = vld [vmem:[%s7768_s0 + $0x53c] sm:$0xf0]  ;;  %v4212_v0 = vld [vmem:[%s7768_s0 + $0x530] sm:$0xf] }
 0x2e2   :  { %v2104_v9 = vadd.f32 %v6719_v56, %v7842_v37  ;;  %v4220_v7 = vld [vmem:[%s7768_s0 + $0x538] sm:$0xf]  ;;  %v4209_v27 = vor.u32 %v4880_v41, %v4206_v50 }
 0x2e3   :  { %v3289_v63 = vmax.f32 %v3112_v40, 0.0 }
 0x2e4   :  { %4697 = vmatmul.msk.bf16.gmra.mxu0 %vm1826_vm0, %v4181_v59  ;;  %v2606_v26 = vpop.f32.mrf.mxu2  ;;  %2914 = vmatmul.bf16.gmra.mxu3 %v4237_v3 }
 0x2e5   :  { %v5109_v19 = vpack.c.bf16 %v3289_v63, %v3288_v62  ;;  %v2607_v6 = vadd.f32 %v2606_v26, %v2353_v29  ;;  %v4213_v62 = vor.u32 %v4883_v44, %v4212_v0 }
 0x2e6   :  { %v2354_v46 = vpop.f32.mrf.mxu1 }
 0x2e7   :  { %5262 = vst [vmem:[%s7769_s3 + $0xb0] sm:$0xff] %v5109_v19   ;;  %v2861_v25 = vadd.f32 %v6983_v55, %v2607_v6  ;;  %v2355_v23 = vadd.f32 %v2354_v46, %v2101_v51  ;;  %v7097_v33 = vpop.f32.mrf.mxu3 }
 0x2e9   :  { %v3116_v32 = vpop.f32.mrf.mxu0  ;;  %v3115_v38 = vadd.f32 %v3114_v28, %v2861_v25  ;;  %v4884_v28 = vld [vmem:[%s7768_s0 + $0x548] sm:$0xf0] }
 0x2ea   :  { %v4221_v26 = vor.u32 %v4884_v28, %v4220_v7  ;;  %v4896_v25 = vld [vmem:[%s7768_s0 + $0x5ac] sm:$0xf] }
 0x2eb   :  { %v3290_v52 = vmax.f32 %v3115_v38, 0.0  ;;  %v7847_v7 = vld [vmem:[#allocation3_spill] sm:$0xff] }
 0x2ec   :  { %v2608_v42 = vpop.f32.mrf.mxu2  ;;  %v2116_v28 = vadd.f32 %v6719_v56, %v7847_v7 }
 0x2ed   :  { %v2609_v24 = vadd.f32 %v2608_v42, %v2355_v23  ;;  %v4274_v23 = vld [vmem:[%s7768_s0 + $0x5bc] sm:$0xf0]  ;;  %v4885_v42 = vld [vmem:[%s7768_s0 + $0x554] sm:$0xf] }
 0x2ee   :  { %v2357_v30 = vpop.f32.mrf.mxu1 }
 0x2ef   :  { %v2863_v55 = vadd.f32 %v6989_v48, %v2609_v24  ;;  %v2358_v43 = vadd.f32 %v2357_v30, %v2104_v9  ;;  %v7103_v10 = vpop.f32.mrf.mxu3  ;;  %v4277_v24 = vor.u32 %v4896_v25, %v4274_v23  ;;  %v4888_v30 = vld [vmem:[%s7768_s0 + $0x568] sm:$0xf0] }
 0x2f1   :  { %v3119_v11 = vpop.f32.mrf.mxu0  ;;  %v3117_v14 = vadd.f32 %v3116_v32, %v2863_v55  ;;  %2396 = vmatmul.bf16.gmra.mxu1 %v4189_v45  ;;  %2650 = vmatmul.bf16.gmra.mxu2 %v4193_v53  ;;  %v7844_v32 = vld [vmem:[#allocation59_spill] sm:$0xff]  ;;  %v4232_v53 = vld [vmem:[%s7768_s0 + $0x558] sm:$0xf]  ;;  %v4240_v55 = vld [vmem:[%s7768_s0 + $0x560] sm:$0xf] }
 0x2f2   :  { %v2109_v57 = vadd.f32 %v6719_v56, %v7844_v32  ;;  %v4226_v45 = vld [vmem:[%s7768_s0 + $0x564] sm:$0xf0] }
 0x2f3   :  { %v3291_v31 = vmax.f32 %v3117_v14, 0.0  ;;  %v4229_v9 = vor.u32 %v4885_v42, %v4226_v45 }
 0x2f4   :  { %4698 = vmatmul.msk.bf16.gmra.mxu0 %vm1826_vm0, %v4201_v58  ;;  %v2611_v21 = vpop.f32.mrf.mxu2  ;;  %2919 = vmatmul.bf16.gmra.mxu3 %v4257_v36 }
 0x2f5   :  { %v5114_v34 = vpack.c.bf16 %v3291_v31, %v3290_v52  ;;  %v2612_v48 = vadd.f32 %v2611_v21, %v2358_v43  ;;  %v4233_v52 = vor.u32 %v4888_v30, %v4232_v53 }
 0x2f6   :  { %v2359_v22 = vpop.f32.mrf.mxu1 }
 0x2f7   :  { %5263 = vst [vmem:[%s7769_s3 + $0xb8] sm:$0xff] %v5114_v34   ;;  %v2866_v59 = vadd.f32 %v7021_v16, %v2612_v48  ;;  %v2360_v54 = vadd.f32 %v2359_v22, %v2106_v5  ;;  %v7135_v19 = vpop.f32.mrf.mxu3 }
 0x2f9   :  { %v3121_v35 = vpop.f32.mrf.mxu0  ;;  %v3120_v29 = vadd.f32 %v3119_v11, %v2866_v59  ;;  %v4889_v11 = vld [vmem:[%s7768_s0 + $0x570] sm:$0xf0] }
 0x2fa   :  { %v4241_v21 = vor.u32 %v4889_v11, %v4240_v55  ;;  %v4901_v59 = vld [vmem:[%s7768_s0 + $0x5d4] sm:$0xf]  ;;  %v7849_v55 = vld [vmem:[#allocation7_spill] sm:$0xff] }
 0x2fb   :  { %v3292_v12 = vmax.f32 %v3120_v29, 0.0  ;;  %v2121_v11 = vadd.f32 %v6719_v56, %v7849_v55 }
 0x2fc   :  { %v2613_v40 = vpop.f32.mrf.mxu2 }
 0x2fd   :  { %v2614_v2 = vadd.f32 %v2613_v40, %v2360_v54  ;;  %v4294_v54 = vld [vmem:[%s7768_s0 + $0x5e4] sm:$0xf0]  ;;  %v4890_v40 = vld [vmem:[%s7768_s0 + $0x57c] sm:$0xf] }
 0x2fe   :  { %v2362_v63 = vpop.f32.mrf.mxu1 }
 0x2ff   :  { %v2868_v16 = vadd.f32 %v7027_v61, %v2614_v2  ;;  %v2363_v3 = vadd.f32 %v2362_v63, %v2109_v57  ;;  %v7141_v4 = vpop.f32.mrf.mxu3  ;;  %v4297_v2 = vor.u32 %v4901_v59, %v4294_v54  ;;  %v4893_v63 = vld [vmem:[%s7768_s0 + $0x590] sm:$0xf0] }
 0x301   :  { %v3124_v46 = vpop.f32.mrf.mxu0  ;;  %v3122_v6 = vadd.f32 %v3121_v35, %v2868_v16  ;;  %2401 = vmatmul.bf16.gmra.mxu1 %v4209_v27  ;;  %2655 = vmatmul.bf16.gmra.mxu2 %v4213_v62  ;;  %v7846_v35 = vld [vmem:[#allocation2_spill] sm:$0xff]  ;;  %v4246_v27 = vld [vmem:[%s7768_s0 + $0x58c] sm:$0xf0]  ;;  %v4260_v16 = vld [vmem:[%s7768_s0 + $0x588] sm:$0xf] }
 0x302   :  { %v2114_v39 = vadd.f32 %v6719_v56, %v7846_v35  ;;  %v4252_v62 = vld [vmem:[%s7768_s0 + $0x580] sm:$0xf]  ;;  %v4249_v57 = vor.u32 %v4890_v40, %v4246_v27 }
 0x303   :  { %v3293_v17 = vmax.f32 %v3122_v6, 0.0 }
 0x304   :  { %4699 = vmatmul.msk.bf16.gmra.mxu0 %vm1826_vm0, %v4221_v26  ;;  %v2616_v51 = vpop.f32.mrf.mxu2  ;;  %2924 = vmatmul.bf16.gmra.mxu3 %v4277_v24 }
 0x305   :  { %v5119_v1 = vpack.c.bf16 %v3293_v17, %v3292_v12  ;;  %v2617_v61 = vadd.f32 %v2616_v51, %v2363_v3  ;;  %v4253_v12 = vor.u32 %v4893_v63, %v4252_v62 }
 0x306   :  { %v2364_v8 = vpop.f32.mrf.mxu1 }
 0x307   :  { %5264 = vst [vmem:[%s7769_s3 + $0xc0] sm:$0xff] %v5119_v1   ;;  %v2871_v58 = vadd.f32 %v7059_v13, %v2617_v61  ;;  %v2365_v38 = vadd.f32 %v2364_v8, %v2111_v60  ;;  %v7173_v34 = vpop.f32.mrf.mxu3 }
 0x309   :  { %v3126_v18 = vpop.f32.mrf.mxu0  ;;  %v3125_v43 = vadd.f32 %v3124_v46, %v2871_v58  ;;  %v4894_v46 = vld [vmem:[%s7768_s0 + $0x598] sm:$0xf0] }
 0x30a   :  { %v4261_v51 = vor.u32 %v4894_v46, %v4260_v16  ;;  %v4906_v58 = vld [vmem:[%s7768_s0 + $0x5fc] sm:$0xf]  ;;  %v7851_v16 = vld [vmem:[#allocation11_spill] sm:$0xff] }
 0x30b   :  { %v3294_v47 = vmax.f32 %v3125_v43, 0.0  ;;  %v4280_v43 = vld [vmem:[%s7768_s0 + $0x5b0] sm:$0xf] }
 0x30c   :  { %v2618_v14 = vpop.f32.mrf.mxu2 }
 0x30d   :  { %v2619_v37 = vadd.f32 %v2618_v14, %v2365_v38  ;;  %v4314_v38 = vld [vmem:[%s7768_s0 + $0x60c] sm:$0xf0]  ;;  %v4895_v14 = vld [vmem:[%s7768_s0 + $0x5a4] sm:$0xf] }
 0x30e   :  { %v2367_v31 = vpop.f32.mrf.mxu1 }
 0x30f   :  { %v2873_v13 = vadd.f32 %v7065_v20, %v2619_v37  ;;  %v2368_v36 = vadd.f32 %v2367_v31, %v2114_v39  ;;  %v7179_v0 = vpop.f32.mrf.mxu3  ;;  %v4317_v37 = vor.u32 %v4906_v58, %v4314_v38  ;;  %v4898_v31 = vld [vmem:[%s7768_s0 + $0x5b8] sm:$0xf0] }
 0x311   :  { %v3129_v22 = vpop.f32.mrf.mxu0  ;;  %v3127_v48 = vadd.f32 %v3126_v18, %v2873_v13  ;;  %2406 = vmatmul.bf16.gmra.mxu1 %v4229_v9  ;;  %2660 = vmatmul.bf16.gmra.mxu2 %v4233_v52  ;;  %v7848_v18 = vld [vmem:[#allocation5_spill] sm:$0xff]  ;;  %v4272_v52 = vld [vmem:[%s7768_s0 + $0x5a8] sm:$0xf]  ;;  %v4899_v13 = vld [vmem:[%s7768_s0 + $0x5c0] sm:$0xf0] }
 0x312   :  { %v2119_v25 = vadd.f32 %v6719_v56, %v7848_v18  ;;  %v4266_v9 = vld [vmem:[%s7768_s0 + $0x5b4] sm:$0xf0]  ;;  %v4273_v39 = vor.u32 %v4898_v31, %v4272_v52 }
 0x313   :  { %v3295_v15 = vmax.f32 %v3127_v48, 0.0  ;;  %v4269_v35 = vor.u32 %v4895_v14, %v4266_v9 }
 0x314   :  { %4700 = vmatmul.msk.bf16.gmra.mxu0 %vm1826_vm0, %v4241_v21  ;;  %v2621_v5 = vpop.f32.mrf.mxu2  ;;  %2929 = vmatmul.bf16.gmra.mxu3 %v4297_v2 }
 0x315   :  { %v5124_v41 = vpack.c.bf16 %v3295_v15, %v3294_v47  ;;  %v2622_v20 = vadd.f32 %v2621_v5, %v2368_v36  ;;  %v4281_v15 = vor.u32 %v4899_v13, %v4280_v43  ;;  %v7853_v43 = vld [vmem:[#allocation15_spill] sm:$0xff] }
 0x316   :  { %v2369_v50 = vpop.f32.mrf.mxu1 }
 0x317   :  { %5265 = vst [vmem:[%s7769_s3 + $0xc8] sm:$0xff] %v5124_v41   ;;  %v2876_v26 = vadd.f32 %v7097_v33, %v2622_v20  ;;  %v2370_v29 = vadd.f32 %v2369_v50, %v2116_v28  ;;  %v7211_v1 = vpop.f32.mrf.mxu3  ;;  %v7256_v20 = vld [vmem:[%s7767_s2] ss:$0 sm:$0xff] }
 0x318   :  { %v2126_v46 = vadd.f32 %v7256_v20, %v7851_v16  ;;  %v2131_v13 = vadd.f32 %v7256_v20, %v7853_v43 }
 0x319   :  { %v3131_v44 = vpop.f32.mrf.mxu0  ;;  %v3130_v3 = vadd.f32 %v3129_v22, %v2876_v26  ;;  %v4911_v26 = vld [vmem:[%s7768_s0 + $0x624] sm:$0xf] }
 0x31b   :  { %v3296_v23 = vmax.f32 %v3130_v3, 0.0 }
 0x31c   :  { %v2623_v6 = vpop.f32.mrf.mxu2 }
 0x31d   :  { %v2624_v32 = vadd.f32 %v2623_v6, %v2370_v29  ;;  %v4334_v29 = vld [vmem:[%s7768_s0 + $0x634] sm:$0xf0]  ;;  %v4900_v6 = vld [vmem:[%s7768_s0 + $0x5cc] sm:$0xf] }
 0x31e   :  { %v2372_v17 = vpop.f32.mrf.mxu1 }
 0x31f   :  { %v2878_v33 = vadd.f32 %v7103_v10, %v2624_v32  ;;  %v2373_v24 = vadd.f32 %v2372_v17, %v2119_v25  ;;  %v7217_v53 = vpop.f32.mrf.mxu3  ;;  %v4337_v32 = vor.u32 %v4911_v26, %v4334_v29  ;;  %v4903_v17 = vld [vmem:[%s7768_s0 + $0x5e0] sm:$0xf0] }
 0x321   :  { %v3134_v8 = vpop.f32.mrf.mxu0  ;;  %v3132_v61 = vadd.f32 %v3131_v44, %v2878_v33  ;;  %2411 = vmatmul.bf16.gmra.mxu1 %v4249_v57  ;;  %2665 = vmatmul.bf16.gmra.mxu2 %v4253_v12  ;;  %v7850_v44 = vld [vmem:[#allocation9_spill] sm:$0xff]  ;;  %v4286_v57 = vld [vmem:[%s7768_s0 + $0x5dc] sm:$0xf0]  ;;  %v4292_v12 = vld [vmem:[%s7768_s0 + $0x5d0] sm:$0xf] }
 0x322   :  { %v2124_v59 = vadd.f32 %v7256_v20, %v7850_v44  ;;  %v4300_v33 = vld [vmem:[%s7768_s0 + $0x5d8] sm:$0xf]  ;;  %v4289_v25 = vor.u32 %v4900_v6, %v4286_v57 }
 0x323   :  { %v3297_v49 = vmax.f32 %v3132_v61, 0.0 }
 0x324   :  { %4701 = vmatmul.msk.bf16.gmra.mxu0 %vm1826_vm0, %v4261_v51  ;;  %v2626_v60 = vpop.f32.mrf.mxu2  ;;  %2934 = vmatmul.bf16.gmra.mxu3 %v4317_v37 }
 0x325   :  { %v5129_v42 = vpack.c.bf16 %v3297_v49, %v3296_v23  ;;  %v2627_v10 = vadd.f32 %v2626_v60, %v2373_v24  ;;  %v4293_v23 = vor.u32 %v4903_v17, %v4292_v12 }
 0x326   :  { %v2374_v45 = vpop.f32.mrf.mxu1 }
 0x327   :  { %5266 = vst [vmem:[%s7769_s3 + $0xd0] sm:$0xff] %v5129_v42   ;;  %v2881_v21 = vadd.f32 %v7135_v19, %v2627_v10  ;;  %v2375_v56 = vadd.f32 %v2374_v45, %v2121_v11  ;;  %v7249_v5 = vpop.f32.mrf.mxu3 }
 0x329   :  { %v3136_v30 = vpop.f32.mrf.mxu0  ;;  %v3135_v41 = vadd.f32 %v3134_v8, %v2881_v21  ;;  %v4904_v8 = vld [vmem:[%s7768_s0 + $0x5e8] sm:$0xf0] }
 0x32a   :  { %v4301_v60 = vor.u32 %v4904_v8, %v4300_v33  ;;  %v4916_v21 = vld [vmem:[%s7768_s0 + $0x64c] sm:$0xf] }
 0x32b   :  { %v3298_v54 = vmax.f32 %v3135_v41, 0.0  ;;  %v7855_v33 = vld [vmem:[#allocation19_spill] sm:$0xff] }
 0x32c   :  { %v2628_v22 = vpop.f32.mrf.mxu2  ;;  %v2136_v8 = vadd.f32 %v7256_v20, %v7855_v33 }
 0x32d   :  { %v2629_v48 = vadd.f32 %v2628_v22, %v2375_v56  ;;  %v4354_v56 = vld [vmem:[%s7768_s0 + $0x65c] sm:$0xf0]  ;;  %v4905_v22 = vld [vmem:[%s7768_s0 + $0x5f4] sm:$0xf] }
 0x32e   :  { %v2377_v47 = vpop.f32.mrf.mxu1 }
 0x32f   :  { %v2883_v19 = vadd.f32 %v7141_v4, %v2629_v48  ;;  %v2378_v2 = vadd.f32 %v2377_v47, %v2124_v59  ;;  %v7260_v27 = vpop.f32.mrf.mxu3  ;;  %v4357_v48 = vor.u32 %v4916_v21, %v4354_v56  ;;  %v4908_v47 = vld [vmem:[%s7768_s0 + $0x608] sm:$0xf0] }
 0x331   :  { %v3139_v36 = vpop.f32.mrf.mxu0  ;;  %v3137_v50 = vadd.f32 %v3136_v30, %v2883_v19  ;;  %2416 = vmatmul.bf16.gmra.mxu1 %v4269_v35  ;;  %2670 = vmatmul.bf16.gmra.mxu2 %v4273_v39  ;;  %v7852_v30 = vld [vmem:[#allocation13_spill] sm:$0xff]  ;;  %v4306_v35 = vld [vmem:[%s7768_s0 + $0x604] sm:$0xf0]  ;;  %v4320_v19 = vld [vmem:[%s7768_s0 + $0x600] sm:$0xf] }
 0x332   :  { %v2129_v58 = vadd.f32 %v7256_v20, %v7852_v30  ;;  %v4312_v39 = vld [vmem:[%s7768_s0 + $0x5f8] sm:$0xf]  ;;  %v4309_v59 = vor.u32 %v4905_v22, %v4306_v35 }
 0x333   :  { %v3299_v7 = vmax.f32 %v3137_v50, 0.0 }
 0x334   :  { %4702 = vmatmul.msk.bf16.gmra.mxu0 %vm1826_vm0, %v4281_v15  ;;  %v2631_v28 = vpop.f32.mrf.mxu2  ;;  %2939 = vmatmul.bf16.gmra.mxu3 %v4337_v32 }
 0x335   :  { %v5134_v40 = vpack.c.bf16 %v3299_v7, %v3298_v54  ;;  %v2632_v62 = vadd.f32 %v2631_v28, %v2378_v2  ;;  %v4313_v54 = vor.u32 %v4908_v47, %v4312_v39 }
 0x336   :  { %v2379_v4 = vpop.f32.mrf.mxu1 }
 0x337   :  { %5267 = vst [vmem:[%s7769_s3 + $0xd8] sm:$0xff] %v5134_v40   ;;  %v2886_v51 = vadd.f32 %v7173_v34, %v2632_v62  ;;  %v2380_v3 = vadd.f32 %v2379_v4, %v2126_v46  ;;  %v7292_v42 = vpop.f32.mrf.mxu3 }
 0x339   :  { %v3141_v63 = vpop.f32.mrf.mxu0  ;;  %v3140_v24 = vadd.f32 %v3139_v36, %v2886_v51  ;;  %v4909_v36 = vld [vmem:[%s7768_s0 + $0x610] sm:$0xf0] }
 0x33a   :  { %v4321_v28 = vor.u32 %v4909_v36, %v4320_v19  ;;  %v4921_v51 = vld [vmem:[%s7768_s0 + $0x674] sm:$0xf] }
 0x33b   :  { %v3300_v38 = vmax.f32 %v3140_v24, 0.0  ;;  %v7857_v19 = vld [vmem:[#allocation24_spill] sm:$0xff] }
 0x33c   :  { %v2633_v61 = vpop.f32.mrf.mxu2  ;;  %v2141_v36 = vadd.f32 %v7256_v20, %v7857_v19 }
 0x33d   :  { %v2634_v18 = vadd.f32 %v2633_v61, %v2380_v3  ;;  %v4374_v3 = vld [vmem:[%s7768_s0 + $0x684] sm:$0xf0]  ;;  %v4910_v61 = vld [vmem:[%s7768_s0 + $0x61c] sm:$0xf] }
 0x33e   :  { %v2382_v49 = vpop.f32.mrf.mxu1 }
 0x33f   :  { %v2888_v34 = vadd.f32 %v7179_v0, %v2634_v18  ;;  %v2383_v37 = vadd.f32 %v2382_v49, %v2129_v58  ;;  %v7298_v52 = vpop.f32.mrf.mxu3  ;;  %v4377_v18 = vor.u32 %v4921_v51, %v4374_v3  ;;  %v4913_v49 = vld [vmem:[%s7768_s0 + $0x630] sm:$0xf0] }
 0x341   :  { %v3144_v45 = vpop.f32.mrf.mxu0  ;;  %v3142_v10 = vadd.f32 %v3141_v63, %v2888_v34  ;;  %2421 = vmatmul.bf16.gmra.mxu1 %v4289_v25  ;;  %2675 = vmatmul.bf16.gmra.mxu2 %v4293_v23  ;;  %v7854_v63 = vld [vmem:[#allocation17_spill] sm:$0xff]  ;;  %v4326_v25 = vld [vmem:[%s7768_s0 + $0x62c] sm:$0xf0]  ;;  %v4332_v23 = vld [vmem:[%s7768_s0 + $0x620] sm:$0xf] }
 0x342   :  { %v2134_v26 = vadd.f32 %v7256_v20, %v7854_v63  ;;  %v4340_v34 = vld [vmem:[%s7768_s0 + $0x628] sm:$0xf]  ;;  %v4329_v58 = vor.u32 %v4910_v61, %v4326_v25 }
 0x343   :  { %v3301_v55 = vmax.f32 %v3142_v10, 0.0 }
 0x344   :  { %4703 = vmatmul.msk.bf16.gmra.mxu0 %vm1826_vm0, %v4301_v60  ;;  %v2636_v11 = vpop.f32.mrf.mxu2  ;;  %2944 = vmatmul.bf16.gmra.mxu3 %v4357_v48 }
 0x345   :  { %v5139_v14 = vpack.c.bf16 %v3301_v55, %v3300_v38  ;;  %v2637_v0 = vadd.f32 %v2636_v11, %v2383_v37  ;;  %v4333_v38 = vor.u32 %v4913_v49, %v4332_v23 }
 0x346   :  { %v2384_v9 = vpop.f32.mrf.mxu1 }
 0x347   :  { %5268 = vst [vmem:[%s7769_s3 + $0xe0] sm:$0xff] %v5139_v14   ;;  %v2891_v15 = vadd.f32 %v7211_v1, %v2637_v0  ;;  %v2385_v41 = vadd.f32 %v2384_v9, %v2131_v13  ;;  %v7330_v40 = vpop.f32.mrf.mxu3 }
 0x349   :  { %v3146_v31 = vpop.f32.mrf.mxu0  ;;  %v3145_v2 = vadd.f32 %v3144_v45, %v2891_v15  ;;  %v4914_v45 = vld [vmem:[%s7768_s0 + $0x638] sm:$0xf0] }
 0x34a   :  { %v4341_v11 = vor.u32 %v4914_v45, %v4340_v34  ;;  %v4926_v15 = vld [vmem:[%s7768_s0 + $0x69c] sm:$0xf]  ;;  %v7859_v34 = vld [vmem:[#allocation30_spill] sm:$0xff] }
 0x34b   :  { %v3302_v29 = vmax.f32 %v3145_v2, 0.0  ;;  %v2146_v45 = vadd.f32 %v7256_v20, %v7859_v34 }
 0x34c   :  { %v2638_v50 = vpop.f32.mrf.mxu2 }
 0x34d   :  { %v2639_v44 = vadd.f32 %v2638_v50, %v2385_v41  ;;  %v4394_v41 = vld [vmem:[%s7768_s0 + $0x6ac] sm:$0xf0]  ;;  %v4915_v50 = vld [vmem:[%s7768_s0 + $0x644] sm:$0xf] }
 0x34e   :  { %v2387_v7 = vpop.f32.mrf.mxu1 }
 0x34f   :  { %v2893_v1 = vadd.f32 %v7217_v53, %v2639_v44  ;;  %v2388_v32 = vadd.f32 %v2387_v7, %v2134_v26  ;;  %v7336_v12 = vpop.f32.mrf.mxu3  ;;  %v4397_v44 = vor.u32 %v4926_v15, %v4394_v41  ;;  %v4918_v7 = vld [vmem:[%s7768_s0 + $0x658] sm:$0xf0] }
 0x351   :  { %v3149_v4 = vpop.f32.mrf.mxu0  ;;  %v3147_v62 = vadd.f32 %v3146_v31, %v2893_v1  ;;  %2426 = vmatmul.bf16.gmra.mxu1 %v4309_v59  ;;  %2680 = vmatmul.bf16.gmra.mxu2 %v4313_v54  ;;  %v7856_v31 = vld [vmem:[#allocation21_spill] sm:$0xff]  ;;  %v4352_v54 = vld [vmem:[%s7768_s0 + $0x648] sm:$0xf]  ;;  %v4360_v1 = vld [vmem:[%s7768_s0 + $0x650] sm:$0xf] }
 0x352   :  { %v2139_v21 = vadd.f32 %v7256_v20, %v7856_v31  ;;  %v4346_v59 = vld [vmem:[%s7768_s0 + $0x654] sm:$0xf0] }
 0x353   :  { %v3303_v16 = vmax.f32 %v3147_v62, 0.0  ;;  %v4349_v26 = vor.u32 %v4915_v50, %v4346_v59 }
 0x354   :  { %4704 = vmatmul.msk.bf16.gmra.mxu0 %vm1826_vm0, %v4321_v28  ;;  %v2641_v46 = vpop.f32.mrf.mxu2  ;;  %2949 = vmatmul.bf16.gmra.mxu3 %v4377_v18 }
 0x355   :  { %v5144_v6 = vpack.c.bf16 %v3303_v16, %v3302_v29  ;;  %v2642_v53 = vadd.f32 %v2641_v46, %v2388_v32  ;;  %v4353_v29 = vor.u32 %v4918_v7, %v4352_v54 }
 0x356   :  { %v2389_v57 = vpop.f32.mrf.mxu1 }
 0x357   :  { %5269 = vst [vmem:[%s7769_s3 + $0xe8] sm:$0xff] %v5144_v6   ;;  %v2896_v60 = vadd.f32 %v7249_v5, %v2642_v53  ;;  %v2390_v24 = vadd.f32 %v2389_v57, %v2136_v8  ;;  %v7368_v14 = vpop.f32.mrf.mxu3 }
 0x359   :  { %v3151_v17 = vpop.f32.mrf.mxu0  ;;  %v3150_v37 = vadd.f32 %v3149_v4, %v2896_v60  ;;  %v4919_v4 = vld [vmem:[%s7768_s0 + $0x660] sm:$0xf0] }
 0x35a   :  { %v4361_v46 = vor.u32 %v4919_v4, %v4360_v1  ;;  %v4931_v60 = vld [vmem:[%s7768_s0 + $0x6c4] sm:$0xf]  ;;  %v7861_v1 = vld [vmem:[#allocation36_spill] sm:$0xff] }
 0x35b   :  { %v3304_v56 = vmax.f32 %v3150_v37, 0.0  ;;  %v2151_v4 = vadd.f32 %v7256_v20, %v7861_v1 }
 0x35c   :  { %v2643_v10 = vpop.f32.mrf.mxu2 }
 0x35d   :  { %v2644_v30 = vadd.f32 %v2643_v10, %v2390_v24  ;;  %v4414_v24 = vld [vmem:[%s7768_s0 + $0x6d4] sm:$0xf0]  ;;  %v4920_v10 = vld [vmem:[%s7768_s0 + $0x66c] sm:$0xf] }
 0x35e   :  { %v2392_v55 = vpop.f32.mrf.mxu1 }
 0x35f   :  { %v2898_v5 = vadd.f32 %v7260_v27, %v2644_v30  ;;  %v2393_v48 = vadd.f32 %v2392_v55, %v2139_v21  ;;  %v7374_v39 = vpop.f32.mrf.mxu3  ;;  %v4417_v30 = vor.u32 %v4931_v60, %v4414_v24  ;;  %v4923_v55 = vld [vmem:[%s7768_s0 + $0x680] sm:$0xf0] }
 0x361   :  { %v3154_v9 = vpop.f32.mrf.mxu0  ;;  %v3152_v0 = vadd.f32 %v3151_v17, %v2898_v5  ;;  %2431 = vmatmul.bf16.gmra.mxu1 %v4329_v58  ;;  %2685 = vmatmul.bf16.gmra.mxu2 %v4333_v38  ;;  %v7858_v17 = vld [vmem:[#allocation27_spill] sm:$0xff]  ;;  %v4366_v58 = vld [vmem:[%s7768_s0 + $0x67c] sm:$0xf0]  ;;  %v4372_v38 = vld [vmem:[%s7768_s0 + $0x670] sm:$0xf] }
 0x362   :  { %v2144_v51 = vadd.f32 %v7256_v20, %v7858_v17  ;;  %v4380_v5 = vld [vmem:[%s7768_s0 + $0x678] sm:$0xf]  ;;  %v4369_v21 = vor.u32 %v4920_v10, %v4366_v58 }
 0x363   :  { %v3305_v43 = vmax.f32 %v3152_v0, 0.0 }
 0x364   :  { %4705 = vmatmul.msk.bf16.gmra.mxu0 %vm1826_vm0, %v4341_v11  ;;  %v2646_v13 = vpop.f32.mrf.mxu2  ;;  %2954 = vmatmul.bf16.gmra.mxu3 %v4397_v44 }
 0x365   :  { %v5149_v22 = vpack.c.bf16 %v3305_v43, %v3304_v56  ;;  %v2647_v27 = vadd.f32 %v2646_v13, %v2393_v48  ;;  %v4373_v56 = vor.u32 %v4923_v55, %v4372_v38 }
 0x366   :  { %v2394_v35 = vpop.f32.mrf.mxu1 }
 0x367   :  { %5270 = vst [vmem:[%s7769_s3 + $0xf0] sm:$0xff] %v5149_v22   ;;  %v2901_v28 = vadd.f32 %v7292_v42, %v2647_v27  ;;  %v2395_v2 = vadd.f32 %v2394_v35, %v2141_v36  ;;  %v7406_v6 = vpop.f32.mrf.mxu3 }
 0x369   :  { %v3156_v47 = vpop.f32.mrf.mxu0  ;;  %v3155_v32 = vadd.f32 %v3154_v9, %v2901_v28  ;;  %v4924_v9 = vld [vmem:[%s7768_s0 + $0x688] sm:$0xf0] }
 0x36a   :  { %v4381_v13 = vor.u32 %v4924_v9, %v4380_v5  ;;  %v4936_v28 = vld [vmem:[%s7768_s0 + $0x6ec] sm:$0xf]  ;;  %v7863_v5 = vld [vmem:[#allocation42_spill] sm:$0xff] }
 0x36b   :  { %v3306_v3 = vmax.f32 %v3155_v32, 0.0  ;;  %v2156_v9 = vadd.f32 %v7256_v20, %v7863_v5 }
 0x36c   :  { %v2648_v62 = vpop.f32.mrf.mxu2 }
 0x36d   :  { %v2649_v63 = vadd.f32 %v2648_v62, %v2395_v2  ;;  %v4434_v2 = vld [vmem:[%s7768_s0 + $0x6fc] sm:$0xf0]  ;;  %v4925_v62 = vld [vmem:[%s7768_s0 + $0x694] sm:$0xf] }
 0x36e   :  { %v2397_v16 = vpop.f32.mrf.mxu1 }
 0x36f   :  { %v2903_v42 = vadd.f32 %v7298_v52, %v2649_v63  ;;  %v2398_v18 = vadd.f32 %v2397_v16, %v2144_v51  ;;  %v7412_v23 = vpop.f32.mrf.mxu3  ;;  %v4437_v63 = vor.u32 %v4936_v28, %v4434_v2  ;;  %v4928_v16 = vld [vmem:[%s7768_s0 + $0x6a8] sm:$0xf0] }
 0x371   :  { %v3159_v57 = vpop.f32.mrf.mxu0  ;;  %v3157_v53 = vadd.f32 %v3156_v47, %v2903_v42  ;;  %2436 = vmatmul.bf16.gmra.mxu1 %v4349_v26  ;;  %2690 = vmatmul.bf16.gmra.mxu2 %v4353_v29  ;;  %v7860_v47 = vld [vmem:[#allocation33_spill] sm:$0xff]  ;;  %v4386_v26 = vld [vmem:[%s7768_s0 + $0x6a4] sm:$0xf0]  ;;  %v4400_v42 = vld [vmem:[%s7768_s0 + $0x6a0] sm:$0xf] }
 0x372   :  { %v2149_v15 = vadd.f32 %v7256_v20, %v7860_v47  ;;  %v4392_v29 = vld [vmem:[%s7768_s0 + $0x698] sm:$0xf]  ;;  %v4389_v51 = vor.u32 %v4925_v62, %v4386_v26 }
 0x373   :  { %v3307_v33 = vmax.f32 %v3157_v53, 0.0 }
 0x374   :  { %4706 = vmatmul.msk.bf16.gmra.mxu0 %vm1826_vm0, %v4361_v46  ;;  %v2651_v8 = vpop.f32.mrf.mxu2  ;;  %2959 = vmatmul.bf16.gmra.mxu3 %v4417_v30 }
 0x375   :  { %v5154_v61 = vpack.c.bf16 %v3307_v33, %v3306_v3  ;;  %v2652_v52 = vadd.f32 %v2651_v8, %v2398_v18  ;;  %v4393_v3 = vor.u32 %v4928_v16, %v4392_v29 }
 0x376   :  { %v2399_v25 = vpop.f32.mrf.mxu1 }
 0x377   :  { %5271 = vst [vmem:[%s7769_s3 + $0xf8] sm:$0xff] %v5154_v61   ;;  %v2906_v11 = vadd.f32 %v7330_v40, %v2652_v52  ;;  %v2400_v37 = vadd.f32 %v2399_v25, %v2146_v45  ;;  %v7444_v22 = vpop.f32.mrf.mxu3 }
 0x379   :  { %v3161_v49 = vpop.f32.mrf.mxu0  ;;  %v3160_v48 = vadd.f32 %v3159_v57, %v2906_v11  ;;  %v4929_v57 = vld [vmem:[%s7768_s0 + $0x6b0] sm:$0xf0] }
 0x37a   :  { %v4401_v8 = vor.u32 %v4929_v57, %v4400_v42  ;;  %v4941_v11 = vld [vmem:[%s7768_s0 + $0x714] sm:$0xf] }
 0x37b   :  { %v3308_v41 = vmax.f32 %v3160_v48, 0.0  ;;  %v7865_v42 = vld [vmem:[#allocation48_spill] sm:$0xff] }
 0x37c   :  { %v2653_v0 = vpop.f32.mrf.mxu2  ;;  %v2161_v57 = vadd.f32 %v7256_v20, %v7865_v42 }
 0x37d   :  { %v2654_v31 = vadd.f32 %v2653_v0, %v2400_v37  ;;  %v4454_v37 = vld [vmem:[%s7768_s0 + $0x724] sm:$0xf0]  ;;  %v4930_v0 = vld [vmem:[%s7768_s0 + $0x6bc] sm:$0xf] }
 0x37e   :  { %v2402_v43 = vpop.f32.mrf.mxu1 }
 0x37f   :  { %v2908_v40 = vadd.f32 %v7336_v12, %v2654_v31  ;;  %v2403_v44 = vadd.f32 %v2402_v43, %v2149_v15  ;;  %v7450_v54 = vpop.f32.mrf.mxu3  ;;  %v4457_v31 = vor.u32 %v4941_v11, %v4454_v37  ;;  %v4933_v43 = vld [vmem:[%s7768_s0 + $0x6d0] sm:$0xf0] }
 0x381   :  { %v3164_v35 = vpop.f32.mrf.mxu0  ;;  %v3162_v27 = vadd.f32 %v3161_v49, %v2908_v40  ;;  %2441 = vmatmul.bf16.gmra.mxu1 %v4369_v21  ;;  %2695 = vmatmul.bf16.gmra.mxu2 %v4373_v56  ;;  %v7862_v49 = vld [vmem:[#allocation39_spill] sm:$0xff]  ;;  %v4406_v21 = vld [vmem:[%s7768_s0 + $0x6cc] sm:$0xf0]  ;;  %v4412_v56 = vld [vmem:[%s7768_s0 + $0x6c0] sm:$0xf] }
 0x382   :  { %v2154_v60 = vadd.f32 %v7256_v20, %v7862_v49  ;;  %v4420_v40 = vld [vmem:[%s7768_s0 + $0x6c8] sm:$0xf]  ;;  %v4409_v15 = vor.u32 %v4930_v0, %v4406_v21 }
 0x383   :  { %v3309_v19 = vmax.f32 %v3162_v27, 0.0 }
 0x384   :  { %4707 = vmatmul.msk.bf16.gmra.mxu0 %vm1826_vm0, %v4381_v13  ;;  %v2656_v36 = vpop.f32.mrf.mxu2  ;;  %2964 = vmatmul.bf16.gmra.mxu3 %v4437_v63 }
 0x385   :  { %v5159_v50 = vpack.c.bf16 %v3309_v19, %v3308_v41  ;;  %v2657_v12 = vadd.f32 %v2656_v36, %v2403_v44  ;;  %v4413_v41 = vor.u32 %v4933_v43, %v4412_v56 }
 0x386   :  { %v2404_v59 = vpop.f32.mrf.mxu1 }
 0x387   :  { %5272 = vst [vmem:[%s7769_s3 + $0x100] sm:$0xff] %v5159_v50   ;;  %v2911_v46 = vadd.f32 %v7368_v14, %v2657_v12  ;;  %v2405_v32 = vadd.f32 %v2404_v59, %v2151_v4  ;;  %v7482_v61 = vpop.f32.mrf.mxu3 }
 0x389   :  { %v3166_v7 = vpop.f32.mrf.mxu0  ;;  %v3165_v18 = vadd.f32 %v3164_v35, %v2911_v46  ;;  %v4934_v35 = vld [vmem:[%s7768_s0 + $0x6d8] sm:$0xf0] }
 0x38a   :  { %v4421_v36 = vor.u32 %v4934_v35, %v4420_v40  ;;  %v4946_v46 = vld [vmem:[%s7768_s0 + $0x73c] sm:$0xf]  ;;  %v7867_v40 = vld [vmem:[#allocation54_spill] sm:$0xff] }
 0x38b   :  { %v3310_v24 = vmax.f32 %v3165_v18, 0.0  ;;  %v2166_v35 = vadd.f32 %v7256_v20, %v7867_v40 }
 0x38c   :  { %v2658_v53 = vpop.f32.mrf.mxu2 }
 0x38d   :  { %v2659_v17 = vadd.f32 %v2658_v53, %v2405_v32  ;;  %v4474_v32 = vld [vmem:[%s7768_s0 + $0x74c] sm:$0xf0]  ;;  %v4935_v53 = vld [vmem:[%s7768_s0 + $0x6e4] sm:$0xf] }
 0x38e   :  { %v2407_v33 = vpop.f32.mrf.mxu1 }
 0x38f   :  { %v2913_v14 = vadd.f32 %v7374_v39, %v2659_v17  ;;  %v2408_v30 = vadd.f32 %v2407_v33, %v2154_v60  ;;  %v7488_v38 = vpop.f32.mrf.mxu3  ;;  %v4477_v17 = vor.u32 %v4946_v46, %v4474_v32  ;;  %v4938_v33 = vld [vmem:[%s7768_s0 + $0x6f8] sm:$0xf0] }
 0x391   :  { %v3169_v25 = vpop.f32.mrf.mxu0  ;;  %v3167_v52 = vadd.f32 %v3166_v7, %v2913_v14  ;;  %2446 = vmatmul.bf16.gmra.mxu1 %v4389_v51  ;;  %2700 = vmatmul.bf16.gmra.mxu2 %v4393_v3  ;;  %v7864_v7 = vld [vmem:[#allocation45_spill] sm:$0xff]  ;;  %v4432_v3 = vld [vmem:[%s7768_s0 + $0x6e8] sm:$0xf]  ;;  %v4440_v14 = vld [vmem:[%s7768_s0 + $0x6f0] sm:$0xf] }
 0x392   :  { %v2159_v28 = vadd.f32 %v7256_v20, %v7864_v7  ;;  %v4426_v51 = vld [vmem:[%s7768_s0 + $0x6f4] sm:$0xf0] }
 0x393   :  { %v3311_v34 = vmax.f32 %v3167_v52, 0.0  ;;  %v4429_v60 = vor.u32 %v4935_v53, %v4426_v51 }
 0x394   :  { %4708 = vmatmul.msk.bf16.gmra.mxu0 %vm1826_vm0, %v4401_v8  ;;  %v2661_v45 = vpop.f32.mrf.mxu2  ;;  %2969 = vmatmul.bf16.gmra.mxu3 %v4457_v31 }
 0x395   :  { %v5164_v10 = vpack.c.bf16 %v3311_v34, %v3310_v24  ;;  %v2662_v39 = vadd.f32 %v2661_v45, %v2408_v30  ;;  %v4433_v24 = vor.u32 %v4938_v33, %v4432_v3  ;;  %v4956_v33 = vld [vmem:[%s7768_s0 + $0x78c] sm:$0xf] }
 0x396   :  { %v2409_v58 = vpop.f32.mrf.mxu1 }
 0x397   :  { %5273 = vst [vmem:[%s7769_s3 + $0x108] sm:$0xff] %v5164_v10   ;;  %v2916_v13 = vadd.f32 %v7406_v6, %v2662_v39  ;;  %v2410_v48 = vadd.f32 %v2409_v58, %v2156_v9  ;;  %v7520_v50 = vpop.f32.mrf.mxu3 }
 0x399   :  { %v3171_v55 = vpop.f32.mrf.mxu0  ;;  %v3170_v44 = vadd.f32 %v3169_v25, %v2916_v13  ;;  %v4939_v25 = vld [vmem:[%s7768_s0 + $0x700] sm:$0xf0] }
 0x39a   :  { %v4441_v45 = vor.u32 %v4939_v25, %v4440_v14  ;;  %v4951_v13 = vld [vmem:[%s7768_s0 + $0x764] sm:$0xf]  ;;  %v4945_v25 = vld [vmem:[%s7768_s0 + $0x734] sm:$0xf] }
 0x39b   :  { %v3312_v2 = vmax.f32 %v3170_v44, 0.0 }
 0x39c   :  { %v2663_v27 = vpop.f32.mrf.mxu2 }
 0x39d   :  { %v2664_v47 = vadd.f32 %v2663_v27, %v2410_v48  ;;  %v4494_v48 = vld [vmem:[%s7768_s0 + $0x774] sm:$0xf0]  ;;  %v4940_v27 = vld [vmem:[%s7768_s0 + $0x70c] sm:$0xf] }
 0x39e   :  { %v2412_v19 = vpop.f32.mrf.mxu1 }
 0x39f   :  { %v2918_v6 = vadd.f32 %v7412_v23, %v2664_v47  ;;  %v2413_v63 = vadd.f32 %v2412_v19, %v2159_v28  ;;  %v7526_v29 = vpop.f32.mrf.mxu3  ;;  %v4497_v47 = vor.u32 %v4951_v13, %v4494_v48  ;;  %v4943_v19 = vld [vmem:[%s7768_s0 + $0x720] sm:$0xf0] }
 0x3a1   :  { %v3174_v59 = vpop.f32.mrf.mxu0  ;;  %v3172_v12 = vadd.f32 %v3171_v55, %v2918_v6  ;;  %2451 = vmatmul.bf16.gmra.mxu1 %v4409_v15  ;;  %2705 = vmatmul.bf16.gmra.mxu2 %v4413_v41  ;;  %v7866_v55 = vld [vmem:[#allocation51_spill] sm:$0xff]  ;;  %v4446_v15 = vld [vmem:[%s7768_s0 + $0x71c] sm:$0xf0]  ;;  %v4452_v41 = vld [vmem:[%s7768_s0 + $0x710] sm:$0xf] }
 0x3a2   :  { %v2164_v11 = vadd.f32 %v7256_v20, %v7866_v55  ;;  %v4460_v6 = vld [vmem:[%s7768_s0 + $0x718] sm:$0xf]  ;;  %v4449_v28 = vor.u32 %v4940_v27, %v4446_v15 }
 0x3a3   :  { %v3313_v1 = vmax.f32 %v3172_v12, 0.0 }
 0x3a4   :  { %4709 = vmatmul.msk.bf16.gmra.mxu0 %vm1826_vm0, %v4421_v36  ;;  %v2666_v4 = vpop.f32.mrf.mxu2  ;;  %2974 = vmatmul.bf16.gmra.mxu3 %v4477_v17 }
 0x3a5   :  { %v5169_v62 = vpack.c.bf16 %v3313_v1, %v3312_v2  ;;  %v2667_v23 = vadd.f32 %v2666_v4, %v2413_v63  ;;  %v4453_v2 = vor.u32 %v4943_v19, %v4452_v41  ;;  %v7871_v19 = vld [vmem:[#allocation62_spill] sm:$0xff] }
 0x3a6   :  { %v2414_v26 = vpop.f32.mrf.mxu1 }
 0x3a7   :  { %5274 = vst [vmem:[%s7769_s3 + $0x110] sm:$0xff] %v5169_v62   ;;  %v2921_v8 = vadd.f32 %v7444_v22, %v2667_v23  ;;  %v2415_v18 = vadd.f32 %v2414_v26, %v2161_v57  ;;  %v7558_v10 = vpop.f32.mrf.mxu3 }
 0x3a9   :  { %v3176_v16 = vpop.f32.mrf.mxu0  ;;  %v3175_v30 = vadd.f32 %v3174_v59, %v2921_v8  ;;  %v4944_v59 = vld [vmem:[%s7768_s0 + $0x728] sm:$0xf0]  ;;  %v4514_v8 = vld [vmem:[%s7768_s0 + $0x79c] sm:$0xf0] }
 0x3aa   :  { %v4461_v4 = vor.u32 %v4944_v59, %v4460_v6  ;;  %v4486_v6 = vld [vmem:[%s7768_s0 + $0x76c] sm:$0xf0]  ;;  %v4492_v59 = vld [vmem:[%s7768_s0 + $0x760] sm:$0xf] }
 0x3ab   :  { %v3314_v37 = vmax.f32 %v3175_v30, 0.0 }
 0x3ac   :  { %v2668_v52 = vpop.f32.mrf.mxu2 }
 0x3ad   :  { %v2669_v49 = vadd.f32 %v2668_v52, %v2415_v18  ;;  %v7869_v18 = vld [vmem:[#allocation58_spill] sm:$0xff]  ;;  %v4517_v52 = vor.u32 %v4956_v33, %v4514_v8 }
 0x3ae   :  { %v2417_v34 = vpop.f32.mrf.mxu1  ;;  %v2171_v14 = vadd.f32 %v7256_v20, %v7869_v18 }
 0x3af   :  { %v2923_v22 = vadd.f32 %v7450_v54, %v2669_v49  ;;  %v2418_v31 = vadd.f32 %v2417_v34, %v2164_v11  ;;  %v7564_v56 = vpop.f32.mrf.mxu3  ;;  %v4466_v49 = vld [vmem:[%s7768_s0 + $0x744] sm:$0xf0] }
 0x3b0   :  { %v4469_v11 = vor.u32 %v4945_v25, %v4466_v49 }
 0x3b1   :  { %v3179_v58 = vpop.f32.mrf.mxu0  ;;  %v3177_v39 = vadd.f32 %v3176_v16, %v2923_v22  ;;  %2456 = vmatmul.bf16.gmra.mxu1 %v4429_v60  ;;  %2710 = vmatmul.bf16.gmra.mxu2 %v4433_v24  ;;  %v7868_v16 = vld [vmem:[#allocation56_spill] sm:$0xff]  ;;  %v4472_v60 = vld [vmem:[%s7768_s0 + $0x738] sm:$0xf]  ;;  %v4948_v24 = vld [vmem:[%s7768_s0 + $0x748] sm:$0xf0] }
 0x3b2   :  { %v2169_v46 = vadd.f32 %v7256_v20, %v7868_v16  ;;  %v4480_v22 = vld [vmem:[%s7768_s0 + $0x740] sm:$0xf] }
 0x3b3   :  { %v3315_v5 = vmax.f32 %v3177_v39, 0.0 }
 0x3b4   :  { %4710 = vmatmul.msk.bf16.gmra.mxu0 %vm1826_vm0, %v4441_v45  ;;  %v2671_v9 = vpop.f32.mrf.mxu2  ;;  %2979 = vmatmul.bf16.gmra.mxu3 %v4497_v47 }
 0x3b5   :  { %v5174_v0 = vpack.c.bf16 %v3315_v5, %v3314_v37  ;;  %v2672_v54 = vadd.f32 %v2671_v9, %v2418_v31  ;;  %v4473_v37 = vor.u32 %v4948_v24, %v4472_v60  ;;  %v4955_v60 = vld [vmem:[%s7768_s0 + $0x784] sm:$0xf]  ;;  %v4506_v24 = vld [vmem:[%s7768_s0 + $0x794] sm:$0xf0] }
 0x3b6   :  { %v2419_v21 = vpop.f32.mrf.mxu1 }
 0x3b7   :  { %5275 = vst [vmem:[%s7769_s3 + $0x118] sm:$0xff] %v5174_v0   ;;  %v2926_v36 = vadd.f32 %v7482_v61, %v2672_v54  ;;  %v2420_v44 = vadd.f32 %v2419_v21, %v2166_v35  ;;  %v7597_v26 = vpop.f32.mrf.mxu3  ;;  %v7870_v54 = vld [vmem:[#allocation60_spill] sm:$0xff] }
 0x3b9   :  { %v3181_v43 = vpop.f32.mrf.mxu0  ;;  %v3180_v62 = vadd.f32 %v3179_v58, %v2926_v36  ;;  %v4949_v58 = vld [vmem:[%s7768_s0 + $0x750] sm:$0xf0]  ;;  %v2176_v36 = vadd.f32 %v7256_v20, %v7871_v19 }
 0x3ba   :  { %v4481_v9 = vor.u32 %v4949_v58, %v4480_v22 }
 0x3bb   :  { %v3316_v32 = vmax.f32 %v3180_v62, 0.0 }
 0x3bc   :  { %v2673_v12 = vpop.f32.mrf.mxu2 }
 0x3bd   :  { %v2674_v7 = vadd.f32 %v2673_v12, %v2420_v44  ;;  %v4950_v44 = vld [vmem:[%s7768_s0 + $0x75c] sm:$0xf]  ;;  %v4953_v12 = vld [vmem:[%s7768_s0 + $0x770] sm:$0xf0] }
 0x3be   :  { %v2422_v1 = vpop.f32.mrf.mxu1 }
 0x3bf   :  { %v2928_v63 = vadd.f32 %v7488_v38, %v2674_v7  ;;  %v2423_v17 = vadd.f32 %v2422_v1, %v2169_v46  ;;  %v7625_v34 = vpop.f32.mrf.mxu3  ;;  %v4954_v1 = vld [vmem:[%s7768_s0 + $0x778] sm:$0xf0] }
 0x3c1   :  { %v3184_v61 = vpop.f32.mrf.mxu0  ;;  %v3182_v23 = vadd.f32 %v3181_v43, %v2928_v63  ;;  %2461 = vmatmul.bf16.gmra.mxu1 %v4449_v28  ;;  %2715 = vmatmul.bf16.gmra.mxu2 %v4453_v2  ;;  %v2174_v43 = vadd.f32 %v7256_v20, %v7870_v54  ;;  %v4500_v2 = vld [vmem:[%s7768_s0 + $0x768] sm:$0xf]  ;;  %v4489_v63 = vor.u32 %v4950_v44, %v4486_v6 }
 0x3c2   :  { %v4501_v16 = vor.u32 %v4954_v1, %v4500_v2 }
 0x3c3   :  { %v3317_v42 = vmax.f32 %v3182_v23, 0.0 }
 0x3c4   :  { %4711 = vmatmul.msk.bf16.gmra.mxu0 %vm1826_vm0, %v4461_v4  ;;  %v2676_v57 = vpop.f32.mrf.mxu2  ;;  %2984 = vmatmul.bf16.gmra.mxu3 %v4517_v52  ;;  %v7873_v52 = vld [vmem:[#allocation6_spill] sm:$0xff] }
 0x3c5   :  { %v5179_v53 = vpack.c.bf16 %v3317_v42, %v3316_v32  ;;  %v2677_v38 = vadd.f32 %v2676_v57, %v2423_v17  ;;  %v2181_v49 = vadd.f32 %v7256_v20, %v7873_v52 }
 0x3c6   :  { %v2424_v51 = vpop.f32.mrf.mxu1 }
 0x3c7   :  { %5276 = vst [vmem:[%s7769_s3 + $0x120] sm:$0xff] %v5179_v53   ;;  %v2931_v45 = vadd.f32 %v7520_v50, %v2677_v38  ;;  %v2425_v30 = vadd.f32 %v2424_v51, %v2171_v14  ;;  %v7638_v35 = vpop.f32.mrf.mxu3  ;;  %v7872_v53 = vld [vmem:[#allocation4_spill] sm:$0xff] }
 0x3c8   :  { %v2179_v17 = vadd.f32 %v7256_v20, %v7872_v53 }
 0x3c9   :  { %v3186_v3 = vpop.f32.mrf.mxu0  ;;  %v3185_v0 = vadd.f32 %v3184_v61, %v2931_v45  ;;  %v4493_v61 = vor.u32 %v4953_v12, %v4492_v59  ;;  %v4512_v45 = vld [vmem:[%s7768_s0 + $0x788] sm:$0xf] }
 0x3cb   :  { %v3318_v13 = vmax.f32 %v3185_v0, 0.0 }
 0x3cc   :  { %v2678_v39 = vpop.f32.mrf.mxu2 }
 0x3cd   :  { %v2679_v55 = vadd.f32 %v2678_v39, %v2425_v30  ;;  %v4958_v30 = vld [vmem:[%s7768_s0 + $0x798] sm:$0xf0]  ;;  %v4520_v39 = vld [vmem:[%s7768_s0 + $0x790] sm:$0xf] }
 0x3ce   :  { %v2427_v5 = vpop.f32.mrf.mxu1 }
 0x3cf   :  { %v2933_v31 = vadd.f32 %v7526_v29, %v2679_v55  ;;  %v2428_v47 = vadd.f32 %v2427_v5, %v2174_v43  ;;  %v2947_v46 = vpop.f32.mrf.mxu3  ;;  %v4959_v55 = vld [vmem:[%s7768_s0 + $0x7a0] sm:$0xf0]  ;;  %v4509_v5 = vor.u32 %v4955_v60, %v4506_v24 }
 0x3d1   :  { %v3189_v50 = vpop.f32.mrf.mxu0  ;;  %v3187_v21 = vadd.f32 %v3186_v3, %v2933_v31  ;;  %2466 = vmatmul.bf16.gmra.mxu1 %v4469_v11  ;;  %2720 = vmatmul.bf16.gmra.mxu2 %v4473_v37  ;;  %v4521_v31 = vor.u32 %v4959_v55, %v4520_v39 }
 0x3d3   :  { %v3319_v48 = vmax.f32 %v3187_v21, 0.0 }
 0x3d4   :  { %4712 = vmatmul.msk.bf16.gmra.mxu0 %vm1826_vm0, %v4481_v9  ;;  %v2681_v40 = vpop.f32.mrf.mxu2  ;;  %v4513_v9 = vor.u32 %v4958_v30, %v4512_v45  ;;  %v7878_v45 = vld [vmem:[#allocation16_spill] sm:$0xff] }
 0x3d5   :  { %v5184_v27 = vpack.c.bf16 %v3319_v48, %v3318_v13  ;;  %v2682_v29 = vadd.f32 %v2681_v40, %v2428_v47  ;;  %v7874_v13 = vld [vmem:[#allocation8_spill] sm:$0xff]  ;;  %v2194_v30 = vadd.f32 %v7256_v20, %v7878_v45 }
 0x3d6   :  { %v2429_v15 = vpop.f32.mrf.mxu1  ;;  %v2184_v48 = vadd.f32 %v7256_v20, %v7874_v13 }
 0x3d7   :  { %5277 = vst [vmem:[%s7769_s3 + $0x128] sm:$0xff] %v5184_v27   ;;  %v2936_v7 = vadd.f32 %v7558_v10, %v2682_v29  ;;  %v2430_v28 = vadd.f32 %v2429_v15, %v2176_v36  ;;  %v2950_v25 = vpop.f32.mrf.mxu3  ;;  %v7875_v36 = vld [vmem:[#allocation10_spill] sm:$0xff] }
 0x3d8   :  { %v2186_v44 = vadd.f32 %v7256_v20, %v7875_v36 }
 0x3d9   :  { %v3191_v41 = vpop.f32.mrf.mxu0  ;;  %v3190_v32 = vadd.f32 %v3189_v50, %v2936_v7 }
 0x3db   :  { %v3320_v51 = vmax.f32 %v3190_v32, 0.0 }
 0x3dc   :  { %v2683_v4 = vpop.f32.mrf.mxu2 }
 0x3dd   :  { %v2684_v62 = vadd.f32 %v2683_v4, %v2430_v28 }
 0x3de   :  { %v2432_v23 = vpop.f32.mrf.mxu1 }
 0x3df   :  { %v2938_v42 = vadd.f32 %v7564_v56, %v2684_v62  ;;  %v2433_v8 = vadd.f32 %v2432_v23, %v2179_v17  ;;  %v2952_v43 = vpop.f32.mrf.mxu3 }
 0x3e1   :  { %v3194_v10 = vpop.f32.mrf.mxu0  ;;  %v3192_v57 = vadd.f32 %v3191_v41, %v2938_v42  ;;  %2471 = vmatmul.bf16.gmra.mxu1 %v4489_v63  ;;  %2725 = vmatmul.bf16.gmra.mxu2 %v4493_v61  ;;  %v7876_v61 = vld [vmem:[#allocation12_spill] sm:$0xff] }
 0x3e2   :  { %v2189_v23 = vadd.f32 %v7256_v20, %v7876_v61 }
 0x3e3   :  { %v3321_v38 = vmax.f32 %v3192_v57, 0.0 }
 0x3e4   :  { %4713 = vmatmul.msk.bf16.gmra.mxu0 %vm1826_vm0, %v4501_v16  ;;  %v2686_v3 = vpop.f32.mrf.mxu2 }
 0x3e5   :  { %v5189_v33 = vpack.c.bf16 %v3321_v38, %v3320_v51  ;;  %v2687_v56 = vadd.f32 %v2686_v3, %v2433_v8  ;;  %v7877_v38 = vld [vmem:[#allocation14_spill] sm:$0xff] }
 0x3e6   :  { %v2434_v18 = vpop.f32.mrf.mxu1 }
 0x3e7   :  { %5278 = vst [vmem:[%s7769_s3 + $0x130] sm:$0xff] %v5189_v33   ;;  %v2941_v22 = vadd.f32 %v7597_v26, %v2687_v56  ;;  %v2435_v58 = vadd.f32 %v2434_v18, %v2181_v49  ;;  %v2955_v7 = vpop.f32.mrf.mxu3 }
 0x3e9   :  { %v3196_v14 = vpop.f32.mrf.mxu0  ;;  %v3195_v50 = vadd.f32 %v3194_v10, %v2941_v22 }
 0x3eb   :  { %v3322_v40 = vmax.f32 %v3195_v50, 0.0 }
 0x3ec   :  { %v2688_v11 = vpop.f32.mrf.mxu2 }
 0x3ed   :  { %v2689_v37 = vadd.f32 %v2688_v11, %v2435_v58 }
 0x3ee   :  { %v2437_v0 = vpop.f32.mrf.mxu1 }
 0x3ef   :  { %v2943_v21 = vadd.f32 %v7625_v34, %v2689_v37  ;;  %v2438_v29 = vadd.f32 %v2437_v0, %v2184_v48  ;;  %v2957_v17 = vpop.f32.mrf.mxu3 }
 0x3f1   :  { %v3199_v54 = vpop.f32.mrf.mxu0  ;;  %v3197_v26 = vadd.f32 %v3196_v14, %v2943_v21  ;;  %2476 = vmatmul.bf16.gmra.mxu1 %v4509_v5  ;;  %2730 = vmatmul.bf16.gmra.mxu2 %v4513_v9  ;;  %v7879_v9 = vld [vmem:[#allocation18_spill] sm:$0xff] }
 0x3f2   :  { %v2196_v0 = vadd.f32 %v7256_v20, %v7879_v9 }
 0x3f3   :  { %v3323_v27 = vmax.f32 %v3197_v26, 0.0 }
 0x3f4   :  { %4714 = vmatmul.msk.bf16.gmra.mxu0 %vm1826_vm0, %v4521_v31  ;;  %v2691_v47 = vpop.f32.mrf.mxu2 }
 0x3f5   :  { %v5194_v15 = vpack.c.bf16 %v3323_v27, %v3322_v40  ;;  %v2692_v34 = vadd.f32 %v2691_v47, %v2438_v29  ;;  %v7880_v47 = vld [vmem:[#allocation20_spill] sm:$0xff] }
 0x3f6   :  { %v2439_v41 = vpop.f32.mrf.mxu1 }
 0x3f7   :  { %5279 = vst [vmem:[%s7769_s3 + $0x138] sm:$0xff] %v5194_v15   ;;  %v2946_v6 = vadd.f32 %v7638_v35, %v2692_v34  ;;  %v2440_v59 = vadd.f32 %v2439_v41, %v2186_v44  ;;  %v2960_v60 = vpop.f32.mrf.mxu3  ;;  %v2199_v15 = vadd.f32 %v7256_v20, %v7880_v47 }
 0x3f9   :  { %v3201_v19 = vpop.f32.mrf.mxu0  ;;  %v3200_v1 = vadd.f32 %v3199_v54, %v2946_v6 }
 0x3fb   :  { %v3324_v16 = vmax.f32 %v3200_v1, 0.0 }
 0x3fc   :  { %v2693_v12 = vpop.f32.mrf.mxu2 }
 0x3fd   :  { %v2694_v28 = vadd.f32 %v2693_v12, %v2440_v59 }
 0x3fe   :  { %v2442_v2 = vpop.f32.mrf.mxu1 }
 0x3ff   :  { %v2948_v4 = vadd.f32 %v2947_v46, %v2694_v28  ;;  %v2443_v57 = vadd.f32 %v2442_v2, %v2189_v23  ;;  %v2191_v46 = vadd.f32 %v7256_v20, %v7877_v38  ;;  %v2962_v31 = vpop.f32.mrf.mxu3  ;;  %v7881_v28 = vld [vmem:[#allocation23_spill] sm:$0xff] }
 0x401   :  { %v3204_v62 = vpop.f32.mrf.mxu0  ;;  %v3202_v63 = vadd.f32 %v3201_v19, %v2948_v4 }
 0x403   :  { %v3325_v32 = vmax.f32 %v3202_v63, 0.0 }
 0x404   :  { %v2696_v42 = vpop.f32.mrf.mxu2 }
 0x405   :  { %v5199_v10 = vpack.c.bf16 %v3325_v32, %v3324_v16  ;;  %v2697_v35 = vadd.f32 %v2696_v42, %v2443_v57 }
 0x406   :  { %v2444_v53 = vpop.f32.mrf.mxu1 }
 0x407   :  { %5280 = vst [vmem:[%s7769_s3 + $0x140] sm:$0xff] %v5199_v10   ;;  %v2951_v3 = vadd.f32 %v2950_v25, %v2697_v35  ;;  %v2445_v33 = vadd.f32 %v2444_v53, %v2191_v46  ;;  %v2965_v19 = vpop.f32.mrf.mxu3  ;;  %v7882_v10 = vld [vmem:[#allocation26_spill] sm:$0xff] }
 0x409   :  { %v3206_v51 = vpop.f32.mrf.mxu0  ;;  %v3205_v14 = vadd.f32 %v3204_v62, %v2951_v3 }
 0x40b   :  { %v3326_v22 = vmax.f32 %v3205_v14, 0.0 }
 0x40c   :  { %v2698_v8 = vpop.f32.mrf.mxu2 }
 0x40d   :  { %v2699_v18 = vadd.f32 %v2698_v8, %v2445_v33 }
 0x40e   :  { %v2447_v56 = vpop.f32.mrf.mxu1 }
 0x40f   :  { %v2953_v52 = vadd.f32 %v2952_v43, %v2699_v18  ;;  %v2448_v11 = vadd.f32 %v2447_v56, %v2194_v30  ;;  %v2967_v61 = vpop.f32.mrf.mxu3  ;;  %v7883_v18 = vld [vmem:[#allocation29_spill] sm:$0xff] }
 0x411   :  { %v3209_v49 = vpop.f32.mrf.mxu0  ;;  %v3207_v24 = vadd.f32 %v3206_v51, %v2953_v52 }
 0x413   :  { %v3327_v58 = vmax.f32 %v3207_v24, 0.0 }
 0x414   :  { %v2701_v39 = vpop.f32.mrf.mxu2 }
 0x415   :  { %v5204_v55 = vpack.c.bf16 %v3327_v58, %v3326_v22  ;;  %v2702_v25 = vadd.f32 %v2701_v39, %v2448_v11 }
 0x416   :  { %v2449_v37 = vpop.f32.mrf.mxu1 }
 0x417   :  { %5281 = vst [vmem:[%s7769_s3 + $0x148] sm:$0xff] %v5204_v55   ;;  %v2956_v50 = vadd.f32 %v2955_v7, %v2702_v25  ;;  %v2450_v21 = vadd.f32 %v2449_v37, %v2196_v0  ;;  %v7724_v7 = vld [vmem:[%s7767_s2] ss:$0 sm:$0xff]  ;;  %v2970_v8 = vpop.f32.mrf.mxu3  ;;  %v7884_v55 = vld [vmem:[#allocation32_spill] sm:$0xff] }
 0x418   :  { %v2201_v20 = vadd.f32 %v7724_v7, %v7881_v28  ;;  %v2204_v57 = vadd.f32 %v7724_v7, %v7882_v10  ;;  %v2206_v56 = vadd.f32 %v7724_v7, %v7883_v18  ;;  %v2209_v11 = vadd.f32 %v7724_v7, %v7884_v55 }
 0x419   :  { %v3211_v5 = vpop.f32.mrf.mxu0  ;;  %v3210_v13 = vadd.f32 %v3209_v49, %v2956_v50 }
 0x41b   :  { %v3328_v29 = vmax.f32 %v3210_v13, 0.0 }
 0x41c   :  { %v2703_v54 = vpop.f32.mrf.mxu2 }
 0x41d   :  { %v2704_v26 = vadd.f32 %v2703_v54, %v2450_v21  ;;  %v7885_v54 = vld [vmem:[#allocation35_spill] sm:$0xff] }
 0x41e   :  { %v2452_v43 = vpop.f32.mrf.mxu1 }
 0x41f   :  { %v2958_v48 = vadd.f32 %v2957_v17, %v2704_v26  ;;  %v2453_v44 = vadd.f32 %v2452_v43, %v2199_v15  ;;  %v2972_v39 = vpop.f32.mrf.mxu3  ;;  %v2211_v26 = vadd.f32 %v7724_v7, %v7885_v54 }
 0x421   :  { %v3214_v40 = vpop.f32.mrf.mxu0  ;;  %v3212_v27 = vadd.f32 %v3211_v5, %v2958_v48 }
 0x423   :  { %v3329_v41 = vmax.f32 %v3212_v27, 0.0 }
 0x424   :  { %v2706_v34 = vpop.f32.mrf.mxu2 }
 0x425   :  { %v5209_v36 = vpack.c.bf16 %v3329_v41, %v3328_v29  ;;  %v2707_v59 = vadd.f32 %v2706_v34, %v2453_v44 }
 0x426   :  { %v2454_v6 = vpop.f32.mrf.mxu1 }
 0x427   :  { %5282 = vst [vmem:[%s7769_s3 + $0x150] sm:$0xff] %v5209_v36   ;;  %v2961_v2 = vadd.f32 %v2960_v60, %v2707_v59  ;;  %v2455_v1 = vadd.f32 %v2454_v6, %v2201_v20 }
 0x429   :  { %v3216_v12 = vpop.f32.mrf.mxu0  ;;  %v3215_v23 = vadd.f32 %v3214_v40, %v2961_v2  ;;  %v2975_v40 = vpop.f32.mrf.mxu3 }
 0x42b   :  { %v3330_v53 = vmax.f32 %v3215_v23, 0.0 }
 0x42c   :  { %v2708_v4 = vpop.f32.mrf.mxu2 }
 0x42d   :  { %v2709_v62 = vadd.f32 %v2708_v4, %v2455_v1 }
 0x42e   :  { %v2457_v63 = vpop.f32.mrf.mxu1 }
 0x42f   :  { %v2963_v16 = vadd.f32 %v2962_v31, %v2709_v62  ;;  %v2458_v38 = vadd.f32 %v2457_v63, %v2204_v57  ;;  %v7887_v62 = vld [vmem:[#allocation41_spill] sm:$0xff] }
 0x430   :  { %v2216_v63 = vadd.f32 %v7724_v7, %v7887_v62 }
 0x431   :  { %v3219_v32 = vpop.f32.mrf.mxu0  ;;  %v3217_v42 = vadd.f32 %v3216_v12, %v2963_v16  ;;  %v2977_v2 = vpop.f32.mrf.mxu3 }
 0x433   :  { %v3331_v17 = vmax.f32 %v3217_v42, 0.0 }
 0x434   :  { %v2711_v35 = vpop.f32.mrf.mxu2 }
 0x435   :  { %v5214_v51 = vpack.c.bf16 %v3331_v17, %v3330_v53  ;;  %v2712_v3 = vadd.f32 %v2711_v35, %v2458_v38 }
 0x436   :  { %v2459_v46 = vpop.f32.mrf.mxu1 }
 0x437   :  { %5283 = vst [vmem:[%s7769_s3 + $0x158] sm:$0xff] %v5214_v51   ;;  %v2966_v14 = vadd.f32 %v2965_v19, %v2712_v3  ;;  %v2460_v52 = vadd.f32 %v2459_v46, %v2206_v56  ;;  %v7886_v19 = vld [vmem:[#allocation38_spill] sm:$0xff]  ;;  %v7888_v51 = vld [vmem:[#allocation44_spill] sm:$0xff] }
 0x438   :  { %v2214_v36 = vadd.f32 %v7724_v7, %v7886_v19  ;;  %v2219_v38 = vadd.f32 %v7724_v7, %v7888_v51 }
 0x439   :  { %v3221_v33 = vpop.f32.mrf.mxu0  ;;  %v3220_v45 = vadd.f32 %v3219_v32, %v2966_v14  ;;  %v2980_v53 = vpop.f32.mrf.mxu3 }
 0x43b   :  { %v3332_v37 = vmax.f32 %v3220_v45, 0.0 }
 0x43c   :  { %v2713_v49 = vpop.f32.mrf.mxu2 }
 0x43d   :  { %v2714_v60 = vadd.f32 %v2713_v49, %v2460_v52  ;;  %v7889_v52 = vld [vmem:[#allocation47_spill] sm:$0xff] }
 0x43e   :  { %v2462_v24 = vpop.f32.mrf.mxu1  ;;  %v2221_v49 = vadd.f32 %v7724_v7, %v7889_v52 }
 0x43f   :  { %v2968_v30 = vadd.f32 %v2967_v61, %v2714_v60  ;;  %v2463_v0 = vadd.f32 %v2462_v24, %v2209_v11 }
 0x441   :  { %v3224_v22 = vpop.f32.mrf.mxu0  ;;  %v3222_v58 = vadd.f32 %v3221_v33, %v2968_v30  ;;  %v2982_v60 = vpop.f32.mrf.mxu3 }
 0x443   :  { %v3333_v25 = vmax.f32 %v3222_v58, 0.0 }
 0x444   :  { %v2716_v5 = vpop.f32.mrf.mxu2 }
 0x445   :  { %v5219_v9 = vpack.c.bf16 %v3333_v25, %v3332_v37  ;;  %v2717_v50 = vadd.f32 %v2716_v5, %v2463_v0  ;;  %v7890_v25 = vld [vmem:[#allocation50_spill] sm:$0xff] }
 0x446   :  { %v2464_v31 = vpop.f32.mrf.mxu1  ;;  %v2224_v5 = vadd.f32 %v7724_v7, %v7890_v25 }
 0x447   :  { %5284 = vst [vmem:[%s7769_s3 + $0x160] sm:$0xff] %v5219_v9   ;;  %v2971_v43 = vadd.f32 %v2970_v8, %v2717_v50  ;;  %v2465_v13 = vadd.f32 %v2464_v31, %v2211_v26 }
 0x449   :  { %v3226_v21 = vpop.f32.mrf.mxu0  ;;  %v3225_v15 = vadd.f32 %v3224_v22, %v2971_v43  ;;  %v2985_v31 = vpop.f32.mrf.mxu3 }
 0x44b   :  { %v3334_v44 = vmax.f32 %v3225_v15, 0.0 }
 0x44c   :  { %v2718_v48 = vpop.f32.mrf.mxu2 }
 0x44d   :  { %v2719_v27 = vadd.f32 %v2718_v48, %v2465_v13  ;;  %v7891_v48 = vld [vmem:[#allocation53_spill] sm:$0xff] }
 0x44e   :  { %v2467_v47 = vpop.f32.mrf.mxu1 }
 0x44f   :  { %v2973_v29 = vadd.f32 %v2972_v39, %v2719_v27  ;;  %v2468_v28 = vadd.f32 %v2467_v47, %v2214_v36 }
 0x451   :  { %v3229_v41 = vpop.f32.mrf.mxu0  ;;  %v3227_v34 = vadd.f32 %v3226_v21, %v2973_v29 }
 0x453   :  { %v3335_v6 = vmax.f32 %v3227_v34, 0.0 }
 0x454   :  { %v2721_v59 = vpop.f32.mrf.mxu2 }
 0x455   :  { %v5224_v12 = vpack.c.bf16 %v3335_v6, %v3334_v44  ;;  %v2722_v1 = vadd.f32 %v2721_v59, %v2468_v28 }
 0x456   :  { %v2469_v20 = vpop.f32.mrf.mxu1 }
 0x457   :  { %5285 = vst [vmem:[%s7769_s3 + $0x168] sm:$0xff] %v5224_v12   ;;  %v2976_v61 = vadd.f32 %v2975_v40, %v2722_v1  ;;  %v2470_v23 = vadd.f32 %v2469_v20, %v2216_v63  ;;  %v2226_v40 = vadd.f32 %v7724_v7, %v7891_v48 }
 0x459   :  { %v3231_v4 = vpop.f32.mrf.mxu0  ;;  %v3230_v10 = vadd.f32 %v3229_v41, %v2976_v61  ;;  %v2987_v41 = vpop.f32.mrf.mxu3 }
 0x45b   :  { %v3336_v46 = vmax.f32 %v3230_v10, 0.0 }
 0x45c   :  { %v2723_v16 = vpop.f32.mrf.mxu2 }
 0x45d   :  { %v2724_v32 = vadd.f32 %v2723_v16, %v2470_v23 }
 0x45e   :  { %v2472_v42 = vpop.f32.mrf.mxu1 }
 0x45f   :  { %v2978_v57 = vadd.f32 %v2977_v2, %v2724_v32  ;;  %v2473_v18 = vadd.f32 %v2472_v42, %v2219_v38 }
 0x461   :  { %v3232_v17 = vadd.f32 %v3231_v4, %v2978_v57  ;;  %v3234_v35 = vpop.f32.mrf.mxu0 }
 0x463   :  { %v3337_v3 = vmax.f32 %v3232_v17, 0.0 }
 0x464   :  { %v2726_v33 = vpop.f32.mrf.mxu2 }
 0x465   :  { %v5229_v8 = vpack.c.bf16 %v3337_v3, %v3336_v46  ;;  %v2727_v14 = vadd.f32 %v2726_v33, %v2473_v18 }
 0x466   :  { %v2474_v56 = vpop.f32.mrf.mxu1 }
 0x467   :  { %5286 = vst [vmem:[%s7769_s3 + $0x170] sm:$0xff] %v5229_v8   ;;  %v2981_v24 = vadd.f32 %v2980_v53, %v2727_v14  ;;  %v2475_v45 = vadd.f32 %v2474_v56, %v2221_v49 }
 0x469   :  { %v3236_v30 = vpop.f32.mrf.mxu0  ;;  %v3235_v55 = vadd.f32 %v3234_v35, %v2981_v24 }
 0x46b   :  { %v3338_v9 = vmax.f32 %v3235_v55, 0.0 }
 0x46c   :  { %v2728_v22 = vpop.f32.mrf.mxu2 }
 0x46d   :  { %v2729_v58 = vadd.f32 %v2728_v22, %v2475_v45 }
 0x46e   :  { %v2477_v39 = vpop.f32.mrf.mxu1 }
 0x46f   :  { %v2983_v11 = vadd.f32 %v2982_v60, %v2729_v58  ;;  %v2478_v54 = vadd.f32 %v2477_v39, %v2224_v5 }
 0x471   :  { %v3237_v37 = vadd.f32 %v3236_v30, %v2983_v11  ;;  %v3239_v26 = vpop.f32.mrf.mxu0 }
 0x473   :  { %v3339_v0 = vmax.f32 %v3237_v37, 0.0 }
 0x474   :  { %v2731_v50 = vpop.f32.mrf.mxu2 }
 0x475   :  { %v5234_v21 = vpack.c.bf16 %v3339_v0, %v3338_v9  ;;  %v2732_v43 = vadd.f32 %v2731_v50, %v2478_v54 }
 0x476   :  { %v2479_v13 = vpop.f32.mrf.mxu1 }
 0x477   :  { %5287 = vst [vmem:[%s7769_s3 + $0x178] sm:$0xff] %v5234_v21   ;;  %v2986_v27 = vadd.f32 %v2985_v31, %v2732_v43  ;;  %v2480_v47 = vadd.f32 %v2479_v13, %v2226_v40 }
 0x479   :  { %v3240_v34 = vadd.f32 %v3239_v26, %v2986_v27  ;;  %v3241_v36 = vpop.f32.mrf.mxu0 }
 0x47b   :  { %v3340_v6 = vmax.f32 %v3240_v34, 0.0 }
 0x47c   :  { %v2733_v15 = vpop.f32.mrf.mxu2 }
 0x47d   :  { %v2734_v29 = vadd.f32 %v2733_v15, %v2480_v47 }
 0x47f   :  { %v2988_v19 = vadd.f32 %v2987_v41, %v2734_v29 }
 0x481   :  { %v3242_v44 = vadd.f32 %v3241_v36, %v2988_v19 }
 0x483   :  { %v3341_v59 = vmax.f32 %v3242_v44, 0.0 }
 0x485   :  { %v5239_v12 = vpack.c.bf16 %v3341_v59, %v3340_v6 }
 0x487   :  { %5288 = vst [vmem:[%s7769_s3 + $0x180] sm:$0xff] %v5239_v12  }

// kernel: forward.7
= control target key start
LH: loop header
LB: loop body
LE: loop exit
PB: predicated region body
PF: predicated region fallthrough
CT: control target
= control target key end

     0   :  { %s384_s0 = inlined_call_operand.vmem [shape: bf16[2,256], index: 0, kind: input, shape index: {}]   ;;  %s385_s1 = inlined_call_operand.vmem [shape: bf16[256,3], index: 1, kind: input, shape index: {}]   ;;  %s386_s2 = inlined_call_operand.vmem [shape: f32[1,3], index: 2, kind: input, shape index: {}]   ;;  %s387_s3 = inlined_call_operand.hbm [shape: f32[2,3], index: 3, kind: output, shape index: {}]  }
   0x1   :  { %v269_v0 = vld [vmem:[%s385_s1 + $0x38] sm:$0xff]  ;;  %v268_v2 = vld [vmem:[%s385_s1 + $0x30] sm:$0xff]  ;;  %v15_v4 = vld [vmem:[%s384_s0] sm:$0x3] }
   0x2   :  { %v277_v1 = vld [vmem:[%s385_s1 + $0x78] sm:$0xff]  ;;  %154 = vmatpush.bf16.msra.mxu0 %v269_v0  ;;  %v276_v3 = vld [vmem:[%s385_s1 + $0x70] sm:$0xff]  ;;  %v267_v5 = vld [vmem:[%s385_s1 + $0x28] sm:$0xff]  ;;  %53 = vst [vmem:[#allocation1] ss:$9 sm:$0xff] %v15_v4 }
   0x3   :  { %167 = vmatpush.bf16.msra.mxu1 %v277_v1  ;;  %v275_v6 = vld [vmem:[%s385_s1 + $0x68] sm:$0xff] }
   0x6   :  { %155 = vmatpush.bf16.msra.mxu0 %v268_v2 }
   0x7   :  { %168 = vmatpush.bf16.msra.mxu1 %v276_v3 }
   0x8   :  { %8 = vsyncpa [#allocation3], 0  ;;  %v266_v7 = vld [vmem:[%s385_s1 + $0x20] sm:$0xff]  ;;  %v265_v9 = vld [vmem:[%s385_s1 + $0x18] sm:$0xff]  ;;  %s306_s20 = smov [#allocation2]   ;;  %s189_s24 = sshll.u32 %s387_s3, 4  ;;  %s190_s24 = int_to_ptr.hbm [resolvable:$true] %s189_s24 }
   0x9   :  { %v274_v8 = vld [vmem:[%s385_s1 + $0x60] sm:$0xff]  ;;  %v273_v10 = vld [vmem:[%s385_s1 + $0x58] sm:$0xff]  ;;  %v264_v11 = vld [vmem:[%s385_s1 + $0x10] sm:$0xff]  ;;  %s187_s21 = sshll.u32 %s306_s20, 4  ;;  %vm180_vm0 = vcmask 17408   ;;  %s188_s21 = int_to_ptr.vmem [resolvable:$true] %s187_s21 }
   0xa   :  { %156 = vmatpush.bf16.msra.mxu0 %v267_v5  ;;  %v272_v12 = vld [vmem:[%s385_s1 + $0x50] sm:$0xff]  ;;  %v263_v13 = vld [vmem:[%s385_s1 + $0x8] sm:$0xff]  ;;  %v262_v15 = vld [vmem:[%s385_s1] sm:$0xff] }
   0xb   :  { %169 = vmatpush.bf16.msra.mxu1 %v275_v6  ;;  %v271_v14 = vld [vmem:[%s385_s1 + $0x48] sm:$0xff]  ;;  %v270_v16 = vld [vmem:[%s385_s1 + $0x40] sm:$0xff] }
   0xc   :  { %v54_v17 = vld [vmem:[#allocation1] sm:$0xff]  ;;  %v55_v18 = vld [vmem:[#allocation1 + $0x9] sm:$0xff] }
   0xd   :  { %v279_v19 = vld [vmem:[%s386_s2] ss:$0 sm:$0xff] }
   0xe   :  { %157 = vmatpush.bf16.msra.mxu0 %v266_v7 }
   0xf   :  { %170 = vmatpush.bf16.msra.mxu1 %v274_v8 }
  0x12   :  { %158 = vmatpush.bf16.msra.mxu0 %v265_v9 }
  0x13   :  { %171 = vmatpush.bf16.msra.mxu1 %v273_v10 }
  0x16   :  { %159 = vmatpush.bf16.msra.mxu0 %v264_v11 }
  0x17   :  { %172 = vmatpush.bf16.msra.mxu1 %v272_v12 }
  0x1a   :  { %160 = vmatpush.bf16.msra.mxu0 %v263_v13 }
  0x1b   :  { %173 = vmatpush.bf16.msra.mxu1 %v271_v14 }
  0x1e   :  { %161 = vmatpush.bf16.msra.mxu0 %v262_v15 }
  0x1f   :  { %174 = vmatpush.bf16.msra.mxu1 %v270_v16 }
  0x21   :  { %162 = vmatmul.bf16.vlgmr.msra.gmra.mxu0 %v54_v17 }
  0x22   :  { %175 = vmatmul.bf16.vlgmr.msra.gmra.mxu1 %v55_v18 }
  0x9e   :  { %v163_v20 = vpop.f32.mrf.mxu0 }
  0x9f   :  { %v176_v21 = vpop.f32.mrf.mxu1  ;;  %v164_v22 = vadd.f32 %v279_v19, %v163_v20 }
  0xa1   :  { %v177_v23 = vadd.f32 %v176_v21, %v164_v22 }
  0xa3   :  { %181 = vst.msk [vmem:[#allocation2] sm:$0x3] %vm180_vm0, %v177_v23 }
  0xa4   :  { %192 = dma.vmem_to_hbm [thread:$0]  %s188_s21, 32, %s190_s24, [#allocation3]  }
  0xa6   :  { %v165_v24 = vpop.f32.mrf.mxu0 }
  0xa7   :  { %v178_v25 = vpop.f32.mrf.mxu1 }
  0xa8   :  { %304 = dma.done.wait [#allocation3], 32  }
  0xa9   :  { %305 = vsyncadd [#allocation3], 4294967264 }
  0xaa   :  { %197 = vsyncpa [#allocation3], 1 }

// kernel: forward.6
= control target key start
LH: loop header
LB: loop body
LE: loop exit
PB: predicated region body
PF: predicated region fallthrough
CT: control target
= control target key end

     0   :  { %s12202_s12 = smov 0   ;;  %s12204_s13 = smov 0   ;;  %s13102_s0 = inlined_call_operand.vmem [shape: bf16[2,50176], index: 0, kind: input, shape index: {}]   ;;  %s13103_s1 = inlined_call_operand.vmem [shape: bf16[2,50176,128], index: 1, kind: input, shape index: {}]   ;;  %s13104_s2 = inlined_call_operand.vmem [shape: f32[1,256], index: 2, kind: input, shape index: {}]   ;;  %s13105_s3 = inlined_call_operand.vmem [shape: bf16[2,256], index: 3, kind: output, shape index: {}]  }
   0x1   :  { %s12206_s14 = smov 0   ;;  %s12208_s15 = smov 0  }
   0x2   :  { %s12210_s16 = smov 0  }
   0x3 LB: > { %s25_s17 = sadd.s32 1, %s12171_s14  ;;  %s28_s18 = sadd.s32 1, %s12175_s15  ;;  %s12179_s16 = sphi %s12210_s16, %s13_s16   ;;  %s12175_s15 = sphi %s12208_s15, %s13109_s15   ;;  %s12171_s14 = sphi %s12206_s14, %s13108_s14   ;;  %s12167_s13 = sphi %s12204_s13, %s13107_s13   ;;  %s12163_s12 = sphi %s12202_s12, %s13106_s12  }
   0x4   : > { %p26_p0 = scmp.ge.s32.totalorder %s25_s17, 4  ;;  %p8172_p1 = scmp.ge.s32.totalorder %s12179_s16, 1 }
   0x5   : > { %p189_p2 = scmp.lt.s32.totalorder %s12179_s16, 9 }
   0x6   : > { %s13111_s17 = smov (%p26_p0, %s25_s17), 0  ;;  %s13113_s18 = smov (!%p26_p0, %s28_s18), %s12175_s15 }
   0x7   : > { %p190_p3 = pnand %p8172_p1, %p189_p2  ;;  %p30_p4 = scmp.ge.s32.totalorder %s13113_s18, 2 }
   0x8   : > { %s230_s19 = smul.u32 (!%p190_p3), 98, %s12163_s12  ;;  %p240_p5 = scmp.lt.s32.totalorder (!%p190_p3), %s12167_s13, 1 }
   0x9   : > { %s13115_s18 = smov (%p30_p4, %s13113_s18), 0  ;;  %193 = sbr.rel (%p190_p3) target bundleno = 972 (0x3cc), region = 32 }
   0xa   : > { %s239_s20 = smul.u32 (!%p190_p3), 1568, %s12163_s12  ;;  %p233_p6 = scmp.lt.s32.totalorder (!%p190_p3), %s230_s19, 391 }
   0xb   : > { %p8174_p8 = scmp.ne.s32.totalorder (!%p190_p3), %s12163_s12, 0 }
   0xc   : > { %p242_p7 = scmp.lt.s32.totalorder (!%p190_p3), %s239_s20, 6271 }
   0xe   : > { %s13117_s13 = smov (!%p240_p5, %s12167_s13), 1  ;;  %s13119_s19 = smov (!%p233_p6, %s230_s19), 391 }
   0xf   : > { %s12098_s21 = smul.u32 6272, %s13117_s13  ;;  %s12242_s24 = scalar_lea.vmem %s13102_s0, %s13119_s19 }
  0x10   : > { %s251_s27 = scalar_lea.vmem %s13104_s2, %s13117_s13  ;;  %s13121_s20 = smov (!%p242_p7, %s239_s20), 6271 }
  0x11   : > { %s258_s30 = scalar_lea.vmem %s13105_s3, %s13117_s13  ;;  %s245_s4 = sadd.s32 %s12098_s21, %s13121_s20 }
  0x12   : > { %s8173_s5 = sshll.u32 %s245_s4, 2  ;;  %262 = sbr.rel (%p8174_p8) target bundleno = 25 (0x19), region = 36 }
  0x13   : > { %s12255_s8 = scalar_lea.vmem %s13103_s1, %s8173_s5 }
  0x17   : > { %v12181_v0 = vmov 0.0  }
  0x18   : > { %263 = vst [vmem:[#allocation2] sm:$0x3] %v12181_v0 }
  0x19 PF: > { %v11321_v1 = vld [vmem:[%s12255_s8 + $0x38] sm:$0xff]  ;;  %v11320_v5 = vld [vmem:[%s12255_s8 + $0x30] sm:$0xff]  ;;  %v11319_v9 = vld [vmem:[%s12255_s8 + $0x28] sm:$0xff]  ;;  %p11311_p9 = scmp.ne.s32.totalorder %s12163_s12, 3 }
  0x1a   : > { %v11329_v2 = vld [vmem:[%s12255_s8 + $0x78] sm:$0xff]  ;;  %6772 = vmatpush.bf16.msra.mxu0 %v11321_v1  ;;  %v11328_v6 = vld [vmem:[%s12255_s8 + $0x70] sm:$0xff]  ;;  %v11327_v10 = vld [vmem:[%s12255_s8 + $0x68] sm:$0xff] }
  0x1b   : > { %v11337_v3 = vld [vmem:[%s12255_s8 + $0xb8] sm:$0xff]  ;;  %6785 = vmatpush.bf16.msra.mxu1 %v11329_v2  ;;  %v11336_v7 = vld [vmem:[%s12255_s8 + $0xb0] sm:$0xff]  ;;  %v11335_v11 = vld [vmem:[%s12255_s8 + $0xa8] sm:$0xff] }
  0x1c   : > { %v11345_v4 = vld [vmem:[%s12255_s8 + $0xf8] sm:$0xff]  ;;  %6798 = vmatpush.bf16.msra.mxu2 %v11337_v3  ;;  %v11344_v8 = vld [vmem:[%s12255_s8 + $0xf0] sm:$0xff]  ;;  %v11343_v12 = vld [vmem:[%s12255_s8 + $0xe8] sm:$0xff] }
  0x1d   : > { %6811 = vmatpush.bf16.msra.mxu3 %v11345_v4  ;;  %v11318_v13 = vld [vmem:[%s12255_s8 + $0x20] sm:$0xff]  ;;  %v11317_v17 = vld [vmem:[%s12255_s8 + $0x18] sm:$0xff]  ;;  %v11316_v22 = vld [vmem:[%s12255_s8 + $0x10] sm:$0xff] }
  0x1e   : > { %6773 = vmatpush.bf16.msra.mxu0 %v11320_v5  ;;  %v11326_v14 = vld [vmem:[%s12255_s8 + $0x60] sm:$0xff]  ;;  %v11325_v18 = vld [vmem:[%s12255_s8 + $0x58] sm:$0xff]  ;;  %v11324_v23 = vld [vmem:[%s12255_s8 + $0x50] sm:$0xff] }
  0x1f   : > { %6786 = vmatpush.bf16.msra.mxu1 %v11328_v6  ;;  %v11334_v15 = vld [vmem:[%s12255_s8 + $0xa0] sm:$0xff]  ;;  %v11333_v19 = vld [vmem:[%s12255_s8 + $0x98] sm:$0xff]  ;;  %v11332_v24 = vld [vmem:[%s12255_s8 + $0x90] sm:$0xff] }
  0x20   : > { %6799 = vmatpush.bf16.msra.mxu2 %v11336_v7  ;;  %v11342_v16 = vld [vmem:[%s12255_s8 + $0xe0] sm:$0xff]  ;;  %v11341_v20 = vld [vmem:[%s12255_s8 + $0xd8] sm:$0xff]  ;;  %v11340_v25 = vld [vmem:[%s12255_s8 + $0xd0] sm:$0xff] }
  0x21   : > { %6812 = vmatpush.bf16.msra.mxu3 %v11344_v8  ;;  %v265_v21 = vld [vmem:[%s12242_s24] sm:$0xff]  ;;  %v11315_v26 = vld [vmem:[%s12255_s8 + $0x8] sm:$0xff]  ;;  %v11353_v33 = vld [vmem:[%s12255_s8 + $0x138] sm:$0xff] }
  0x22   : > { %6774 = vmatpush.bf16.msra.mxu0 %v11319_v9  ;;  %1847 = vst [vmem:[#allocation1] ss:$9 sm:$0xff] %v265_v21  ;;  %v11323_v27 = vld [vmem:[%s12255_s8 + $0x48] sm:$0xff]  ;;  %v11314_v30 = vld [vmem:[%s12255_s8] sm:$0xff]  ;;  %v11361_v34 = vld [vmem:[%s12255_s8 + $0x178] sm:$0xff] }
  0x23   : > { %6787 = vmatpush.bf16.msra.mxu1 %v11327_v10  ;;  %v11331_v28 = vld [vmem:[%s12255_s8 + $0x88] sm:$0xff]  ;;  %v11322_v31 = vld [vmem:[%s12255_s8 + $0x40] sm:$0xff]  ;;  %v11369_v35 = vld [vmem:[%s12255_s8 + $0x1b8] sm:$0xff] }
  0x24   : > { %6800 = vmatpush.bf16.msra.mxu2 %v11335_v11  ;;  %v11339_v29 = vld [vmem:[%s12255_s8 + $0xc8] sm:$0xff]  ;;  %v11330_v32 = vld [vmem:[%s12255_s8 + $0x80] sm:$0xff]  ;;  %v11377_v37 = vld [vmem:[%s12255_s8 + $0x1f8] sm:$0xff] }
  0x25   : > { %6813 = vmatpush.bf16.msra.mxu3 %v11343_v12  ;;  %v11338_v36 = vld [vmem:[%s12255_s8 + $0xc0] sm:$0xff]  ;;  %v11352_v39 = vld [vmem:[%s12255_s8 + $0x130] sm:$0xff]  ;;  %v11351_v46 = vld [vmem:[%s12255_s8 + $0x128] sm:$0xff] }
  0x26   : > { %6775 = vmatpush.bf16.msra.mxu0 %v11318_v13  ;;  %v11360_v41 = vld [vmem:[%s12255_s8 + $0x170] sm:$0xff]  ;;  %v11359_v47 = vld [vmem:[%s12255_s8 + $0x168] sm:$0xff]  ;;  %v11350_v50 = vld [vmem:[%s12255_s8 + $0x120] sm:$0xff] }
  0x27   : > { %6788 = vmatpush.bf16.msra.mxu1 %v11326_v14  ;;  %v11368_v42 = vld [vmem:[%s12255_s8 + $0x1b0] sm:$0xff]  ;;  %v11367_v48 = vld [vmem:[%s12255_s8 + $0x1a8] sm:$0xff]  ;;  %v11358_v51 = vld [vmem:[%s12255_s8 + $0x160] sm:$0xff] }
  0x28   : > { %6801 = vmatpush.bf16.msra.mxu2 %v11334_v15  ;;  %v11376_v44 = vld [vmem:[%s12255_s8 + $0x1f0] sm:$0xff]  ;;  %v11375_v49 = vld [vmem:[%s12255_s8 + $0x1e8] sm:$0xff]  ;;  %v11366_v52 = vld [vmem:[%s12255_s8 + $0x1a0] sm:$0xff] }
  0x29   : > { %6814 = vmatpush.bf16.msra.mxu3 %v11342_v16  ;;  %v1848_v38 = vld [vmem:[#allocation1] sm:$0xff]  ;;  %v1850_v40 = vld [vmem:[#allocation1 + $0x12] sm:$0xff]  ;;  %v1849_v43 = vld [vmem:[#allocation1 + $0x9] sm:$0xff] }
  0x2a   : > { %6776 = vmatpush.bf16.msra.mxu0 %v11317_v17  ;;  %v1851_v45 = vld [vmem:[#allocation1 + $0x1b] sm:$0xff]  ;;  %v11348_v58 = vld [vmem:[%s12255_s8 + $0x110] sm:$0xff]  ;;  %v11347_v62 = vld [vmem:[%s12255_s8 + $0x108] sm:$0xff] }
  0x2b   : > { %6789 = vmatpush.bf16.msra.mxu1 %v11325_v18  ;;  %v11374_v53 = vld [vmem:[%s12255_s8 + $0x1e0] sm:$0xff]  ;;  %v11349_v54 = vld [vmem:[%s12255_s8 + $0x118] sm:$0xff]  ;;  %v11356_v59 = vld [vmem:[%s12255_s8 + $0x150] sm:$0xff] }
  0x2c   : > { %6802 = vmatpush.bf16.msra.mxu2 %v11333_v19  ;;  %v11357_v55 = vld [vmem:[%s12255_s8 + $0x158] sm:$0xff]  ;;  %v11364_v60 = vld [vmem:[%s12255_s8 + $0x190] sm:$0xff]  ;;  %v11355_v63 = vld [vmem:[%s12255_s8 + $0x148] sm:$0xff] }
  0x2d   : > { %6815 = vmatpush.bf16.msra.mxu3 %v11341_v20  ;;  %v11365_v56 = vld [vmem:[%s12255_s8 + $0x198] sm:$0xff]  ;;  %v11372_v61 = vld [vmem:[%s12255_s8 + $0x1d0] sm:$0xff]  ;;  %v11363_v0 = vld [vmem:[%s12255_s8 + $0x188] sm:$0xff] }
  0x2e   : > { %6777 = vmatpush.bf16.msra.mxu0 %v11316_v22  ;;  %v11373_v57 = vld [vmem:[%s12255_s8 + $0x1d8] sm:$0xff]  ;;  %v1852_v2 = vld [vmem:[#allocation1 + $0x24] sm:$0xff]  ;;  %v1853_v4 = vld [vmem:[#allocation1 + $0x2d] sm:$0xff] }
  0x2f   : > { %6790 = vmatpush.bf16.msra.mxu1 %v11324_v23  ;;  %v1854_v1 = vld [vmem:[#allocation1 + $0x36] sm:$0xff]  ;;  %v1855_v3 = vld [vmem:[#allocation1 + $0x3f] sm:$0xff]  ;;  %v266_v5 = vld [vmem:[%s12242_s24 + $0x8] sm:$0xff] }
  0x30   : > { %6803 = vmatpush.bf16.msra.mxu2 %v11332_v24  ;;  %1857 = vst [vmem:[#allocation1] ss:$9 sm:$0xff] %v266_v5  ;;  %v11371_v6 = vld [vmem:[%s12255_s8 + $0x1c8] sm:$0xff]  ;;  %v11346_v7 = vld [vmem:[%s12255_s8 + $0x100] sm:$0xff]  ;;  %v11385_v10 = vld [vmem:[%s12255_s8 + $0x238] sm:$0xff] }
  0x31   : > { %6816 = vmatpush.bf16.msra.mxu3 %v11340_v25  ;;  %v11354_v8 = vld [vmem:[%s12255_s8 + $0x140] sm:$0xff]  ;;  %v11393_v11 = vld [vmem:[%s12255_s8 + $0x278] sm:$0xff]  ;;  %v11384_v15 = vld [vmem:[%s12255_s8 + $0x230] sm:$0xff] }
  0x32   : > { %6778 = vmatpush.bf16.msra.mxu0 %v11315_v26  ;;  %v11362_v9 = vld [vmem:[%s12255_s8 + $0x180] sm:$0xff]  ;;  %v11401_v12 = vld [vmem:[%s12255_s8 + $0x2b8] sm:$0xff]  ;;  %v11392_v16 = vld [vmem:[%s12255_s8 + $0x270] sm:$0xff] }
  0x33   : > { %6791 = vmatpush.bf16.msra.mxu1 %v11323_v27  ;;  %v11370_v13 = vld [vmem:[%s12255_s8 + $0x1c0] sm:$0xff]  ;;  %v11409_v14 = vld [vmem:[%s12255_s8 + $0x2f8] sm:$0xff]  ;;  %v11400_v17 = vld [vmem:[%s12255_s8 + $0x2b0] sm:$0xff] }
  0x34   : > { %6804 = vmatpush.bf16.msra.mxu2 %v11331_v28  ;;  %v11408_v18 = vld [vmem:[%s12255_s8 + $0x2f0] sm:$0xff]  ;;  %v11383_v19 = vld [vmem:[%s12255_s8 + $0x228] sm:$0xff]  ;;  %v11382_v23 = vld [vmem:[%s12255_s8 + $0x220] sm:$0xff] }
  0x35   : > { %6817 = vmatpush.bf16.msra.mxu3 %v11339_v29  ;;  %v11391_v20 = vld [vmem:[%s12255_s8 + $0x268] sm:$0xff]  ;;  %v11390_v24 = vld [vmem:[%s12255_s8 + $0x260] sm:$0xff]  ;;  %v11381_v27 = vld [vmem:[%s12255_s8 + $0x218] sm:$0xff] }
  0x36   : > { %6779 = vmatpush.bf16.msra.mxu0 %v11314_v30  ;;  %v11399_v21 = vld [vmem:[%s12255_s8 + $0x2a8] sm:$0xff]  ;;  %v11398_v25 = vld [vmem:[%s12255_s8 + $0x2a0] sm:$0xff]  ;;  %v11389_v28 = vld [vmem:[%s12255_s8 + $0x258] sm:$0xff] }
  0x37   : > { %6792 = vmatpush.bf16.msra.mxu1 %v11322_v31  ;;  %v11407_v22 = vld [vmem:[%s12255_s8 + $0x2e8] sm:$0xff]  ;;  %v11406_v26 = vld [vmem:[%s12255_s8 + $0x2e0] sm:$0xff]  ;;  %v11397_v29 = vld [vmem:[%s12255_s8 + $0x298] sm:$0xff] }
  0x38   : > { %6805 = vmatpush.bf16.msra.mxu2 %v11330_v32  ;;  %v11405_v30 = vld [vmem:[%s12255_s8 + $0x2d8] sm:$0xff]  ;;  %v11380_v31 = vld [vmem:[%s12255_s8 + $0x210] sm:$0xff] }
  0x39   : > { %6818 = vmatpush.bf16.msra.mxu3 %v11338_v36  ;;  %6780 = vmatmul.bf16.vlgmr.msra.gmra.mxu0 %v1848_v38  ;;  %v11388_v32 = vld [vmem:[%s12255_s8 + $0x250] sm:$0xff]  ;;  %v11387_v36 = vld [vmem:[%s12255_s8 + $0x248] sm:$0xff] }
  0x3a   : > { %6824 = vmatpush.bf16.msrb.mxu0 %v11353_v33  ;;  %6793 = vmatmul.bf16.vlgmr.msra.gmra.mxu1 %v1849_v43  ;;  %v11396_v33 = vld [vmem:[%s12255_s8 + $0x290] sm:$0xff]  ;;  %v11403_v38 = vld [vmem:[%s12255_s8 + $0x2c8] sm:$0xff]  ;;  %v11425_v43 = vld [vmem:[%s12255_s8 + $0x378] sm:$0xff] }
  0x3b   : > { %6837 = vmatpush.bf16.msrb.mxu1 %v11361_v34  ;;  %6806 = vmatmul.bf16.vlgmr.msra.gmra.mxu2 %v1850_v40  ;;  %v11404_v34 = vld [vmem:[%s12255_s8 + $0x2d0] sm:$0xff]  ;;  %v11386_v40 = vld [vmem:[%s12255_s8 + $0x240] sm:$0xff] }
  0x3c   : > { %6850 = vmatpush.bf16.msrb.mxu2 %v11369_v35  ;;  %6819 = vmatmul.bf16.vlgmr.msra.gmra.mxu3 %v1851_v45  ;;  %v11379_v35 = vld [vmem:[%s12255_s8 + $0x208] sm:$0xff]  ;;  %v11402_v45 = vld [vmem:[%s12255_s8 + $0x2c0] sm:$0xff]  ;;  %v11428_v5 = vld [vmem:[%s12255_s8 + $0x390] sm:$0xff] }
  0x3d   : > { %6863 = vmatpush.bf16.msrb.mxu3 %v11377_v37  ;;  %v11395_v37 = vld [vmem:[%s12255_s8 + $0x288] sm:$0xff] }
  0x3e   : > { %6825 = vmatpush.bf16.msrb.mxu0 %v11352_v39  ;;  %v11378_v39 = vld [vmem:[%s12255_s8 + $0x200] sm:$0xff] }
  0x3f   : > { %6838 = vmatpush.bf16.msrb.mxu1 %v11360_v41  ;;  %v11394_v41 = vld [vmem:[%s12255_s8 + $0x280] sm:$0xff] }
  0x40   : > { %6851 = vmatpush.bf16.msrb.mxu2 %v11368_v42  ;;  %v11417_v42 = vld [vmem:[%s12255_s8 + $0x338] sm:$0xff] }
  0x41   : > { %6864 = vmatpush.bf16.msrb.mxu3 %v11376_v44  ;;  %v11433_v44 = vld [vmem:[%s12255_s8 + $0x3b8] sm:$0xff] }
  0x42   : > { %6826 = vmatpush.bf16.msrb.mxu0 %v11351_v46  ;;  %v1858_v46 = vld [vmem:[#allocation1] sm:$0xff] }
  0x43   : > { %6839 = vmatpush.bf16.msrb.mxu1 %v11359_v47  ;;  %v11441_v47 = vld [vmem:[%s12255_s8 + $0x3f8] sm:$0xff] }
  0x44   : > { %6852 = vmatpush.bf16.msrb.mxu2 %v11367_v48  ;;  %v1860_v48 = vld [vmem:[#allocation1 + $0x12] sm:$0xff] }
  0x45   : > { %6865 = vmatpush.bf16.msrb.mxu3 %v11375_v49  ;;  %v11416_v49 = vld [vmem:[%s12255_s8 + $0x330] sm:$0xff] }
  0x46   : > { %6827 = vmatpush.bf16.msrb.mxu0 %v11350_v50  ;;  %v1859_v50 = vld [vmem:[#allocation1 + $0x9] sm:$0xff] }
  0x47   : > { %6840 = vmatpush.bf16.msrb.mxu1 %v11358_v51  ;;  %v11424_v51 = vld [vmem:[%s12255_s8 + $0x370] sm:$0xff] }
  0x48   : > { %6853 = vmatpush.bf16.msrb.mxu2 %v11366_v52  ;;  %v1861_v52 = vld [vmem:[#allocation1 + $0x1b] sm:$0xff] }
  0x49   : > { %6866 = vmatpush.bf16.msrb.mxu3 %v11374_v53  ;;  %v11432_v53 = vld [vmem:[%s12255_s8 + $0x3b0] sm:$0xff] }
  0x4a   : > { %6828 = vmatpush.bf16.msrb.mxu0 %v11349_v54  ;;  %v11440_v54 = vld [vmem:[%s12255_s8 + $0x3f0] sm:$0xff] }
  0x4b   : > { %6841 = vmatpush.bf16.msrb.mxu1 %v11357_v55  ;;  %v11415_v55 = vld [vmem:[%s12255_s8 + $0x328] sm:$0xff] }
  0x4c   : > { %6854 = vmatpush.bf16.msrb.mxu2 %v11365_v56  ;;  %v11423_v56 = vld [vmem:[%s12255_s8 + $0x368] sm:$0xff] }
  0x4d   : > { %6867 = vmatpush.bf16.msrb.mxu3 %v11373_v57  ;;  %v11431_v57 = vld [vmem:[%s12255_s8 + $0x3a8] sm:$0xff] }
  0x4e   : > { %6829 = vmatpush.bf16.msrb.mxu0 %v11348_v58  ;;  %v11439_v58 = vld [vmem:[%s12255_s8 + $0x3e8] sm:$0xff] }
  0x4f   : > { %6842 = vmatpush.bf16.msrb.mxu1 %v11356_v59  ;;  %v11414_v59 = vld [vmem:[%s12255_s8 + $0x320] sm:$0xff] }
  0x50   : > { %6855 = vmatpush.bf16.msrb.mxu2 %v11364_v60  ;;  %v11422_v60 = vld [vmem:[%s12255_s8 + $0x360] sm:$0xff] }
  0x51   : > { %6868 = vmatpush.bf16.msrb.mxu3 %v11372_v61  ;;  %v11430_v61 = vld [vmem:[%s12255_s8 + $0x3a0] sm:$0xff] }
  0x52   : > { %6830 = vmatpush.bf16.msrb.mxu0 %v11347_v62  ;;  %v11438_v62 = vld [vmem:[%s12255_s8 + $0x3e0] sm:$0xff] }
  0x53   : > { %6843 = vmatpush.bf16.msrb.mxu1 %v11355_v63  ;;  %v11413_v63 = vld [vmem:[%s12255_s8 + $0x318] sm:$0xff] }
  0x54   : > { %6856 = vmatpush.bf16.msrb.mxu2 %v11363_v0  ;;  %v11421_v0 = vld [vmem:[%s12255_s8 + $0x358] sm:$0xff] }
  0x55   : > { %6869 = vmatpush.bf16.msrb.mxu3 %v11371_v6  ;;  %v11436_v6 = vld [vmem:[%s12255_s8 + $0x3d0] sm:$0xff] }
  0x56   : > { %6831 = vmatpush.bf16.msrb.mxu0 %v11346_v7  ;;  %v11411_v7 = vld [vmem:[%s12255_s8 + $0x308] sm:$0xff] }
  0x57   : > { %6844 = vmatpush.bf16.msrb.mxu1 %v11354_v8  ;;  %v11419_v8 = vld [vmem:[%s12255_s8 + $0x348] sm:$0xff] }
  0x58   : > { %6857 = vmatpush.bf16.msrb.mxu2 %v11362_v9  ;;  %v11427_v9 = vld [vmem:[%s12255_s8 + $0x388] sm:$0xff] }
  0x59   : > { %6870 = vmatpush.bf16.msrb.mxu3 %v11370_v13  ;;  %6832 = vmatmul.bf16.vlgmr.msrb.gmra.mxu0 %v1852_v2  ;;  %v11437_v2 = vld [vmem:[%s12255_s8 + $0x3d8] sm:$0xff] }
  0x5a   : > { %6876 = vmatpush.bf16.msra.mxu0 %v11385_v10  ;;  %6845 = vmatmul.bf16.vlgmr.msrb.gmra.mxu1 %v1853_v4  ;;  %v11420_v4 = vld [vmem:[%s12255_s8 + $0x350] sm:$0xff]  ;;  %v1862_v10 = vld [vmem:[#allocation1 + $0x24] sm:$0xff] }
  0x5b   : > { %6889 = vmatpush.bf16.msra.mxu1 %v11393_v11  ;;  %6858 = vmatmul.bf16.vlgmr.msrb.gmra.mxu2 %v1854_v1  ;;  %v11429_v1 = vld [vmem:[%s12255_s8 + $0x398] sm:$0xff] }
  0x5c   : > { %6902 = vmatpush.bf16.msra.mxu2 %v11401_v12  ;;  %6871 = vmatmul.bf16.vlgmr.msrb.gmra.mxu3 %v1855_v3  ;;  %v11412_v3 = vld [vmem:[%s12255_s8 + $0x310] sm:$0xff]  ;;  %v1865_v13 = vld [vmem:[#allocation1 + $0x3f] sm:$0xff] }
  0x5d   : > { %6915 = vmatpush.bf16.msra.mxu3 %v11409_v14  ;;  %v1864_v11 = vld [vmem:[#allocation1 + $0x36] sm:$0xff]  ;;  %v1863_v12 = vld [vmem:[#allocation1 + $0x2d] sm:$0xff] }
  0x5e   : > { %6877 = vmatpush.bf16.msra.mxu0 %v11384_v15  ;;  %v267_v14 = vld [vmem:[%s12242_s24 + $0x10] sm:$0xff]  ;;  %v11435_v15 = vld [vmem:[%s12255_s8 + $0x3c8] sm:$0xff] }
  0x5f   : > { %6890 = vmatpush.bf16.msra.mxu1 %v11392_v16  ;;  %1867 = vst [vmem:[#allocation1] ss:$9 sm:$0xff] %v267_v14  ;;  %v11410_v16 = vld [vmem:[%s12255_s8 + $0x300] sm:$0xff]  ;;  %v11501_v14 = vld [vmem:[%s12255_s8 + $0x5d8] sm:$0xff] }
  0x60   : > { %6903 = vmatpush.bf16.msra.mxu2 %v11400_v17  ;;  %v11418_v17 = vld [vmem:[%s12255_s8 + $0x340] sm:$0xff] }
  0x61   : > { %6916 = vmatpush.bf16.msra.mxu3 %v11408_v18  ;;  %v11449_v18 = vld [vmem:[%s12255_s8 + $0x438] sm:$0xff] }
  0x62   : > { %6878 = vmatpush.bf16.msra.mxu0 %v11383_v19  ;;  %v11426_v19 = vld [vmem:[%s12255_s8 + $0x380] sm:$0xff] }
  0x63   : > { %6891 = vmatpush.bf16.msra.mxu1 %v11391_v20  ;;  %v11457_v20 = vld [vmem:[%s12255_s8 + $0x478] sm:$0xff] }
  0x64   : > { %6904 = vmatpush.bf16.msra.mxu2 %v11399_v21  ;;  %v11465_v21 = vld [vmem:[%s12255_s8 + $0x4b8] sm:$0xff] }
  0x65   : > { %6917 = vmatpush.bf16.msra.mxu3 %v11407_v22  ;;  %v11434_v22 = vld [vmem:[%s12255_s8 + $0x3c0] sm:$0xff] }
  0x66   : > { %6879 = vmatpush.bf16.msra.mxu0 %v11382_v23  ;;  %v11473_v23 = vld [vmem:[%s12255_s8 + $0x4f8] sm:$0xff] }
  0x67   : > { %6892 = vmatpush.bf16.msra.mxu1 %v11390_v24  ;;  %v11448_v24 = vld [vmem:[%s12255_s8 + $0x430] sm:$0xff] }
  0x68   : > { %6905 = vmatpush.bf16.msra.mxu2 %v11398_v25  ;;  %v11456_v25 = vld [vmem:[%s12255_s8 + $0x470] sm:$0xff] }
  0x69   : > { %6918 = vmatpush.bf16.msra.mxu3 %v11406_v26  ;;  %v11464_v26 = vld [vmem:[%s12255_s8 + $0x4b0] sm:$0xff] }
  0x6a   : > { %6880 = vmatpush.bf16.msra.mxu0 %v11381_v27  ;;  %v11472_v27 = vld [vmem:[%s12255_s8 + $0x4f0] sm:$0xff] }
  0x6b   : > { %6893 = vmatpush.bf16.msra.mxu1 %v11389_v28  ;;  %v11447_v28 = vld [vmem:[%s12255_s8 + $0x428] sm:$0xff] }
  0x6c   : > { %6906 = vmatpush.bf16.msra.mxu2 %v11397_v29  ;;  %v11455_v29 = vld [vmem:[%s12255_s8 + $0x468] sm:$0xff] }
  0x6d   : > { %6919 = vmatpush.bf16.msra.mxu3 %v11405_v30  ;;  %v11463_v30 = vld [vmem:[%s12255_s8 + $0x4a8] sm:$0xff] }
  0x6e   : > { %6881 = vmatpush.bf16.msra.mxu0 %v11380_v31  ;;  %v11471_v31 = vld [vmem:[%s12255_s8 + $0x4e8] sm:$0xff] }
  0x6f   : > { %6894 = vmatpush.bf16.msra.mxu1 %v11388_v32  ;;  %v11446_v32 = vld [vmem:[%s12255_s8 + $0x420] sm:$0xff] }
  0x70   : > { %6907 = vmatpush.bf16.msra.mxu2 %v11396_v33  ;;  %v11454_v33 = vld [vmem:[%s12255_s8 + $0x460] sm:$0xff] }
  0x71   : > { %6920 = vmatpush.bf16.msra.mxu3 %v11404_v34  ;;  %v11462_v34 = vld [vmem:[%s12255_s8 + $0x4a0] sm:$0xff] }
  0x72   : > { %6882 = vmatpush.bf16.msra.mxu0 %v11379_v35  ;;  %v11470_v35 = vld [vmem:[%s12255_s8 + $0x4e0] sm:$0xff] }
  0x73   : > { %6895 = vmatpush.bf16.msra.mxu1 %v11387_v36  ;;  %v11445_v36 = vld [vmem:[%s12255_s8 + $0x418] sm:$0xff] }
  0x74   : > { %6908 = vmatpush.bf16.msra.mxu2 %v11395_v37  ;;  %v11453_v37 = vld [vmem:[%s12255_s8 + $0x458] sm:$0xff] }
  0x75   : > { %6921 = vmatpush.bf16.msra.mxu3 %v11403_v38  ;;  %v11461_v38 = vld [vmem:[%s12255_s8 + $0x498] sm:$0xff] }
  0x76   : > { %6883 = vmatpush.bf16.msra.mxu0 %v11378_v39  ;;  %v11469_v39 = vld [vmem:[%s12255_s8 + $0x4d8] sm:$0xff] }
  0x77   : > { %6896 = vmatpush.bf16.msra.mxu1 %v11386_v40  ;;  %v11444_v40 = vld [vmem:[%s12255_s8 + $0x410] sm:$0xff] }
  0x78   : > { %6909 = vmatpush.bf16.msra.mxu2 %v11394_v41  ;;  %v11452_v41 = vld [vmem:[%s12255_s8 + $0x450] sm:$0xff] }
  0x79   : > { %6922 = vmatpush.bf16.msra.mxu3 %v11402_v45  ;;  %6884 = vmatmul.bf16.vlgmr.msra.gmra.mxu0 %v1858_v46  ;;  %v11451_v45 = vld [vmem:[%s12255_s8 + $0x448] sm:$0xff] }
  0x7a   : > { %6928 = vmatpush.bf16.msrb.mxu0 %v11417_v42  ;;  %6897 = vmatmul.bf16.vlgmr.msra.gmra.mxu1 %v1859_v50  ;;  %v11460_v42 = vld [vmem:[%s12255_s8 + $0x490] sm:$0xff]  ;;  %v11459_v46 = vld [vmem:[%s12255_s8 + $0x488] sm:$0xff]  ;;  %v11458_v50 = vld [vmem:[%s12255_s8 + $0x480] sm:$0xff] }
  0x7b   : > { %6941 = vmatpush.bf16.msrb.mxu1 %v11425_v43  ;;  %6910 = vmatmul.bf16.vlgmr.msra.gmra.mxu2 %v1860_v48  ;;  %v11468_v43 = vld [vmem:[%s12255_s8 + $0x4d0] sm:$0xff]  ;;  %v11442_v48 = vld [vmem:[%s12255_s8 + $0x400] sm:$0xff] }
  0x7c   : > { %6954 = vmatpush.bf16.msrb.mxu2 %v11433_v44  ;;  %6923 = vmatmul.bf16.vlgmr.msra.gmra.mxu3 %v1861_v52  ;;  %v11443_v44 = vld [vmem:[%s12255_s8 + $0x408] sm:$0xff]  ;;  %v11489_v52 = vld [vmem:[%s12255_s8 + $0x578] sm:$0xff] }
  0x7d   : > { %6967 = vmatpush.bf16.msrb.mxu3 %v11441_v47  ;;  %v11467_v47 = vld [vmem:[%s12255_s8 + $0x4c8] sm:$0xff] }
  0x7e   : > { %6929 = vmatpush.bf16.msrb.mxu0 %v11416_v49  ;;  %v11450_v49 = vld [vmem:[%s12255_s8 + $0x440] sm:$0xff] }
  0x7f   : > { %6942 = vmatpush.bf16.msrb.mxu1 %v11424_v51  ;;  %v11481_v51 = vld [vmem:[%s12255_s8 + $0x538] sm:$0xff] }
  0x80   : > { %6955 = vmatpush.bf16.msrb.mxu2 %v11432_v53  ;;  %v11497_v53 = vld [vmem:[%s12255_s8 + $0x5b8] sm:$0xff] }
  0x81   : > { %6968 = vmatpush.bf16.msrb.mxu3 %v11440_v54  ;;  %v11466_v54 = vld [vmem:[%s12255_s8 + $0x4c0] sm:$0xff] }
  0x82   : > { %6930 = vmatpush.bf16.msrb.mxu0 %v11415_v55  ;;  %v1868_v55 = vld [vmem:[#allocation1] sm:$0xff] }
  0x83   : > { %6943 = vmatpush.bf16.msrb.mxu1 %v11423_v56  ;;  %v1870_v56 = vld [vmem:[#allocation1 + $0x12] sm:$0xff] }
  0x84   : > { %6956 = vmatpush.bf16.msrb.mxu2 %v11431_v57  ;;  %v11505_v57 = vld [vmem:[%s12255_s8 + $0x5f8] sm:$0xff] }
  0x85   : > { %6969 = vmatpush.bf16.msrb.mxu3 %v11439_v58  ;;  %v1869_v58 = vld [vmem:[#allocation1 + $0x9] sm:$0xff] }
  0x86   : > { %6931 = vmatpush.bf16.msrb.mxu0 %v11414_v59  ;;  %v11480_v59 = vld [vmem:[%s12255_s8 + $0x530] sm:$0xff] }
  0x87   : > { %6944 = vmatpush.bf16.msrb.mxu1 %v11422_v60  ;;  %v1871_v60 = vld [vmem:[#allocation1 + $0x1b] sm:$0xff] }
  0x88   : > { %6957 = vmatpush.bf16.msrb.mxu2 %v11430_v61  ;;  %v11488_v61 = vld [vmem:[%s12255_s8 + $0x570] sm:$0xff] }
  0x89   : > { %6970 = vmatpush.bf16.msrb.mxu3 %v11438_v62  ;;  %v11496_v62 = vld [vmem:[%s12255_s8 + $0x5b0] sm:$0xff] }
  0x8a   : > { %6932 = vmatpush.bf16.msrb.mxu0 %v11413_v63  ;;  %v11504_v63 = vld [vmem:[%s12255_s8 + $0x5f0] sm:$0xff] }
  0x8b   : > { %6945 = vmatpush.bf16.msrb.mxu1 %v11421_v0  ;;  %v11479_v0 = vld [vmem:[%s12255_s8 + $0x528] sm:$0xff] }
  0x8c   : > { %6958 = vmatpush.bf16.msrb.mxu2 %v11429_v1  ;;  %v11487_v1 = vld [vmem:[%s12255_s8 + $0x568] sm:$0xff] }
  0x8d   : > { %6971 = vmatpush.bf16.msrb.mxu3 %v11437_v2  ;;  %v11495_v2 = vld [vmem:[%s12255_s8 + $0x5a8] sm:$0xff] }
  0x8e   : > { %6933 = vmatpush.bf16.msrb.mxu0 %v11412_v3  ;;  %v11503_v3 = vld [vmem:[%s12255_s8 + $0x5e8] sm:$0xff] }
  0x8f   : > { %6946 = vmatpush.bf16.msrb.mxu1 %v11420_v4  ;;  %v11478_v4 = vld [vmem:[%s12255_s8 + $0x520] sm:$0xff] }
  0x90   : > { %6959 = vmatpush.bf16.msrb.mxu2 %v11428_v5 }
  0x91   : > { %6972 = vmatpush.bf16.msrb.mxu3 %v11436_v6  ;;  %v11486_v6 = vld [vmem:[%s12255_s8 + $0x560] sm:$0xff] }
  0x92   : > { %6934 = vmatpush.bf16.msrb.mxu0 %v11411_v7  ;;  %v11494_v7 = vld [vmem:[%s12255_s8 + $0x5a0] sm:$0xff] }
  0x93   : > { %6947 = vmatpush.bf16.msrb.mxu1 %v11419_v8 }
  0x94   : > { %6960 = vmatpush.bf16.msrb.mxu2 %v11427_v9  ;;  %v11502_v9 = vld [vmem:[%s12255_s8 + $0x5e0] sm:$0xff] }
  0x95   : > { %6973 = vmatpush.bf16.msrb.mxu3 %v11435_v15 }
  0x96   : > { %6935 = vmatpush.bf16.msrb.mxu0 %v11410_v16  ;;  %v11476_v16 = vld [vmem:[%s12255_s8 + $0x510] sm:$0xff] }
  0x97   : > { %6948 = vmatpush.bf16.msrb.mxu1 %v11418_v17 }
  0x98   : > { %6961 = vmatpush.bf16.msrb.mxu2 %v11426_v19  ;;  %v11484_v19 = vld [vmem:[%s12255_s8 + $0x550] sm:$0xff] }
  0x99   : > { %6974 = vmatpush.bf16.msrb.mxu3 %v11434_v22  ;;  %6936 = vmatmul.bf16.vlgmr.msrb.gmra.mxu0 %v1862_v10 }
  0x9a   : > { %6980 = vmatpush.bf16.msra.mxu0 %v11449_v18  ;;  %6949 = vmatmul.bf16.vlgmr.msrb.gmra.mxu1 %v1863_v12  ;;  %v11485_v12 = vld [vmem:[%s12255_s8 + $0x558] sm:$0xff] }
  0x9b   : > { %6993 = vmatpush.bf16.msra.mxu1 %v11457_v20  ;;  %6962 = vmatmul.bf16.vlgmr.msrb.gmra.mxu2 %v1864_v11  ;;  %v11477_v11 = vld [vmem:[%s12255_s8 + $0x518] sm:$0xff]  ;;  %v11492_v20 = vld [vmem:[%s12255_s8 + $0x590] sm:$0xff] }
  0x9c   : > { %7006 = vmatpush.bf16.msra.mxu2 %v11465_v21  ;;  %6975 = vmatmul.bf16.vlgmr.msrb.gmra.mxu3 %v1865_v13  ;;  %v11493_v13 = vld [vmem:[%s12255_s8 + $0x598] sm:$0xff] }
  0x9d   : > { %7019 = vmatpush.bf16.msra.mxu3 %v11473_v23  ;;  %v11500_v23 = vld [vmem:[%s12255_s8 + $0x5d0] sm:$0xff] }
  0x9e   : > { %6981 = vmatpush.bf16.msra.mxu0 %v11448_v24 }
  0x9f   : > { %6994 = vmatpush.bf16.msra.mxu1 %v11456_v25  ;;  %v11475_v25 = vld [vmem:[%s12255_s8 + $0x508] sm:$0xff] }
  0xa0   : > { %7007 = vmatpush.bf16.msra.mxu2 %v11464_v26  ;;  %v11483_v26 = vld [vmem:[%s12255_s8 + $0x548] sm:$0xff] }
  0xa1   : > { %7020 = vmatpush.bf16.msra.mxu3 %v11472_v27  ;;  %v11491_v27 = vld [vmem:[%s12255_s8 + $0x588] sm:$0xff] }
  0xa2   : > { %6982 = vmatpush.bf16.msra.mxu0 %v11447_v28  ;;  %v1872_v28 = vld [vmem:[#allocation1 + $0x24] sm:$0xff] }
  0xa3   : > { %6995 = vmatpush.bf16.msra.mxu1 %v11455_v29  ;;  %v1874_v29 = vld [vmem:[#allocation1 + $0x36] sm:$0xff] }
  0xa4   : > { %7008 = vmatpush.bf16.msra.mxu2 %v11463_v30  ;;  %v1873_v30 = vld [vmem:[#allocation1 + $0x2d] sm:$0xff] }
  0xa5   : > { %7021 = vmatpush.bf16.msra.mxu3 %v11471_v31  ;;  %v1875_v31 = vld [vmem:[#allocation1 + $0x3f] sm:$0xff] }
  0xa6   : > { %6983 = vmatpush.bf16.msra.mxu0 %v11446_v32  ;;  %v268_v32 = vld [vmem:[%s12242_s24 + $0x18] sm:$0xff] }
  0xa7   : > { %6996 = vmatpush.bf16.msra.mxu1 %v11454_v33  ;;  %v11499_v33 = vld [vmem:[%s12255_s8 + $0x5c8] sm:$0xff]  ;;  %1877 = vst [vmem:[#allocation1] ss:$9 sm:$0xff] %v268_v32 }
  0xa8   : > { %7009 = vmatpush.bf16.msra.mxu2 %v11462_v34  ;;  %v11543_v32 = vld [vmem:[%s12255_s8 + $0x728] sm:$0xff] }
  0xa9   : > { %7022 = vmatpush.bf16.msra.mxu3 %v11470_v35  ;;  %v11474_v35 = vld [vmem:[%s12255_s8 + $0x500] sm:$0xff] }
  0xaa   : > { %6984 = vmatpush.bf16.msra.mxu0 %v11445_v36  ;;  %v11482_v36 = vld [vmem:[%s12255_s8 + $0x540] sm:$0xff] }
  0xab   : > { %6997 = vmatpush.bf16.msra.mxu1 %v11453_v37  ;;  %v11490_v37 = vld [vmem:[%s12255_s8 + $0x580] sm:$0xff] }
  0xac   : > { %7010 = vmatpush.bf16.msra.mxu2 %v11461_v38  ;;  %v11513_v38 = vld [vmem:[%s12255_s8 + $0x638] sm:$0xff] }
  0xad   : > { %7023 = vmatpush.bf16.msra.mxu3 %v11469_v39  ;;  %v11521_v39 = vld [vmem:[%s12255_s8 + $0x678] sm:$0xff] }
  0xae   : > { %6985 = vmatpush.bf16.msra.mxu0 %v11444_v40 }
  0xaf   : > { %6998 = vmatpush.bf16.msra.mxu1 %v11452_v41  ;;  %v11529_v41 = vld [vmem:[%s12255_s8 + $0x6b8] sm:$0xff] }
  0xb0   : > { %7011 = vmatpush.bf16.msra.mxu2 %v11460_v42  ;;  %v11498_v42 = vld [vmem:[%s12255_s8 + $0x5c0] sm:$0xff] }
  0xb1   : > { %7024 = vmatpush.bf16.msra.mxu3 %v11468_v43  ;;  %v11537_v43 = vld [vmem:[%s12255_s8 + $0x6f8] sm:$0xff] }
  0xb2   : > { %6986 = vmatpush.bf16.msra.mxu0 %v11443_v44  ;;  %v11512_v44 = vld [vmem:[%s12255_s8 + $0x630] sm:$0xff] }
  0xb3   : > { %6999 = vmatpush.bf16.msra.mxu1 %v11451_v45  ;;  %v11520_v45 = vld [vmem:[%s12255_s8 + $0x670] sm:$0xff] }
  0xb4   : > { %7012 = vmatpush.bf16.msra.mxu2 %v11459_v46  ;;  %v11528_v46 = vld [vmem:[%s12255_s8 + $0x6b0] sm:$0xff] }
  0xb5   : > { %7025 = vmatpush.bf16.msra.mxu3 %v11467_v47  ;;  %v11536_v47 = vld [vmem:[%s12255_s8 + $0x6f0] sm:$0xff] }
  0xb6   : > { %6987 = vmatpush.bf16.msra.mxu0 %v11442_v48  ;;  %v6781_v5 = vpop.f32.mrf.mxu0  ;;  %v11511_v48 = vld [vmem:[%s12255_s8 + $0x628] sm:$0xff] }
  0xb7   : > { %7000 = vmatpush.bf16.msra.mxu1 %v11450_v49  ;;  %v6794_v8 = vpop.f32.mrf.mxu1  ;;  %v11519_v49 = vld [vmem:[%s12255_s8 + $0x668] sm:$0xff] }
  0xb8   : > { %7013 = vmatpush.bf16.msra.mxu2 %v11458_v50  ;;  %v6795_v10 = vadd.f32 %v6794_v8, %v6781_v5  ;;  %v11527_v50 = vld [vmem:[%s12255_s8 + $0x6a8] sm:$0xff] }
  0xb9   : > { %7026 = vmatpush.bf16.msra.mxu3 %v11466_v54  ;;  %6988 = vmatmul.bf16.vlgmr.msra.gmra.mxu0 %v1868_v55  ;;  %v11526_v54 = vld [vmem:[%s12255_s8 + $0x6a0] sm:$0xff] }
  0xba   : > { %7032 = vmatpush.bf16.msrb.mxu0 %v11481_v51  ;;  %7001 = vmatmul.bf16.vlgmr.msra.gmra.mxu1 %v1869_v58  ;;  %v11535_v51 = vld [vmem:[%s12255_s8 + $0x6e8] sm:$0xff]  ;;  %v11534_v58 = vld [vmem:[%s12255_s8 + $0x6e0] sm:$0xff] }
  0xbb   : > { %7045 = vmatpush.bf16.msrb.mxu1 %v11489_v52  ;;  %7014 = vmatmul.bf16.vlgmr.msra.gmra.mxu2 %v1870_v56  ;;  %v11510_v52 = vld [vmem:[%s12255_s8 + $0x620] sm:$0xff] }
  0xbc   : > { %7058 = vmatpush.bf16.msrb.mxu2 %v11497_v53  ;;  %7027 = vmatmul.bf16.vlgmr.msra.gmra.mxu3 %v1871_v60  ;;  %v11518_v53 = vld [vmem:[%s12255_s8 + $0x660] sm:$0xff] }
  0xbd   : > { %7071 = vmatpush.bf16.msrb.mxu3 %v11505_v57 }
  0xbe   : > { %7033 = vmatpush.bf16.msrb.mxu0 %v11480_v59  ;;  %v6807_v15 = vpop.f32.mrf.mxu2  ;;  %v6783_v18 = vpop.f32.mrf.mxu0  ;;  %v11509_v59 = vld [vmem:[%s12255_s8 + $0x618] sm:$0xff] }
  0xbf   : > { %7046 = vmatpush.bf16.msrb.mxu1 %v11488_v61  ;;  %v6808_v17 = vadd.f32 %v6807_v15, %v6795_v10  ;;  %v6820_v21 = vpop.f32.mrf.mxu3  ;;  %v6796_v22 = vpop.f32.mrf.mxu1  ;;  %v11517_v61 = vld [vmem:[%s12255_s8 + $0x658] sm:$0xff]  ;;  %v11507_v10 = vld [vmem:[%s12255_s8 + $0x608] sm:$0xff]  ;;  %v11506_v15 = vld [vmem:[%s12255_s8 + $0x600] sm:$0xff] }
  0xc0   : > { %7059 = vmatpush.bf16.msrb.mxu2 %v11496_v62  ;;  %v11525_v62 = vld [vmem:[%s12255_s8 + $0x698] sm:$0xff]  ;;  %v11530_v22 = vld [vmem:[%s12255_s8 + $0x6c0] sm:$0xff] }
  0xc1   : > { %7072 = vmatpush.bf16.msrb.mxu3 %v11504_v63  ;;  %v6821_v24 = vadd.f32 %v6820_v21, %v6808_v17  ;;  %v11522_v17 = vld [vmem:[%s12255_s8 + $0x680] sm:$0xff]  ;;  %v11561_v21 = vld [vmem:[%s12255_s8 + $0x7b8] sm:$0xff] }
  0xc2   : > { %7034 = vmatpush.bf16.msrb.mxu0 %v11479_v0  ;;  %v11533_v0 = vld [vmem:[%s12255_s8 + $0x6d8] sm:$0xff] }
  0xc3   : > { %7047 = vmatpush.bf16.msrb.mxu1 %v11487_v1 }
  0xc4   : > { %7060 = vmatpush.bf16.msrb.mxu2 %v11495_v2  ;;  %v11508_v2 = vld [vmem:[%s12255_s8 + $0x610] sm:$0xff] }
  0xc5   : > { %7073 = vmatpush.bf16.msrb.mxu3 %v11503_v3  ;;  %v11516_v3 = vld [vmem:[%s12255_s8 + $0x650] sm:$0xff] }
  0xc6   : > { %7035 = vmatpush.bf16.msrb.mxu0 %v11478_v4  ;;  %v6809_v34 = vpop.f32.mrf.mxu2  ;;  %v11524_v4 = vld [vmem:[%s12255_s8 + $0x690] sm:$0xff] }
  0xc7   : > { %7048 = vmatpush.bf16.msrb.mxu1 %v11486_v6  ;;  %v6822_v40 = vpop.f32.mrf.mxu3  ;;  %v11559_v34 = vld [vmem:[%s12255_s8 + $0x7a8] sm:$0xff] }
  0xc8   : > { %7061 = vmatpush.bf16.msrb.mxu2 %v11494_v7  ;;  %v11558_v40 = vld [vmem:[%s12255_s8 + $0x7a0] sm:$0xff] }
  0xc9   : > { %7074 = vmatpush.bf16.msrb.mxu3 %v11502_v9  ;;  %v11532_v9 = vld [vmem:[%s12255_s8 + $0x6d0] sm:$0xff] }
  0xca   : > { %7036 = vmatpush.bf16.msrb.mxu0 %v11477_v11  ;;  %v11515_v11 = vld [vmem:[%s12255_s8 + $0x648] sm:$0xff] }
  0xcb   : > { %7049 = vmatpush.bf16.msrb.mxu1 %v11485_v12  ;;  %v11523_v12 = vld [vmem:[%s12255_s8 + $0x688] sm:$0xff] }
  0xcc   : > { %7062 = vmatpush.bf16.msrb.mxu2 %v11493_v13 }
  0xcd   : > { %7075 = vmatpush.bf16.msrb.mxu3 %v11501_v14  ;;  %v11531_v14 = vld [vmem:[%s12255_s8 + $0x6c8] sm:$0xff] }
  0xce   : > { %7037 = vmatpush.bf16.msrb.mxu0 %v11476_v16  ;;  %v11514_v16 = vld [vmem:[%s12255_s8 + $0x640] sm:$0xff] }
  0xcf   : > { %7050 = vmatpush.bf16.msrb.mxu1 %v11484_v19  ;;  %v11545_v19 = vld [vmem:[%s12255_s8 + $0x738] sm:$0xff] }
  0xd0   : > { %7063 = vmatpush.bf16.msrb.mxu2 %v11492_v20  ;;  %v11553_v20 = vld [vmem:[%s12255_s8 + $0x778] sm:$0xff] }
  0xd1   : > { %7076 = vmatpush.bf16.msrb.mxu3 %v11500_v23  ;;  %v1878_v23 = vld [vmem:[#allocation1] sm:$0xff] }
  0xd2   : > { %7038 = vmatpush.bf16.msrb.mxu0 %v11475_v25  ;;  %v11569_v25 = vld [vmem:[%s12255_s8 + $0x7f8] sm:$0xff] }
  0xd3   : > { %7051 = vmatpush.bf16.msrb.mxu1 %v11483_v26  ;;  %v1879_v26 = vld [vmem:[#allocation1 + $0x9] sm:$0xff] }
  0xd4   : > { %7064 = vmatpush.bf16.msrb.mxu2 %v11491_v27  ;;  %v11544_v27 = vld [vmem:[%s12255_s8 + $0x730] sm:$0xff] }
  0xd5   : > { %7077 = vmatpush.bf16.msrb.mxu3 %v11499_v33  ;;  %v11551_v33 = vld [vmem:[%s12255_s8 + $0x768] sm:$0xff] }
  0xd6   : > { %7039 = vmatpush.bf16.msrb.mxu0 %v11474_v35  ;;  %v6833_v55 = vpop.f32.mrf.mxu0  ;;  %v11567_v35 = vld [vmem:[%s12255_s8 + $0x7e8] sm:$0xff] }
  0xd7   : > { %7052 = vmatpush.bf16.msrb.mxu1 %v11482_v36  ;;  %v6846_v56 = vpop.f32.mrf.mxu1  ;;  %v6834_v57 = vadd.f32 %v6833_v55, %v6821_v24  ;;  %v1880_v24 = vld [vmem:[#allocation1 + $0x12] sm:$0xff] }
  0xd8   : > { %7065 = vmatpush.bf16.msrb.mxu2 %v11490_v37  ;;  %v11556_v55 = vld [vmem:[%s12255_s8 + $0x790] sm:$0xff] }
  0xd9   : > { %7078 = vmatpush.bf16.msrb.mxu3 %v11498_v42  ;;  %7040 = vmatmul.bf16.vlgmr.msrb.gmra.mxu0 %v1872_v28  ;;  %v6847_v60 = vadd.f32 %v6846_v56, %v6834_v57  ;;  %v1881_v28 = vld [vmem:[#allocation1 + $0x1b] sm:$0xff]  ;;  %v11564_v57 = vld [vmem:[%s12255_s8 + $0x7d0] sm:$0xff] }
  0xda   : > { %7084 = vmatpush.bf16.msra.mxu0 %v11513_v38  ;;  %7053 = vmatmul.bf16.vlgmr.msrb.gmra.mxu1 %v1873_v30  ;;  %v11560_v30 = vld [vmem:[%s12255_s8 + $0x7b0] sm:$0xff]  ;;  %v11542_v38 = vld [vmem:[%s12255_s8 + $0x720] sm:$0xff] }
  0xdb   : > { %7097 = vmatpush.bf16.msra.mxu1 %v11521_v39  ;;  %7066 = vmatmul.bf16.vlgmr.msrb.gmra.mxu2 %v1874_v29  ;;  %v11552_v29 = vld [vmem:[%s12255_s8 + $0x770] sm:$0xff]  ;;  %v11550_v39 = vld [vmem:[%s12255_s8 + $0x760] sm:$0xff] }
  0xdc   : > { %7110 = vmatpush.bf16.msra.mxu2 %v11529_v41  ;;  %7079 = vmatmul.bf16.vlgmr.msrb.gmra.mxu3 %v1875_v31  ;;  %v11568_v31 = vld [vmem:[%s12255_s8 + $0x7f0] sm:$0xff] }
  0xdd   : > { %7123 = vmatpush.bf16.msra.mxu3 %v11537_v43  ;;  %v11566_v43 = vld [vmem:[%s12255_s8 + $0x7e0] sm:$0xff] }
  0xde   : > { %7085 = vmatpush.bf16.msra.mxu0 %v11512_v44  ;;  %v6859_v63 = vpop.f32.mrf.mxu2  ;;  %v6835_v6 = vpop.f32.mrf.mxu0  ;;  %v11541_v44 = vld [vmem:[%s12255_s8 + $0x718] sm:$0xff] }
  0xdf   : > { %7098 = vmatpush.bf16.msra.mxu1 %v11520_v45  ;;  %v6860_v1 = vadd.f32 %v6859_v63, %v6847_v60  ;;  %v6872_v5 = vpop.f32.mrf.mxu3  ;;  %v6848_v8 = vpop.f32.mrf.mxu1  ;;  %v11549_v45 = vld [vmem:[%s12255_s8 + $0x758] sm:$0xff]  ;;  %v11555_v60 = vld [vmem:[%s12255_s8 + $0x788] sm:$0xff]  ;;  %v11546_v6 = vld [vmem:[%s12255_s8 + $0x740] sm:$0xff] }
  0xe0   : > { %7111 = vmatpush.bf16.msra.mxu2 %v11528_v46  ;;  %v11557_v46 = vld [vmem:[%s12255_s8 + $0x798] sm:$0xff]  ;;  %v1883_v63 = vld [vmem:[#allocation1 + $0x2d] sm:$0xff] }
  0xe1   : > { %7124 = vmatpush.bf16.msra.mxu3 %v11536_v47  ;;  %v6873_v7 = vadd.f32 %v6872_v5, %v6860_v1  ;;  %v11577_v8 = vld [vmem:[%s12255_s8 + $0x838] sm:$0xff] }
  0xe2   : > { %7086 = vmatpush.bf16.msra.mxu0 %v11511_v48 }
  0xe3   : > { %7099 = vmatpush.bf16.msra.mxu1 %v11519_v49  ;;  %v11565_v49 = vld [vmem:[%s12255_s8 + $0x7d8] sm:$0xff] }
  0xe4   : > { %7112 = vmatpush.bf16.msra.mxu2 %v11527_v50 }
  0xe5   : > { %7125 = vmatpush.bf16.msra.mxu3 %v11535_v51 }
  0xe6   : > { %7087 = vmatpush.bf16.msra.mxu0 %v11510_v52  ;;  %v6861_v13 = vpop.f32.mrf.mxu2  ;;  %v11540_v52 = vld [vmem:[%s12255_s8 + $0x710] sm:$0xff] }
  0xe7   : > { %7100 = vmatpush.bf16.msra.mxu1 %v11518_v53  ;;  %v6874_v18 = vpop.f32.mrf.mxu3  ;;  %v11576_v13 = vld [vmem:[%s12255_s8 + $0x830] sm:$0xff] }
  0xe8   : > { %7113 = vmatpush.bf16.msra.mxu2 %v11526_v54  ;;  %v11548_v54 = vld [vmem:[%s12255_s8 + $0x750] sm:$0xff]  ;;  %v11583_v18 = vld [vmem:[%s12255_s8 + $0x868] sm:$0xff] }
  0xe9   : > { %7126 = vmatpush.bf16.msra.mxu3 %v11534_v58  ;;  %v11539_v58 = vld [vmem:[%s12255_s8 + $0x708] sm:$0xff] }
  0xea   : > { %7088 = vmatpush.bf16.msra.mxu0 %v11509_v59  ;;  %v11547_v59 = vld [vmem:[%s12255_s8 + $0x748] sm:$0xff] }
  0xeb   : > { %7101 = vmatpush.bf16.msra.mxu1 %v11517_v61  ;;  %v1882_v61 = vld [vmem:[#allocation1 + $0x24] sm:$0xff] }
  0xec   : > { %7114 = vmatpush.bf16.msra.mxu2 %v11525_v62  ;;  %v1884_v62 = vld [vmem:[#allocation1 + $0x36] sm:$0xff] }
  0xed   : > { %7127 = vmatpush.bf16.msra.mxu3 %v11533_v0  ;;  %v1885_v0 = vld [vmem:[#allocation1 + $0x3f] sm:$0xff] }
  0xee   : > { %7089 = vmatpush.bf16.msra.mxu0 %v11508_v2  ;;  %v269_v2 = vld [vmem:[%s12242_s24 + $0x20] sm:$0xff] }
  0xef   : > { %7102 = vmatpush.bf16.msra.mxu1 %v11516_v3  ;;  %v11563_v3 = vld [vmem:[%s12255_s8 + $0x7c8] sm:$0xff]  ;;  %1887 = vst [vmem:[#allocation1] ss:$9 sm:$0xff] %v269_v2 }
  0xf0   : > { %7115 = vmatpush.bf16.msra.mxu2 %v11524_v4  ;;  %v11538_v4 = vld [vmem:[%s12255_s8 + $0x700] sm:$0xff]  ;;  %v11615_v2 = vld [vmem:[%s12255_s8 + $0x968] sm:$0xff] }
  0xf1   : > { %7128 = vmatpush.bf16.msra.mxu3 %v11532_v9  ;;  %v11585_v9 = vld [vmem:[%s12255_s8 + $0x878] sm:$0xff] }
  0xf2   : > { %7090 = vmatpush.bf16.msra.mxu0 %v11507_v10  ;;  %v11593_v10 = vld [vmem:[%s12255_s8 + $0x8b8] sm:$0xff] }
  0xf3   : > { %7103 = vmatpush.bf16.msra.mxu1 %v11515_v11  ;;  %v11562_v11 = vld [vmem:[%s12255_s8 + $0x7c0] sm:$0xff] }
  0xf4   : > { %7116 = vmatpush.bf16.msra.mxu2 %v11523_v12  ;;  %v11601_v12 = vld [vmem:[%s12255_s8 + $0x8f8] sm:$0xff] }
  0xf5   : > { %7129 = vmatpush.bf16.msra.mxu3 %v11531_v14  ;;  %v11584_v14 = vld [vmem:[%s12255_s8 + $0x870] sm:$0xff] }
  0xf6   : > { %7091 = vmatpush.bf16.msra.mxu0 %v11506_v15  ;;  %v6885_v36 = vpop.f32.mrf.mxu0  ;;  %v11592_v15 = vld [vmem:[%s12255_s8 + $0x8b0] sm:$0xff] }
  0xf7   : > { %7104 = vmatpush.bf16.msra.mxu1 %v11514_v16  ;;  %v6886_v37 = vadd.f32 %v6885_v36, %v6873_v7  ;;  %v6898_v41 = vpop.f32.mrf.mxu1  ;;  %v11554_v7 = vld [vmem:[%s12255_s8 + $0x780] sm:$0xff]  ;;  %v11600_v16 = vld [vmem:[%s12255_s8 + $0x8f0] sm:$0xff] }
  0xf8   : > { %7117 = vmatpush.bf16.msra.mxu2 %v11522_v17  ;;  %v11575_v17 = vld [vmem:[%s12255_s8 + $0x828] sm:$0xff] }
  0xf9   : > { %7130 = vmatpush.bf16.msra.mxu3 %v11530_v22  ;;  %7092 = vmatmul.bf16.vlgmr.msra.gmra.mxu0 %v1878_v23  ;;  %v6899_v42 = vadd.f32 %v6898_v41, %v6886_v37  ;;  %v11574_v23 = vld [vmem:[%s12255_s8 + $0x820] sm:$0xff]  ;;  %v11572_v37 = vld [vmem:[%s12255_s8 + $0x810] sm:$0xff] }
  0xfa   : > { %7136 = vmatpush.bf16.msrb.mxu0 %v11545_v19  ;;  %7105 = vmatmul.bf16.vlgmr.msra.gmra.mxu1 %v1879_v26  ;;  %v11591_v19 = vld [vmem:[%s12255_s8 + $0x8a8] sm:$0xff]  ;;  %v11590_v26 = vld [vmem:[%s12255_s8 + $0x8a0] sm:$0xff]  ;;  %v11588_v41 = vld [vmem:[%s12255_s8 + $0x890] sm:$0xff] }
  0xfb   : > { %7149 = vmatpush.bf16.msrb.mxu1 %v11553_v20  ;;  %7118 = vmatmul.bf16.vlgmr.msra.gmra.mxu2 %v1880_v24  ;;  %v11599_v20 = vld [vmem:[%s12255_s8 + $0x8e8] sm:$0xff] }
  0xfc   : > { %7162 = vmatpush.bf16.msrb.mxu2 %v11561_v21  ;;  %7131 = vmatmul.bf16.vlgmr.msra.gmra.mxu3 %v1881_v28  ;;  %v11598_v28 = vld [vmem:[%s12255_s8 + $0x8e0] sm:$0xff] }
  0xfd   : > { %7175 = vmatpush.bf16.msrb.mxu3 %v11569_v25  ;;  %v11582_v25 = vld [vmem:[%s12255_s8 + $0x860] sm:$0xff] }
  0xfe   : > { %7137 = vmatpush.bf16.msrb.mxu0 %v11544_v27  ;;  %v6911_v47 = vpop.f32.mrf.mxu2  ;;  %v6887_v50 = vpop.f32.mrf.mxu0 }
  0xff   : > { %7150 = vmatpush.bf16.msrb.mxu1 %v11552_v29  ;;  %v6912_v48 = vadd.f32 %v6911_v47, %v6899_v42  ;;  %v6924_v51 = vpop.f32.mrf.mxu3  ;;  %v6900_v56 = vpop.f32.mrf.mxu1  ;;  %v11573_v29 = vld [vmem:[%s12255_s8 + $0x818] sm:$0xff]  ;;  %v11596_v42 = vld [vmem:[%s12255_s8 + $0x8d0] sm:$0xff]  ;;  %v11595_v47 = vld [vmem:[%s12255_s8 + $0x8c8] sm:$0xff] }
 0x100   : > { %7163 = vmatpush.bf16.msrb.mxu2 %v11560_v30  ;;  %v11581_v30 = vld [vmem:[%s12255_s8 + $0x858] sm:$0xff]  ;;  %v11578_v50 = vld [vmem:[%s12255_s8 + $0x840] sm:$0xff] }
 0x101   : > { %7176 = vmatpush.bf16.msrb.mxu3 %v11568_v31  ;;  %v6925_v53 = vadd.f32 %v6924_v51, %v6912_v48  ;;  %v11589_v31 = vld [vmem:[%s12255_s8 + $0x898] sm:$0xff]  ;;  %v11586_v51 = vld [vmem:[%s12255_s8 + $0x880] sm:$0xff] }
 0x102   : > { %7138 = vmatpush.bf16.msrb.mxu0 %v11543_v32  ;;  %v1888_v56 = vld [vmem:[#allocation1] sm:$0xff] }
 0x103   : > { %7151 = vmatpush.bf16.msrb.mxu1 %v11551_v33 }
 0x104   : > { %7164 = vmatpush.bf16.msrb.mxu2 %v11559_v34  ;;  %v11597_v34 = vld [vmem:[%s12255_s8 + $0x8d8] sm:$0xff] }
 0x105   : > { %7177 = vmatpush.bf16.msrb.mxu3 %v11567_v35 }
 0x106   : > { %7139 = vmatpush.bf16.msrb.mxu0 %v11542_v38  ;;  %v6913_v1 = vpop.f32.mrf.mxu2 }
 0x107   : > { %7152 = vmatpush.bf16.msrb.mxu1 %v11550_v39  ;;  %v6926_v5 = vpop.f32.mrf.mxu3  ;;  %v11607_v1 = vld [vmem:[%s12255_s8 + $0x928] sm:$0xff] }
 0x108   : > { %7165 = vmatpush.bf16.msrb.mxu2 %v11558_v40  ;;  %v11580_v40 = vld [vmem:[%s12255_s8 + $0x850] sm:$0xff] }
 0x109   : > { %7178 = vmatpush.bf16.msrb.mxu3 %v11566_v43  ;;  %v11571_v43 = vld [vmem:[%s12255_s8 + $0x808] sm:$0xff] }
 0x10a   : > { %7140 = vmatpush.bf16.msrb.mxu0 %v11541_v44  ;;  %v11579_v44 = vld [vmem:[%s12255_s8 + $0x848] sm:$0xff] }
 0x10b   : > { %7153 = vmatpush.bf16.msrb.mxu1 %v11549_v45  ;;  %v11587_v45 = vld [vmem:[%s12255_s8 + $0x888] sm:$0xff] }
 0x10c   : > { %7166 = vmatpush.bf16.msrb.mxu2 %v11557_v46 }
 0x10d   : > { %7179 = vmatpush.bf16.msrb.mxu3 %v11565_v49  ;;  %v11570_v49 = vld [vmem:[%s12255_s8 + $0x800] sm:$0xff] }
 0x10e   : > { %7141 = vmatpush.bf16.msrb.mxu0 %v11540_v52  ;;  %v11609_v52 = vld [vmem:[%s12255_s8 + $0x938] sm:$0xff] }
 0x10f   : > { %7154 = vmatpush.bf16.msrb.mxu1 %v11548_v54  ;;  %v11625_v54 = vld [vmem:[%s12255_s8 + $0x9b8] sm:$0xff] }
 0x110   : > { %7167 = vmatpush.bf16.msrb.mxu2 %v11556_v55  ;;  %v11594_v55 = vld [vmem:[%s12255_s8 + $0x8c0] sm:$0xff] }
 0x111   : > { %7180 = vmatpush.bf16.msrb.mxu3 %v11564_v57  ;;  %v1890_v57 = vld [vmem:[#allocation1 + $0x12] sm:$0xff] }
 0x112   : > { %7142 = vmatpush.bf16.msrb.mxu0 %v11539_v58  ;;  %v11633_v58 = vld [vmem:[%s12255_s8 + $0x9f8] sm:$0xff] }
 0x113   : > { %7155 = vmatpush.bf16.msrb.mxu1 %v11547_v59  ;;  %v1889_v59 = vld [vmem:[#allocation1 + $0x9] sm:$0xff] }
 0x114   : > { %7168 = vmatpush.bf16.msrb.mxu2 %v11555_v60  ;;  %v11608_v60 = vld [vmem:[%s12255_s8 + $0x930] sm:$0xff] }
 0x115   : > { %7181 = vmatpush.bf16.msrb.mxu3 %v11563_v3  ;;  %v11623_v3 = vld [vmem:[%s12255_s8 + $0x9a8] sm:$0xff] }
 0x116   : > { %7143 = vmatpush.bf16.msrb.mxu0 %v11538_v4  ;;  %v6937_v21 = vpop.f32.mrf.mxu0  ;;  %v11631_v4 = vld [vmem:[%s12255_s8 + $0x9e8] sm:$0xff] }
 0x117   : > { %7156 = vmatpush.bf16.msrb.mxu1 %v11546_v6  ;;  %v6938_v22 = vadd.f32 %v6937_v21, %v6925_v53  ;;  %v6950_v24 = vpop.f32.mrf.mxu1  ;;  %v11617_v53 = vld [vmem:[%s12255_s8 + $0x978] sm:$0xff] }
 0x118   : > { %7169 = vmatpush.bf16.msrb.mxu2 %v11554_v7  ;;  %v11606_v7 = vld [vmem:[%s12255_s8 + $0x920] sm:$0xff] }
 0x119   : > { %7182 = vmatpush.bf16.msrb.mxu3 %v11562_v11  ;;  %7144 = vmatmul.bf16.vlgmr.msrb.gmra.mxu0 %v1882_v61  ;;  %v6951_v27 = vadd.f32 %v6950_v24, %v6938_v22  ;;  %v1891_v61 = vld [vmem:[#allocation1 + $0x1b] sm:$0xff]  ;;  %v11604_v22 = vld [vmem:[%s12255_s8 + $0x910] sm:$0xff] }
 0x11a   : > { %7188 = vmatpush.bf16.msra.mxu0 %v11577_v8  ;;  %7157 = vmatmul.bf16.vlgmr.msrb.gmra.mxu1 %v1883_v63  ;;  %v11624_v63 = vld [vmem:[%s12255_s8 + $0x9b0] sm:$0xff] }
 0x11b   : > { %7201 = vmatpush.bf16.msra.mxu1 %v11585_v9  ;;  %7170 = vmatmul.bf16.vlgmr.msrb.gmra.mxu2 %v1884_v62  ;;  %v11616_v62 = vld [vmem:[%s12255_s8 + $0x970] sm:$0xff]  ;;  %v11614_v9 = vld [vmem:[%s12255_s8 + $0x960] sm:$0xff] }
 0x11c   : > { %7214 = vmatpush.bf16.msra.mxu2 %v11593_v10  ;;  %7183 = vmatmul.bf16.vlgmr.msrb.gmra.mxu3 %v1885_v0  ;;  %v11632_v0 = vld [vmem:[%s12255_s8 + $0x9f0] sm:$0xff]  ;;  %v11622_v10 = vld [vmem:[%s12255_s8 + $0x9a0] sm:$0xff] }
 0x11d   : > { %7227 = vmatpush.bf16.msra.mxu3 %v11601_v12  ;;  %v11630_v12 = vld [vmem:[%s12255_s8 + $0x9e0] sm:$0xff]  ;;  %v11612_v24 = vld [vmem:[%s12255_s8 + $0x950] sm:$0xff] }
 0x11e   : > { %7189 = vmatpush.bf16.msra.mxu0 %v11576_v13  ;;  %v6963_v32 = vpop.f32.mrf.mxu2  ;;  %v6939_v36 = vpop.f32.mrf.mxu0  ;;  %v11605_v13 = vld [vmem:[%s12255_s8 + $0x918] sm:$0xff] }
 0x11f   : > { %7202 = vmatpush.bf16.msra.mxu1 %v11584_v14  ;;  %v6964_v33 = vadd.f32 %v6963_v32, %v6951_v27  ;;  %v6976_v35 = vpop.f32.mrf.mxu3  ;;  %v6952_v38 = vpop.f32.mrf.mxu1  ;;  %v11613_v14 = vld [vmem:[%s12255_s8 + $0x958] sm:$0xff]  ;;  %v11603_v27 = vld [vmem:[%s12255_s8 + $0x908] sm:$0xff] }
 0x120   : > { %7215 = vmatpush.bf16.msra.mxu2 %v11592_v15  ;;  %v11621_v15 = vld [vmem:[%s12255_s8 + $0x998] sm:$0xff]  ;;  %v11627_v36 = vld [vmem:[%s12255_s8 + $0x9c8] sm:$0xff]  ;;  %v11602_v38 = vld [vmem:[%s12255_s8 + $0x900] sm:$0xff] }
 0x121   : > { %7228 = vmatpush.bf16.msra.mxu3 %v11600_v16  ;;  %v6977_v39 = vadd.f32 %v6976_v35, %v6964_v33  ;;  %v1893_v33 = vld [vmem:[#allocation1 + $0x2d] sm:$0xff] }
 0x122   : > { %7190 = vmatpush.bf16.msra.mxu0 %v11575_v17  ;;  %v270_v35 = vld [vmem:[%s12242_s24 + $0x28] sm:$0xff] }
 0x123   : > { %7203 = vmatpush.bf16.msra.mxu1 %v11583_v18  ;;  %v11629_v18 = vld [vmem:[%s12255_s8 + $0x9d8] sm:$0xff] }
 0x124   : > { %7216 = vmatpush.bf16.msra.mxu2 %v11591_v19 }
 0x125   : > { %7229 = vmatpush.bf16.msra.mxu3 %v11599_v20 }
 0x126   : > { %7191 = vmatpush.bf16.msra.mxu0 %v11574_v23  ;;  %v6965_v46 = vpop.f32.mrf.mxu2 }
 0x127   : > { %7204 = vmatpush.bf16.msra.mxu1 %v11582_v25  ;;  %v6978_v48 = vpop.f32.mrf.mxu3  ;;  %v11620_v25 = vld [vmem:[%s12255_s8 + $0x990] sm:$0xff] }
 0x128   : > { %7217 = vmatpush.bf16.msra.mxu2 %v11590_v26  ;;  %v11628_v26 = vld [vmem:[%s12255_s8 + $0x9d0] sm:$0xff] }
 0x129   : > { %7230 = vmatpush.bf16.msra.mxu3 %v11598_v28  ;;  %v11611_v28 = vld [vmem:[%s12255_s8 + $0x948] sm:$0xff]  ;;  %v11640_v46 = vld [vmem:[%s12255_s8 + $0xa30] sm:$0xff] }
 0x12a   : > { %7192 = vmatpush.bf16.msra.mxu0 %v11573_v29  ;;  %v11619_v29 = vld [vmem:[%s12255_s8 + $0x988] sm:$0xff]  ;;  %v11656_v48 = vld [vmem:[%s12255_s8 + $0xab0] sm:$0xff] }
 0x12b   : > { %7205 = vmatpush.bf16.msra.mxu1 %v11581_v30  ;;  %v1892_v30 = vld [vmem:[#allocation1 + $0x24] sm:$0xff] }
 0x12c   : > { %7218 = vmatpush.bf16.msra.mxu2 %v11589_v31  ;;  %v1894_v31 = vld [vmem:[#allocation1 + $0x36] sm:$0xff] }
 0x12d   : > { %7231 = vmatpush.bf16.msra.mxu3 %v11597_v34  ;;  %v1895_v34 = vld [vmem:[#allocation1 + $0x3f] sm:$0xff] }
 0x12e   : > { %7193 = vmatpush.bf16.msra.mxu0 %v11572_v37  ;;  %1897 = vst [vmem:[#allocation1] ss:$9 sm:$0xff] %v270_v35  ;;  %v11679_v35 = vld [vmem:[%s12255_s8 + $0xb68] sm:$0xff] }
 0x12f   : > { %7206 = vmatpush.bf16.msra.mxu1 %v11580_v40  ;;  %v11618_v40 = vld [vmem:[%s12255_s8 + $0x980] sm:$0xff] }
 0x130   : > { %7219 = vmatpush.bf16.msra.mxu2 %v11588_v41  ;;  %v11641_v41 = vld [vmem:[%s12255_s8 + $0xa38] sm:$0xff] }
 0x131   : > { %7232 = vmatpush.bf16.msra.mxu3 %v11596_v42  ;;  %v11649_v42 = vld [vmem:[%s12255_s8 + $0xa78] sm:$0xff] }
 0x132   : > { %7194 = vmatpush.bf16.msra.mxu0 %v11571_v43  ;;  %v11657_v43 = vld [vmem:[%s12255_s8 + $0xab8] sm:$0xff] }
 0x133   : > { %7207 = vmatpush.bf16.msra.mxu1 %v11579_v44  ;;  %v11626_v44 = vld [vmem:[%s12255_s8 + $0x9c0] sm:$0xff] }
 0x134   : > { %7220 = vmatpush.bf16.msra.mxu2 %v11587_v45  ;;  %v11665_v45 = vld [vmem:[%s12255_s8 + $0xaf8] sm:$0xff] }
 0x135   : > { %7233 = vmatpush.bf16.msra.mxu3 %v11595_v47  ;;  %v11648_v47 = vld [vmem:[%s12255_s8 + $0xa70] sm:$0xff] }
 0x136   : > { %7195 = vmatpush.bf16.msra.mxu0 %v11570_v49  ;;  %v6989_v5 = vpop.f32.mrf.mxu0  ;;  %v11664_v49 = vld [vmem:[%s12255_s8 + $0xaf0] sm:$0xff] }
 0x137   : > { %7208 = vmatpush.bf16.msra.mxu1 %v11578_v50  ;;  %v6990_v6 = vadd.f32 %v6989_v5, %v6977_v39  ;;  %v7002_v8 = vpop.f32.mrf.mxu1  ;;  %v11610_v39 = vld [vmem:[%s12255_s8 + $0x940] sm:$0xff]  ;;  %v11639_v50 = vld [vmem:[%s12255_s8 + $0xa28] sm:$0xff] }
 0x138   : > { %7221 = vmatpush.bf16.msra.mxu2 %v11586_v51  ;;  %v11647_v51 = vld [vmem:[%s12255_s8 + $0xa68] sm:$0xff] }
 0x139   : > { %7234 = vmatpush.bf16.msra.mxu3 %v11594_v55  ;;  %7196 = vmatmul.bf16.vlgmr.msra.gmra.mxu0 %v1888_v56  ;;  %v7003_v11 = vadd.f32 %v7002_v8, %v6990_v6  ;;  %v11638_v56 = vld [vmem:[%s12255_s8 + $0xa20] sm:$0xff] }
 0x13a   : > { %7240 = vmatpush.bf16.msrb.mxu0 %v11609_v52  ;;  %7209 = vmatmul.bf16.vlgmr.msra.gmra.mxu1 %v1889_v59  ;;  %v11655_v52 = vld [vmem:[%s12255_s8 + $0xaa8] sm:$0xff]  ;;  %v11654_v59 = vld [vmem:[%s12255_s8 + $0xaa0] sm:$0xff] }
 0x13b   : > { %7253 = vmatpush.bf16.msrb.mxu1 %v11617_v53  ;;  %7222 = vmatmul.bf16.vlgmr.msra.gmra.mxu2 %v1890_v57  ;;  %v11663_v53 = vld [vmem:[%s12255_s8 + $0xae8] sm:$0xff] }
 0x13c   : > { %7266 = vmatpush.bf16.msrb.mxu2 %v11625_v54  ;;  %7235 = vmatmul.bf16.vlgmr.msra.gmra.mxu3 %v1891_v61  ;;  %v11662_v61 = vld [vmem:[%s12255_s8 + $0xae0] sm:$0xff] }
 0x13d   : > { %7279 = vmatpush.bf16.msrb.mxu3 %v11633_v58  ;;  %v11646_v58 = vld [vmem:[%s12255_s8 + $0xa60] sm:$0xff] }
 0x13e   : > { %7241 = vmatpush.bf16.msrb.mxu0 %v11608_v60  ;;  %v7015_v16 = vpop.f32.mrf.mxu2  ;;  %v6991_v20 = vpop.f32.mrf.mxu0 }
 0x13f   : > { %7254 = vmatpush.bf16.msrb.mxu1 %v11616_v62  ;;  %v7016_v17 = vadd.f32 %v7015_v16, %v7003_v11  ;;  %v7028_v19 = vpop.f32.mrf.mxu3  ;;  %v7004_v23 = vpop.f32.mrf.mxu1  ;;  %v11637_v62 = vld [vmem:[%s12255_s8 + $0xa18] sm:$0xff]  ;;  %v11660_v11 = vld [vmem:[%s12255_s8 + $0xad0] sm:$0xff]  ;;  %v11659_v16 = vld [vmem:[%s12255_s8 + $0xac8] sm:$0xff] }
 0x140   : > { %7267 = vmatpush.bf16.msrb.mxu2 %v11624_v63  ;;  %v11645_v63 = vld [vmem:[%s12255_s8 + $0xa58] sm:$0xff]  ;;  %v11650_v20 = vld [vmem:[%s12255_s8 + $0xa80] sm:$0xff] }
 0x141   : > { %7280 = vmatpush.bf16.msrb.mxu3 %v11632_v0  ;;  %v12571_v21 = vadd.f32 %v7028_v19, %v7016_v17  ;;  %v11653_v0 = vld [vmem:[%s12255_s8 + $0xa98] sm:$0xff]  ;;  %v11642_v19 = vld [vmem:[%s12255_s8 + $0xa40] sm:$0xff] }
 0x142   : > { %7242 = vmatpush.bf16.msrb.mxu0 %v11607_v1  ;;  %v11689_v23 = vld [vmem:[%s12255_s8 + $0xbb8] sm:$0xff] }
 0x143   : > { %7255 = vmatpush.bf16.msrb.mxu1 %v11615_v2 }
 0x144   : > { %7268 = vmatpush.bf16.msrb.mxu2 %v11623_v3  ;;  %v11661_v3 = vld [vmem:[%s12255_s8 + $0xad8] sm:$0xff] }
 0x145   : > { %7281 = vmatpush.bf16.msrb.mxu3 %v11631_v4 }
 0x146   : > { %7243 = vmatpush.bf16.msrb.mxu0 %v11606_v7  ;;  %v7017_v32 = vpop.f32.mrf.mxu2  ;;  %v11636_v7 = vld [vmem:[%s12255_s8 + $0xa10] sm:$0xff] }
 0x147   : > { %7256 = vmatpush.bf16.msrb.mxu1 %v11614_v9  ;;  %v7030_v37 = vpop.f32.mrf.mxu3  ;;  %v11644_v9 = vld [vmem:[%s12255_s8 + $0xa50] sm:$0xff] }
 0x148   : > { %7269 = vmatpush.bf16.msrb.mxu2 %v11622_v10  ;;  %v11652_v10 = vld [vmem:[%s12255_s8 + $0xa90] sm:$0xff]  ;;  %v11695_v37 = vld [vmem:[%s12255_s8 + $0xbe8] sm:$0xff] }
 0x149   : > { %7282 = vmatpush.bf16.msrb.mxu3 %v11630_v12  ;;  %v11635_v12 = vld [vmem:[%s12255_s8 + $0xa08] sm:$0xff]  ;;  %v11688_v32 = vld [vmem:[%s12255_s8 + $0xbb0] sm:$0xff] }
 0x14a   : > { %7244 = vmatpush.bf16.msrb.mxu0 %v11605_v13  ;;  %v11643_v13 = vld [vmem:[%s12255_s8 + $0xa48] sm:$0xff] }
 0x14b   : > { %7257 = vmatpush.bf16.msrb.mxu1 %v11613_v14  ;;  %v11651_v14 = vld [vmem:[%s12255_s8 + $0xa88] sm:$0xff] }
 0x14c   : > { %7270 = vmatpush.bf16.msrb.mxu2 %v11621_v15 }
 0x14d   : > { %7283 = vmatpush.bf16.msrb.mxu3 %v11629_v18  ;;  %v11634_v18 = vld [vmem:[%s12255_s8 + $0xa00] sm:$0xff] }
 0x14e   : > { %7245 = vmatpush.bf16.msrb.mxu0 %v11604_v22  ;;  %v11681_v22 = vld [vmem:[%s12255_s8 + $0xb78] sm:$0xff] }
 0x14f   : > { %7258 = vmatpush.bf16.msrb.mxu1 %v11612_v24  ;;  %v11658_v24 = vld [vmem:[%s12255_s8 + $0xac0] sm:$0xff] }
 0x150   : > { %7271 = vmatpush.bf16.msrb.mxu2 %v11620_v25  ;;  %v1898_v25 = vld [vmem:[#allocation1] sm:$0xff] }
 0x151   : > { %7284 = vmatpush.bf16.msrb.mxu3 %v11628_v26  ;;  %v1900_v26 = vld [vmem:[#allocation1 + $0x12] sm:$0xff] }
 0x152   : > { %7246 = vmatpush.bf16.msrb.mxu0 %v11603_v27  ;;  %v11697_v27 = vld [vmem:[%s12255_s8 + $0xbf8] sm:$0xff] }
 0x153   : > { %7259 = vmatpush.bf16.msrb.mxu1 %v11611_v28  ;;  %v1899_v28 = vld [vmem:[#allocation1 + $0x9] sm:$0xff] }
 0x154   : > { %7272 = vmatpush.bf16.msrb.mxu2 %v11619_v29  ;;  %v11672_v29 = vld [vmem:[%s12255_s8 + $0xb30] sm:$0xff] }
 0x155   : > { %7285 = vmatpush.bf16.msrb.mxu3 %v11627_v36  ;;  %v11687_v36 = vld [vmem:[%s12255_s8 + $0xba8] sm:$0xff] }
 0x156   : > { %7247 = vmatpush.bf16.msrb.mxu0 %v11602_v38  ;;  %v7041_v54 = vpop.f32.mrf.mxu0 }
 0x157   : > { %7260 = vmatpush.bf16.msrb.mxu1 %v11610_v39  ;;  %v7042_v55 = vadd.f32 %v7041_v54, %v12571_v21  ;;  %v7054_v57 = vpop.f32.mrf.mxu1  ;;  %v11673_v21 = vld [vmem:[%s12255_s8 + $0xb38] sm:$0xff] }
 0x158   : > { %7273 = vmatpush.bf16.msrb.mxu2 %v11618_v40  ;;  %v11670_v40 = vld [vmem:[%s12255_s8 + $0xb20] sm:$0xff] }
 0x159   : > { %7286 = vmatpush.bf16.msrb.mxu3 %v11626_v44  ;;  %7248 = vmatmul.bf16.vlgmr.msrb.gmra.mxu0 %v1892_v30  ;;  %v7055_v60 = vadd.f32 %v7054_v57, %v7042_v55  ;;  %v1901_v30 = vld [vmem:[#allocation1 + $0x1b] sm:$0xff]  ;;  %v11668_v55 = vld [vmem:[%s12255_s8 + $0xb10] sm:$0xff] }
 0x15a   : > { %7292 = vmatpush.bf16.msra.mxu0 %v11641_v41  ;;  %7261 = vmatmul.bf16.vlgmr.msrb.gmra.mxu1 %v1893_v33  ;;  %v11696_v33 = vld [vmem:[%s12255_s8 + $0xbf0] sm:$0xff] }
 0x15b   : > { %7305 = vmatpush.bf16.msra.mxu1 %v11649_v42  ;;  %7274 = vmatmul.bf16.vlgmr.msrb.gmra.mxu2 %v1894_v31  ;;  %v11680_v31 = vld [vmem:[%s12255_s8 + $0xb70] sm:$0xff]  ;;  %v11678_v42 = vld [vmem:[%s12255_s8 + $0xb60] sm:$0xff] }
 0x15c   : > { %7318 = vmatpush.bf16.msra.mxu2 %v11657_v43  ;;  %7287 = vmatmul.bf16.vlgmr.msrb.gmra.mxu3 %v1895_v34  ;;  %v11671_v34 = vld [vmem:[%s12255_s8 + $0xb28] sm:$0xff]  ;;  %v11686_v43 = vld [vmem:[%s12255_s8 + $0xba0] sm:$0xff]  ;;  %v11676_v57 = vld [vmem:[%s12255_s8 + $0xb50] sm:$0xff] }
 0x15d   : > { %7331 = vmatpush.bf16.msra.mxu3 %v11665_v45  ;;  %v11694_v45 = vld [vmem:[%s12255_s8 + $0xbe0] sm:$0xff] }
 0x15e   : > { %7293 = vmatpush.bf16.msra.mxu0 %v11640_v46  ;;  %v7067_v1 = vpop.f32.mrf.mxu2  ;;  %v7043_v5 = vpop.f32.mrf.mxu0  ;;  %v11669_v46 = vld [vmem:[%s12255_s8 + $0xb18] sm:$0xff] }
 0x15f   : > { %7306 = vmatpush.bf16.msra.mxu1 %v11648_v47  ;;  %v7068_v2 = vadd.f32 %v7067_v1, %v7055_v60  ;;  %v7080_v4 = vpop.f32.mrf.mxu3  ;;  %v7056_v8 = vpop.f32.mrf.mxu1  ;;  %v11677_v47 = vld [vmem:[%s12255_s8 + $0xb58] sm:$0xff]  ;;  %v11667_v60 = vld [vmem:[%s12255_s8 + $0xb08] sm:$0xff] }
 0x160   : > { %7319 = vmatpush.bf16.msra.mxu2 %v11656_v48  ;;  %v11685_v48 = vld [vmem:[%s12255_s8 + $0xb98] sm:$0xff]  ;;  %v11691_v5 = vld [vmem:[%s12255_s8 + $0xbc8] sm:$0xff]  ;;  %v11674_v8 = vld [vmem:[%s12255_s8 + $0xb40] sm:$0xff] }
 0x161   : > { %7332 = vmatpush.bf16.msra.mxu3 %v11664_v49  ;;  %v7081_v6 = vadd.f32 %v7080_v4, %v7068_v2  ;;  %v1903_v2 = vld [vmem:[#allocation1 + $0x2d] sm:$0xff] }
 0x162   : > { %7294 = vmatpush.bf16.msra.mxu0 %v11639_v50  ;;  %v271_v4 = vld [vmem:[%s12242_s24 + $0x30] sm:$0xff] }
 0x163   : > { %7307 = vmatpush.bf16.msra.mxu1 %v11647_v51  ;;  %v11693_v51 = vld [vmem:[%s12255_s8 + $0xbd8] sm:$0xff] }
 0x164   : > { %7320 = vmatpush.bf16.msra.mxu2 %v11655_v52 }
 0x165   : > { %7333 = vmatpush.bf16.msra.mxu3 %v11663_v53 }
 0x166   : > { %7295 = vmatpush.bf16.msra.mxu0 %v11638_v56  ;;  %v7069_v15 = vpop.f32.mrf.mxu2 }
 0x167   : > { %7308 = vmatpush.bf16.msra.mxu1 %v11646_v58  ;;  %v7082_v17 = vpop.f32.mrf.mxu3  ;;  %v11684_v58 = vld [vmem:[%s12255_s8 + $0xb90] sm:$0xff] }
 0x168   : > { %7321 = vmatpush.bf16.msra.mxu2 %v11654_v59  ;;  %v11692_v59 = vld [vmem:[%s12255_s8 + $0xbd0] sm:$0xff] }
 0x169   : > { %7334 = vmatpush.bf16.msra.mxu3 %v11662_v61  ;;  %v11675_v61 = vld [vmem:[%s12255_s8 + $0xb48] sm:$0xff]  ;;  %v11704_v15 = vld [vmem:[%s12255_s8 + $0xc30] sm:$0xff] }
 0x16a   : > { %7296 = vmatpush.bf16.msra.mxu0 %v11637_v62  ;;  %v11683_v62 = vld [vmem:[%s12255_s8 + $0xb88] sm:$0xff]  ;;  %v11720_v17 = vld [vmem:[%s12255_s8 + $0xcb0] sm:$0xff] }
 0x16b   : > { %7309 = vmatpush.bf16.msra.mxu1 %v11645_v63  ;;  %v1902_v63 = vld [vmem:[#allocation1 + $0x24] sm:$0xff] }
 0x16c   : > { %7322 = vmatpush.bf16.msra.mxu2 %v11653_v0  ;;  %v1904_v0 = vld [vmem:[#allocation1 + $0x36] sm:$0xff] }
 0x16d   : > { %7335 = vmatpush.bf16.msra.mxu3 %v11661_v3  ;;  %v1905_v3 = vld [vmem:[#allocation1 + $0x3f] sm:$0xff] }
 0x16e   : > { %7297 = vmatpush.bf16.msra.mxu0 %v11636_v7  ;;  %1907 = vst [vmem:[#allocation1] ss:$9 sm:$0xff] %v271_v4  ;;  %v11666_v7 = vld [vmem:[%s12255_s8 + $0xb00] sm:$0xff]  ;;  %v11743_v4 = vld [vmem:[%s12255_s8 + $0xd68] sm:$0xff] }
 0x16f   : > { %7310 = vmatpush.bf16.msra.mxu1 %v11644_v9  ;;  %v11682_v9 = vld [vmem:[%s12255_s8 + $0xb80] sm:$0xff] }
 0x170   : > { %7323 = vmatpush.bf16.msra.mxu2 %v11652_v10  ;;  %v11705_v10 = vld [vmem:[%s12255_s8 + $0xc38] sm:$0xff] }
 0x171   : > { %7336 = vmatpush.bf16.msra.mxu3 %v11660_v11  ;;  %v11713_v11 = vld [vmem:[%s12255_s8 + $0xc78] sm:$0xff] }
 0x172   : > { %7298 = vmatpush.bf16.msra.mxu0 %v11635_v12  ;;  %v11721_v12 = vld [vmem:[%s12255_s8 + $0xcb8] sm:$0xff] }
 0x173   : > { %7311 = vmatpush.bf16.msra.mxu1 %v11643_v13  ;;  %v11690_v13 = vld [vmem:[%s12255_s8 + $0xbc0] sm:$0xff] }
 0x174   : > { %7324 = vmatpush.bf16.msra.mxu2 %v11651_v14  ;;  %v11729_v14 = vld [vmem:[%s12255_s8 + $0xcf8] sm:$0xff] }
 0x175   : > { %7337 = vmatpush.bf16.msra.mxu3 %v11659_v16  ;;  %v11712_v16 = vld [vmem:[%s12255_s8 + $0xc70] sm:$0xff] }
 0x176   : > { %7299 = vmatpush.bf16.msra.mxu0 %v11634_v18  ;;  %v7093_v38 = vpop.f32.mrf.mxu0  ;;  %v11728_v18 = vld [vmem:[%s12255_s8 + $0xcf0] sm:$0xff] }
 0x177   : > { %7312 = vmatpush.bf16.msra.mxu1 %v11642_v19  ;;  %v7094_v39 = vadd.f32 %v7093_v38, %v7081_v6  ;;  %v7106_v41 = vpop.f32.mrf.mxu1  ;;  %v11703_v19 = vld [vmem:[%s12255_s8 + $0xc28] sm:$0xff] }
 0x178   : > { %7325 = vmatpush.bf16.msra.mxu2 %v11650_v20  ;;  %v11711_v20 = vld [vmem:[%s12255_s8 + $0xc68] sm:$0xff] }
 0x179   : > { %7338 = vmatpush.bf16.msra.mxu3 %v11658_v24  ;;  %7300 = vmatmul.bf16.vlgmr.msra.gmra.mxu0 %v1898_v25  ;;  %v7107_v44 = vadd.f32 %v7106_v41, %v7094_v39  ;;  %v11702_v25 = vld [vmem:[%s12255_s8 + $0xc20] sm:$0xff] }
 0x17a   : > { %7344 = vmatpush.bf16.msrb.mxu0 %v11673_v21  ;;  %7313 = vmatmul.bf16.vlgmr.msra.gmra.mxu1 %v1899_v28  ;;  %v11719_v21 = vld [vmem:[%s12255_s8 + $0xca8] sm:$0xff]  ;;  %v11718_v28 = vld [vmem:[%s12255_s8 + $0xca0] sm:$0xff] }
 0x17b   : > { %7357 = vmatpush.bf16.msrb.mxu1 %v11681_v22  ;;  %7326 = vmatmul.bf16.vlgmr.msra.gmra.mxu2 %v1900_v26  ;;  %v11727_v22 = vld [vmem:[%s12255_s8 + $0xce8] sm:$0xff] }
 0x17c   : > { %7370 = vmatpush.bf16.msrb.mxu2 %v11689_v23  ;;  %7339 = vmatmul.bf16.vlgmr.msra.gmra.mxu3 %v1901_v30  ;;  %v11726_v30 = vld [vmem:[%s12255_s8 + $0xce0] sm:$0xff] }
 0x17d   : > { %7383 = vmatpush.bf16.msrb.mxu3 %v11697_v27  ;;  %v11710_v27 = vld [vmem:[%s12255_s8 + $0xc60] sm:$0xff] }
 0x17e   : > { %7345 = vmatpush.bf16.msrb.mxu0 %v11672_v29  ;;  %v7119_v49 = vpop.f32.mrf.mxu2  ;;  %v7095_v53 = vpop.f32.mrf.mxu0 }
 0x17f   : > { %7358 = vmatpush.bf16.msrb.mxu1 %v11680_v31  ;;  %v7120_v50 = vadd.f32 %v7119_v49, %v7107_v44  ;;  %v7132_v52 = vpop.f32.mrf.mxu3  ;;  %v7108_v56 = vpop.f32.mrf.mxu1  ;;  %v11701_v31 = vld [vmem:[%s12255_s8 + $0xc18] sm:$0xff]  ;;  %v11724_v44 = vld [vmem:[%s12255_s8 + $0xcd0] sm:$0xff]  ;;  %v11723_v49 = vld [vmem:[%s12255_s8 + $0xcc8] sm:$0xff] }
 0x180   : > { %7371 = vmatpush.bf16.msrb.mxu2 %v11688_v32  ;;  %v11709_v32 = vld [vmem:[%s12255_s8 + $0xc58] sm:$0xff]  ;;  %v11714_v53 = vld [vmem:[%s12255_s8 + $0xc80] sm:$0xff] }
 0x181   : > { %7384 = vmatpush.bf16.msrb.mxu3 %v11696_v33  ;;  %v12639_v54 = vadd.f32 %v7132_v52, %v7120_v50  ;;  %v11717_v33 = vld [vmem:[%s12255_s8 + $0xc98] sm:$0xff]  ;;  %v11706_v52 = vld [vmem:[%s12255_s8 + $0xc40] sm:$0xff] }
 0x182   : > { %7346 = vmatpush.bf16.msrb.mxu0 %v11671_v34  ;;  %v11753_v56 = vld [vmem:[%s12255_s8 + $0xdb8] sm:$0xff] }
 0x183   : > { %7359 = vmatpush.bf16.msrb.mxu1 %v11679_v35 }
 0x184   : > { %7372 = vmatpush.bf16.msrb.mxu2 %v11687_v36  ;;  %v11725_v36 = vld [vmem:[%s12255_s8 + $0xcd8] sm:$0xff] }
 0x185   : > { %7385 = vmatpush.bf16.msrb.mxu3 %v11695_v37 }
 0x186   : > { %7347 = vmatpush.bf16.msrb.mxu0 %v11670_v40  ;;  %v7121_v1 = vpop.f32.mrf.mxu2  ;;  %v11700_v40 = vld [vmem:[%s12255_s8 + $0xc10] sm:$0xff] }
 0x187   : > { %7360 = vmatpush.bf16.msrb.mxu1 %v11678_v42  ;;  %v7134_v6 = vpop.f32.mrf.mxu3  ;;  %v11708_v42 = vld [vmem:[%s12255_s8 + $0xc50] sm:$0xff] }
 0x188   : > { %7373 = vmatpush.bf16.msrb.mxu2 %v11686_v43  ;;  %v11716_v43 = vld [vmem:[%s12255_s8 + $0xc90] sm:$0xff]  ;;  %v11759_v6 = vld [vmem:[%s12255_s8 + $0xde8] sm:$0xff] }
 0x189   : > { %7386 = vmatpush.bf16.msrb.mxu3 %v11694_v45  ;;  %v11699_v45 = vld [vmem:[%s12255_s8 + $0xc08] sm:$0xff]  ;;  %v11752_v1 = vld [vmem:[%s12255_s8 + $0xdb0] sm:$0xff] }
 0x18a   : > { %7348 = vmatpush.bf16.msrb.mxu0 %v11669_v46  ;;  %v11707_v46 = vld [vmem:[%s12255_s8 + $0xc48] sm:$0xff] }
 0x18b   : > { %7361 = vmatpush.bf16.msrb.mxu1 %v11677_v47  ;;  %v11715_v47 = vld [vmem:[%s12255_s8 + $0xc88] sm:$0xff] }
 0x18c   : > { %7374 = vmatpush.bf16.msrb.mxu2 %v11685_v48 }
 0x18d   : > { %7387 = vmatpush.bf16.msrb.mxu3 %v11693_v51  ;;  %v11698_v51 = vld [vmem:[%s12255_s8 + $0xc00] sm:$0xff] }
 0x18e   : > { %7349 = vmatpush.bf16.msrb.mxu0 %v11668_v55  ;;  %v11745_v55 = vld [vmem:[%s12255_s8 + $0xd78] sm:$0xff] }
 0x18f   : > { %7362 = vmatpush.bf16.msrb.mxu1 %v11676_v57  ;;  %v11722_v57 = vld [vmem:[%s12255_s8 + $0xcc0] sm:$0xff] }
 0x190   : > { %7375 = vmatpush.bf16.msrb.mxu2 %v11684_v58  ;;  %v1908_v58 = vld [vmem:[#allocation1] sm:$0xff] }
 0x191   : > { %7388 = vmatpush.bf16.msrb.mxu3 %v11692_v59  ;;  %v1910_v59 = vld [vmem:[#allocation1 + $0x12] sm:$0xff] }
 0x192   : > { %7350 = vmatpush.bf16.msrb.mxu0 %v11667_v60  ;;  %v11761_v60 = vld [vmem:[%s12255_s8 + $0xdf8] sm:$0xff] }
 0x193   : > { %7363 = vmatpush.bf16.msrb.mxu1 %v11675_v61  ;;  %v1909_v61 = vld [vmem:[#allocation1 + $0x9] sm:$0xff] }
 0x194   : > { %7376 = vmatpush.bf16.msrb.mxu2 %v11683_v62  ;;  %v11736_v62 = vld [vmem:[%s12255_s8 + $0xd30] sm:$0xff] }
 0x195   : > { %7389 = vmatpush.bf16.msrb.mxu3 %v11691_v5  ;;  %v11751_v5 = vld [vmem:[%s12255_s8 + $0xda8] sm:$0xff] }
 0x196   : > { %7351 = vmatpush.bf16.msrb.mxu0 %v11666_v7  ;;  %v7145_v23 = vpop.f32.mrf.mxu0 }
 0x197   : > { %7364 = vmatpush.bf16.msrb.mxu1 %v11674_v8  ;;  %v7146_v24 = vadd.f32 %v7145_v23, %v12639_v54  ;;  %v7158_v26 = vpop.f32.mrf.mxu1  ;;  %v11737_v54 = vld [vmem:[%s12255_s8 + $0xd38] sm:$0xff] }
 0x198   : > { %7377 = vmatpush.bf16.msrb.mxu2 %v11682_v9  ;;  %v11734_v9 = vld [vmem:[%s12255_s8 + $0xd20] sm:$0xff] }
 0x199   : > { %7390 = vmatpush.bf16.msrb.mxu3 %v11690_v13  ;;  %7352 = vmatmul.bf16.vlgmr.msrb.gmra.mxu0 %v1902_v63  ;;  %v7159_v29 = vadd.f32 %v7158_v26, %v7146_v24  ;;  %v1911_v63 = vld [vmem:[#allocation1 + $0x1b] sm:$0xff]  ;;  %v11732_v24 = vld [vmem:[%s12255_s8 + $0xd10] sm:$0xff] }
 0x19a   : > { %7396 = vmatpush.bf16.msra.mxu0 %v11705_v10  ;;  %7365 = vmatmul.bf16.vlgmr.msrb.gmra.mxu1 %v1903_v2  ;;  %v11760_v2 = vld [vmem:[%s12255_s8 + $0xdf0] sm:$0xff] }
 0x19b   : > { %7409 = vmatpush.bf16.msra.mxu1 %v11713_v11  ;;  %7378 = vmatmul.bf16.vlgmr.msrb.gmra.mxu2 %v1904_v0  ;;  %v11744_v0 = vld [vmem:[%s12255_s8 + $0xd70] sm:$0xff]  ;;  %v11742_v11 = vld [vmem:[%s12255_s8 + $0xd60] sm:$0xff] }
 0x19c   : > { %7422 = vmatpush.bf16.msra.mxu2 %v11721_v12  ;;  %7391 = vmatmul.bf16.vlgmr.msrb.gmra.mxu3 %v1905_v3  ;;  %v11735_v3 = vld [vmem:[%s12255_s8 + $0xd28] sm:$0xff]  ;;  %v11750_v12 = vld [vmem:[%s12255_s8 + $0xda0] sm:$0xff]  ;;  %v11740_v26 = vld [vmem:[%s12255_s8 + $0xd50] sm:$0xff] }
 0x19d   : > { %7435 = vmatpush.bf16.msra.mxu3 %v11729_v14  ;;  %v11758_v14 = vld [vmem:[%s12255_s8 + $0xde0] sm:$0xff] }
 0x19e   : > { %7397 = vmatpush.bf16.msra.mxu0 %v11704_v15  ;;  %v7171_v34 = vpop.f32.mrf.mxu2  ;;  %v7147_v38 = vpop.f32.mrf.mxu0  ;;  %v11733_v15 = vld [vmem:[%s12255_s8 + $0xd18] sm:$0xff] }
 0x19f   : > { %7410 = vmatpush.bf16.msra.mxu1 %v11712_v16  ;;  %v7172_v35 = vadd.f32 %v7171_v34, %v7159_v29  ;;  %v7184_v37 = vpop.f32.mrf.mxu3  ;;  %v7160_v41 = vpop.f32.mrf.mxu1  ;;  %v11741_v16 = vld [vmem:[%s12255_s8 + $0xd58] sm:$0xff]  ;;  %v11731_v29 = vld [vmem:[%s12255_s8 + $0xd08] sm:$0xff] }
 0x1a0   : > { %7423 = vmatpush.bf16.msra.mxu2 %v11720_v17  ;;  %v11749_v17 = vld [vmem:[%s12255_s8 + $0xd98] sm:$0xff]  ;;  %v11755_v38 = vld [vmem:[%s12255_s8 + $0xdc8] sm:$0xff]  ;;  %v11738_v41 = vld [vmem:[%s12255_s8 + $0xd40] sm:$0xff] }
 0x1a1   : > { %7436 = vmatpush.bf16.msra.mxu3 %v11728_v18  ;;  %v7185_v39 = vadd.f32 %v7184_v37, %v7172_v35  ;;  %v1913_v35 = vld [vmem:[#allocation1 + $0x2d] sm:$0xff]  ;;  %v272_v37 = vld [vmem:[%s12242_s24 + $0x38] sm:$0xff] }
 0x1a2   : > { %7398 = vmatpush.bf16.msra.mxu0 %v11703_v19 }
 0x1a3   : > { %7411 = vmatpush.bf16.msra.mxu1 %v11711_v20  ;;  %v11757_v20 = vld [vmem:[%s12255_s8 + $0xdd8] sm:$0xff] }
 0x1a4   : > { %7424 = vmatpush.bf16.msra.mxu2 %v11719_v21 }
 0x1a5   : > { %7437 = vmatpush.bf16.msra.mxu3 %v11727_v22 }
 0x1a6   : > { %7399 = vmatpush.bf16.msra.mxu0 %v11702_v25  ;;  %v7173_v48 = vpop.f32.mrf.mxu2 }
 0x1a7   : > { %7412 = vmatpush.bf16.msra.mxu1 %v11710_v27  ;;  %v7186_v50 = vpop.f32.mrf.mxu3  ;;  %v11748_v27 = vld [vmem:[%s12255_s8 + $0xd90] sm:$0xff] }
 0x1a8   : > { %7425 = vmatpush.bf16.msra.mxu2 %v11718_v28  ;;  %v11756_v28 = vld [vmem:[%s12255_s8 + $0xdd0] sm:$0xff] }
 0x1a9   : > { %7438 = vmatpush.bf16.msra.mxu3 %v11726_v30  ;;  %v11739_v30 = vld [vmem:[%s12255_s8 + $0xd48] sm:$0xff]  ;;  %v11768_v48 = vld [vmem:[%s12255_s8 + $0xe30] sm:$0xff] }
 0x1aa   : > { %7400 = vmatpush.bf16.msra.mxu0 %v11701_v31  ;;  %v11747_v31 = vld [vmem:[%s12255_s8 + $0xd88] sm:$0xff]  ;;  %v11784_v50 = vld [vmem:[%s12255_s8 + $0xeb0] sm:$0xff] }
 0x1ab   : > { %7413 = vmatpush.bf16.msra.mxu1 %v11709_v32  ;;  %v1912_v32 = vld [vmem:[#allocation1 + $0x24] sm:$0xff] }
 0x1ac   : > { %7426 = vmatpush.bf16.msra.mxu2 %v11717_v33  ;;  %v1914_v33 = vld [vmem:[#allocation1 + $0x36] sm:$0xff] }
 0x1ad   : > { %7439 = vmatpush.bf16.msra.mxu3 %v11725_v36  ;;  %v1915_v36 = vld [vmem:[#allocation1 + $0x3f] sm:$0xff] }
 0x1ae   : > { %7401 = vmatpush.bf16.msra.mxu0 %v11700_v40  ;;  %1917 = vst [vmem:[#allocation1] ss:$9 sm:$0xff] %v272_v37  ;;  %v11730_v40 = vld [vmem:[%s12255_s8 + $0xd00] sm:$0xff]  ;;  %v11807_v37 = vld [vmem:[%s12255_s8 + $0xf68] sm:$0xff] }
 0x1af   : > { %7414 = vmatpush.bf16.msra.mxu1 %v11708_v42  ;;  %v11746_v42 = vld [vmem:[%s12255_s8 + $0xd80] sm:$0xff] }
 0x1b0   : > { %7427 = vmatpush.bf16.msra.mxu2 %v11716_v43  ;;  %v11769_v43 = vld [vmem:[%s12255_s8 + $0xe38] sm:$0xff] }
 0x1b1   : > { %7440 = vmatpush.bf16.msra.mxu3 %v11724_v44  ;;  %v11777_v44 = vld [vmem:[%s12255_s8 + $0xe78] sm:$0xff] }
 0x1b2   : > { %7402 = vmatpush.bf16.msra.mxu0 %v11699_v45  ;;  %v11785_v45 = vld [vmem:[%s12255_s8 + $0xeb8] sm:$0xff] }
 0x1b3   : > { %7415 = vmatpush.bf16.msra.mxu1 %v11707_v46  ;;  %v11754_v46 = vld [vmem:[%s12255_s8 + $0xdc0] sm:$0xff] }
 0x1b4   : > { %7428 = vmatpush.bf16.msra.mxu2 %v11715_v47  ;;  %v11793_v47 = vld [vmem:[%s12255_s8 + $0xef8] sm:$0xff] }
 0x1b5   : > { %7441 = vmatpush.bf16.msra.mxu3 %v11723_v49  ;;  %v11776_v49 = vld [vmem:[%s12255_s8 + $0xe70] sm:$0xff] }
 0x1b6   : > { %7403 = vmatpush.bf16.msra.mxu0 %v11698_v51  ;;  %v7197_v7 = vpop.f32.mrf.mxu0  ;;  %v11792_v51 = vld [vmem:[%s12255_s8 + $0xef0] sm:$0xff] }
 0x1b7   : > { %7416 = vmatpush.bf16.msra.mxu1 %v11706_v52  ;;  %v7198_v8 = vadd.f32 %v7197_v7, %v7185_v39  ;;  %v7210_v10 = vpop.f32.mrf.mxu1  ;;  %v11767_v52 = vld [vmem:[%s12255_s8 + $0xe28] sm:$0xff] }
 0x1b8   : > { %7429 = vmatpush.bf16.msra.mxu2 %v11714_v53  ;;  %v11775_v53 = vld [vmem:[%s12255_s8 + $0xe68] sm:$0xff] }
 0x1b9   : > { %7442 = vmatpush.bf16.msra.mxu3 %v11722_v57  ;;  %7404 = vmatmul.bf16.vlgmr.msra.gmra.mxu0 %v1908_v58  ;;  %v7211_v13 = vadd.f32 %v7210_v10, %v7198_v8  ;;  %v11766_v58 = vld [vmem:[%s12255_s8 + $0xe20] sm:$0xff] }
 0x1ba   : > { %7448 = vmatpush.bf16.msrb.mxu0 %v11737_v54  ;;  %7417 = vmatmul.bf16.vlgmr.msra.gmra.mxu1 %v1909_v61  ;;  %v11783_v54 = vld [vmem:[%s12255_s8 + $0xea8] sm:$0xff]  ;;  %v11782_v61 = vld [vmem:[%s12255_s8 + $0xea0] sm:$0xff] }
 0x1bb   : > { %7461 = vmatpush.bf16.msrb.mxu1 %v11745_v55  ;;  %7430 = vmatmul.bf16.vlgmr.msra.gmra.mxu2 %v1910_v59  ;;  %v11791_v55 = vld [vmem:[%s12255_s8 + $0xee8] sm:$0xff] }
 0x1bc   : > { %7474 = vmatpush.bf16.msrb.mxu2 %v11753_v56  ;;  %7443 = vmatmul.bf16.vlgmr.msra.gmra.mxu3 %v1911_v63  ;;  %v11790_v63 = vld [vmem:[%s12255_s8 + $0xee0] sm:$0xff] }
 0x1bd   : > { %7487 = vmatpush.bf16.msrb.mxu3 %v11761_v60  ;;  %v11774_v60 = vld [vmem:[%s12255_s8 + $0xe60] sm:$0xff] }
 0x1be   : > { %7449 = vmatpush.bf16.msrb.mxu0 %v11736_v62  ;;  %v7223_v18 = vpop.f32.mrf.mxu2  ;;  %v7199_v22 = vpop.f32.mrf.mxu0 }
 0x1bf   : > { %7462 = vmatpush.bf16.msrb.mxu1 %v11744_v0  ;;  %v7224_v19 = vadd.f32 %v7223_v18, %v7211_v13  ;;  %v7236_v21 = vpop.f32.mrf.mxu3  ;;  %v7212_v25 = vpop.f32.mrf.mxu1  ;;  %v11765_v0 = vld [vmem:[%s12255_s8 + $0xe18] sm:$0xff]  ;;  %v11788_v13 = vld [vmem:[%s12255_s8 + $0xed0] sm:$0xff]  ;;  %v11787_v18 = vld [vmem:[%s12255_s8 + $0xec8] sm:$0xff] }
 0x1c0   : > { %7475 = vmatpush.bf16.msrb.mxu2 %v11752_v1  ;;  %v11773_v1 = vld [vmem:[%s12255_s8 + $0xe58] sm:$0xff]  ;;  %v11778_v22 = vld [vmem:[%s12255_s8 + $0xe80] sm:$0xff] }
 0x1c1   : > { %7488 = vmatpush.bf16.msrb.mxu3 %v11760_v2  ;;  %v12707_v23 = vadd.f32 %v7236_v21, %v7224_v19  ;;  %v11781_v2 = vld [vmem:[%s12255_s8 + $0xe98] sm:$0xff]  ;;  %v11770_v21 = vld [vmem:[%s12255_s8 + $0xe40] sm:$0xff] }
 0x1c2   : > { %7450 = vmatpush.bf16.msrb.mxu0 %v11735_v3  ;;  %v11817_v25 = vld [vmem:[%s12255_s8 + $0xfb8] sm:$0xff] }
 0x1c3   : > { %7463 = vmatpush.bf16.msrb.mxu1 %v11743_v4 }
 0x1c4   : > { %7476 = vmatpush.bf16.msrb.mxu2 %v11751_v5  ;;  %v11789_v5 = vld [vmem:[%s12255_s8 + $0xed8] sm:$0xff] }
 0x1c5   : > { %7489 = vmatpush.bf16.msrb.mxu3 %v11759_v6 }
 0x1c6   : > { %7451 = vmatpush.bf16.msrb.mxu0 %v11734_v9  ;;  %v7225_v34 = vpop.f32.mrf.mxu2  ;;  %v11764_v9 = vld [vmem:[%s12255_s8 + $0xe10] sm:$0xff] }
 0x1c7   : > { %7464 = vmatpush.bf16.msrb.mxu1 %v11742_v11  ;;  %v7238_v39 = vpop.f32.mrf.mxu3  ;;  %v11772_v11 = vld [vmem:[%s12255_s8 + $0xe50] sm:$0xff] }
 0x1c8   : > { %7477 = vmatpush.bf16.msrb.mxu2 %v11750_v12  ;;  %v11780_v12 = vld [vmem:[%s12255_s8 + $0xe90] sm:$0xff]  ;;  %v11823_v39 = vld [vmem:[%s12255_s8 + $0xfe8] sm:$0xff] }
 0x1c9   : > { %7490 = vmatpush.bf16.msrb.mxu3 %v11758_v14  ;;  %v11763_v14 = vld [vmem:[%s12255_s8 + $0xe08] sm:$0xff]  ;;  %v11816_v34 = vld [vmem:[%s12255_s8 + $0xfb0] sm:$0xff] }
 0x1ca   : > { %7452 = vmatpush.bf16.msrb.mxu0 %v11733_v15  ;;  %v11771_v15 = vld [vmem:[%s12255_s8 + $0xe48] sm:$0xff] }
 0x1cb   : > { %7465 = vmatpush.bf16.msrb.mxu1 %v11741_v16  ;;  %v11779_v16 = vld [vmem:[%s12255_s8 + $0xe88] sm:$0xff] }
 0x1cc   : > { %7478 = vmatpush.bf16.msrb.mxu2 %v11749_v17 }
 0x1cd   : > { %7491 = vmatpush.bf16.msrb.mxu3 %v11757_v20  ;;  %v11762_v20 = vld [vmem:[%s12255_s8 + $0xe00] sm:$0xff] }
 0x1ce   : > { %7453 = vmatpush.bf16.msrb.mxu0 %v11732_v24  ;;  %v11809_v24 = vld [vmem:[%s12255_s8 + $0xf78] sm:$0xff] }
 0x1cf   : > { %7466 = vmatpush.bf16.msrb.mxu1 %v11740_v26  ;;  %v11786_v26 = vld [vmem:[%s12255_s8 + $0xec0] sm:$0xff] }
 0x1d0   : > { %7479 = vmatpush.bf16.msrb.mxu2 %v11748_v27  ;;  %v1918_v27 = vld [vmem:[#allocation1] sm:$0xff] }
 0x1d1   : > { %7492 = vmatpush.bf16.msrb.mxu3 %v11756_v28  ;;  %v1920_v28 = vld [vmem:[#allocation1 + $0x12] sm:$0xff] }
 0x1d2   : > { %7454 = vmatpush.bf16.msrb.mxu0 %v11731_v29  ;;  %v11825_v29 = vld [vmem:[%s12255_s8 + $0xff8] sm:$0xff] }
 0x1d3   : > { %7467 = vmatpush.bf16.msrb.mxu1 %v11739_v30  ;;  %v1919_v30 = vld [vmem:[#allocation1 + $0x9] sm:$0xff] }
 0x1d4   : > { %7480 = vmatpush.bf16.msrb.mxu2 %v11747_v31  ;;  %v11800_v31 = vld [vmem:[%s12255_s8 + $0xf30] sm:$0xff] }
 0x1d5   : > { %7493 = vmatpush.bf16.msrb.mxu3 %v11755_v38  ;;  %v11815_v38 = vld [vmem:[%s12255_s8 + $0xfa8] sm:$0xff] }
 0x1d6   : > { %7455 = vmatpush.bf16.msrb.mxu0 %v11730_v40  ;;  %v7249_v56 = vpop.f32.mrf.mxu0 }
 0x1d7   : > { %7468 = vmatpush.bf16.msrb.mxu1 %v11738_v41  ;;  %v7250_v57 = vadd.f32 %v7249_v56, %v12707_v23  ;;  %v7262_v59 = vpop.f32.mrf.mxu1  ;;  %v11801_v23 = vld [vmem:[%s12255_s8 + $0xf38] sm:$0xff] }
 0x1d8   : > { %7481 = vmatpush.bf16.msrb.mxu2 %v11746_v42  ;;  %v11798_v42 = vld [vmem:[%s12255_s8 + $0xf20] sm:$0xff] }
 0x1d9   : > { %7494 = vmatpush.bf16.msrb.mxu3 %v11754_v46  ;;  %7456 = vmatmul.bf16.vlgmr.msrb.gmra.mxu0 %v1912_v32  ;;  %v7263_v62 = vadd.f32 %v7262_v59, %v7250_v57  ;;  %v1921_v32 = vld [vmem:[#allocation1 + $0x1b] sm:$0xff]  ;;  %v11796_v57 = vld [vmem:[%s12255_s8 + $0xf10] sm:$0xff] }
 0x1da   : > { %7500 = vmatpush.bf16.msra.mxu0 %v11769_v43  ;;  %7469 = vmatmul.bf16.vlgmr.msrb.gmra.mxu1 %v1913_v35  ;;  %v11824_v35 = vld [vmem:[%s12255_s8 + $0xff0] sm:$0xff] }
 0x1db   : > { %7513 = vmatpush.bf16.msra.mxu1 %v11777_v44  ;;  %7482 = vmatmul.bf16.vlgmr.msrb.gmra.mxu2 %v1914_v33  ;;  %v11808_v33 = vld [vmem:[%s12255_s8 + $0xf70] sm:$0xff]  ;;  %v11806_v44 = vld [vmem:[%s12255_s8 + $0xf60] sm:$0xff] }
 0x1dc   : > { %7526 = vmatpush.bf16.msra.mxu2 %v11785_v45  ;;  %7495 = vmatmul.bf16.vlgmr.msrb.gmra.mxu3 %v1915_v36  ;;  %v11799_v36 = vld [vmem:[%s12255_s8 + $0xf28] sm:$0xff]  ;;  %v11814_v45 = vld [vmem:[%s12255_s8 + $0xfa0] sm:$0xff]  ;;  %v11804_v59 = vld [vmem:[%s12255_s8 + $0xf50] sm:$0xff] }
 0x1dd   : > { %7539 = vmatpush.bf16.msra.mxu3 %v11793_v47  ;;  %v11822_v47 = vld [vmem:[%s12255_s8 + $0xfe0] sm:$0xff] }
 0x1de   : > { %7501 = vmatpush.bf16.msra.mxu0 %v11768_v48  ;;  %v7275_v3 = vpop.f32.mrf.mxu2  ;;  %v7251_v7 = vpop.f32.mrf.mxu0  ;;  %v11797_v48 = vld [vmem:[%s12255_s8 + $0xf18] sm:$0xff] }
 0x1df   : > { %7514 = vmatpush.bf16.msra.mxu1 %v11776_v49  ;;  %v7276_v4 = vadd.f32 %v7275_v3, %v7263_v62  ;;  %v7288_v6 = vpop.f32.mrf.mxu3  ;;  %v7264_v10 = vpop.f32.mrf.mxu1  ;;  %v11805_v49 = vld [vmem:[%s12255_s8 + $0xf58] sm:$0xff]  ;;  %v11795_v62 = vld [vmem:[%s12255_s8 + $0xf08] sm:$0xff] }
 0x1e0   : > { %7527 = vmatpush.bf16.msra.mxu2 %v11784_v50  ;;  %v11813_v50 = vld [vmem:[%s12255_s8 + $0xf98] sm:$0xff]  ;;  %v11819_v7 = vld [vmem:[%s12255_s8 + $0xfc8] sm:$0xff]  ;;  %v11802_v10 = vld [vmem:[%s12255_s8 + $0xf40] sm:$0xff] }
 0x1e1   : > { %7540 = vmatpush.bf16.msra.mxu3 %v11792_v51  ;;  %v7289_v8 = vadd.f32 %v7288_v6, %v7276_v4  ;;  %v1923_v4 = vld [vmem:[#allocation1 + $0x2d] sm:$0xff]  ;;  %v273_v6 = vld [vmem:[%s12242_s24 + $0x40] sm:$0xff] }
 0x1e2   : > { %7502 = vmatpush.bf16.msra.mxu0 %v11767_v52 }
 0x1e3   : > { %7515 = vmatpush.bf16.msra.mxu1 %v11775_v53  ;;  %v11821_v53 = vld [vmem:[%s12255_s8 + $0xfd8] sm:$0xff] }
 0x1e4   : > { %7528 = vmatpush.bf16.msra.mxu2 %v11783_v54 }
 0x1e5   : > { %7541 = vmatpush.bf16.msra.mxu3 %v11791_v55 }
 0x1e6   : > { %7503 = vmatpush.bf16.msra.mxu0 %v11766_v58  ;;  %v7277_v17 = vpop.f32.mrf.mxu2 }
 0x1e7   : > { %7516 = vmatpush.bf16.msra.mxu1 %v11774_v60  ;;  %v7290_v19 = vpop.f32.mrf.mxu3  ;;  %v11812_v60 = vld [vmem:[%s12255_s8 + $0xf90] sm:$0xff] }
 0x1e8   : > { %7529 = vmatpush.bf16.msra.mxu2 %v11782_v61  ;;  %v11820_v61 = vld [vmem:[%s12255_s8 + $0xfd0] sm:$0xff] }
 0x1e9   : > { %7542 = vmatpush.bf16.msra.mxu3 %v11790_v63  ;;  %v11803_v63 = vld [vmem:[%s12255_s8 + $0xf48] sm:$0xff]  ;;  %v11832_v17 = vld [vmem:[%s12255_s8 + $0x1030] sm:$0xff] }
 0x1ea   : > { %7504 = vmatpush.bf16.msra.mxu0 %v11765_v0  ;;  %v11811_v0 = vld [vmem:[%s12255_s8 + $0xf88] sm:$0xff]  ;;  %v11848_v19 = vld [vmem:[%s12255_s8 + $0x10b0] sm:$0xff] }
 0x1eb   : > { %7517 = vmatpush.bf16.msra.mxu1 %v11773_v1  ;;  %v1922_v1 = vld [vmem:[#allocation1 + $0x24] sm:$0xff] }
 0x1ec   : > { %7530 = vmatpush.bf16.msra.mxu2 %v11781_v2  ;;  %v1924_v2 = vld [vmem:[#allocation1 + $0x36] sm:$0xff] }
 0x1ed   : > { %7543 = vmatpush.bf16.msra.mxu3 %v11789_v5  ;;  %v1925_v5 = vld [vmem:[#allocation1 + $0x3f] sm:$0xff] }
 0x1ee   : > { %7505 = vmatpush.bf16.msra.mxu0 %v11764_v9  ;;  %1927 = vst [vmem:[#allocation1] ss:$9 sm:$0xff] %v273_v6  ;;  %v11794_v9 = vld [vmem:[%s12255_s8 + $0xf00] sm:$0xff]  ;;  %v11871_v6 = vld [vmem:[%s12255_s8 + $0x1168] sm:$0xff] }
 0x1ef   : > { %7518 = vmatpush.bf16.msra.mxu1 %v11772_v11  ;;  %v11810_v11 = vld [vmem:[%s12255_s8 + $0xf80] sm:$0xff] }
 0x1f0   : > { %7531 = vmatpush.bf16.msra.mxu2 %v11780_v12  ;;  %v11833_v12 = vld [vmem:[%s12255_s8 + $0x1038] sm:$0xff] }
 0x1f1   : > { %7544 = vmatpush.bf16.msra.mxu3 %v11788_v13  ;;  %v11841_v13 = vld [vmem:[%s12255_s8 + $0x1078] sm:$0xff] }
 0x1f2   : > { %7506 = vmatpush.bf16.msra.mxu0 %v11763_v14  ;;  %v11849_v14 = vld [vmem:[%s12255_s8 + $0x10b8] sm:$0xff] }
 0x1f3   : > { %7519 = vmatpush.bf16.msra.mxu1 %v11771_v15  ;;  %v11818_v15 = vld [vmem:[%s12255_s8 + $0xfc0] sm:$0xff] }
 0x1f4   : > { %7532 = vmatpush.bf16.msra.mxu2 %v11779_v16  ;;  %v11857_v16 = vld [vmem:[%s12255_s8 + $0x10f8] sm:$0xff] }
 0x1f5   : > { %7545 = vmatpush.bf16.msra.mxu3 %v11787_v18  ;;  %v11840_v18 = vld [vmem:[%s12255_s8 + $0x1070] sm:$0xff] }
 0x1f6   : > { %7507 = vmatpush.bf16.msra.mxu0 %v11762_v20  ;;  %v7301_v40 = vpop.f32.mrf.mxu0  ;;  %v11856_v20 = vld [vmem:[%s12255_s8 + $0x10f0] sm:$0xff] }
 0x1f7   : > { %7520 = vmatpush.bf16.msra.mxu1 %v11770_v21  ;;  %v7302_v41 = vadd.f32 %v7301_v40, %v7289_v8  ;;  %v7314_v43 = vpop.f32.mrf.mxu1  ;;  %v11831_v21 = vld [vmem:[%s12255_s8 + $0x1028] sm:$0xff] }
 0x1f8   : > { %7533 = vmatpush.bf16.msra.mxu2 %v11778_v22  ;;  %v11839_v22 = vld [vmem:[%s12255_s8 + $0x1068] sm:$0xff] }
 0x1f9   : > { %7546 = vmatpush.bf16.msra.mxu3 %v11786_v26  ;;  %7508 = vmatmul.bf16.vlgmr.msra.gmra.mxu0 %v1918_v27  ;;  %v7315_v46 = vadd.f32 %v7314_v43, %v7302_v41  ;;  %v11830_v27 = vld [vmem:[%s12255_s8 + $0x1020] sm:$0xff] }
 0x1fa   : > { %7552 = vmatpush.bf16.msrb.mxu0 %v11801_v23  ;;  %7521 = vmatmul.bf16.vlgmr.msra.gmra.mxu1 %v1919_v30  ;;  %v11847_v23 = vld [vmem:[%s12255_s8 + $0x10a8] sm:$0xff]  ;;  %v11846_v30 = vld [vmem:[%s12255_s8 + $0x10a0] sm:$0xff] }
 0x1fb   : > { %7565 = vmatpush.bf16.msrb.mxu1 %v11809_v24  ;;  %7534 = vmatmul.bf16.vlgmr.msra.gmra.mxu2 %v1920_v28  ;;  %v11855_v24 = vld [vmem:[%s12255_s8 + $0x10e8] sm:$0xff] }
 0x1fc   : > { %7578 = vmatpush.bf16.msrb.mxu2 %v11817_v25  ;;  %7547 = vmatmul.bf16.vlgmr.msra.gmra.mxu3 %v1921_v32  ;;  %v11854_v32 = vld [vmem:[%s12255_s8 + $0x10e0] sm:$0xff] }
 0x1fd   : > { %7591 = vmatpush.bf16.msrb.mxu3 %v11825_v29  ;;  %v11838_v29 = vld [vmem:[%s12255_s8 + $0x1060] sm:$0xff] }
 0x1fe   : > { %7553 = vmatpush.bf16.msrb.mxu0 %v11800_v31  ;;  %v7327_v51 = vpop.f32.mrf.mxu2  ;;  %v7303_v55 = vpop.f32.mrf.mxu0 }
 0x1ff   : > { %7566 = vmatpush.bf16.msrb.mxu1 %v11808_v33  ;;  %v7328_v52 = vadd.f32 %v7327_v51, %v7315_v46  ;;  %v7340_v54 = vpop.f32.mrf.mxu3  ;;  %v7316_v58 = vpop.f32.mrf.mxu1  ;;  %v11829_v33 = vld [vmem:[%s12255_s8 + $0x1018] sm:$0xff]  ;;  %v11852_v46 = vld [vmem:[%s12255_s8 + $0x10d0] sm:$0xff]  ;;  %v11851_v51 = vld [vmem:[%s12255_s8 + $0x10c8] sm:$0xff] }
 0x200   : > { %7579 = vmatpush.bf16.msrb.mxu2 %v11816_v34  ;;  %v11837_v34 = vld [vmem:[%s12255_s8 + $0x1058] sm:$0xff]  ;;  %v11842_v55 = vld [vmem:[%s12255_s8 + $0x1080] sm:$0xff] }
 0x201   : > { %7592 = vmatpush.bf16.msrb.mxu3 %v11824_v35  ;;  %v12775_v56 = vadd.f32 %v7340_v54, %v7328_v52  ;;  %v11845_v35 = vld [vmem:[%s12255_s8 + $0x1098] sm:$0xff]  ;;  %v11834_v54 = vld [vmem:[%s12255_s8 + $0x1040] sm:$0xff] }
 0x202   : > { %7554 = vmatpush.bf16.msrb.mxu0 %v11799_v36  ;;  %v11881_v58 = vld [vmem:[%s12255_s8 + $0x11b8] sm:$0xff] }
 0x203   : > { %7567 = vmatpush.bf16.msrb.mxu1 %v11807_v37 }
 0x204   : > { %7580 = vmatpush.bf16.msrb.mxu2 %v11815_v38  ;;  %v11853_v38 = vld [vmem:[%s12255_s8 + $0x10d8] sm:$0xff] }
 0x205   : > { %7593 = vmatpush.bf16.msrb.mxu3 %v11823_v39 }
 0x206   : > { %7555 = vmatpush.bf16.msrb.mxu0 %v11798_v42  ;;  %v7329_v3 = vpop.f32.mrf.mxu2  ;;  %v11828_v42 = vld [vmem:[%s12255_s8 + $0x1010] sm:$0xff] }
 0x207   : > { %7568 = vmatpush.bf16.msrb.mxu1 %v11806_v44  ;;  %v7342_v8 = vpop.f32.mrf.mxu3  ;;  %v11836_v44 = vld [vmem:[%s12255_s8 + $0x1050] sm:$0xff] }
 0x208   : > { %7581 = vmatpush.bf16.msrb.mxu2 %v11814_v45  ;;  %v11844_v45 = vld [vmem:[%s12255_s8 + $0x1090] sm:$0xff]  ;;  %v11887_v8 = vld [vmem:[%s12255_s8 + $0x11e8] sm:$0xff] }
 0x209   : > { %7594 = vmatpush.bf16.msrb.mxu3 %v11822_v47  ;;  %v11827_v47 = vld [vmem:[%s12255_s8 + $0x1008] sm:$0xff]  ;;  %v11880_v3 = vld [vmem:[%s12255_s8 + $0x11b0] sm:$0xff] }
 0x20a   : > { %7556 = vmatpush.bf16.msrb.mxu0 %v11797_v48  ;;  %v11835_v48 = vld [vmem:[%s12255_s8 + $0x1048] sm:$0xff] }
 0x20b   : > { %7569 = vmatpush.bf16.msrb.mxu1 %v11805_v49  ;;  %v11843_v49 = vld [vmem:[%s12255_s8 + $0x1088] sm:$0xff] }
 0x20c   : > { %7582 = vmatpush.bf16.msrb.mxu2 %v11813_v50 }
 0x20d   : > { %7595 = vmatpush.bf16.msrb.mxu3 %v11821_v53  ;;  %v11826_v53 = vld [vmem:[%s12255_s8 + $0x1000] sm:$0xff] }
 0x20e   : > { %7557 = vmatpush.bf16.msrb.mxu0 %v11796_v57  ;;  %v11873_v57 = vld [vmem:[%s12255_s8 + $0x1178] sm:$0xff] }
 0x20f   : > { %7570 = vmatpush.bf16.msrb.mxu1 %v11804_v59  ;;  %v11850_v59 = vld [vmem:[%s12255_s8 + $0x10c0] sm:$0xff] }
 0x210   : > { %7583 = vmatpush.bf16.msrb.mxu2 %v11812_v60  ;;  %v1928_v60 = vld [vmem:[#allocation1] sm:$0xff] }
 0x211   : > { %7596 = vmatpush.bf16.msrb.mxu3 %v11820_v61  ;;  %v1930_v61 = vld [vmem:[#allocation1 + $0x12] sm:$0xff] }
 0x212   : > { %7558 = vmatpush.bf16.msrb.mxu0 %v11795_v62  ;;  %v11889_v62 = vld [vmem:[%s12255_s8 + $0x11f8] sm:$0xff] }
 0x213   : > { %7571 = vmatpush.bf16.msrb.mxu1 %v11803_v63  ;;  %v1929_v63 = vld [vmem:[#allocation1 + $0x9] sm:$0xff] }
 0x214   : > { %7584 = vmatpush.bf16.msrb.mxu2 %v11811_v0  ;;  %v11864_v0 = vld [vmem:[%s12255_s8 + $0x1130] sm:$0xff] }
 0x215   : > { %7597 = vmatpush.bf16.msrb.mxu3 %v11819_v7  ;;  %v11879_v7 = vld [vmem:[%s12255_s8 + $0x11a8] sm:$0xff] }
 0x216   : > { %7559 = vmatpush.bf16.msrb.mxu0 %v11794_v9  ;;  %v7353_v25 = vpop.f32.mrf.mxu0 }
 0x217   : > { %7572 = vmatpush.bf16.msrb.mxu1 %v11802_v10  ;;  %v7354_v26 = vadd.f32 %v7353_v25, %v12775_v56  ;;  %v7366_v28 = vpop.f32.mrf.mxu1  ;;  %v11865_v56 = vld [vmem:[%s12255_s8 + $0x1138] sm:$0xff] }
 0x218   : > { %7585 = vmatpush.bf16.msrb.mxu2 %v11810_v11  ;;  %v11862_v11 = vld [vmem:[%s12255_s8 + $0x1120] sm:$0xff] }
 0x219   : > { %7598 = vmatpush.bf16.msrb.mxu3 %v11818_v15  ;;  %7560 = vmatmul.bf16.vlgmr.msrb.gmra.mxu0 %v1922_v1  ;;  %v7367_v31 = vadd.f32 %v7366_v28, %v7354_v26  ;;  %v1931_v1 = vld [vmem:[#allocation1 + $0x1b] sm:$0xff]  ;;  %v11860_v26 = vld [vmem:[%s12255_s8 + $0x1110] sm:$0xff] }
 0x21a   : > { %7604 = vmatpush.bf16.msra.mxu0 %v11833_v12  ;;  %7573 = vmatmul.bf16.vlgmr.msrb.gmra.mxu1 %v1923_v4  ;;  %v11888_v4 = vld [vmem:[%s12255_s8 + $0x11f0] sm:$0xff] }
 0x21b   : > { %7617 = vmatpush.bf16.msra.mxu1 %v11841_v13  ;;  %7586 = vmatmul.bf16.vlgmr.msrb.gmra.mxu2 %v1924_v2  ;;  %v11872_v2 = vld [vmem:[%s12255_s8 + $0x1170] sm:$0xff]  ;;  %v11870_v13 = vld [vmem:[%s12255_s8 + $0x1160] sm:$0xff] }
 0x21c   : > { %7630 = vmatpush.bf16.msra.mxu2 %v11849_v14  ;;  %7599 = vmatmul.bf16.vlgmr.msrb.gmra.mxu3 %v1925_v5  ;;  %v11863_v5 = vld [vmem:[%s12255_s8 + $0x1128] sm:$0xff]  ;;  %v11878_v14 = vld [vmem:[%s12255_s8 + $0x11a0] sm:$0xff]  ;;  %v11868_v28 = vld [vmem:[%s12255_s8 + $0x1150] sm:$0xff] }
 0x21d   : > { %7643 = vmatpush.bf16.msra.mxu3 %v11857_v16  ;;  %v11886_v16 = vld [vmem:[%s12255_s8 + $0x11e0] sm:$0xff] }
 0x21e   : > { %7605 = vmatpush.bf16.msra.mxu0 %v11832_v17  ;;  %v7379_v36 = vpop.f32.mrf.mxu2  ;;  %v7355_v40 = vpop.f32.mrf.mxu0  ;;  %v11861_v17 = vld [vmem:[%s12255_s8 + $0x1118] sm:$0xff] }
 0x21f   : > { %7618 = vmatpush.bf16.msra.mxu1 %v11840_v18  ;;  %v7380_v37 = vadd.f32 %v7379_v36, %v7367_v31  ;;  %v7392_v39 = vpop.f32.mrf.mxu3  ;;  %v7368_v43 = vpop.f32.mrf.mxu1  ;;  %v11869_v18 = vld [vmem:[%s12255_s8 + $0x1158] sm:$0xff]  ;;  %v11859_v31 = vld [vmem:[%s12255_s8 + $0x1108] sm:$0xff] }
 0x220   : > { %7631 = vmatpush.bf16.msra.mxu2 %v11848_v19  ;;  %v11877_v19 = vld [vmem:[%s12255_s8 + $0x1198] sm:$0xff]  ;;  %v11883_v40 = vld [vmem:[%s12255_s8 + $0x11c8] sm:$0xff]  ;;  %v11866_v43 = vld [vmem:[%s12255_s8 + $0x1140] sm:$0xff] }
 0x221   : > { %7644 = vmatpush.bf16.msra.mxu3 %v11856_v20  ;;  %v7393_v41 = vadd.f32 %v7392_v39, %v7380_v37  ;;  %v1933_v37 = vld [vmem:[#allocation1 + $0x2d] sm:$0xff] }
 0x222   : > { %7606 = vmatpush.bf16.msra.mxu0 %v11831_v21  ;;  %v274_v39 = vld [vmem:[%s12242_s24 + $0x48] sm:$0xff] }
 0x223   : > { %7619 = vmatpush.bf16.msra.mxu1 %v11839_v22  ;;  %v11885_v22 = vld [vmem:[%s12255_s8 + $0x11d8] sm:$0xff] }
 0x224   : > { %7632 = vmatpush.bf16.msra.mxu2 %v11847_v23 }
 0x225   : > { %7645 = vmatpush.bf16.msra.mxu3 %v11855_v24 }
 0x226   : > { %7607 = vmatpush.bf16.msra.mxu0 %v11830_v27  ;;  %v7381_v50 = vpop.f32.mrf.mxu2 }
 0x227   : > { %7620 = vmatpush.bf16.msra.mxu1 %v11838_v29  ;;  %v7394_v52 = vpop.f32.mrf.mxu3  ;;  %v11876_v29 = vld [vmem:[%s12255_s8 + $0x1190] sm:$0xff] }
 0x228   : > { %7633 = vmatpush.bf16.msra.mxu2 %v11846_v30  ;;  %v11884_v30 = vld [vmem:[%s12255_s8 + $0x11d0] sm:$0xff] }
 0x229   : > { %7646 = vmatpush.bf16.msra.mxu3 %v11854_v32  ;;  %v11867_v32 = vld [vmem:[%s12255_s8 + $0x1148] sm:$0xff]  ;;  %v11896_v50 = vld [vmem:[%s12255_s8 + $0x1230] sm:$0xff] }
 0x22a   : > { %7608 = vmatpush.bf16.msra.mxu0 %v11829_v33  ;;  %v11875_v33 = vld [vmem:[%s12255_s8 + $0x1188] sm:$0xff]  ;;  %v11912_v52 = vld [vmem:[%s12255_s8 + $0x12b0] sm:$0xff] }
 0x22b   : > { %7621 = vmatpush.bf16.msra.mxu1 %v11837_v34  ;;  %v1932_v34 = vld [vmem:[#allocation1 + $0x24] sm:$0xff] }
 0x22c   : > { %7634 = vmatpush.bf16.msra.mxu2 %v11845_v35  ;;  %v1934_v35 = vld [vmem:[#allocation1 + $0x36] sm:$0xff] }
 0x22d   : > { %7647 = vmatpush.bf16.msra.mxu3 %v11853_v38  ;;  %v1935_v38 = vld [vmem:[#allocation1 + $0x3f] sm:$0xff] }
 0x22e   : > { %7609 = vmatpush.bf16.msra.mxu0 %v11828_v42  ;;  %1937 = vst [vmem:[#allocation1] ss:$9 sm:$0xff] %v274_v39  ;;  %v11858_v42 = vld [vmem:[%s12255_s8 + $0x1100] sm:$0xff]  ;;  %v11935_v39 = vld [vmem:[%s12255_s8 + $0x1368] sm:$0xff] }
 0x22f   : > { %7622 = vmatpush.bf16.msra.mxu1 %v11836_v44  ;;  %v11874_v44 = vld [vmem:[%s12255_s8 + $0x1180] sm:$0xff] }
 0x230   : > { %7635 = vmatpush.bf16.msra.mxu2 %v11844_v45  ;;  %v11897_v45 = vld [vmem:[%s12255_s8 + $0x1238] sm:$0xff] }
 0x231   : > { %7648 = vmatpush.bf16.msra.mxu3 %v11852_v46  ;;  %v11905_v46 = vld [vmem:[%s12255_s8 + $0x1278] sm:$0xff] }
 0x232   : > { %7610 = vmatpush.bf16.msra.mxu0 %v11827_v47  ;;  %v11913_v47 = vld [vmem:[%s12255_s8 + $0x12b8] sm:$0xff] }
 0x233   : > { %7623 = vmatpush.bf16.msra.mxu1 %v11835_v48  ;;  %v11882_v48 = vld [vmem:[%s12255_s8 + $0x11c0] sm:$0xff] }
 0x234   : > { %7636 = vmatpush.bf16.msra.mxu2 %v11843_v49  ;;  %v11921_v49 = vld [vmem:[%s12255_s8 + $0x12f8] sm:$0xff] }
 0x235   : > { %7649 = vmatpush.bf16.msra.mxu3 %v11851_v51  ;;  %v11904_v51 = vld [vmem:[%s12255_s8 + $0x1270] sm:$0xff] }
 0x236   : > { %7611 = vmatpush.bf16.msra.mxu0 %v11826_v53  ;;  %v7405_v9 = vpop.f32.mrf.mxu0  ;;  %v11920_v53 = vld [vmem:[%s12255_s8 + $0x12f0] sm:$0xff] }
 0x237   : > { %7624 = vmatpush.bf16.msra.mxu1 %v11834_v54  ;;  %v7406_v10 = vadd.f32 %v7405_v9, %v7393_v41  ;;  %v7418_v12 = vpop.f32.mrf.mxu1  ;;  %v11895_v54 = vld [vmem:[%s12255_s8 + $0x1228] sm:$0xff] }
 0x238   : > { %7637 = vmatpush.bf16.msra.mxu2 %v11842_v55  ;;  %v11903_v55 = vld [vmem:[%s12255_s8 + $0x1268] sm:$0xff] }
 0x239   : > { %7650 = vmatpush.bf16.msra.mxu3 %v11850_v59  ;;  %7612 = vmatmul.bf16.vlgmr.msra.gmra.mxu0 %v1928_v60  ;;  %v7419_v15 = vadd.f32 %v7418_v12, %v7406_v10  ;;  %v11894_v60 = vld [vmem:[%s12255_s8 + $0x1220] sm:$0xff] }
 0x23a   : > { %7656 = vmatpush.bf16.msrb.mxu0 %v11865_v56  ;;  %7625 = vmatmul.bf16.vlgmr.msra.gmra.mxu1 %v1929_v63  ;;  %v11911_v56 = vld [vmem:[%s12255_s8 + $0x12a8] sm:$0xff]  ;;  %v11910_v63 = vld [vmem:[%s12255_s8 + $0x12a0] sm:$0xff] }
 0x23b   : > { %7669 = vmatpush.bf16.msrb.mxu1 %v11873_v57  ;;  %7638 = vmatmul.bf16.vlgmr.msra.gmra.mxu2 %v1930_v61  ;;  %v11919_v57 = vld [vmem:[%s12255_s8 + $0x12e8] sm:$0xff] }
 0x23c   : > { %7682 = vmatpush.bf16.msrb.mxu2 %v11881_v58  ;;  %7651 = vmatmul.bf16.vlgmr.msra.gmra.mxu3 %v1931_v1  ;;  %v11918_v1 = vld [vmem:[%s12255_s8 + $0x12e0] sm:$0xff] }
 0x23d   : > { %7695 = vmatpush.bf16.msrb.mxu3 %v11889_v62  ;;  %v11902_v62 = vld [vmem:[%s12255_s8 + $0x1260] sm:$0xff] }
 0x23e   : > { %7657 = vmatpush.bf16.msrb.mxu0 %v11864_v0  ;;  %v7431_v20 = vpop.f32.mrf.mxu2  ;;  %v7407_v24 = vpop.f32.mrf.mxu0 }
 0x23f   : > { %7670 = vmatpush.bf16.msrb.mxu1 %v11872_v2  ;;  %v7432_v21 = vadd.f32 %v7431_v20, %v7419_v15  ;;  %v7444_v23 = vpop.f32.mrf.mxu3  ;;  %v7420_v27 = vpop.f32.mrf.mxu1  ;;  %v11893_v2 = vld [vmem:[%s12255_s8 + $0x1218] sm:$0xff]  ;;  %v11916_v15 = vld [vmem:[%s12255_s8 + $0x12d0] sm:$0xff]  ;;  %v11915_v20 = vld [vmem:[%s12255_s8 + $0x12c8] sm:$0xff] }
 0x240   : > { %7683 = vmatpush.bf16.msrb.mxu2 %v11880_v3  ;;  %v11901_v3 = vld [vmem:[%s12255_s8 + $0x1258] sm:$0xff]  ;;  %v11906_v24 = vld [vmem:[%s12255_s8 + $0x1280] sm:$0xff] }
 0x241   : > { %7696 = vmatpush.bf16.msrb.mxu3 %v11888_v4  ;;  %v12843_v25 = vadd.f32 %v7444_v23, %v7432_v21  ;;  %v11909_v4 = vld [vmem:[%s12255_s8 + $0x1298] sm:$0xff]  ;;  %v11898_v23 = vld [vmem:[%s12255_s8 + $0x1240] sm:$0xff] }
 0x242   : > { %7658 = vmatpush.bf16.msrb.mxu0 %v11863_v5  ;;  %v11945_v27 = vld [vmem:[%s12255_s8 + $0x13b8] sm:$0xff] }
 0x243   : > { %7671 = vmatpush.bf16.msrb.mxu1 %v11871_v6 }
 0x244   : > { %7684 = vmatpush.bf16.msrb.mxu2 %v11879_v7  ;;  %v11917_v7 = vld [vmem:[%s12255_s8 + $0x12d8] sm:$0xff] }
 0x245   : > { %7697 = vmatpush.bf16.msrb.mxu3 %v11887_v8 }
 0x246   : > { %7659 = vmatpush.bf16.msrb.mxu0 %v11862_v11  ;;  %v7433_v36 = vpop.f32.mrf.mxu2  ;;  %v11892_v11 = vld [vmem:[%s12255_s8 + $0x1210] sm:$0xff] }
 0x247   : > { %7672 = vmatpush.bf16.msrb.mxu1 %v11870_v13  ;;  %v7446_v41 = vpop.f32.mrf.mxu3  ;;  %v11900_v13 = vld [vmem:[%s12255_s8 + $0x1250] sm:$0xff] }
 0x248   : > { %7685 = vmatpush.bf16.msrb.mxu2 %v11878_v14  ;;  %v11908_v14 = vld [vmem:[%s12255_s8 + $0x1290] sm:$0xff]  ;;  %v11951_v41 = vld [vmem:[%s12255_s8 + $0x13e8] sm:$0xff] }
 0x249   : > { %7698 = vmatpush.bf16.msrb.mxu3 %v11886_v16  ;;  %v11891_v16 = vld [vmem:[%s12255_s8 + $0x1208] sm:$0xff]  ;;  %v11944_v36 = vld [vmem:[%s12255_s8 + $0x13b0] sm:$0xff] }
 0x24a   : > { %7660 = vmatpush.bf16.msrb.mxu0 %v11861_v17  ;;  %v11899_v17 = vld [vmem:[%s12255_s8 + $0x1248] sm:$0xff] }
 0x24b   : > { %7673 = vmatpush.bf16.msrb.mxu1 %v11869_v18  ;;  %v11907_v18 = vld [vmem:[%s12255_s8 + $0x1288] sm:$0xff] }
 0x24c   : > { %7686 = vmatpush.bf16.msrb.mxu2 %v11877_v19 }
 0x24d   : > { %7699 = vmatpush.bf16.msrb.mxu3 %v11885_v22  ;;  %v11890_v22 = vld [vmem:[%s12255_s8 + $0x1200] sm:$0xff] }
 0x24e   : > { %7661 = vmatpush.bf16.msrb.mxu0 %v11860_v26  ;;  %v11937_v26 = vld [vmem:[%s12255_s8 + $0x1378] sm:$0xff] }
 0x24f   : > { %7674 = vmatpush.bf16.msrb.mxu1 %v11868_v28  ;;  %v11914_v28 = vld [vmem:[%s12255_s8 + $0x12c0] sm:$0xff] }
 0x250   : > { %7687 = vmatpush.bf16.msrb.mxu2 %v11876_v29  ;;  %v1938_v29 = vld [vmem:[#allocation1] sm:$0xff] }
 0x251   : > { %7700 = vmatpush.bf16.msrb.mxu3 %v11884_v30  ;;  %v1940_v30 = vld [vmem:[#allocation1 + $0x12] sm:$0xff] }
 0x252   : > { %7662 = vmatpush.bf16.msrb.mxu0 %v11859_v31  ;;  %v11953_v31 = vld [vmem:[%s12255_s8 + $0x13f8] sm:$0xff] }
 0x253   : > { %7675 = vmatpush.bf16.msrb.mxu1 %v11867_v32  ;;  %v1939_v32 = vld [vmem:[#allocation1 + $0x9] sm:$0xff] }
 0x254   : > { %7688 = vmatpush.bf16.msrb.mxu2 %v11875_v33  ;;  %v11928_v33 = vld [vmem:[%s12255_s8 + $0x1330] sm:$0xff] }
 0x255   : > { %7701 = vmatpush.bf16.msrb.mxu3 %v11883_v40  ;;  %v11943_v40 = vld [vmem:[%s12255_s8 + $0x13a8] sm:$0xff] }
 0x256   : > { %7663 = vmatpush.bf16.msrb.mxu0 %v11858_v42  ;;  %v7457_v58 = vpop.f32.mrf.mxu0 }
 0x257   : > { %7676 = vmatpush.bf16.msrb.mxu1 %v11866_v43  ;;  %v7458_v59 = vadd.f32 %v7457_v58, %v12843_v25  ;;  %v7470_v61 = vpop.f32.mrf.mxu1  ;;  %v11929_v25 = vld [vmem:[%s12255_s8 + $0x1338] sm:$0xff] }
 0x258   : > { %7689 = vmatpush.bf16.msrb.mxu2 %v11874_v44  ;;  %v11926_v44 = vld [vmem:[%s12255_s8 + $0x1320] sm:$0xff] }
 0x259   : > { %7702 = vmatpush.bf16.msrb.mxu3 %v11882_v48  ;;  %7664 = vmatmul.bf16.vlgmr.msrb.gmra.mxu0 %v1932_v34  ;;  %v7471_v0 = vadd.f32 %v7470_v61, %v7458_v59  ;;  %v1941_v34 = vld [vmem:[#allocation1 + $0x1b] sm:$0xff]  ;;  %v11924_v59 = vld [vmem:[%s12255_s8 + $0x1310] sm:$0xff] }
 0x25a   : > { %7708 = vmatpush.bf16.msra.mxu0 %v11897_v45  ;;  %7677 = vmatmul.bf16.vlgmr.msrb.gmra.mxu1 %v1933_v37  ;;  %v11952_v37 = vld [vmem:[%s12255_s8 + $0x13f0] sm:$0xff] }
 0x25b   : > { %7721 = vmatpush.bf16.msra.mxu1 %v11905_v46  ;;  %7690 = vmatmul.bf16.vlgmr.msrb.gmra.mxu2 %v1934_v35  ;;  %v11936_v35 = vld [vmem:[%s12255_s8 + $0x1370] sm:$0xff]  ;;  %v11934_v46 = vld [vmem:[%s12255_s8 + $0x1360] sm:$0xff] }
 0x25c   : > { %7734 = vmatpush.bf16.msra.mxu2 %v11913_v47  ;;  %7703 = vmatmul.bf16.vlgmr.msrb.gmra.mxu3 %v1935_v38  ;;  %v11927_v38 = vld [vmem:[%s12255_s8 + $0x1328] sm:$0xff]  ;;  %v11942_v47 = vld [vmem:[%s12255_s8 + $0x13a0] sm:$0xff]  ;;  %v11932_v61 = vld [vmem:[%s12255_s8 + $0x1350] sm:$0xff] }
 0x25d   : > { %7747 = vmatpush.bf16.msra.mxu3 %v11921_v49  ;;  %v11950_v49 = vld [vmem:[%s12255_s8 + $0x13e0] sm:$0xff] }
 0x25e   : > { %7709 = vmatpush.bf16.msra.mxu0 %v11896_v50  ;;  %v7483_v5 = vpop.f32.mrf.mxu2  ;;  %v7459_v9 = vpop.f32.mrf.mxu0  ;;  %v11925_v50 = vld [vmem:[%s12255_s8 + $0x1318] sm:$0xff] }
 0x25f   : > { %7722 = vmatpush.bf16.msra.mxu1 %v11904_v51  ;;  %v7484_v6 = vadd.f32 %v7483_v5, %v7471_v0  ;;  %v7496_v8 = vpop.f32.mrf.mxu3  ;;  %v7472_v12 = vpop.f32.mrf.mxu1  ;;  %v11933_v51 = vld [vmem:[%s12255_s8 + $0x1358] sm:$0xff]  ;;  %v11923_v0 = vld [vmem:[%s12255_s8 + $0x1308] sm:$0xff] }
 0x260   : > { %7735 = vmatpush.bf16.msra.mxu2 %v11912_v52  ;;  %v11941_v52 = vld [vmem:[%s12255_s8 + $0x1398] sm:$0xff]  ;;  %v11947_v9 = vld [vmem:[%s12255_s8 + $0x13c8] sm:$0xff]  ;;  %v11930_v12 = vld [vmem:[%s12255_s8 + $0x1340] sm:$0xff] }
 0x261   : > { %7748 = vmatpush.bf16.msra.mxu3 %v11920_v53  ;;  %v7497_v10 = vadd.f32 %v7496_v8, %v7484_v6  ;;  %v1943_v6 = vld [vmem:[#allocation1 + $0x2d] sm:$0xff] }
 0x262   : > { %7710 = vmatpush.bf16.msra.mxu0 %v11895_v54  ;;  %v275_v8 = vld [vmem:[%s12242_s24 + $0x50] sm:$0xff] }
 0x263   : > { %7723 = vmatpush.bf16.msra.mxu1 %v11903_v55  ;;  %v11949_v55 = vld [vmem:[%s12255_s8 + $0x13d8] sm:$0xff] }
 0x264   : > { %7736 = vmatpush.bf16.msra.mxu2 %v11911_v56 }
 0x265   : > { %7749 = vmatpush.bf16.msra.mxu3 %v11919_v57 }
 0x266   : > { %7711 = vmatpush.bf16.msra.mxu0 %v11894_v60  ;;  %v7485_v19 = vpop.f32.mrf.mxu2 }
 0x267   : > { %7724 = vmatpush.bf16.msra.mxu1 %v11902_v62  ;;  %v7498_v21 = vpop.f32.mrf.mxu3  ;;  %v11940_v62 = vld [vmem:[%s12255_s8 + $0x1390] sm:$0xff] }
 0x268   : > { %7737 = vmatpush.bf16.msra.mxu2 %v11910_v63  ;;  %v11948_v63 = vld [vmem:[%s12255_s8 + $0x13d0] sm:$0xff] }
 0x269   : > { %7750 = vmatpush.bf16.msra.mxu3 %v11918_v1  ;;  %v11931_v1 = vld [vmem:[%s12255_s8 + $0x1348] sm:$0xff]  ;;  %v11960_v19 = vld [vmem:[%s12255_s8 + $0x1430] sm:$0xff] }
 0x26a   : > { %7712 = vmatpush.bf16.msra.mxu0 %v11893_v2  ;;  %v11939_v2 = vld [vmem:[%s12255_s8 + $0x1388] sm:$0xff]  ;;  %v11976_v21 = vld [vmem:[%s12255_s8 + $0x14b0] sm:$0xff] }
 0x26b   : > { %7725 = vmatpush.bf16.msra.mxu1 %v11901_v3  ;;  %v1942_v3 = vld [vmem:[#allocation1 + $0x24] sm:$0xff] }
 0x26c   : > { %7738 = vmatpush.bf16.msra.mxu2 %v11909_v4  ;;  %v1944_v4 = vld [vmem:[#allocation1 + $0x36] sm:$0xff] }
 0x26d   : > { %7751 = vmatpush.bf16.msra.mxu3 %v11917_v7  ;;  %v1945_v7 = vld [vmem:[#allocation1 + $0x3f] sm:$0xff] }
 0x26e   : > { %7713 = vmatpush.bf16.msra.mxu0 %v11892_v11  ;;  %1947 = vst [vmem:[#allocation1] ss:$9 sm:$0xff] %v275_v8  ;;  %v11922_v11 = vld [vmem:[%s12255_s8 + $0x1300] sm:$0xff]  ;;  %v11999_v8 = vld [vmem:[%s12255_s8 + $0x1568] sm:$0xff] }
 0x26f   : > { %7726 = vmatpush.bf16.msra.mxu1 %v11900_v13  ;;  %v11938_v13 = vld [vmem:[%s12255_s8 + $0x1380] sm:$0xff] }
 0x270   : > { %7739 = vmatpush.bf16.msra.mxu2 %v11908_v14  ;;  %v11961_v14 = vld [vmem:[%s12255_s8 + $0x1438] sm:$0xff] }
 0x271   : > { %7752 = vmatpush.bf16.msra.mxu3 %v11916_v15  ;;  %v11969_v15 = vld [vmem:[%s12255_s8 + $0x1478] sm:$0xff] }
 0x272   : > { %7714 = vmatpush.bf16.msra.mxu0 %v11891_v16  ;;  %v11977_v16 = vld [vmem:[%s12255_s8 + $0x14b8] sm:$0xff] }
 0x273   : > { %7727 = vmatpush.bf16.msra.mxu1 %v11899_v17  ;;  %v11946_v17 = vld [vmem:[%s12255_s8 + $0x13c0] sm:$0xff] }
 0x274   : > { %7740 = vmatpush.bf16.msra.mxu2 %v11907_v18  ;;  %v11985_v18 = vld [vmem:[%s12255_s8 + $0x14f8] sm:$0xff] }
 0x275   : > { %7753 = vmatpush.bf16.msra.mxu3 %v11915_v20  ;;  %v11968_v20 = vld [vmem:[%s12255_s8 + $0x1470] sm:$0xff] }
 0x276   : > { %7715 = vmatpush.bf16.msra.mxu0 %v11890_v22  ;;  %v7509_v42 = vpop.f32.mrf.mxu0  ;;  %v11984_v22 = vld [vmem:[%s12255_s8 + $0x14f0] sm:$0xff] }
 0x277   : > { %7728 = vmatpush.bf16.msra.mxu1 %v11898_v23  ;;  %v7510_v43 = vadd.f32 %v7509_v42, %v7497_v10  ;;  %v7522_v45 = vpop.f32.mrf.mxu1  ;;  %v11959_v23 = vld [vmem:[%s12255_s8 + $0x1428] sm:$0xff] }
 0x278   : > { %7741 = vmatpush.bf16.msra.mxu2 %v11906_v24  ;;  %v11967_v24 = vld [vmem:[%s12255_s8 + $0x1468] sm:$0xff] }
 0x279   : > { %7754 = vmatpush.bf16.msra.mxu3 %v11914_v28  ;;  %7716 = vmatmul.bf16.vlgmr.msra.gmra.mxu0 %v1938_v29  ;;  %v7523_v48 = vadd.f32 %v7522_v45, %v7510_v43  ;;  %v11958_v29 = vld [vmem:[%s12255_s8 + $0x1420] sm:$0xff] }
 0x27a   : > { %7760 = vmatpush.bf16.msrb.mxu0 %v11929_v25  ;;  %7729 = vmatmul.bf16.vlgmr.msra.gmra.mxu1 %v1939_v32  ;;  %v11975_v25 = vld [vmem:[%s12255_s8 + $0x14a8] sm:$0xff]  ;;  %v11974_v32 = vld [vmem:[%s12255_s8 + $0x14a0] sm:$0xff] }
 0x27b   : > { %7773 = vmatpush.bf16.msrb.mxu1 %v11937_v26  ;;  %7742 = vmatmul.bf16.vlgmr.msra.gmra.mxu2 %v1940_v30  ;;  %v11983_v26 = vld [vmem:[%s12255_s8 + $0x14e8] sm:$0xff] }
 0x27c   : > { %7786 = vmatpush.bf16.msrb.mxu2 %v11945_v27  ;;  %7755 = vmatmul.bf16.vlgmr.msra.gmra.mxu3 %v1941_v34  ;;  %v11982_v34 = vld [vmem:[%s12255_s8 + $0x14e0] sm:$0xff] }
 0x27d   : > { %7799 = vmatpush.bf16.msrb.mxu3 %v11953_v31  ;;  %v11966_v31 = vld [vmem:[%s12255_s8 + $0x1460] sm:$0xff] }
 0x27e   : > { %7761 = vmatpush.bf16.msrb.mxu0 %v11928_v33  ;;  %v7535_v53 = vpop.f32.mrf.mxu2  ;;  %v7511_v57 = vpop.f32.mrf.mxu0 }
 0x27f   : > { %7774 = vmatpush.bf16.msrb.mxu1 %v11936_v35  ;;  %v7536_v54 = vadd.f32 %v7535_v53, %v7523_v48  ;;  %v7548_v56 = vpop.f32.mrf.mxu3  ;;  %v7524_v60 = vpop.f32.mrf.mxu1  ;;  %v11957_v35 = vld [vmem:[%s12255_s8 + $0x1418] sm:$0xff]  ;;  %v11980_v48 = vld [vmem:[%s12255_s8 + $0x14d0] sm:$0xff]  ;;  %v11979_v53 = vld [vmem:[%s12255_s8 + $0x14c8] sm:$0xff] }
 0x280   : > { %7787 = vmatpush.bf16.msrb.mxu2 %v11944_v36  ;;  %v11965_v36 = vld [vmem:[%s12255_s8 + $0x1458] sm:$0xff]  ;;  %v11970_v57 = vld [vmem:[%s12255_s8 + $0x1480] sm:$0xff] }
 0x281   : > { %7800 = vmatpush.bf16.msrb.mxu3 %v11952_v37  ;;  %v12911_v58 = vadd.f32 %v7548_v56, %v7536_v54  ;;  %v11973_v37 = vld [vmem:[%s12255_s8 + $0x1498] sm:$0xff]  ;;  %v11962_v56 = vld [vmem:[%s12255_s8 + $0x1440] sm:$0xff] }
 0x282   : > { %7762 = vmatpush.bf16.msrb.mxu0 %v11927_v38  ;;  %v12009_v60 = vld [vmem:[%s12255_s8 + $0x15b8] sm:$0xff] }
 0x283   : > { %7775 = vmatpush.bf16.msrb.mxu1 %v11935_v39 }
 0x284   : > { %7788 = vmatpush.bf16.msrb.mxu2 %v11943_v40  ;;  %v11981_v40 = vld [vmem:[%s12255_s8 + $0x14d8] sm:$0xff] }
 0x285   : > { %7801 = vmatpush.bf16.msrb.mxu3 %v11951_v41 }
 0x286   : > { %7763 = vmatpush.bf16.msrb.mxu0 %v11926_v44  ;;  %v7537_v5 = vpop.f32.mrf.mxu2  ;;  %v11956_v44 = vld [vmem:[%s12255_s8 + $0x1410] sm:$0xff] }
 0x287   : > { %7776 = vmatpush.bf16.msrb.mxu1 %v11934_v46  ;;  %v7550_v10 = vpop.f32.mrf.mxu3  ;;  %v11964_v46 = vld [vmem:[%s12255_s8 + $0x1450] sm:$0xff] }
 0x288   : > { %7789 = vmatpush.bf16.msrb.mxu2 %v11942_v47  ;;  %v11972_v47 = vld [vmem:[%s12255_s8 + $0x1490] sm:$0xff]  ;;  %v12015_v10 = vld [vmem:[%s12255_s8 + $0x15e8] sm:$0xff] }
 0x289   : > { %7802 = vmatpush.bf16.msrb.mxu3 %v11950_v49  ;;  %v11955_v49 = vld [vmem:[%s12255_s8 + $0x1408] sm:$0xff]  ;;  %v12008_v5 = vld [vmem:[%s12255_s8 + $0x15b0] sm:$0xff] }
 0x28a   : > { %7764 = vmatpush.bf16.msrb.mxu0 %v11925_v50  ;;  %v11963_v50 = vld [vmem:[%s12255_s8 + $0x1448] sm:$0xff] }
 0x28b   : > { %7777 = vmatpush.bf16.msrb.mxu1 %v11933_v51  ;;  %v11971_v51 = vld [vmem:[%s12255_s8 + $0x1488] sm:$0xff] }
 0x28c   : > { %7790 = vmatpush.bf16.msrb.mxu2 %v11941_v52 }
 0x28d   : > { %7803 = vmatpush.bf16.msrb.mxu3 %v11949_v55  ;;  %v11954_v55 = vld [vmem:[%s12255_s8 + $0x1400] sm:$0xff] }
 0x28e   : > { %7765 = vmatpush.bf16.msrb.mxu0 %v11924_v59  ;;  %v12001_v59 = vld [vmem:[%s12255_s8 + $0x1578] sm:$0xff] }
 0x28f   : > { %7778 = vmatpush.bf16.msrb.mxu1 %v11932_v61  ;;  %v11978_v61 = vld [vmem:[%s12255_s8 + $0x14c0] sm:$0xff] }
 0x290   : > { %7791 = vmatpush.bf16.msrb.mxu2 %v11940_v62  ;;  %v1948_v62 = vld [vmem:[#allocation1] sm:$0xff] }
 0x291   : > { %7804 = vmatpush.bf16.msrb.mxu3 %v11948_v63  ;;  %v1950_v63 = vld [vmem:[#allocation1 + $0x12] sm:$0xff] }
 0x292   : > { %7766 = vmatpush.bf16.msrb.mxu0 %v11923_v0  ;;  %v12017_v0 = vld [vmem:[%s12255_s8 + $0x15f8] sm:$0xff] }
 0x293   : > { %7779 = vmatpush.bf16.msrb.mxu1 %v11931_v1  ;;  %v1949_v1 = vld [vmem:[#allocation1 + $0x9] sm:$0xff] }
 0x294   : > { %7792 = vmatpush.bf16.msrb.mxu2 %v11939_v2  ;;  %v11992_v2 = vld [vmem:[%s12255_s8 + $0x1530] sm:$0xff] }
 0x295   : > { %7805 = vmatpush.bf16.msrb.mxu3 %v11947_v9  ;;  %v12007_v9 = vld [vmem:[%s12255_s8 + $0x15a8] sm:$0xff] }
 0x296   : > { %7767 = vmatpush.bf16.msrb.mxu0 %v11922_v11  ;;  %v7561_v27 = vpop.f32.mrf.mxu0 }
 0x297   : > { %7780 = vmatpush.bf16.msrb.mxu1 %v11930_v12  ;;  %v7562_v28 = vadd.f32 %v7561_v27, %v12911_v58  ;;  %v7574_v30 = vpop.f32.mrf.mxu1  ;;  %v11993_v58 = vld [vmem:[%s12255_s8 + $0x1538] sm:$0xff] }
 0x298   : > { %7793 = vmatpush.bf16.msrb.mxu2 %v11938_v13  ;;  %v11990_v13 = vld [vmem:[%s12255_s8 + $0x1520] sm:$0xff] }
 0x299   : > { %7806 = vmatpush.bf16.msrb.mxu3 %v11946_v17  ;;  %7768 = vmatmul.bf16.vlgmr.msrb.gmra.mxu0 %v1942_v3  ;;  %v7575_v33 = vadd.f32 %v7574_v30, %v7562_v28  ;;  %v1951_v3 = vld [vmem:[#allocation1 + $0x1b] sm:$0xff]  ;;  %v11988_v28 = vld [vmem:[%s12255_s8 + $0x1510] sm:$0xff] }
 0x29a   : > { %7812 = vmatpush.bf16.msra.mxu0 %v11961_v14  ;;  %7781 = vmatmul.bf16.vlgmr.msrb.gmra.mxu1 %v1943_v6  ;;  %v12016_v6 = vld [vmem:[%s12255_s8 + $0x15f0] sm:$0xff] }
 0x29b   : > { %7825 = vmatpush.bf16.msra.mxu1 %v11969_v15  ;;  %7794 = vmatmul.bf16.vlgmr.msrb.gmra.mxu2 %v1944_v4  ;;  %v12000_v4 = vld [vmem:[%s12255_s8 + $0x1570] sm:$0xff]  ;;  %v11998_v15 = vld [vmem:[%s12255_s8 + $0x1560] sm:$0xff] }
 0x29c   : > { %7838 = vmatpush.bf16.msra.mxu2 %v11977_v16  ;;  %7807 = vmatmul.bf16.vlgmr.msrb.gmra.mxu3 %v1945_v7  ;;  %v11991_v7 = vld [vmem:[%s12255_s8 + $0x1528] sm:$0xff]  ;;  %v12006_v16 = vld [vmem:[%s12255_s8 + $0x15a0] sm:$0xff]  ;;  %v11996_v30 = vld [vmem:[%s12255_s8 + $0x1550] sm:$0xff] }
 0x29d   : > { %7851 = vmatpush.bf16.msra.mxu3 %v11985_v18  ;;  %v12014_v18 = vld [vmem:[%s12255_s8 + $0x15e0] sm:$0xff] }
 0x29e   : > { %7813 = vmatpush.bf16.msra.mxu0 %v11960_v19  ;;  %v7587_v38 = vpop.f32.mrf.mxu2  ;;  %v7563_v42 = vpop.f32.mrf.mxu0  ;;  %v11989_v19 = vld [vmem:[%s12255_s8 + $0x1518] sm:$0xff] }
 0x29f   : > { %7826 = vmatpush.bf16.msra.mxu1 %v11968_v20  ;;  %v7588_v39 = vadd.f32 %v7587_v38, %v7575_v33  ;;  %v7600_v41 = vpop.f32.mrf.mxu3  ;;  %v7576_v45 = vpop.f32.mrf.mxu1  ;;  %v11997_v20 = vld [vmem:[%s12255_s8 + $0x1558] sm:$0xff]  ;;  %v11987_v33 = vld [vmem:[%s12255_s8 + $0x1508] sm:$0xff] }
 0x2a0   : > { %7839 = vmatpush.bf16.msra.mxu2 %v11976_v21  ;;  %v12005_v21 = vld [vmem:[%s12255_s8 + $0x1598] sm:$0xff]  ;;  %v12011_v42 = vld [vmem:[%s12255_s8 + $0x15c8] sm:$0xff]  ;;  %v11994_v45 = vld [vmem:[%s12255_s8 + $0x1540] sm:$0xff] }
 0x2a1   : > { %7852 = vmatpush.bf16.msra.mxu3 %v11984_v22  ;;  %v7601_v43 = vadd.f32 %v7600_v41, %v7588_v39  ;;  %v1953_v39 = vld [vmem:[#allocation1 + $0x2d] sm:$0xff]  ;;  %v276_v41 = vld [vmem:[%s12242_s24 + $0x58] sm:$0xff] }
 0x2a2   : > { %7814 = vmatpush.bf16.msra.mxu0 %v11959_v23 }
 0x2a3   : > { %7827 = vmatpush.bf16.msra.mxu1 %v11967_v24  ;;  %v12013_v24 = vld [vmem:[%s12255_s8 + $0x15d8] sm:$0xff] }
 0x2a4   : > { %7840 = vmatpush.bf16.msra.mxu2 %v11975_v25 }
 0x2a5   : > { %7853 = vmatpush.bf16.msra.mxu3 %v11983_v26 }
 0x2a6   : > { %7815 = vmatpush.bf16.msra.mxu0 %v11958_v29  ;;  %v7589_v52 = vpop.f32.mrf.mxu2 }
 0x2a7   : > { %7828 = vmatpush.bf16.msra.mxu1 %v11966_v31  ;;  %v7602_v54 = vpop.f32.mrf.mxu3  ;;  %v12004_v31 = vld [vmem:[%s12255_s8 + $0x1590] sm:$0xff] }
 0x2a8   : > { %7841 = vmatpush.bf16.msra.mxu2 %v11974_v32  ;;  %v12012_v32 = vld [vmem:[%s12255_s8 + $0x15d0] sm:$0xff] }
 0x2a9   : > { %7854 = vmatpush.bf16.msra.mxu3 %v11982_v34  ;;  %v11995_v34 = vld [vmem:[%s12255_s8 + $0x1548] sm:$0xff]  ;;  %v12024_v52 = vld [vmem:[%s12255_s8 + $0x1630] sm:$0xff] }
 0x2aa   : > { %7816 = vmatpush.bf16.msra.mxu0 %v11957_v35  ;;  %v12003_v35 = vld [vmem:[%s12255_s8 + $0x1588] sm:$0xff]  ;;  %v12040_v54 = vld [vmem:[%s12255_s8 + $0x16b0] sm:$0xff] }
 0x2ab   : > { %7829 = vmatpush.bf16.msra.mxu1 %v11965_v36  ;;  %v1952_v36 = vld [vmem:[#allocation1 + $0x24] sm:$0xff] }
 0x2ac   : > { %7842 = vmatpush.bf16.msra.mxu2 %v11973_v37  ;;  %v1954_v37 = vld [vmem:[#allocation1 + $0x36] sm:$0xff] }
 0x2ad   : > { %7855 = vmatpush.bf16.msra.mxu3 %v11981_v40  ;;  %v1955_v40 = vld [vmem:[#allocation1 + $0x3f] sm:$0xff] }
 0x2ae   : > { %7817 = vmatpush.bf16.msra.mxu0 %v11956_v44  ;;  %1957 = vst [vmem:[#allocation1] ss:$9 sm:$0xff] %v276_v41  ;;  %v11986_v44 = vld [vmem:[%s12255_s8 + $0x1500] sm:$0xff]  ;;  %v12063_v41 = vld [vmem:[%s12255_s8 + $0x1768] sm:$0xff] }
 0x2af   : > { %7830 = vmatpush.bf16.msra.mxu1 %v11964_v46  ;;  %v12002_v46 = vld [vmem:[%s12255_s8 + $0x1580] sm:$0xff] }
 0x2b0   : > { %7843 = vmatpush.bf16.msra.mxu2 %v11972_v47  ;;  %v12025_v47 = vld [vmem:[%s12255_s8 + $0x1638] sm:$0xff] }
 0x2b1   : > { %7856 = vmatpush.bf16.msra.mxu3 %v11980_v48  ;;  %v12033_v48 = vld [vmem:[%s12255_s8 + $0x1678] sm:$0xff] }
 0x2b2   : > { %7818 = vmatpush.bf16.msra.mxu0 %v11955_v49  ;;  %v12041_v49 = vld [vmem:[%s12255_s8 + $0x16b8] sm:$0xff] }
 0x2b3   : > { %7831 = vmatpush.bf16.msra.mxu1 %v11963_v50  ;;  %v12010_v50 = vld [vmem:[%s12255_s8 + $0x15c0] sm:$0xff] }
 0x2b4   : > { %7844 = vmatpush.bf16.msra.mxu2 %v11971_v51  ;;  %v12049_v51 = vld [vmem:[%s12255_s8 + $0x16f8] sm:$0xff] }
 0x2b5   : > { %7857 = vmatpush.bf16.msra.mxu3 %v11979_v53  ;;  %v12032_v53 = vld [vmem:[%s12255_s8 + $0x1670] sm:$0xff] }
 0x2b6   : > { %7819 = vmatpush.bf16.msra.mxu0 %v11954_v55  ;;  %v7613_v11 = vpop.f32.mrf.mxu0  ;;  %v12048_v55 = vld [vmem:[%s12255_s8 + $0x16f0] sm:$0xff] }
 0x2b7   : > { %7832 = vmatpush.bf16.msra.mxu1 %v11962_v56  ;;  %v7614_v12 = vadd.f32 %v7613_v11, %v7601_v43  ;;  %v7626_v14 = vpop.f32.mrf.mxu1  ;;  %v12023_v56 = vld [vmem:[%s12255_s8 + $0x1628] sm:$0xff] }
 0x2b8   : > { %7845 = vmatpush.bf16.msra.mxu2 %v11970_v57  ;;  %v12031_v57 = vld [vmem:[%s12255_s8 + $0x1668] sm:$0xff] }
 0x2b9   : > { %7858 = vmatpush.bf16.msra.mxu3 %v11978_v61  ;;  %7820 = vmatmul.bf16.vlgmr.msra.gmra.mxu0 %v1948_v62  ;;  %v7627_v17 = vadd.f32 %v7626_v14, %v7614_v12  ;;  %v12022_v62 = vld [vmem:[%s12255_s8 + $0x1620] sm:$0xff] }
 0x2ba   : > { %7864 = vmatpush.bf16.msrb.mxu0 %v11993_v58  ;;  %7833 = vmatmul.bf16.vlgmr.msra.gmra.mxu1 %v1949_v1  ;;  %v12039_v58 = vld [vmem:[%s12255_s8 + $0x16a8] sm:$0xff]  ;;  %v12038_v1 = vld [vmem:[%s12255_s8 + $0x16a0] sm:$0xff] }
 0x2bb   : > { %7877 = vmatpush.bf16.msrb.mxu1 %v12001_v59  ;;  %7846 = vmatmul.bf16.vlgmr.msra.gmra.mxu2 %v1950_v63  ;;  %v12047_v59 = vld [vmem:[%s12255_s8 + $0x16e8] sm:$0xff] }
 0x2bc   : > { %7890 = vmatpush.bf16.msrb.mxu2 %v12009_v60  ;;  %7859 = vmatmul.bf16.vlgmr.msra.gmra.mxu3 %v1951_v3  ;;  %v12046_v3 = vld [vmem:[%s12255_s8 + $0x16e0] sm:$0xff] }
 0x2bd   : > { %7903 = vmatpush.bf16.msrb.mxu3 %v12017_v0  ;;  %v12030_v0 = vld [vmem:[%s12255_s8 + $0x1660] sm:$0xff] }
 0x2be   : > { %7865 = vmatpush.bf16.msrb.mxu0 %v11992_v2  ;;  %v7639_v22 = vpop.f32.mrf.mxu2  ;;  %v7615_v26 = vpop.f32.mrf.mxu0 }
 0x2bf   : > { %7878 = vmatpush.bf16.msrb.mxu1 %v12000_v4  ;;  %v7640_v23 = vadd.f32 %v7639_v22, %v7627_v17  ;;  %v7652_v25 = vpop.f32.mrf.mxu3  ;;  %v7628_v29 = vpop.f32.mrf.mxu1  ;;  %v12021_v4 = vld [vmem:[%s12255_s8 + $0x1618] sm:$0xff]  ;;  %v12044_v17 = vld [vmem:[%s12255_s8 + $0x16d0] sm:$0xff]  ;;  %v12043_v22 = vld [vmem:[%s12255_s8 + $0x16c8] sm:$0xff] }
 0x2c0   : > { %7891 = vmatpush.bf16.msrb.mxu2 %v12008_v5  ;;  %v12029_v5 = vld [vmem:[%s12255_s8 + $0x1658] sm:$0xff]  ;;  %v12034_v26 = vld [vmem:[%s12255_s8 + $0x1680] sm:$0xff] }
 0x2c1   : > { %7904 = vmatpush.bf16.msrb.mxu3 %v12016_v6  ;;  %v12979_v27 = vadd.f32 %v7652_v25, %v7640_v23  ;;  %v12037_v6 = vld [vmem:[%s12255_s8 + $0x1698] sm:$0xff]  ;;  %v12026_v25 = vld [vmem:[%s12255_s8 + $0x1640] sm:$0xff] }
 0x2c2   : > { %7866 = vmatpush.bf16.msrb.mxu0 %v11991_v7  ;;  %v12073_v29 = vld [vmem:[%s12255_s8 + $0x17b8] sm:$0xff] }
 0x2c3   : > { %7879 = vmatpush.bf16.msrb.mxu1 %v11999_v8 }
 0x2c4   : > { %7892 = vmatpush.bf16.msrb.mxu2 %v12007_v9  ;;  %v12045_v9 = vld [vmem:[%s12255_s8 + $0x16d8] sm:$0xff] }
 0x2c5   : > { %7905 = vmatpush.bf16.msrb.mxu3 %v12015_v10 }
 0x2c6   : > { %7867 = vmatpush.bf16.msrb.mxu0 %v11990_v13  ;;  %v7641_v38 = vpop.f32.mrf.mxu2  ;;  %v12020_v13 = vld [vmem:[%s12255_s8 + $0x1610] sm:$0xff] }
 0x2c7   : > { %7880 = vmatpush.bf16.msrb.mxu1 %v11998_v15  ;;  %v7654_v43 = vpop.f32.mrf.mxu3  ;;  %v12028_v15 = vld [vmem:[%s12255_s8 + $0x1650] sm:$0xff] }
 0x2c8   : > { %7893 = vmatpush.bf16.msrb.mxu2 %v12006_v16  ;;  %v12036_v16 = vld [vmem:[%s12255_s8 + $0x1690] sm:$0xff]  ;;  %v12079_v43 = vld [vmem:[%s12255_s8 + $0x17e8] sm:$0xff] }
 0x2c9   : > { %7906 = vmatpush.bf16.msrb.mxu3 %v12014_v18  ;;  %v12019_v18 = vld [vmem:[%s12255_s8 + $0x1608] sm:$0xff]  ;;  %v12072_v38 = vld [vmem:[%s12255_s8 + $0x17b0] sm:$0xff] }
 0x2ca   : > { %7868 = vmatpush.bf16.msrb.mxu0 %v11989_v19  ;;  %v12027_v19 = vld [vmem:[%s12255_s8 + $0x1648] sm:$0xff] }
 0x2cb   : > { %7881 = vmatpush.bf16.msrb.mxu1 %v11997_v20  ;;  %v12035_v20 = vld [vmem:[%s12255_s8 + $0x1688] sm:$0xff] }
 0x2cc   : > { %7894 = vmatpush.bf16.msrb.mxu2 %v12005_v21 }
 0x2cd   : > { %7907 = vmatpush.bf16.msrb.mxu3 %v12013_v24  ;;  %v12018_v24 = vld [vmem:[%s12255_s8 + $0x1600] sm:$0xff] }
 0x2ce   : > { %7869 = vmatpush.bf16.msrb.mxu0 %v11988_v28  ;;  %v12065_v28 = vld [vmem:[%s12255_s8 + $0x1778] sm:$0xff] }
 0x2cf   : > { %7882 = vmatpush.bf16.msrb.mxu1 %v11996_v30  ;;  %v12042_v30 = vld [vmem:[%s12255_s8 + $0x16c0] sm:$0xff] }
 0x2d0   : > { %7895 = vmatpush.bf16.msrb.mxu2 %v12004_v31  ;;  %v1958_v31 = vld [vmem:[#allocation1] sm:$0xff] }
 0x2d1   : > { %7908 = vmatpush.bf16.msrb.mxu3 %v12012_v32  ;;  %v1960_v32 = vld [vmem:[#allocation1 + $0x12] sm:$0xff] }
 0x2d2   : > { %7870 = vmatpush.bf16.msrb.mxu0 %v11987_v33  ;;  %v12081_v33 = vld [vmem:[%s12255_s8 + $0x17f8] sm:$0xff] }
 0x2d3   : > { %7883 = vmatpush.bf16.msrb.mxu1 %v11995_v34  ;;  %v1959_v34 = vld [vmem:[#allocation1 + $0x9] sm:$0xff] }
 0x2d4   : > { %7896 = vmatpush.bf16.msrb.mxu2 %v12003_v35  ;;  %v12056_v35 = vld [vmem:[%s12255_s8 + $0x1730] sm:$0xff] }
 0x2d5   : > { %7909 = vmatpush.bf16.msrb.mxu3 %v12011_v42  ;;  %v12071_v42 = vld [vmem:[%s12255_s8 + $0x17a8] sm:$0xff] }
 0x2d6   : > { %7871 = vmatpush.bf16.msrb.mxu0 %v11986_v44  ;;  %v7665_v60 = vpop.f32.mrf.mxu0 }
 0x2d7   : > { %7884 = vmatpush.bf16.msrb.mxu1 %v11994_v45  ;;  %v7666_v61 = vadd.f32 %v7665_v60, %v12979_v27  ;;  %v7678_v63 = vpop.f32.mrf.mxu1  ;;  %v12057_v27 = vld [vmem:[%s12255_s8 + $0x1738] sm:$0xff] }
 0x2d8   : > { %7897 = vmatpush.bf16.msrb.mxu2 %v12002_v46  ;;  %v12054_v46 = vld [vmem:[%s12255_s8 + $0x1720] sm:$0xff] }
 0x2d9   : > { %7910 = vmatpush.bf16.msrb.mxu3 %v12010_v50  ;;  %7872 = vmatmul.bf16.vlgmr.msrb.gmra.mxu0 %v1952_v36  ;;  %v7679_v2 = vadd.f32 %v7678_v63, %v7666_v61  ;;  %v1961_v36 = vld [vmem:[#allocation1 + $0x1b] sm:$0xff]  ;;  %v12052_v61 = vld [vmem:[%s12255_s8 + $0x1710] sm:$0xff] }
 0x2da   : > { %7916 = vmatpush.bf16.msra.mxu0 %v12025_v47  ;;  %7885 = vmatmul.bf16.vlgmr.msrb.gmra.mxu1 %v1953_v39  ;;  %v12080_v39 = vld [vmem:[%s12255_s8 + $0x17f0] sm:$0xff] }
 0x2db   : > { %7929 = vmatpush.bf16.msra.mxu1 %v12033_v48  ;;  %7898 = vmatmul.bf16.vlgmr.msrb.gmra.mxu2 %v1954_v37  ;;  %v12064_v37 = vld [vmem:[%s12255_s8 + $0x1770] sm:$0xff]  ;;  %v12062_v48 = vld [vmem:[%s12255_s8 + $0x1760] sm:$0xff] }
 0x2dc   : > { %7942 = vmatpush.bf16.msra.mxu2 %v12041_v49  ;;  %7911 = vmatmul.bf16.vlgmr.msrb.gmra.mxu3 %v1955_v40  ;;  %v12055_v40 = vld [vmem:[%s12255_s8 + $0x1728] sm:$0xff]  ;;  %v12070_v49 = vld [vmem:[%s12255_s8 + $0x17a0] sm:$0xff]  ;;  %v12060_v63 = vld [vmem:[%s12255_s8 + $0x1750] sm:$0xff] }
 0x2dd   : > { %7955 = vmatpush.bf16.msra.mxu3 %v12049_v51  ;;  %v12078_v51 = vld [vmem:[%s12255_s8 + $0x17e0] sm:$0xff] }
 0x2de   : > { %7917 = vmatpush.bf16.msra.mxu0 %v12024_v52  ;;  %v7691_v7 = vpop.f32.mrf.mxu2  ;;  %v7667_v11 = vpop.f32.mrf.mxu0  ;;  %v12053_v52 = vld [vmem:[%s12255_s8 + $0x1718] sm:$0xff] }
 0x2df   : > { %7930 = vmatpush.bf16.msra.mxu1 %v12032_v53  ;;  %v7692_v8 = vadd.f32 %v7691_v7, %v7679_v2  ;;  %v7704_v10 = vpop.f32.mrf.mxu3  ;;  %v7680_v14 = vpop.f32.mrf.mxu1  ;;  %v12061_v53 = vld [vmem:[%s12255_s8 + $0x1758] sm:$0xff]  ;;  %v12051_v2 = vld [vmem:[%s12255_s8 + $0x1708] sm:$0xff] }
 0x2e0   : > { %7943 = vmatpush.bf16.msra.mxu2 %v12040_v54  ;;  %v12069_v54 = vld [vmem:[%s12255_s8 + $0x1798] sm:$0xff]  ;;  %v1963_v7 = vld [vmem:[#allocation1 + $0x2d] sm:$0xff]  ;;  %v12058_v14 = vld [vmem:[%s12255_s8 + $0x1740] sm:$0xff] }
 0x2e1   : > { %7956 = vmatpush.bf16.msra.mxu3 %v12048_v55  ;;  %v7705_v12 = vadd.f32 %v7704_v10, %v7692_v8  ;;  %v1965_v8 = vld [vmem:[#allocation1 + $0x3f] sm:$0xff]  ;;  %v12075_v11 = vld [vmem:[%s12255_s8 + $0x17c8] sm:$0xff] }
 0x2e2   : > { %7918 = vmatpush.bf16.msra.mxu0 %v12023_v56  ;;  %v277_v10 = vld [vmem:[%s12242_s24 + $0x60] sm:$0x3] }
 0x2e3   : > { %7931 = vmatpush.bf16.msra.mxu1 %v12031_v57  ;;  %v12077_v57 = vld [vmem:[%s12255_s8 + $0x17d8] sm:$0xff] }
 0x2e4   : > { %7944 = vmatpush.bf16.msra.mxu2 %v12039_v58 }
 0x2e5   : > { %7957 = vmatpush.bf16.msra.mxu3 %v12047_v59 }
 0x2e6   : > { %7919 = vmatpush.bf16.msra.mxu0 %v12022_v62  ;;  %v7693_v21 = vpop.f32.mrf.mxu2 }
 0x2e7   : > { %7932 = vmatpush.bf16.msra.mxu1 %v12030_v0  ;;  %v7706_v23 = vpop.f32.mrf.mxu3  ;;  %v12068_v0 = vld [vmem:[%s12255_s8 + $0x1790] sm:$0xff]  ;;  %v12087_v21 = vld [vmem:[%s12255_s8 + $0x1828] sm:$0xff] }
 0x2e8   : > { %7945 = vmatpush.bf16.msra.mxu2 %v12038_v1  ;;  %v12076_v1 = vld [vmem:[%s12255_s8 + $0x17d0] sm:$0xff] }
 0x2e9   : > { %7958 = vmatpush.bf16.msra.mxu3 %v12046_v3  ;;  %v12059_v3 = vld [vmem:[%s12255_s8 + $0x1748] sm:$0xff] }
 0x2ea   : > { %7920 = vmatpush.bf16.msra.mxu0 %v12021_v4  ;;  %v12067_v4 = vld [vmem:[%s12255_s8 + $0x1788] sm:$0xff] }
 0x2eb   : > { %7933 = vmatpush.bf16.msra.mxu1 %v12029_v5  ;;  %v1962_v5 = vld [vmem:[#allocation1 + $0x24] sm:$0xff] }
 0x2ec   : > { %7946 = vmatpush.bf16.msra.mxu2 %v12037_v6  ;;  %v1964_v6 = vld [vmem:[#allocation1 + $0x36] sm:$0xff] }
 0x2ed   : > { %7959 = vmatpush.bf16.msra.mxu3 %v12045_v9  ;;  %1967 = vst [vmem:[#allocation1] ss:$9 sm:$0xff] %v277_v10 }
 0x2ee   : > { %7921 = vmatpush.bf16.msra.mxu0 %v12020_v13  ;;  %v12050_v13 = vld [vmem:[%s12255_s8 + $0x1700] sm:$0xff] }
 0x2ef   : > { %7934 = vmatpush.bf16.msra.mxu1 %v12028_v15  ;;  %v12066_v15 = vld [vmem:[%s12255_s8 + $0x1780] sm:$0xff] }
 0x2f0   : > { %7947 = vmatpush.bf16.msra.mxu2 %v12036_v16  ;;  %v12089_v16 = vld [vmem:[%s12255_s8 + $0x1838] sm:$0xff] }
 0x2f1   : > { %7960 = vmatpush.bf16.msra.mxu3 %v12044_v17  ;;  %v12097_v17 = vld [vmem:[%s12255_s8 + $0x1878] sm:$0xff] }
 0x2f2   : > { %7922 = vmatpush.bf16.msra.mxu0 %v12019_v18  ;;  %v12074_v18 = vld [vmem:[%s12255_s8 + $0x17c0] sm:$0xff] }
 0x2f3   : > { %7935 = vmatpush.bf16.msra.mxu1 %v12027_v19  ;;  %v12088_v19 = vld [vmem:[%s12255_s8 + $0x1830] sm:$0xff] }
 0x2f4   : > { %7948 = vmatpush.bf16.msra.mxu2 %v12035_v20  ;;  %v12096_v20 = vld [vmem:[%s12255_s8 + $0x1870] sm:$0xff] }
 0x2f5   : > { %7961 = vmatpush.bf16.msra.mxu3 %v12043_v22  ;;  %v12095_v22 = vld [vmem:[%s12255_s8 + $0x1868] sm:$0xff] }
 0x2f6   : > { %7923 = vmatpush.bf16.msra.mxu0 %v12018_v24  ;;  %v7717_v44 = vpop.f32.mrf.mxu0 }
 0x2f7   : > { %7936 = vmatpush.bf16.msra.mxu1 %v12026_v25  ;;  %v7718_v45 = vadd.f32 %v7717_v44, %v7705_v12  ;;  %v7730_v47 = vpop.f32.mrf.mxu1  ;;  %v12086_v25 = vld [vmem:[%s12255_s8 + $0x1820] sm:$0xff] }
 0x2f8   : > { %7949 = vmatpush.bf16.msra.mxu2 %v12034_v26  ;;  %v12090_v44 = vld [vmem:[%s12255_s8 + $0x1840] sm:$0xff] }
 0x2f9   : > { %7962 = vmatpush.bf16.msra.mxu3 %v12042_v30  ;;  %7924 = vmatmul.bf16.vlgmr.msra.gmra.mxu0 %v1958_v31  ;;  %v7731_v50 = vadd.f32 %v7730_v47, %v7718_v45  ;;  %v12093_v30 = vld [vmem:[%s12255_s8 + $0x1858] sm:$0xff]  ;;  %v1968_v45 = vld [vmem:[#allocation1] sm:$0xff] }
 0x2fa   : > { %7968 = vmatpush.bf16.msrb.mxu0 %v12057_v27  ;;  %7937 = vmatmul.bf16.vlgmr.msra.gmra.mxu1 %v1959_v34  ;;  %v12094_v27 = vld [vmem:[%s12255_s8 + $0x1860] sm:$0xff] }
 0x2fb   : > { %7981 = vmatpush.bf16.msrb.mxu1 %v12065_v28  ;;  %7950 = vmatmul.bf16.vlgmr.msra.gmra.mxu2 %v1960_v32 }
 0x2fc   : > { %7994 = vmatpush.bf16.msrb.mxu2 %v12073_v29  ;;  %7963 = vmatmul.bf16.vlgmr.msra.gmra.mxu3 %v1961_v36  ;;  %v12085_v29 = vld [vmem:[%s12255_s8 + $0x1818] sm:$0xff]  ;;  %v12084_v36 = vld [vmem:[%s12255_s8 + $0x1810] sm:$0xff] }
 0x2fd   : > { %8007 = vmatpush.bf16.msrb.mxu3 %v12081_v33 }
 0x2fe   : > { %7969 = vmatpush.bf16.msrb.mxu0 %v12056_v35  ;;  %v7743_v55 = vpop.f32.mrf.mxu2  ;;  %v7719_v59 = vpop.f32.mrf.mxu0 }
 0x2ff   : > { %7982 = vmatpush.bf16.msrb.mxu1 %v12064_v37  ;;  %v7744_v56 = vadd.f32 %v7743_v55, %v7731_v50  ;;  %v7756_v58 = vpop.f32.mrf.mxu3  ;;  %v7732_v62 = vpop.f32.mrf.mxu1 }
 0x300   : > { %7995 = vmatpush.bf16.msrb.mxu2 %v12072_v38  ;;  %v12092_v38 = vld [vmem:[%s12255_s8 + $0x1850] sm:$0xff] }
 0x301   : > { %8008 = vmatpush.bf16.msrb.mxu3 %v12080_v39  ;;  %v7757_v60 = vadd.f32 %v7756_v58, %v7744_v56  ;;  %v12083_v39 = vld [vmem:[%s12255_s8 + $0x1808] sm:$0xff] }
 0x302   : > { %7970 = vmatpush.bf16.msrb.mxu0 %v12055_v40  ;;  %v12091_v40 = vld [vmem:[%s12255_s8 + $0x1848] sm:$0xff] }
 0x303   : > { %7983 = vmatpush.bf16.msrb.mxu1 %v12063_v41 }
 0x304   : > { %7996 = vmatpush.bf16.msrb.mxu2 %v12071_v42 }
 0x305   : > { %8009 = vmatpush.bf16.msrb.mxu3 %v12079_v43  ;;  %v12082_v43 = vld [vmem:[%s12255_s8 + $0x1800] sm:$0xff] }
 0x306   : > { %7971 = vmatpush.bf16.msrb.mxu0 %v12054_v46  ;;  %v7745_v9 = vpop.f32.mrf.mxu2  ;;  %v1969_v46 = vld [vmem:[#allocation1 + $0x9] sm:$0xff] }
 0x307   : > { %7984 = vmatpush.bf16.msrb.mxu1 %v12062_v48  ;;  %v7758_v12 = vpop.f32.mrf.mxu3 }
 0x308   : > { %7997 = vmatpush.bf16.msrb.mxu2 %v12070_v49 }
 0x309   : > { %8010 = vmatpush.bf16.msrb.mxu3 %v12078_v51 }
 0x30a   : > { %7972 = vmatpush.bf16.msrb.mxu0 %v12053_v52 }
 0x30b   : > { %7985 = vmatpush.bf16.msrb.mxu1 %v12061_v53 }
 0x30c   : > { %7998 = vmatpush.bf16.msrb.mxu2 %v12069_v54 }
 0x30d   : > { %8011 = vmatpush.bf16.msrb.mxu3 %v12077_v57 }
 0x30e   : > { %7973 = vmatpush.bf16.msrb.mxu0 %v12052_v61 }
 0x30f   : > { %7986 = vmatpush.bf16.msrb.mxu1 %v12060_v63 }
 0x310   : > { %7999 = vmatpush.bf16.msrb.mxu2 %v12068_v0 }
 0x311   : > { %8012 = vmatpush.bf16.msrb.mxu3 %v12076_v1 }
 0x312   : > { %7974 = vmatpush.bf16.msrb.mxu0 %v12051_v2 }
 0x313   : > { %7987 = vmatpush.bf16.msrb.mxu1 %v12059_v3 }
 0x314   : > { %8000 = vmatpush.bf16.msrb.mxu2 %v12067_v4 }
 0x315   : > { %8013 = vmatpush.bf16.msrb.mxu3 %v12075_v11 }
 0x316   : > { %7975 = vmatpush.bf16.msrb.mxu0 %v12050_v13  ;;  %v7769_v23 = vpop.f32.mrf.mxu0 }
 0x317   : > { %7988 = vmatpush.bf16.msrb.mxu1 %v12058_v14  ;;  %v7770_v24 = vadd.f32 %v7769_v23, %v7757_v60  ;;  %v7782_v26 = vpop.f32.mrf.mxu1 }
 0x318   : > { %8001 = vmatpush.bf16.msrb.mxu2 %v12066_v15 }
 0x319   : > { %8014 = vmatpush.bf16.msrb.mxu3 %v12074_v18  ;;  %7976 = vmatmul.bf16.vlgmr.msrb.gmra.mxu0 %v1962_v5  ;;  %v7783_v28 = vadd.f32 %v7782_v26, %v7770_v24 }
 0x31a   : > { %8020 = vmatpush.bf16.msra.mxu0 %v12089_v16  ;;  %7989 = vmatmul.bf16.vlgmr.msrb.gmra.mxu1 %v1963_v7 }
 0x31b   : > { %8033 = vmatpush.bf16.msra.mxu1 %v12097_v17  ;;  %8002 = vmatmul.bf16.vlgmr.msrb.gmra.mxu2 %v1964_v6 }
 0x31c   : > { %8015 = vmatmul.bf16.vlgmr.msrb.gmra.mxu3 %v1965_v8 }
 0x31e   : > { %8021 = vmatpush.bf16.msra.mxu0 %v12088_v19  ;;  %v7795_v31 = vpop.f32.mrf.mxu2  ;;  %v7771_v34 = vpop.f32.mrf.mxu0 }
 0x31f   : > { %8034 = vmatpush.bf16.msra.mxu1 %v12096_v20  ;;  %v7796_v32 = vadd.f32 %v7795_v31, %v7783_v28  ;;  %v7808_v33 = vpop.f32.mrf.mxu3  ;;  %v7784_v37 = vpop.f32.mrf.mxu1  ;;  %v264_v34 = vld [vmem:[#allocation2] sm:$0x3] }
 0x321   : > { %v7809_v35 = vadd.f32 %v7808_v33, %v7796_v32 }
 0x322   : > { %8022 = vmatpush.bf16.msra.mxu0 %v12087_v21 }
 0x323   : > { %8035 = vmatpush.bf16.msra.mxu1 %v12095_v22 }
 0x326   : > { %8023 = vmatpush.bf16.msra.mxu0 %v12086_v25  ;;  %v7797_v41 = vpop.f32.mrf.mxu2 }
 0x327   : > { %8036 = vmatpush.bf16.msra.mxu1 %v12094_v27  ;;  %v7810_v42 = vpop.f32.mrf.mxu3 }
 0x32a   : > { %8024 = vmatpush.bf16.msra.mxu0 %v12085_v29 }
 0x32b   : > { %8037 = vmatpush.bf16.msra.mxu1 %v12093_v30 }
 0x32e   : > { %8025 = vmatpush.bf16.msra.mxu0 %v12084_v36 }
 0x32f   : > { %8038 = vmatpush.bf16.msra.mxu1 %v12092_v38 }
 0x332   : > { %8026 = vmatpush.bf16.msra.mxu0 %v12083_v39 }
 0x333   : > { %8039 = vmatpush.bf16.msra.mxu1 %v12091_v40 }
 0x336   : > { %8027 = vmatpush.bf16.msra.mxu0 %v12082_v43  ;;  %v7821_v47 = vpop.f32.mrf.mxu0 }
 0x337   : > { %8040 = vmatpush.bf16.msra.mxu1 %v12090_v44  ;;  %v7822_v48 = vadd.f32 %v7821_v47, %v7809_v35  ;;  %v7834_v49 = vpop.f32.mrf.mxu1 }
 0x339   : > { %8028 = vmatmul.bf16.vlgmr.msra.gmra.mxu0 %v1968_v45  ;;  %v7835_v50 = vadd.f32 %v7834_v49, %v7822_v48 }
 0x33a   : > { %8041 = vmatmul.bf16.vlgmr.msra.gmra.mxu1 %v1969_v46 }
 0x33e   : > { %v7847_v51 = vpop.f32.mrf.mxu2  ;;  %v7823_v54 = vpop.f32.mrf.mxu0 }
 0x33f   : > { %v7848_v52 = vadd.f32 %v7847_v51, %v7835_v50  ;;  %v7860_v53 = vpop.f32.mrf.mxu3  ;;  %v7836_v56 = vpop.f32.mrf.mxu1 }
 0x341   : > { %v7861_v55 = vadd.f32 %v7860_v53, %v7848_v52 }
 0x346   : > { %v7849_v57 = vpop.f32.mrf.mxu2 }
 0x347   : > { %v7862_v58 = vpop.f32.mrf.mxu3 }
 0x356   : > { %v7873_v59 = vpop.f32.mrf.mxu0 }
 0x357   : > { %v7874_v60 = vadd.f32 %v7873_v59, %v7861_v55  ;;  %v7886_v61 = vpop.f32.mrf.mxu1 }
 0x359   : > { %v7887_v62 = vadd.f32 %v7886_v61, %v7874_v60 }
 0x35e   : > { %v7899_v63 = vpop.f32.mrf.mxu2  ;;  %v7875_v1 = vpop.f32.mrf.mxu0 }
 0x35f   : > { %v7912_v0 = vpop.f32.mrf.mxu3  ;;  %v7888_v2 = vpop.f32.mrf.mxu1  ;;  %v7900_v14 = vadd.f32 %v7899_v63, %v7887_v62 }
 0x361   : > { %v7913_v16 = vadd.f32 %v7912_v0, %v7900_v14 }
 0x366   : > { %v7901_v3 = vpop.f32.mrf.mxu2 }
 0x367   : > { %v7914_v4 = vpop.f32.mrf.mxu3 }
 0x376   : > { %v7925_v5 = vpop.f32.mrf.mxu0 }
 0x377   : > { %v7938_v6 = vpop.f32.mrf.mxu1  ;;  %v7926_v17 = vadd.f32 %v7925_v5, %v7913_v16 }
 0x379   : > { %v7939_v22 = vadd.f32 %v7938_v6, %v7926_v17 }
 0x37e   : > { %v7951_v7 = vpop.f32.mrf.mxu2  ;;  %v7927_v9 = vpop.f32.mrf.mxu0 }
 0x37f   : > { %v7964_v8 = vpop.f32.mrf.mxu3  ;;  %v7940_v10 = vpop.f32.mrf.mxu1  ;;  %v7952_v23 = vadd.f32 %v7951_v7, %v7939_v22 }
 0x381   : > { %v7965_v25 = vadd.f32 %v7964_v8, %v7952_v23 }
 0x386   : > { %v7953_v11 = vpop.f32.mrf.mxu2 }
 0x387   : > { %v7966_v12 = vpop.f32.mrf.mxu3 }
 0x396   : > { %v7977_v13 = vpop.f32.mrf.mxu0 }
 0x397   : > { %v7990_v15 = vpop.f32.mrf.mxu1  ;;  %v7978_v27 = vadd.f32 %v7977_v13, %v7965_v25 }
 0x399   : > { %v7991_v28 = vadd.f32 %v7990_v15, %v7978_v27 }
 0x39e   : > { %v8003_v18 = vpop.f32.mrf.mxu2  ;;  %v7979_v19 = vpop.f32.mrf.mxu0 }
 0x39f   : > { %v8016_v20 = vpop.f32.mrf.mxu3  ;;  %v7992_v21 = vpop.f32.mrf.mxu1  ;;  %v8004_v29 = vadd.f32 %v8003_v18, %v7991_v28 }
 0x3a1   : > { %v8017_v30 = vadd.f32 %v8016_v20, %v8004_v29 }
 0x3a6   : > { %v8005_v24 = vpop.f32.mrf.mxu2 }
 0x3a7   : > { %v8018_v26 = vpop.f32.mrf.mxu3 }
 0x3b6   : > { %v8029_v31 = vpop.f32.mrf.mxu0 }
 0x3b7   : > { %v8030_v32 = vadd.f32 %v8029_v31, %v8017_v30  ;;  %v8042_v33 = vpop.f32.mrf.mxu1 }
 0x3b9   : > { %v8043_v35 = vadd.f32 %v8042_v33, %v8030_v32 }
 0x3bb   : > { %v8046_v36 = vadd.f32 %v8043_v35, %v264_v34  ;;  %8051 = sbr.rel (%p11311_p9) target bundleno = 972 (0x3cc), region = 40 }
 0x3bd   : > { %8047 = vst [vmem:[#allocation2] sm:$0x3] %v8046_v36 }
 0x3be   : > { %v8031_v37 = vpop.f32.mrf.mxu0 }
 0x3bf   : > { %v8044_v38 = vpop.f32.mrf.mxu1 }
 0x3c0   : > { %v12140_v40 = vld [vmem:[%s251_s27] ss:$0 sm:$0xff] }
 0x3c4   : > { %v8052_v39 = vld [vmem:[#allocation2] sm:$0x3] }
 0x3c5   : > { %v8057_v41 = vadd.f32 %v12140_v40, %v8052_v39 }
 0x3c7   : > { %v8058_v42 = vmax.f32 %v8057_v41, 0.0 }
 0x3c9   : > { %v8059_v43 = vpack.c.bf16 %v8058_v42, %v8058_v42 }
 0x3cb   : > { %8060 = vst [vmem:[%s258_s30] sm:$0x1] %v8059_v43 }
 0x3cc PF: > { %s13_s16 = sadd.s32 1, %s12179_s16   ;;  %s13106_s12 = smov %s12171_s14 }
 0x3cd   : > { %p10_p10 = scmp.ge.s32.totalorder %s13_s16, 10   ;;  %s13107_s13 = smov %s12175_s15 }
 0x3ce   : > { %s13108_s14 = smov %s13111_s17  ;;  %s13109_s15 = smov %s13115_s18 }
 0x3cf   :  { %12 = sbr.rel (!%p10_p10) target bundleno = 3 (0x3), region = 76 }

</bundles_post_ra>
